<compile_context>
chip_gen: v5e
topology: v5e:2x2
jax: 0.10.0
libtpu: 0.0.40
codegen_flags: <defaults>
</compile_context>

<pallas_src>
import math

import jax
import jax.numpy as jnp
from jax import lax
from jax.experimental import pallas as pl
from jax.experimental.pallas import tpu as pltpu

# ----------------------------- configuration --------------------------------
BASE_WIDTH = 26
SCALE = 4
EXPANSION = 4
LAYERS = [1, 1, 1, 1]          # small synthetic depth (one Bottle2neck / stage)
NUM_CLASSES = 2
BN_EPS = 1e-5


def _round_up(x, m):
    return (x + m - 1) // m * m


def _tile_targets():
    """(TM target, TN/TK target). 256-wide MXU on v6e/v7x, 128-wide on v5-."""
    try:
        kind = jax.devices()[0].device_kind.lower()
    except Exception:
        kind = ""
    if any(t in kind for t in ("v2", "v3", "v4", "v5")):
        return 512, 128
    return 256, 256


_TM_TGT, _TNK_TGT = _tile_targets()


def _pick_tnk(dim):
    """Tile size for a lane-aligned (N or K) dimension, given its real size."""
    dp = _round_up(dim, 128)
    if _TNK_TGT >= 256 and dp % 256 == 0:
        return 256
    return 128


# ------------------- Pallas kernel: fused GEMM + BN (+res) (+ReLU) ----------
def _make_gemm_kernel(relu, has_res):
    """acc += A @ B over the k grid axis; epilogue: acc*scale + bias
    (+ residual) (+ ReLU) -> out."""

    def kernel(*refs):
        if has_res:
            x_ref, w_ref, sb_ref, r_ref, o_ref, acc_ref = refs
        else:
            x_ref, w_ref, sb_ref, o_ref, acc_ref = refs
            r_ref = None
        k = pl.program_id(2)

        @pl.when(k == 0)
        def _():
            acc_ref[...] = jnp.zeros_like(acc_ref)

        acc_ref[...] += jnp.dot(
            x_ref[...], w_ref[...], preferred_element_type=jnp.float32
        )

        @pl.when(k == pl.num_programs(2) - 1)
        def _():
            y = acc_ref[...] * sb_ref[0:1, :] + sb_ref[1:2, :]
            if has_res:
                y = y + r_ref[...].astype(jnp.float32)
            if relu:
                y = jnp.maximum(y, 0.0)
            o_ref[...] = y.astype(o_ref.dtype)

    return kernel


def gemm_bn_act(x, packed, relu, residual=None, out_dtype=jnp.bfloat16):
    """x:(M,K) @ packed weight:(Kp,Np) with fused scale/bias/residual/ReLU."""
    M, K = x.shape
    assert K == packed["k"], (K, packed["k"])
    wp, sbp = packed["w"], packed["sb"]
    Kp, Np = wp.shape
    N, tk, tn = packed["n"], packed["tk"], packed["tn"]

    # M tile: as large as the target, but keep >= 2 parallel output blocks
    # when M allows it so both v7x TensorCores get work.
    tm = min(_TM_TGT, _round_up(M, 8))
    if pl.cdiv(_round_up(M, 8), tm) * (Np // tn) < 2 and M > 8:
        tm = _round_up(pl.cdiv(M, 2), 8)
    Mp = _round_up(M, tm)

    xp = jnp.pad(x.astype(jnp.bfloat16), ((0, Mp - M), (0, Kp - K)))

    in_specs = [
        pl.BlockSpec((tm, tk), lambda i, j, k: (i, k)),
        pl.BlockSpec((tk, tn), lambda i, j, k: (k, j)),
        pl.BlockSpec((2, tn), lambda i, j, k: (0, j)),
    ]
    args = [xp, wp, sbp]
    if residual is not None:
        rp = jnp.pad(residual.astype(jnp.bfloat16), ((0, Mp - M), (0, Np - N)))
        in_specs.append(pl.BlockSpec((tm, tn), lambda i, j, k: (i, j)))
        args.append(rp)

    out_bytes = Mp * Np * jnp.dtype(out_dtype).itemsize
    cost = pl.CostEstimate(
        flops=2 * Mp * Kp * Np,
        transcendentals=0,
        bytes_accessed=int(
            Mp * Kp * 2 + Kp * Np * 2 + out_bytes
            + (Mp * Np * 2 if residual is not None else 0)
        ),
    )

    out = pl.pallas_call(
        _make_gemm_kernel(relu, residual is not None),
        out_shape=jax.ShapeDtypeStruct((Mp, Np), out_dtype),
        grid_spec=pltpu.PrefetchScalarGridSpec(
            num_scalar_prefetch=0,
            grid=(Mp // tm, Np // tn, Kp // tk),
            in_specs=in_specs,
            out_specs=pl.BlockSpec((tm, tn), lambda i, j, k: (i, j)),
            scratch_shapes=[pltpu.VMEM((tm, tn), jnp.float32)],
        ),
        compiler_params=pltpu.CompilerParams(
            dimension_semantics=("parallel", "parallel", "arbitrary")
        ),
        cost_estimate=cost,
    )(*args)
    return out[:M, :N]


# ------------------------------ JAX glue ops ---------------------------------
def extract_patches(x, kh, kw, stride, pad):
    """x: NHWC -> (N, Ho, Wo, kh*kw*C) im2col patches (bf16, keeps DMA small)."""
    N, H, W, C = x.shape
    xp = jnp.pad(x, ((0, 0), (pad, pad), (pad, pad), (0, 0)))
    Ho = (H + 2 * pad - kh) // stride + 1
    Wo = (W + 2 * pad - kw) // stride + 1
    cols = []
    for i in range(kh):
        for j in range(kw):
            cols.append(xp[:, i:i + stride * Ho:stride, j:j + stride * Wo:stride, :])
    return jnp.concatenate(cols, axis=-1)


def conv_bn_act(x, packed, stride, pad, relu, residual=None):
    """Conv (pre-packed weights) + folded BN + optional residual/ReLU, NHWC."""
    kh, kw = packed["kh"], packed["kw"]
    if kh == 1 and kw == 1:
        if stride > 1:
            x = x[:, ::stride, ::stride, :]
        cols = x
    else:
        cols = extract_patches(x, kh, kw, stride, pad)
    N_, Ho, Wo, _ = cols.shape
    M = N_ * Ho * Wo
    res2d = residual.reshape(M, -1) if residual is not None else None
    out = gemm_bn_act(cols.reshape(M, -1), packed, relu, residual=res2d)
    return out.reshape(N_, Ho, Wo, packed["n"])


def maxpool3x3_s2_p1(x):
    return lax.reduce_window(
        x, jnp.asarray(-jnp.inf, x.dtype), lax.max,
        window_dimensions=(1, 3, 3, 1),
        window_strides=(1, 2, 2, 1),
        padding=((0, 0), (1, 1), (1, 1), (0, 0)),
    )


def avgpool3x3(x, stride):
    s = lax.reduce_window(
        x.astype(jnp.float32), jnp.float32(0.0), lax.add,
        window_dimensions=(1, 3, 3, 1),
        window_strides=(1, stride, stride, 1),
        padding=((0, 0), (1, 1), (1, 1), (0, 0)),
    )
    return (s / 9.0).astype(x.dtype)  # count_include_pad=True like torch


# --------------------------- parameter creation / packing --------------------
def init_conv(key, cin, cout, k):
    fan_in = cin * k * k
    return jax.random.normal(key, (cout, cin, k, k), jnp.float32) / math.sqrt(fan_in)


def init_bn(key, c):
    k1, k2, k3, k4 = jax.random.split(key, 4)
    gamma = jax.random.uniform(k1, (c,), minval=0.5, maxval=1.5)
    beta = jax.random.normal(k2, (c,)) * 0.1
    mean = jax.random.normal(k3, (c,)) * 0.1
    var = jax.random.uniform(k4, (c,), minval=0.5, maxval=1.5)
    scale = gamma / jnp.sqrt(var + BN_EPS)
    bias = beta - mean * scale
    return scale.astype(jnp.float32), bias.astype(jnp.float32)


def _pack_matrix(wm, scale, bias, kh=1, kw=1):
    """wm:(K,N) f32 -> padded bf16 weight + packed (2,Np) f32 scale/bias."""
    K, N = wm.shape
    tk, tn = _pick_tnk(K), _pick_tnk(N)
    Kp, Np = _round_up(K, 128), _round_up(N, 128)
    wp = jnp.pad(wm, ((0, Kp - K), (0, Np - N))).astype(jnp.bfloat16)
    sb = jnp.stack([scale, bias]).astype(jnp.float32)
    sbp = jnp.pad(sb, ((0, 0), (0, Np - N)))
    return {"w": wp, "sb": sbp, "k": K, "n": N, "tk": tk, "tn": tn,
            "kh": kh, "kw": kw}


def pack_conv(w_oihw, bn):
    cout, cin, kh, kw = w_oihw.shape
    wm = jnp.transpose(w_oihw, (2, 3, 1, 0)).reshape(kh * kw * cin, cout)
    return _pack_matrix(wm, bn[0], bn[1], kh, kw)


def pack_group_conv(w_list, bn_list, width):
    """Block-diagonal packing of the independent 3x3 branch convs (groups=3)."""
    nums = len(w_list)
    C = nums * width
    wfull = jnp.zeros((3, 3, C, C), jnp.float32)
    for i, w in enumerate(w_list):
        wfull = wfull.at[:, :, i * width:(i + 1) * width,
                         i * width:(i + 1) * width].set(
            jnp.transpose(w, (2, 3, 1, 0)))
    wm = wfull.reshape(9 * C, C)
    scale = jnp.concatenate([s for s, _ in bn_list])
    bias = jnp.concatenate([b for _, b in bn_list])
    return _pack_matrix(wm, scale, bias, 3, 3)


def pack_linear(w_torch, b):
    wm = jnp.transpose(w_torch)                      # (K, N)
    return _pack_matrix(wm, jnp.ones((wm.shape[1],), jnp.float32), b)


def init_block(keys, inplanes, planes, stride, has_downsample):
    width = int(math.floor(planes * (BASE_WIDTH / 64.0)))
    nums = SCALE - 1
    conv_ws = [init_conv(next(keys), width, width, 3) for _ in range(nums)]
    bns = [init_bn(next(keys), width) for _ in range(nums)]
    bp = {
        "width": width,
        "stride": stride,
        "stype": "stage" if has_downsample else "normal",
        "conv1": pack_conv(init_conv(next(keys), inplanes, width * SCALE, 1),
                           init_bn(next(keys), width * SCALE)),
        "conv3": pack_conv(init_conv(next(keys), width * SCALE,
                                     planes * EXPANSION, 1),
                           init_bn(next(keys), planes * EXPANSION)),
    }
    if bp["stype"] == "stage":
        bp["group_conv"] = pack_group_conv(conv_ws, bns, width)
    else:
        bp["convs"] = [pack_conv(w, bn) for w, bn in zip(conv_ws, bns)]
    if has_downsample:
        bp["downsample"] = pack_conv(
            init_conv(next(keys), inplanes, planes * EXPANSION, 1),
            init_bn(next(keys), planes * EXPANSION))
    return bp


def init_params(key):
    keys = iter(jax.random.split(key, 256))
    p = {"conv1": pack_conv(init_conv(next(keys), 3, 64, 7),
                            init_bn(next(keys), 64))}
    inplanes = 64
    layers_params = []
    for planes, blocks, stride in zip([64, 128, 256, 512], LAYERS, [1, 2, 2, 2]):
        blocks_p = []
        for b in range(blocks):
            s = stride if b == 0 else 1
            has_ds = b == 0 and (s != 1 or inplanes != planes * EXPANSION)
            blocks_p.append(init_block(keys, inplanes, planes, s, has_ds))
            inplanes = planes * EXPANSION
        layers_params.append(blocks_p)
    p["layers"] = layers_params
    fc_w = jax.random.normal(next(keys), (NUM_CLASSES, 512 * EXPANSION)) * 0.02
    fc_b = jax.random.normal(next(keys), (NUM_CLASSES,)) * 0.01
    p["fc"] = pack_linear(fc_w, fc_b)
    return p


# ------------------------------ model forward --------------------------------
def bottle2neck_forward(x, bp):
    stride, width = bp["stride"], bp["width"]
    nums = SCALE - 1

    out = conv_bn_act(x, bp["conv1"], stride=1, pad=0, relu=True)

    if bp["stype"] == "stage":
        # Branches are independent -> one block-diagonal (grouped) GEMM.
        branches = conv_bn_act(out[..., :nums * width], bp["group_conv"],
                               stride=stride, pad=1, relu=True)
        tail = avgpool3x3(out[..., nums * width:SCALE * width], stride)
        out = jnp.concatenate([branches, tail], axis=-1)
    else:
        spx = [out[..., i * width:(i + 1) * width] for i in range(SCALE)]
        parts, sp = [], None
        for i in range(nums):
            sp = spx[i] if i == 0 else sp + spx[i]
            sp = conv_bn_act(sp, bp["convs"][i], stride=stride, pad=1, relu=True)
            parts.append(sp)
        parts.append(spx[nums])
        out = jnp.concatenate(parts, axis=-1)

    if "downsample" in bp:
        residual = conv_bn_act(x, bp["downsample"], stride=stride, pad=0,
                               relu=False)
    else:
        residual = x
    # conv3 + BN + residual-add + ReLU fused into a single GEMM epilogue.
    return conv_bn_act(out, bp["conv3"], stride=1, pad=0, relu=True,
                       residual=residual)


def res2net_forward(x_nchw, p):
    x = jnp.transpose(x_nchw, (0, 2, 3, 1)).astype(jnp.bfloat16)  # NCHW -> NHWC
    x = conv_bn_act(x, p["conv1"], stride=2, pad=3, relu=True)
    x = maxpool3x3_s2_p1(x)
    for blocks_p in p["layers"]:
        for bp in blocks_p:
            x = bottle2neck_forward(x, bp)
    x = jnp.mean(x.astype(jnp.float32), axis=(1, 2))  # AdaptiveAvgPool2d(1)
    return gemm_bn_act(x, p["fc"], relu=False, out_dtype=jnp.float32)


# ---------------------------------- main -------------------------------------
if __name__ == "__main__":
    key = jax.random.PRNGKey(0)
    kx, kp = jax.random.split(key)
    x = jax.random.normal(kx, (2, 3, 32, 32), jnp.float32)
    params = init_params(kp)

    fwd = jax.jit(lambda inp: res2net_forward(inp, params))
    out = jax.block_until_ready(fwd(x))

    assert out.shape == (2, NUM_CLASSES), out.shape
    assert bool(jnp.all(jnp.isfinite(out)))
    print("KERNEL_OK")
</pallas_src>

<mosaic_0001>
module attributes {stable_mosaic.version = 11 : i64} {
  func.func @kernel(%arg0: i32, %arg1: i32, %arg2: i32, %arg3: memref<256x256xbf16, #tpu.memory_space<vmem>>, %arg4: memref<256x128xbf16, #tpu.memory_space<vmem>>, %arg5: memref<2x128xf32, #tpu.memory_space<vmem>>, %arg6: memref<256x128xbf16, #tpu.memory_space<vmem>>, %arg7: memref<256x128xf32, #tpu.memory_space<vmem>>) attributes {dimension_semantics = [#tpu.dimension_semantics<parallel>, #tpu.dimension_semantics<parallel>, #tpu.dimension_semantics<arbitrary>], iteration_bounds = array<i64: 2, 1, 1>, scalar_prefetch = 0 : i64, scratch_operands = 1 : i64, tpu.core_type = #tpu.core_type<tc>, window_params = [{transform_indices = @transform_0, window_bounds = array<i64: 256, 256>}, {transform_indices = @transform_1, window_bounds = array<i64: 256, 128>}, {transform_indices = @transform_2, window_bounds = array<i64: 2, 128>}, {transform_indices = @transform_3, window_bounds = array<i64: 256, 128>}]} {
    %c0_i32 = arith.constant 0 : i32
    %0 = arith.cmpi eq, %arg2, %c0_i32 : i32
    %1 = arith.extui %0 : i1 to i32
    %c0_i32_0 = arith.constant 0 : i32
    %2 = arith.cmpi ne, %1, %c0_i32_0 : i32
    scf.if %2 {
      %cst_10 = arith.constant 0.000000e+00 : f32
      %12 = vector.broadcast %cst_10 : f32 to vector<256x128xf32>
      %c0_11 = arith.constant 0 : index
      %c0_12 = arith.constant 0 : index
      %13 = vector.load %arg7[%c0_11, %c0_12] : memref<256x128xf32, #tpu.memory_space<vmem>>, vector<256x128xf32>
      tpu.vector_store %arg7[%c0_11, %c0_12], %12 {strides = array<i32>} : memref<256x128xf32, #tpu.memory_space<vmem>>, vector<256x128xf32>,
    } else {
    }
    %c0 = arith.constant 0 : index
    %c0_1 = arith.constant 0 : index
    %3 = vector.load %arg7[%c0, %c0_1] : memref<256x128xf32, #tpu.memory_space<vmem>>, vector<256x128xf32>
    %c0_2 = arith.constant 0 : index
    %c0_3 = arith.constant 0 : index
    %4 = vector.load %arg3[%c0_2, %c0_3] : memref<256x256xbf16, #tpu.memory_space<vmem>>, vector<256x256xbf16>
    %c0_4 = arith.constant 0 : index
    %c0_5 = arith.constant 0 : index
    %5 = vector.load %arg4[%c0_4, %c0_5] : memref<256x128xbf16, #tpu.memory_space<vmem>>, vector<256x128xbf16>
    %cst = arith.constant dense<0.000000e+00> : vector<256x128xf32>
    %6 = tpu.matmul %4, %5, %cst {dimension_numbers = #tpu.dot_dimension_numbers<[1], [0], [0], [1], [0, 0, 1, 1], [], []>} : vector<256x256xbf16>, vector<256x128xbf16>, vector<256x128xf32> -> vector<256x128xf32>
    %7 = arith.addf %3, %6 : vector<256x128xf32>
    %c0_6 = arith.constant 0 : index
    %c0_7 = arith.constant 0 : index
    %8 = vector.load %arg7[%c0_6, %c0_7] : memref<256x128xf32, #tpu.memory_space<vmem>>, vector<256x128xf32>
    tpu.vector_store %arg7[%c0_6, %c0_7], %7 {strides = array<i32>} : memref<256x128xf32, #tpu.memory_space<vmem>>, vector<256x128xf32>,
    %c0_i32_8 = arith.constant 0 : i32
    %9 = arith.cmpi eq, %arg2, %c0_i32_8 : i32
    %10 = arith.extui %9 : i1 to i32
    %c0_i32_9 = arith.constant 0 : i32
    %11 = arith.cmpi ne, %10, %c0_i32_9 : i32
    scf.if %11 {
      %c0_10 = arith.constant 0 : index
      %c0_11 = arith.constant 0 : index
      %12 = vector.load %arg7[%c0_10, %c0_11] : memref<256x128xf32, #tpu.memory_space<vmem>>, vector<256x128xf32>
      %c0_12 = arith.constant 0 : index
      %c0_13 = arith.constant 0 : index
      %13 = vector.load %arg5[%c0_12, %c0_13] : memref<2x128xf32, #tpu.memory_space<vmem>>, vector<1x128xf32>
      %14 = vector.broadcast %13 : vector<1x128xf32> to vector<256x128xf32>
      %15 = arith.mulf %12, %14 : vector<256x128xf32>
      %c1 = arith.constant 1 : index
      %c0_14 = arith.constant 0 : index
      %16 = vector.load %arg5[%c1, %c0_14] : memref<2x128xf32, #tpu.memory_space<vmem>>, vector<1x128xf32>
      %17 = vector.broadcast %16 : vector<1x128xf32> to vector<256x128xf32>
      %18 = arith.addf %15, %17 : vector<256x128xf32>
      %cst_15 = arith.constant 0.000000e+00 : f32
      %19 = vector.broadcast %cst_15 : f32 to vector<256x128xf32>
      %20 = arith.maximumf %18, %19 : vector<256x128xf32>
      %21 = arith.truncf %20 : vector<256x128xf32> to vector<256x128xbf16>
      %c0_16 = arith.constant 0 : index
      %c0_17 = arith.constant 0 : index
      %22 = vector.load %arg6[%c0_16, %c0_17] : memref<256x128xbf16, #tpu.memory_space<vmem>>, vector<256x128xbf16>
      tpu.vector_store %arg6[%c0_16, %c0_17], %21 {strides = array<i32>} : memref<256x128xbf16, #tpu.memory_space<vmem>>, vector<256x128xbf16>,
    } else {
    }
    return
  }
  func.func @transform_0(%arg0: i32, %arg1: i32, %arg2: i32) -> (i32, i32) {
    %c0_i32 = arith.constant 0 : i32
    return %arg0, %arg2 : i32, i32
  }
  func.func @transform_1(%arg0: i32, %arg1: i32, %arg2: i32) -> (i32, i32) {
    %c0_i32 = arith.constant 0 : i32
    return %arg2, %arg1 : i32, i32
  }
  func.func @transform_2(%arg0: i32, %arg1: i32, %arg2: i32) -> (i32, i32) {
    %c0_i32 = arith.constant 0 : i32
    %c0_i32_0 = arith.constant 0 : i32
    return %c0_i32, %arg1 : i32, i32
  }
  func.func @transform_3(%arg0: i32, %arg1: i32, %arg2: i32) -> (i32, i32) {
    %c0_i32 = arith.constant 0 : i32
    return %arg0, %arg1 : i32, i32
  }
}

module attributes {stable_mosaic.version = 11 : i64} {
  func.func @kernel(%arg0: i32, %arg1: i32, %arg2: i32, %arg3: memref<64x128xbf16, #tpu.memory_space<vmem>>, %arg4: memref<128x128xbf16, #tpu.memory_space<vmem>>, %arg5: memref<2x128xf32, #tpu.memory_space<vmem>>, %arg6: memref<64x128xbf16, #tpu.memory_space<vmem>>, %arg7: memref<64x128xf32, #tpu.memory_space<vmem>>) attributes {dimension_semantics = [#tpu.dimension_semantics<parallel>, #tpu.dimension_semantics<parallel>, #tpu.dimension_semantics<arbitrary>], iteration_bounds = array<i64: 2, 1, 1>, scalar_prefetch = 0 : i64, scratch_operands = 1 : i64, tpu.core_type = #tpu.core_type<tc>, window_params = [{transform_indices = @transform_0, window_bounds = array<i64: 64, 128>}, {transform_indices = @transform_1, window_bounds = array<i64: 128, 128>}, {transform_indices = @transform_2, window_bounds = array<i64: 2, 128>}, {transform_indices = @transform_3, window_bounds = array<i64: 64, 128>}]} {
    %c0_i32 = arith.constant 0 : i32
    %0 = arith.cmpi eq, %arg2, %c0_i32 : i32
    %1 = arith.extui %0 : i1 to i32
    %c0_i32_0 = arith.constant 0 : i32
    %2 = arith.cmpi ne, %1, %c0_i32_0 : i32
    scf.if %2 {
      %cst_10 = arith.constant 0.000000e+00 : f32
      %12 = vector.broadcast %cst_10 : f32 to vector<64x128xf32>
      %c0_11 = arith.constant 0 : index
      %c0_12 = arith.constant 0 : index
      %13 = vector.load %arg7[%c0_11, %c0_12] : memref<64x128xf32, #tpu.memory_space<vmem>>, vector<64x128xf32>
      tpu.vector_store %arg7[%c0_11, %c0_12], %12 {strides = array<i32>} : memref<64x128xf32, #tpu.memory_space<vmem>>, vector<64x128xf32>,
    } else {
    }
    %c0 = arith.constant 0 : index
    %c0_1 = arith.constant 0 : index
    %3 = vector.load %arg7[%c0, %c0_1] : memref<64x128xf32, #tpu.memory_space<vmem>>, vector<64x128xf32>
    %c0_2 = arith.constant 0 : index
    %c0_3 = arith.constant 0 : index
    %4 = vector.load %arg3[%c0_2, %c0_3] : memref<64x128xbf16, #tpu.memory_space<vmem>>, vector<64x128xbf16>
    %c0_4 = arith.constant 0 : index
    %c0_5 = arith.constant 0 : index
    %5 = vector.load %arg4[%c0_4, %c0_5] : memref<128x128xbf16, #tpu.memory_space<vmem>>, vector<128x128xbf16>
    %cst = arith.constant dense<0.000000e+00> : vector<64x128xf32>
    %6 = tpu.matmul %4, %5, %cst {dimension_numbers = #tpu.dot_dimension_numbers<[1], [0], [0], [1], [0, 0, 1, 1], [], []>} : vector<64x128xbf16>, vector<128x128xbf16>, vector<64x128xf32> -> vector<64x128xf32>
    %7 = arith.addf %3, %6 : vector<64x128xf32>
    %c0_6 = arith.constant 0 : index
    %c0_7 = arith.constant 0 : index
    %8 = vector.load %arg7[%c0_6, %c0_7] : memref<64x128xf32, #tpu.memory_space<vmem>>, vector<64x128xf32>
    tpu.vector_store %arg7[%c0_6, %c0_7], %7 {strides = array<i32>} : memref<64x128xf32, #tpu.memory_space<vmem>>, vector<64x128xf32>,
    %c0_i32_8 = arith.constant 0 : i32
    %9 = arith.cmpi eq, %arg2, %c0_i32_8 : i32
    %10 = arith.extui %9 : i1 to i32
    %c0_i32_9 = arith.constant 0 : i32
    %11 = arith.cmpi ne, %10, %c0_i32_9 : i32
    scf.if %11 {
      %c0_10 = arith.constant 0 : index
      %c0_11 = arith.constant 0 : index
      %12 = vector.load %arg7[%c0_10, %c0_11] : memref<64x128xf32, #tpu.memory_space<vmem>>, vector<64x128xf32>
      %c0_12 = arith.constant 0 : index
      %c0_13 = arith.constant 0 : index
      %13 = vector.load %arg5[%c0_12, %c0_13] : memref<2x128xf32, #tpu.memory_space<vmem>>, vector<1x128xf32>
      %14 = vector.broadcast %13 : vector<1x128xf32> to vector<64x128xf32>
      %15 = arith.mulf %12, %14 : vector<64x128xf32>
      %c1 = arith.constant 1 : index
      %c0_14 = arith.constant 0 : index
      %16 = vector.load %arg5[%c1, %c0_14] : memref<2x128xf32, #tpu.memory_space<vmem>>, vector<1x128xf32>
      %17 = vector.broadcast %16 : vector<1x128xf32> to vector<64x128xf32>
      %18 = arith.addf %15, %17 : vector<64x128xf32>
      %cst_15 = arith.constant 0.000000e+00 : f32
      %19 = vector.broadcast %cst_15 : f32 to vector<64x128xf32>
      %20 = arith.maximumf %18, %19 : vector<64x128xf32>
      %21 = arith.truncf %20 : vector<64x128xf32> to vector<64x128xbf16>
      %c0_16 = arith.constant 0 : index
      %c0_17 = arith.constant 0 : index
      %22 = vector.load %arg6[%c0_16, %c0_17] : memref<64x128xbf16, #tpu.memory_space<vmem>>, vector<64x128xbf16>
      tpu.vector_store %arg6[%c0_16, %c0_17], %21 {strides = array<i32>} : memref<64x128xbf16, #tpu.memory_space<vmem>>, vector<64x128xbf16>,
    } else {
    }
    return
  }
  func.func @transform_0(%arg0: i32, %arg1: i32, %arg2: i32) -> (i32, i32) {
    %c0_i32 = arith.constant 0 : i32
    return %arg0, %arg2 : i32, i32
  }
  func.func @transform_1(%arg0: i32, %arg1: i32, %arg2: i32) -> (i32, i32) {
    %c0_i32 = arith.constant 0 : i32
    return %arg2, %arg1 : i32, i32
  }
  func.func @transform_2(%arg0: i32, %arg1: i32, %arg2: i32) -> (i32, i32) {
    %c0_i32 = arith.constant 0 : i32
    %c0_i32_0 = arith.constant 0 : i32
    return %c0_i32, %arg1 : i32, i32
  }
  func.func @transform_3(%arg0: i32, %arg1: i32, %arg2: i32) -> (i32, i32) {
    %c0_i32 = arith.constant 0 : i32
    return %arg0, %arg1 : i32, i32
  }
}

module attributes {stable_mosaic.version = 11 : i64} {
  func.func @kernel(%arg0: i32, %arg1: i32, %arg2: i32, %arg3: memref<64x256xbf16, #tpu.memory_space<vmem>>, %arg4: memref<256x128xbf16, #tpu.memory_space<vmem>>, %arg5: memref<2x128xf32, #tpu.memory_space<vmem>>, %arg6: memref<64x128xbf16, #tpu.memory_space<vmem>>, %arg7: memref<64x128xf32, #tpu.memory_space<vmem>>) attributes {dimension_semantics = [#tpu.dimension_semantics<parallel>, #tpu.dimension_semantics<parallel>, #tpu.dimension_semantics<arbitrary>], iteration_bounds = array<i64: 2, 1, 3>, scalar_prefetch = 0 : i64, scratch_operands = 1 : i64, tpu.core_type = #tpu.core_type<tc>, window_params = [{transform_indices = @transform_0, window_bounds = array<i64: 64, 256>}, {transform_indices = @transform_1, window_bounds = array<i64: 256, 128>}, {transform_indices = @transform_2, window_bounds = array<i64: 2, 128>}, {transform_indices = @transform_3, window_bounds = array<i64: 64, 128>}]} {
    %c0_i32 = arith.constant 0 : i32
    %0 = arith.cmpi eq, %arg2, %c0_i32 : i32
    %1 = arith.extui %0 : i1 to i32
    %c0_i32_0 = arith.constant 0 : i32
    %2 = arith.cmpi ne, %1, %c0_i32_0 : i32
    scf.if %2 {
      %cst_9 = arith.constant 0.000000e+00 : f32
      %12 = vector.broadcast %cst_9 : f32 to vector<64x128xf32>
      %c0_10 = arith.constant 0 : index
      %c0_11 = arith.constant 0 : index
      %13 = vector.load %arg7[%c0_10, %c0_11] : memref<64x128xf32, #tpu.memory_space<vmem>>, vector<64x128xf32>
      tpu.vector_store %arg7[%c0_10, %c0_11], %12 {strides = array<i32>} : memref<64x128xf32, #tpu.memory_space<vmem>>, vector<64x128xf32>,
    } else {
    }
    %c0 = arith.constant 0 : index
    %c0_1 = arith.constant 0 : index
    %3 = vector.load %arg7[%c0, %c0_1] : memref<64x128xf32, #tpu.memory_space<vmem>>, vector<64x128xf32>
    %c0_2 = arith.constant 0 : index
    %c0_3 = arith.constant 0 : index
    %4 = vector.load %arg3[%c0_2, %c0_3] : memref<64x256xbf16, #tpu.memory_space<vmem>>, vector<64x256xbf16>
    %c0_4 = arith.constant 0 : index
    %c0_5 = arith.constant 0 : index
    %5 = vector.load %arg4[%c0_4, %c0_5] : memref<256x128xbf16, #tpu.memory_space<vmem>>, vector<256x128xbf16>
    %cst = arith.constant dense<0.000000e+00> : vector<64x128xf32>
    %6 = tpu.matmul %4, %5, %cst {dimension_numbers = #tpu.dot_dimension_numbers<[1], [0], [0], [1], [0, 0, 1, 1], [], []>} : vector<64x256xbf16>, vector<256x128xbf16>, vector<64x128xf32> -> vector<64x128xf32>
    %7 = arith.addf %3, %6 : vector<64x128xf32>
    %c0_6 = arith.constant 0 : index
    %c0_7 = arith.constant 0 : index
    %8 = vector.load %arg7[%c0_6, %c0_7] : memref<64x128xf32, #tpu.memory_space<vmem>>, vector<64x128xf32>
    tpu.vector_store %arg7[%c0_6, %c0_7], %7 {strides = array<i32>} : memref<64x128xf32, #tpu.memory_space<vmem>>, vector<64x128xf32>,
    %c2_i32 = arith.constant 2 : i32
    %9 = arith.cmpi eq, %arg2, %c2_i32 : i32
    %10 = arith.extui %9 : i1 to i32
    %c0_i32_8 = arith.constant 0 : i32
    %11 = arith.cmpi ne, %10, %c0_i32_8 : i32
    scf.if %11 {
      %c0_9 = arith.constant 0 : index
      %c0_10 = arith.constant 0 : index
      %12 = vector.load %arg7[%c0_9, %c0_10] : memref<64x128xf32, #tpu.memory_space<vmem>>, vector<64x128xf32>
      %c0_11 = arith.constant 0 : index
      %c0_12 = arith.constant 0 : index
      %13 = vector.load %arg5[%c0_11, %c0_12] : memref<2x128xf32, #tpu.memory_space<vmem>>, vector<1x128xf32>
      %14 = vector.broadcast %13 : vector<1x128xf32> to vector<64x128xf32>
      %15 = arith.mulf %12, %14 : vector<64x128xf32>
      %c1 = arith.constant 1 : index
      %c0_13 = arith.constant 0 : index
      %16 = vector.load %arg5[%c1, %c0_13] : memref<2x128xf32, #tpu.memory_space<vmem>>, vector<1x128xf32>
      %17 = vector.broadcast %16 : vector<1x128xf32> to vector<64x128xf32>
      %18 = arith.addf %15, %17 : vector<64x128xf32>
      %cst_14 = arith.constant 0.000000e+00 : f32
      %19 = vector.broadcast %cst_14 : f32 to vector<64x128xf32>
      %20 = arith.maximumf %18, %19 : vector<64x128xf32>
      %21 = arith.truncf %20 : vector<64x128xf32> to vector<64x128xbf16>
      %c0_15 = arith.constant 0 : index
      %c0_16 = arith.constant 0 : index
      %22 = vector.load %arg6[%c0_15, %c0_16] : memref<64x128xbf16, #tpu.memory_space<vmem>>, vector<64x128xbf16>
      tpu.vector_store %arg6[%c0_15, %c0_16], %21 {strides = array<i32>} : memref<64x128xbf16, #tpu.memory_space<vmem>>, vector<64x128xbf16>,
    } else {
    }
    return
  }
  func.func @transform_0(%arg0: i32, %arg1: i32, %arg2: i32) -> (i32, i32) {
    %c0_i32 = arith.constant 0 : i32
    return %arg0, %arg2 : i32, i32
  }
  func.func @transform_1(%arg0: i32, %arg1: i32, %arg2: i32) -> (i32, i32) {
    %c0_i32 = arith.constant 0 : i32
    return %arg2, %arg1 : i32, i32
  }
  func.func @transform_2(%arg0: i32, %arg1: i32, %arg2: i32) -> (i32, i32) {
    %c0_i32 = arith.constant 0 : i32
    %c0_i32_0 = arith.constant 0 : i32
    return %c0_i32, %arg1 : i32, i32
  }
  func.func @transform_3(%arg0: i32, %arg1: i32, %arg2: i32) -> (i32, i32) {
    %c0_i32 = arith.constant 0 : i32
    return %arg0, %arg1 : i32, i32
  }
}

module attributes {stable_mosaic.version = 11 : i64} {
  func.func @kernel(%arg0: i32, %arg1: i32, %arg2: i32, %arg3: memref<64x128xbf16, #tpu.memory_space<vmem>>, %arg4: memref<128x256xbf16, #tpu.memory_space<vmem>>, %arg5: memref<2x256xf32, #tpu.memory_space<vmem>>, %arg6: memref<64x256xbf16, #tpu.memory_space<vmem>>, %arg7: memref<64x256xf32, #tpu.memory_space<vmem>>) attributes {dimension_semantics = [#tpu.dimension_semantics<parallel>, #tpu.dimension_semantics<parallel>, #tpu.dimension_semantics<arbitrary>], iteration_bounds = array<i64: 2, 1, 1>, scalar_prefetch = 0 : i64, scratch_operands = 1 : i64, tpu.core_type = #tpu.core_type<tc>, window_params = [{transform_indices = @transform_0, window_bounds = array<i64: 64, 128>}, {transform_indices = @transform_1, window_bounds = array<i64: 128, 256>}, {transform_indices = @transform_2, window_bounds = array<i64: 2, 256>}, {transform_indices = @transform_3, window_bounds = array<i64: 64, 256>}]} {
    %c0_i32 = arith.constant 0 : i32
    %0 = arith.cmpi eq, %arg2, %c0_i32 : i32
    %1 = arith.extui %0 : i1 to i32
    %c0_i32_0 = arith.constant 0 : i32
    %2 = arith.cmpi ne, %1, %c0_i32_0 : i32
    scf.if %2 {
      %cst_10 = arith.constant 0.000000e+00 : f32
      %12 = vector.broadcast %cst_10 : f32 to vector<64x256xf32>
      %c0_11 = arith.constant 0 : index
      %c0_12 = arith.constant 0 : index
      %13 = vector.load %arg7[%c0_11, %c0_12] : memref<64x256xf32, #tpu.memory_space<vmem>>, vector<64x256xf32>
      tpu.vector_store %arg7[%c0_11, %c0_12], %12 {strides = array<i32>} : memref<64x256xf32, #tpu.memory_space<vmem>>, vector<64x256xf32>,
    } else {
    }
    %c0 = arith.constant 0 : index
    %c0_1 = arith.constant 0 : index
    %3 = vector.load %arg7[%c0, %c0_1] : memref<64x256xf32, #tpu.memory_space<vmem>>, vector<64x256xf32>
    %c0_2 = arith.constant 0 : index
    %c0_3 = arith.constant 0 : index
    %4 = vector.load %arg3[%c0_2, %c0_3] : memref<64x128xbf16, #tpu.memory_space<vmem>>, vector<64x128xbf16>
    %c0_4 = arith.constant 0 : index
    %c0_5 = arith.constant 0 : index
    %5 = vector.load %arg4[%c0_4, %c0_5] : memref<128x256xbf16, #tpu.memory_space<vmem>>, vector<128x256xbf16>
    %cst = arith.constant dense<0.000000e+00> : vector<64x256xf32>
    %6 = tpu.matmul %4, %5, %cst {dimension_numbers = #tpu.dot_dimension_numbers<[1], [0], [0], [1], [0, 0, 1, 1], [], []>} : vector<64x128xbf16>, vector<128x256xbf16>, vector<64x256xf32> -> vector<64x256xf32>
    %7 = arith.addf %3, %6 : vector<64x256xf32>
    %c0_6 = arith.constant 0 : index
    %c0_7 = arith.constant 0 : index
    %8 = vector.load %arg7[%c0_6, %c0_7] : memref<64x256xf32, #tpu.memory_space<vmem>>, vector<64x256xf32>
    tpu.vector_store %arg7[%c0_6, %c0_7], %7 {strides = array<i32>} : memref<64x256xf32, #tpu.memory_space<vmem>>, vector<64x256xf32>,
    %c0_i32_8 = arith.constant 0 : i32
    %9 = arith.cmpi eq, %arg2, %c0_i32_8 : i32
    %10 = arith.extui %9 : i1 to i32
    %c0_i32_9 = arith.constant 0 : i32
    %11 = arith.cmpi ne, %10, %c0_i32_9 : i32
    scf.if %11 {
      %c0_10 = arith.constant 0 : index
      %c0_11 = arith.constant 0 : index
      %12 = vector.load %arg7[%c0_10, %c0_11] : memref<64x256xf32, #tpu.memory_space<vmem>>, vector<64x256xf32>
      %c0_12 = arith.constant 0 : index
      %c0_13 = arith.constant 0 : index
      %13 = vector.load %arg5[%c0_12, %c0_13] : memref<2x256xf32, #tpu.memory_space<vmem>>, vector<1x256xf32>
      %14 = vector.broadcast %13 : vector<1x256xf32> to vector<64x256xf32>
      %15 = arith.mulf %12, %14 : vector<64x256xf32>
      %c1 = arith.constant 1 : index
      %c0_14 = arith.constant 0 : index
      %16 = vector.load %arg5[%c1, %c0_14] : memref<2x256xf32, #tpu.memory_space<vmem>>, vector<1x256xf32>
      %17 = vector.broadcast %16 : vector<1x256xf32> to vector<64x256xf32>
      %18 = arith.addf %15, %17 : vector<64x256xf32>
      %19 = arith.truncf %18 : vector<64x256xf32> to vector<64x256xbf16>
      %c0_15 = arith.constant 0 : index
      %c0_16 = arith.constant 0 : index
      %20 = vector.load %arg6[%c0_15, %c0_16] : memref<64x256xbf16, #tpu.memory_space<vmem>>, vector<64x256xbf16>
      tpu.vector_store %arg6[%c0_15, %c0_16], %19 {strides = array<i32>} : memref<64x256xbf16, #tpu.memory_space<vmem>>, vector<64x256xbf16>,
    } else {
    }
    return
  }
  func.func @transform_0(%arg0: i32, %arg1: i32, %arg2: i32) -> (i32, i32) {
    %c0_i32 = arith.constant 0 : i32
    return %arg0, %arg2 : i32, i32
  }
  func.func @transform_1(%arg0: i32, %arg1: i32, %arg2: i32) -> (i32, i32) {
    %c0_i32 = arith.constant 0 : i32
    return %arg2, %arg1 : i32, i32
  }
  func.func @transform_2(%arg0: i32, %arg1: i32, %arg2: i32) -> (i32, i32) {
    %c0_i32 = arith.constant 0 : i32
    %c0_i32_0 = arith.constant 0 : i32
    return %c0_i32, %arg1 : i32, i32
  }
  func.func @transform_3(%arg0: i32, %arg1: i32, %arg2: i32) -> (i32, i32) {
    %c0_i32 = arith.constant 0 : i32
    return %arg0, %arg1 : i32, i32
  }
}

module attributes {stable_mosaic.version = 11 : i64} {
  func.func @kernel(%arg0: i32, %arg1: i32, %arg2: i32, %arg3: memref<64x128xbf16, #tpu.memory_space<vmem>>, %arg4: memref<128x256xbf16, #tpu.memory_space<vmem>>, %arg5: memref<2x256xf32, #tpu.memory_space<vmem>>, %arg6: memref<64x256xbf16, #tpu.memory_space<vmem>>, %arg7: memref<64x256xbf16, #tpu.memory_space<vmem>>, %arg8: memref<64x256xf32, #tpu.memory_space<vmem>>) attributes {dimension_semantics = [#tpu.dimension_semantics<parallel>, #tpu.dimension_semantics<parallel>, #tpu.dimension_semantics<arbitrary>], iteration_bounds = array<i64: 2, 1, 1>, scalar_prefetch = 0 : i64, scratch_operands = 1 : i64, tpu.core_type = #tpu.core_type<tc>, window_params = [{transform_indices = @transform_0, window_bounds = array<i64: 64, 128>}, {transform_indices = @transform_1, window_bounds = array<i64: 128, 256>}, {transform_indices = @transform_2, window_bounds = array<i64: 2, 256>}, {transform_indices = @transform_3, window_bounds = array<i64: 64, 256>}, {transform_indices = @transform_4, window_bounds = array<i64: 64, 256>}]} {
    %c0_i32 = arith.constant 0 : i32
    %0 = arith.cmpi eq, %arg2, %c0_i32 : i32
    %1 = arith.extui %0 : i1 to i32
    %c0_i32_0 = arith.constant 0 : i32
    %2 = arith.cmpi ne, %1, %c0_i32_0 : i32
    scf.if %2 {
      %cst_10 = arith.constant 0.000000e+00 : f32
      %12 = vector.broadcast %cst_10 : f32 to vector<64x256xf32>
      %c0_11 = arith.constant 0 : index
      %c0_12 = arith.constant 0 : index
      %13 = vector.load %arg8[%c0_11, %c0_12] : memref<64x256xf32, #tpu.memory_space<vmem>>, vector<64x256xf32>
      tpu.vector_store %arg8[%c0_11, %c0_12], %12 {strides = array<i32>} : memref<64x256xf32, #tpu.memory_space<vmem>>, vector<64x256xf32>,
    } else {
    }
    %c0 = arith.constant 0 : index
    %c0_1 = arith.constant 0 : index
    %3 = vector.load %arg8[%c0, %c0_1] : memref<64x256xf32, #tpu.memory_space<vmem>>, vector<64x256xf32>
    %c0_2 = arith.constant 0 : index
    %c0_3 = arith.constant 0 : index
    %4 = vector.load %arg3[%c0_2, %c0_3] : memref<64x128xbf16, #tpu.memory_space<vmem>>, vector<64x128xbf16>
    %c0_4 = arith.constant 0 : index
    %c0_5 = arith.constant 0 : index
    %5 = vector.load %arg4[%c0_4, %c0_5] : memref<128x256xbf16, #tpu.memory_space<vmem>>, vector<128x256xbf16>
    %cst = arith.constant dense<0.000000e+00> : vector<64x256xf32>
    %6 = tpu.matmul %4, %5, %cst {dimension_numbers = #tpu.dot_dimension_numbers<[1], [0], [0], [1], [0, 0, 1, 1], [], []>} : vector<64x128xbf16>, vector<128x256xbf16>, vector<64x256xf32> -> vector<64x256xf32>
    %7 = arith.addf %3, %6 : vector<64x256xf32>
    %c0_6 = arith.constant 0 : index
    %c0_7 = arith.constant 0 : index
    %8 = vector.load %arg8[%c0_6, %c0_7] : memref<64x256xf32, #tpu.memory_space<vmem>>, vector<64x256xf32>
    tpu.vector_store %arg8[%c0_6, %c0_7], %7 {strides = array<i32>} : memref<64x256xf32, #tpu.memory_space<vmem>>, vector<64x256xf32>,
    %c0_i32_8 = arith.constant 0 : i32
    %9 = arith.cmpi eq, %arg2, %c0_i32_8 : i32
    %10 = arith.extui %9 : i1 to i32
    %c0_i32_9 = arith.constant 0 : i32
    %11 = arith.cmpi ne, %10, %c0_i32_9 : i32
    scf.if %11 {
      %c0_10 = arith.constant 0 : index
      %c0_11 = arith.constant 0 : index
      %12 = vector.load %arg8[%c0_10, %c0_11] : memref<64x256xf32, #tpu.memory_space<vmem>>, vector<64x256xf32>
      %c0_12 = arith.constant 0 : index
      %c0_13 = arith.constant 0 : index
      %13 = vector.load %arg5[%c0_12, %c0_13] : memref<2x256xf32, #tpu.memory_space<vmem>>, vector<1x256xf32>
      %14 = vector.broadcast %13 : vector<1x256xf32> to vector<64x256xf32>
      %15 = arith.mulf %12, %14 : vector<64x256xf32>
      %c1 = arith.constant 1 : index
      %c0_14 = arith.constant 0 : index
      %16 = vector.load %arg5[%c1, %c0_14] : memref<2x256xf32, #tpu.memory_space<vmem>>, vector<1x256xf32>
      %17 = vector.broadcast %16 : vector<1x256xf32> to vector<64x256xf32>
      %18 = arith.addf %15, %17 : vector<64x256xf32>
      %c0_15 = arith.constant 0 : index
      %c0_16 = arith.constant 0 : index
      %19 = vector.load %arg6[%c0_15, %c0_16] : memref<64x256xbf16, #tpu.memory_space<vmem>>, vector<64x256xbf16>
      %20 = arith.extf %19 : vector<64x256xbf16> to vector<64x256xf32>
      %21 = arith.addf %18, %20 : vector<64x256xf32>
      %cst_17 = arith.constant 0.000000e+00 : f32
      %22 = vector.broadcast %cst_17 : f32 to vector<64x256xf32>
      %23 = arith.maximumf %21, %22 : vector<64x256xf32>
      %24 = arith.truncf %23 : vector<64x256xf32> to vector<64x256xbf16>
      %c0_18 = arith.constant 0 : index
      %c0_19 = arith.constant 0 : index
      %25 = vector.load %arg7[%c0_18, %c0_19] : memref<64x256xbf16, #tpu.memory_space<vmem>>, vector<64x256xbf16>
      tpu.vector_store %arg7[%c0_18, %c0_19], %24 {strides = array<i32>} : memref<64x256xbf16, #tpu.memory_space<vmem>>, vector<64x256xbf16>,
    } else {
    }
    return
  }
  func.func @transform_0(%arg0: i32, %arg1: i32, %arg2: i32) -> (i32, i32) {
    %c0_i32 = arith.constant 0 : i32
    return %arg0, %arg2 : i32, i32
  }
  func.func @transform_1(%arg0: i32, %arg1: i32, %arg2: i32) -> (i32, i32) {
    %c0_i32 = arith.constant 0 : i32
    return %arg2, %arg1 : i32, i32
  }
  func.func @transform_2(%arg0: i32, %arg1: i32, %arg2: i32) -> (i32, i32) {
    %c0_i32 = arith.constant 0 : i32
    %c0_i32_0 = arith.constant 0 : i32
    return %c0_i32, %arg1 : i32, i32
  }
  func.func @transform_3(%arg0: i32, %arg1: i32, %arg2: i32) -> (i32, i32) {
    %c0_i32 = arith.constant 0 : i32
    return %arg0, %arg1 : i32, i32
  }
  func.func @transform_4(%arg0: i32, %arg1: i32, %arg2: i32) -> (i32, i32) {
    %c0_i32 = arith.constant 0 : i32
    return %arg0, %arg1 : i32, i32
  }
}

module attributes {stable_mosaic.version = 11 : i64} {
  func.func @kernel(%arg0: i32, %arg1: i32, %arg2: i32, %arg3: memref<64x256xbf16, #tpu.memory_space<vmem>>, %arg4: memref<256x256xbf16, #tpu.memory_space<vmem>>, %arg5: memref<2x256xf32, #tpu.memory_space<vmem>>, %arg6: memref<64x256xbf16, #tpu.memory_space<vmem>>, %arg7: memref<64x256xf32, #tpu.memory_space<vmem>>) attributes {dimension_semantics = [#tpu.dimension_semantics<parallel>, #tpu.dimension_semantics<parallel>, #tpu.dimension_semantics<arbitrary>], iteration_bounds = array<i64: 2, 1, 1>, scalar_prefetch = 0 : i64, scratch_operands = 1 : i64, tpu.core_type = #tpu.core_type<tc>, window_params = [{transform_indices = @transform_0, window_bounds = array<i64: 64, 256>}, {transform_indices = @transform_1, window_bounds = array<i64: 256, 256>}, {transform_indices = @transform_2, window_bounds = array<i64: 2, 256>}, {transform_indices = @transform_3, window_bounds = array<i64: 64, 256>}]} {
    %c0_i32 = arith.constant 0 : i32
    %0 = arith.cmpi eq, %arg2, %c0_i32 : i32
    %1 = arith.extui %0 : i1 to i32
    %c0_i32_0 = arith.constant 0 : i32
    %2 = arith.cmpi ne, %1, %c0_i32_0 : i32
    scf.if %2 {
      %cst_10 = arith.constant 0.000000e+00 : f32
      %12 = vector.broadcast %cst_10 : f32 to vector<64x256xf32>
      %c0_11 = arith.constant 0 : index
      %c0_12 = arith.constant 0 : index
      %13 = vector.load %arg7[%c0_11, %c0_12] : memref<64x256xf32, #tpu.memory_space<vmem>>, vector<64x256xf32>
      tpu.vector_store %arg7[%c0_11, %c0_12], %12 {strides = array<i32>} : memref<64x256xf32, #tpu.memory_space<vmem>>, vector<64x256xf32>,
    } else {
    }
    %c0 = arith.constant 0 : index
    %c0_1 = arith.constant 0 : index
    %3 = vector.load %arg7[%c0, %c0_1] : memref<64x256xf32, #tpu.memory_space<vmem>>, vector<64x256xf32>
    %c0_2 = arith.constant 0 : index
    %c0_3 = arith.constant 0 : index
    %4 = vector.load %arg3[%c0_2, %c0_3] : memref<64x256xbf16, #tpu.memory_space<vmem>>, vector<64x256xbf16>
    %c0_4 = arith.constant 0 : index
    %c0_5 = arith.constant 0 : index
    %5 = vector.load %arg4[%c0_4, %c0_5] : memref<256x256xbf16, #tpu.memory_space<vmem>>, vector<256x256xbf16>
    %cst = arith.constant dense<0.000000e+00> : vector<64x256xf32>
    %6 = tpu.matmul %4, %5, %cst {dimension_numbers = #tpu.dot_dimension_numbers<[1], [0], [0], [1], [0, 0, 1, 1], [], []>} : vector<64x256xbf16>, vector<256x256xbf16>, vector<64x256xf32> -> vector<64x256xf32>
    %7 = arith.addf %3, %6 : vector<64x256xf32>
    %c0_6 = arith.constant 0 : index
    %c0_7 = arith.constant 0 : index
    %8 = vector.load %arg7[%c0_6, %c0_7] : memref<64x256xf32, #tpu.memory_space<vmem>>, vector<64x256xf32>
    tpu.vector_store %arg7[%c0_6, %c0_7], %7 {strides = array<i32>} : memref<64x256xf32, #tpu.memory_space<vmem>>, vector<64x256xf32>,
    %c0_i32_8 = arith.constant 0 : i32
    %9 = arith.cmpi eq, %arg2, %c0_i32_8 : i32
    %10 = arith.extui %9 : i1 to i32
    %c0_i32_9 = arith.constant 0 : i32
    %11 = arith.cmpi ne, %10, %c0_i32_9 : i32
    scf.if %11 {
      %c0_10 = arith.constant 0 : index
      %c0_11 = arith.constant 0 : index
      %12 = vector.load %arg7[%c0_10, %c0_11] : memref<64x256xf32, #tpu.memory_space<vmem>>, vector<64x256xf32>
      %c0_12 = arith.constant 0 : index
      %c0_13 = arith.constant 0 : index
      %13 = vector.load %arg5[%c0_12, %c0_13] : memref<2x256xf32, #tpu.memory_space<vmem>>, vector<1x256xf32>
      %14 = vector.broadcast %13 : vector<1x256xf32> to vector<64x256xf32>
      %15 = arith.mulf %12, %14 : vector<64x256xf32>
      %c1 = arith.constant 1 : index
      %c0_14 = arith.constant 0 : index
      %16 = vector.load %arg5[%c1, %c0_14] : memref<2x256xf32, #tpu.memory_space<vmem>>, vector<1x256xf32>
      %17 = vector.broadcast %16 : vector<1x256xf32> to vector<64x256xf32>
      %18 = arith.addf %15, %17 : vector<64x256xf32>
      %cst_15 = arith.constant 0.000000e+00 : f32
      %19 = vector.broadcast %cst_15 : f32 to vector<64x256xf32>
      %20 = arith.maximumf %18, %19 : vector<64x256xf32>
      %21 = arith.truncf %20 : vector<64x256xf32> to vector<64x256xbf16>
      %c0_16 = arith.constant 0 : index
      %c0_17 = arith.constant 0 : index
      %22 = vector.load %arg6[%c0_16, %c0_17] : memref<64x256xbf16, #tpu.memory_space<vmem>>, vector<64x256xbf16>
      tpu.vector_store %arg6[%c0_16, %c0_17], %21 {strides = array<i32>} : memref<64x256xbf16, #tpu.memory_space<vmem>>, vector<64x256xbf16>,
    } else {
    }
    return
  }
  func.func @transform_0(%arg0: i32, %arg1: i32, %arg2: i32) -> (i32, i32) {
    %c0_i32 = arith.constant 0 : i32
    return %arg0, %arg2 : i32, i32
  }
  func.func @transform_1(%arg0: i32, %arg1: i32, %arg2: i32) -> (i32, i32) {
    %c0_i32 = arith.constant 0 : i32
    return %arg2, %arg1 : i32, i32
  }
  func.func @transform_2(%arg0: i32, %arg1: i32, %arg2: i32) -> (i32, i32) {
    %c0_i32 = arith.constant 0 : i32
    %c0_i32_0 = arith.constant 0 : i32
    return %c0_i32, %arg1 : i32, i32
  }
  func.func @transform_3(%arg0: i32, %arg1: i32, %arg2: i32) -> (i32, i32) {
    %c0_i32 = arith.constant 0 : i32
    return %arg0, %arg1 : i32, i32
  }
}

module attributes {stable_mosaic.version = 11 : i64} {
  func.func @kernel(%arg0: i32, %arg1: i32, %arg2: i32, %arg3: memref<16x128xbf16, #tpu.memory_space<vmem>>, %arg4: memref<128x256xbf16, #tpu.memory_space<vmem>>, %arg5: memref<2x256xf32, #tpu.memory_space<vmem>>, %arg6: memref<16x256xbf16, #tpu.memory_space<vmem>>, %arg7: memref<16x256xf32, #tpu.memory_space<vmem>>) attributes {dimension_semantics = [#tpu.dimension_semantics<parallel>, #tpu.dimension_semantics<parallel>, #tpu.dimension_semantics<arbitrary>], iteration_bounds = array<i64: 2, 1, 11>, scalar_prefetch = 0 : i64, scratch_operands = 1 : i64, tpu.core_type = #tpu.core_type<tc>, window_params = [{transform_indices = @transform_0, window_bounds = array<i64: 16, 128>}, {transform_indices = @transform_1, window_bounds = array<i64: 128, 256>}, {transform_indices = @transform_2, window_bounds = array<i64: 2, 256>}, {transform_indices = @transform_3, window_bounds = array<i64: 16, 256>}]} {
    %c0_i32 = arith.constant 0 : i32
    %0 = arith.cmpi eq, %arg2, %c0_i32 : i32
    %1 = arith.extui %0 : i1 to i32
    %c0_i32_0 = arith.constant 0 : i32
    %2 = arith.cmpi ne, %1, %c0_i32_0 : i32
    scf.if %2 {
      %cst_9 = arith.constant 0.000000e+00 : f32
      %12 = vector.broadcast %cst_9 : f32 to vector<16x256xf32>
      %c0_10 = arith.constant 0 : index
      %c0_11 = arith.constant 0 : index
      %13 = vector.load %arg7[%c0_10, %c0_11] : memref<16x256xf32, #tpu.memory_space<vmem>>, vector<16x256xf32>
      tpu.vector_store %arg7[%c0_10, %c0_11], %12 {strides = array<i32>} : memref<16x256xf32, #tpu.memory_space<vmem>>, vector<16x256xf32>,
    } else {
    }
    %c0 = arith.constant 0 : index
    %c0_1 = arith.constant 0 : index
    %3 = vector.load %arg7[%c0, %c0_1] : memref<16x256xf32, #tpu.memory_space<vmem>>, vector<16x256xf32>
    %c0_2 = arith.constant 0 : index
    %c0_3 = arith.constant 0 : index
    %4 = vector.load %arg3[%c0_2, %c0_3] : memref<16x128xbf16, #tpu.memory_space<vmem>>, vector<16x128xbf16>
    %c0_4 = arith.constant 0 : index
    %c0_5 = arith.constant 0 : index
    %5 = vector.load %arg4[%c0_4, %c0_5] : memref<128x256xbf16, #tpu.memory_space<vmem>>, vector<128x256xbf16>
    %cst = arith.constant dense<0.000000e+00> : vector<16x256xf32>
    %6 = tpu.matmul %4, %5, %cst {dimension_numbers = #tpu.dot_dimension_numbers<[1], [0], [0], [1], [0, 0, 1, 1], [], []>} : vector<16x128xbf16>, vector<128x256xbf16>, vector<16x256xf32> -> vector<16x256xf32>
    %7 = arith.addf %3, %6 : vector<16x256xf32>
    %c0_6 = arith.constant 0 : index
    %c0_7 = arith.constant 0 : index
    %8 = vector.load %arg7[%c0_6, %c0_7] : memref<16x256xf32, #tpu.memory_space<vmem>>, vector<16x256xf32>
    tpu.vector_store %arg7[%c0_6, %c0_7], %7 {strides = array<i32>} : memref<16x256xf32, #tpu.memory_space<vmem>>, vector<16x256xf32>,
    %c10_i32 = arith.constant 10 : i32
    %9 = arith.cmpi eq, %arg2, %c10_i32 : i32
    %10 = arith.extui %9 : i1 to i32
    %c0_i32_8 = arith.constant 0 : i32
    %11 = arith.cmpi ne, %10, %c0_i32_8 : i32
    scf.if %11 {
      %c0_9 = arith.constant 0 : index
      %c0_10 = arith.constant 0 : index
      %12 = vector.load %arg7[%c0_9, %c0_10] : memref<16x256xf32, #tpu.memory_space<vmem>>, vector<16x256xf32>
      %c0_11 = arith.constant 0 : index
      %c0_12 = arith.constant 0 : index
      %13 = vector.load %arg5[%c0_11, %c0_12] : memref<2x256xf32, #tpu.memory_space<vmem>>, vector<1x256xf32>
      %14 = vector.broadcast %13 : vector<1x256xf32> to vector<16x256xf32>
      %15 = arith.mulf %12, %14 : vector<16x256xf32>
      %c1 = arith.constant 1 : index
      %c0_13 = arith.constant 0 : index
      %16 = vector.load %arg5[%c1, %c0_13] : memref<2x256xf32, #tpu.memory_space<vmem>>, vector<1x256xf32>
      %17 = vector.broadcast %16 : vector<1x256xf32> to vector<16x256xf32>
      %18 = arith.addf %15, %17 : vector<16x256xf32>
      %cst_14 = arith.constant 0.000000e+00 : f32
      %19 = vector.broadcast %cst_14 : f32 to vector<16x256xf32>
      %20 = arith.maximumf %18, %19 : vector<16x256xf32>
      %21 = arith.truncf %20 : vector<16x256xf32> to vector<16x256xbf16>
      %c0_15 = arith.constant 0 : index
      %c0_16 = arith.constant 0 : index
      %22 = vector.load %arg6[%c0_15, %c0_16] : memref<16x256xbf16, #tpu.memory_space<vmem>>, vector<16x256xbf16>
      tpu.vector_store %arg6[%c0_15, %c0_16], %21 {strides = array<i32>} : memref<16x256xbf16, #tpu.memory_space<vmem>>, vector<16x256xbf16>,
    } else {
    }
    return
  }
  func.func @transform_0(%arg0: i32, %arg1: i32, %arg2: i32) -> (i32, i32) {
    %c0_i32 = arith.constant 0 : i32
    return %arg0, %arg2 : i32, i32
  }
  func.func @transform_1(%arg0: i32, %arg1: i32, %arg2: i32) -> (i32, i32) {
    %c0_i32 = arith.constant 0 : i32
    return %arg2, %arg1 : i32, i32
  }
  func.func @transform_2(%arg0: i32, %arg1: i32, %arg2: i32) -> (i32, i32) {
    %c0_i32 = arith.constant 0 : i32
    %c0_i32_0 = arith.constant 0 : i32
    return %c0_i32, %arg1 : i32, i32
  }
  func.func @transform_3(%arg0: i32, %arg1: i32, %arg2: i32) -> (i32, i32) {
    %c0_i32 = arith.constant 0 : i32
    return %arg0, %arg1 : i32, i32
  }
}

module attributes {stable_mosaic.version = 11 : i64} {
  func.func @kernel(%arg0: i32, %arg1: i32, %arg2: i32, %arg3: memref<32x256xbf16, #tpu.memory_space<vmem>>, %arg4: memref<256x256xbf16, #tpu.memory_space<vmem>>, %arg5: memref<2x256xf32, #tpu.memory_space<vmem>>, %arg6: memref<32x256xbf16, #tpu.memory_space<vmem>>, %arg7: memref<32x256xf32, #tpu.memory_space<vmem>>) attributes {dimension_semantics = [#tpu.dimension_semantics<parallel>, #tpu.dimension_semantics<parallel>, #tpu.dimension_semantics<arbitrary>], iteration_bounds = array<i64: 1, 2, 1>, scalar_prefetch = 0 : i64, scratch_operands = 1 : i64, tpu.core_type = #tpu.core_type<tc>, window_params = [{transform_indices = @transform_0, window_bounds = array<i64: 32, 256>}, {transform_indices = @transform_1, window_bounds = array<i64: 256, 256>}, {transform_indices = @transform_2, window_bounds = array<i64: 2, 256>}, {transform_indices = @transform_3, window_bounds = array<i64: 32, 256>}]} {
    %c0_i32 = arith.constant 0 : i32
    %0 = arith.cmpi eq, %arg2, %c0_i32 : i32
    %1 = arith.extui %0 : i1 to i32
    %c0_i32_0 = arith.constant 0 : i32
    %2 = arith.cmpi ne, %1, %c0_i32_0 : i32
    scf.if %2 {
      %cst_10 = arith.constant 0.000000e+00 : f32
      %12 = vector.broadcast %cst_10 : f32 to vector<32x256xf32>
      %c0_11 = arith.constant 0 : index
      %c0_12 = arith.constant 0 : index
      %13 = vector.load %arg7[%c0_11, %c0_12] : memref<32x256xf32, #tpu.memory_space<vmem>>, vector<32x256xf32>
      tpu.vector_store %arg7[%c0_11, %c0_12], %12 {strides = array<i32>} : memref<32x256xf32, #tpu.memory_space<vmem>>, vector<32x256xf32>,
    } else {
    }
    %c0 = arith.constant 0 : index
    %c0_1 = arith.constant 0 : index
    %3 = vector.load %arg7[%c0, %c0_1] : memref<32x256xf32, #tpu.memory_space<vmem>>, vector<32x256xf32>
    %c0_2 = arith.constant 0 : index
    %c0_3 = arith.constant 0 : index
    %4 = vector.load %arg3[%c0_2, %c0_3] : memref<32x256xbf16, #tpu.memory_space<vmem>>, vector<32x256xbf16>
    %c0_4 = arith.constant 0 : index
    %c0_5 = arith.constant 0 : index
    %5 = vector.load %arg4[%c0_4, %c0_5] : memref<256x256xbf16, #tpu.memory_space<vmem>>, vector<256x256xbf16>
    %cst = arith.constant dense<0.000000e+00> : vector<32x256xf32>
    %6 = tpu.matmul %4, %5, %cst {dimension_numbers = #tpu.dot_dimension_numbers<[1], [0], [0], [1], [0, 0, 1, 1], [], []>} : vector<32x256xbf16>, vector<256x256xbf16>, vector<32x256xf32> -> vector<32x256xf32>
    %7 = arith.addf %3, %6 : vector<32x256xf32>
    %c0_6 = arith.constant 0 : index
    %c0_7 = arith.constant 0 : index
    %8 = vector.load %arg7[%c0_6, %c0_7] : memref<32x256xf32, #tpu.memory_space<vmem>>, vector<32x256xf32>
    tpu.vector_store %arg7[%c0_6, %c0_7], %7 {strides = array<i32>} : memref<32x256xf32, #tpu.memory_space<vmem>>, vector<32x256xf32>,
    %c0_i32_8 = arith.constant 0 : i32
    %9 = arith.cmpi eq, %arg2, %c0_i32_8 : i32
    %10 = arith.extui %9 : i1 to i32
    %c0_i32_9 = arith.constant 0 : i32
    %11 = arith.cmpi ne, %10, %c0_i32_9 : i32
    scf.if %11 {
      %c0_10 = arith.constant 0 : index
      %c0_11 = arith.constant 0 : index
      %12 = vector.load %arg7[%c0_10, %c0_11] : memref<32x256xf32, #tpu.memory_space<vmem>>, vector<32x256xf32>
      %c0_12 = arith.constant 0 : index
      %c0_13 = arith.constant 0 : index
      %13 = vector.load %arg5[%c0_12, %c0_13] : memref<2x256xf32, #tpu.memory_space<vmem>>, vector<1x256xf32>
      %14 = vector.broadcast %13 : vector<1x256xf32> to vector<32x256xf32>
      %15 = arith.mulf %12, %14 : vector<32x256xf32>
      %c1 = arith.constant 1 : index
      %c0_14 = arith.constant 0 : index
      %16 = vector.load %arg5[%c1, %c0_14] : memref<2x256xf32, #tpu.memory_space<vmem>>, vector<1x256xf32>
      %17 = vector.broadcast %16 : vector<1x256xf32> to vector<32x256xf32>
      %18 = arith.addf %15, %17 : vector<32x256xf32>
      %19 = arith.truncf %18 : vector<32x256xf32> to vector<32x256xbf16>
      %c0_15 = arith.constant 0 : index
      %c0_16 = arith.constant 0 : index
      %20 = vector.load %arg6[%c0_15, %c0_16] : memref<32x256xbf16, #tpu.memory_space<vmem>>, vector<32x256xbf16>
      tpu.vector_store %arg6[%c0_15, %c0_16], %19 {strides = array<i32>} : memref<32x256xbf16, #tpu.memory_space<vmem>>, vector<32x256xbf16>,
    } else {
    }
    return
  }
  func.func @transform_0(%arg0: i32, %arg1: i32, %arg2: i32) -> (i32, i32) {
    %c0_i32 = arith.constant 0 : i32
    return %arg0, %arg2 : i32, i32
  }
  func.func @transform_1(%arg0: i32, %arg1: i32, %arg2: i32) -> (i32, i32) {
    %c0_i32 = arith.constant 0 : i32
    return %arg2, %arg1 : i32, i32
  }
  func.func @transform_2(%arg0: i32, %arg1: i32, %arg2: i32) -> (i32, i32) {
    %c0_i32 = arith.constant 0 : i32
    %c0_i32_0 = arith.constant 0 : i32
    return %c0_i32, %arg1 : i32, i32
  }
  func.func @transform_3(%arg0: i32, %arg1: i32, %arg2: i32) -> (i32, i32) {
    %c0_i32 = arith.constant 0 : i32
    return %arg0, %arg1 : i32, i32
  }
}

module attributes {stable_mosaic.version = 11 : i64} {
  func.func @kernel(%arg0: i32, %arg1: i32, %arg2: i32, %arg3: memref<32x256xbf16, #tpu.memory_space<vmem>>, %arg4: memref<256x256xbf16, #tpu.memory_space<vmem>>, %arg5: memref<2x256xf32, #tpu.memory_space<vmem>>, %arg6: memref<32x256xbf16, #tpu.memory_space<vmem>>, %arg7: memref<32x256xbf16, #tpu.memory_space<vmem>>, %arg8: memref<32x256xf32, #tpu.memory_space<vmem>>) attributes {dimension_semantics = [#tpu.dimension_semantics<parallel>, #tpu.dimension_semantics<parallel>, #tpu.dimension_semantics<arbitrary>], iteration_bounds = array<i64: 1, 2, 1>, scalar_prefetch = 0 : i64, scratch_operands = 1 : i64, tpu.core_type = #tpu.core_type<tc>, window_params = [{transform_indices = @transform_0, window_bounds = array<i64: 32, 256>}, {transform_indices = @transform_1, window_bounds = array<i64: 256, 256>}, {transform_indices = @transform_2, window_bounds = array<i64: 2, 256>}, {transform_indices = @transform_3, window_bounds = array<i64: 32, 256>}, {transform_indices = @transform_4, window_bounds = array<i64: 32, 256>}]} {
    %c0_i32 = arith.constant 0 : i32
    %0 = arith.cmpi eq, %arg2, %c0_i32 : i32
    %1 = arith.extui %0 : i1 to i32
    %c0_i32_0 = arith.constant 0 : i32
    %2 = arith.cmpi ne, %1, %c0_i32_0 : i32
    scf.if %2 {
      %cst_10 = arith.constant 0.000000e+00 : f32
      %12 = vector.broadcast %cst_10 : f32 to vector<32x256xf32>
      %c0_11 = arith.constant 0 : index
      %c0_12 = arith.constant 0 : index
      %13 = vector.load %arg8[%c0_11, %c0_12] : memref<32x256xf32, #tpu.memory_space<vmem>>, vector<32x256xf32>
      tpu.vector_store %arg8[%c0_11, %c0_12], %12 {strides = array<i32>} : memref<32x256xf32, #tpu.memory_space<vmem>>, vector<32x256xf32>,
    } else {
    }
    %c0 = arith.constant 0 : index
    %c0_1 = arith.constant 0 : index
    %3 = vector.load %arg8[%c0, %c0_1] : memref<32x256xf32, #tpu.memory_space<vmem>>, vector<32x256xf32>
    %c0_2 = arith.constant 0 : index
    %c0_3 = arith.constant 0 : index
    %4 = vector.load %arg3[%c0_2, %c0_3] : memref<32x256xbf16, #tpu.memory_space<vmem>>, vector<32x256xbf16>
    %c0_4 = arith.constant 0 : index
    %c0_5 = arith.constant 0 : index
    %5 = vector.load %arg4[%c0_4, %c0_5] : memref<256x256xbf16, #tpu.memory_space<vmem>>, vector<256x256xbf16>
    %cst = arith.constant dense<0.000000e+00> : vector<32x256xf32>
    %6 = tpu.matmul %4, %5, %cst {dimension_numbers = #tpu.dot_dimension_numbers<[1], [0], [0], [1], [0, 0, 1, 1], [], []>} : vector<32x256xbf16>, vector<256x256xbf16>, vector<32x256xf32> -> vector<32x256xf32>
    %7 = arith.addf %3, %6 : vector<32x256xf32>
    %c0_6 = arith.constant 0 : index
    %c0_7 = arith.constant 0 : index
    %8 = vector.load %arg8[%c0_6, %c0_7] : memref<32x256xf32, #tpu.memory_space<vmem>>, vector<32x256xf32>
    tpu.vector_store %arg8[%c0_6, %c0_7], %7 {strides = array<i32>} : memref<32x256xf32, #tpu.memory_space<vmem>>, vector<32x256xf32>,
    %c0_i32_8 = arith.constant 0 : i32
    %9 = arith.cmpi eq, %arg2, %c0_i32_8 : i32
    %10 = arith.extui %9 : i1 to i32
    %c0_i32_9 = arith.constant 0 : i32
    %11 = arith.cmpi ne, %10, %c0_i32_9 : i32
    scf.if %11 {
      %c0_10 = arith.constant 0 : index
      %c0_11 = arith.constant 0 : index
      %12 = vector.load %arg8[%c0_10, %c0_11] : memref<32x256xf32, #tpu.memory_space<vmem>>, vector<32x256xf32>
      %c0_12 = arith.constant 0 : index
      %c0_13 = arith.constant 0 : index
      %13 = vector.load %arg5[%c0_12, %c0_13] : memref<2x256xf32, #tpu.memory_space<vmem>>, vector<1x256xf32>
      %14 = vector.broadcast %13 : vector<1x256xf32> to vector<32x256xf32>
      %15 = arith.mulf %12, %14 : vector<32x256xf32>
      %c1 = arith.constant 1 : index
      %c0_14 = arith.constant 0 : index
      %16 = vector.load %arg5[%c1, %c0_14] : memref<2x256xf32, #tpu.memory_space<vmem>>, vector<1x256xf32>
      %17 = vector.broadcast %16 : vector<1x256xf32> to vector<32x256xf32>
      %18 = arith.addf %15, %17 : vector<32x256xf32>
      %c0_15 = arith.constant 0 : index
      %c0_16 = arith.constant 0 : index
      %19 = vector.load %arg6[%c0_15, %c0_16] : memref<32x256xbf16, #tpu.memory_space<vmem>>, vector<32x256xbf16>
      %20 = arith.extf %19 : vector<32x256xbf16> to vector<32x256xf32>
      %21 = arith.addf %18, %20 : vector<32x256xf32>
      %cst_17 = arith.constant 0.000000e+00 : f32
      %22 = vector.broadcast %cst_17 : f32 to vector<32x256xf32>
      %23 = arith.maximumf %21, %22 : vector<32x256xf32>
      %24 = arith.truncf %23 : vector<32x256xf32> to vector<32x256xbf16>
      %c0_18 = arith.constant 0 : index
      %c0_19 = arith.constant 0 : index
      %25 = vector.load %arg7[%c0_18, %c0_19] : memref<32x256xbf16, #tpu.memory_space<vmem>>, vector<32x256xbf16>
      tpu.vector_store %arg7[%c0_18, %c0_19], %24 {strides = array<i32>} : memref<32x256xbf16, #tpu.memory_space<vmem>>, vector<32x256xbf16>,
    } else {
    }
    return
  }
  func.func @transform_0(%arg0: i32, %arg1: i32, %arg2: i32) -> (i32, i32) {
    %c0_i32 = arith.constant 0 : i32
    return %arg0, %arg2 : i32, i32
  }
  func.func @transform_1(%arg0: i32, %arg1: i32, %arg2: i32) -> (i32, i32) {
    %c0_i32 = arith.constant 0 : i32
    return %arg2, %arg1 : i32, i32
  }
  func.func @transform_2(%arg0: i32, %arg1: i32, %arg2: i32) -> (i32, i32) {
    %c0_i32 = arith.constant 0 : i32
    %c0_i32_0 = arith.constant 0 : i32
    return %c0_i32, %arg1 : i32, i32
  }
  func.func @transform_3(%arg0: i32, %arg1: i32, %arg2: i32) -> (i32, i32) {
    %c0_i32 = arith.constant 0 : i32
    return %arg0, %arg1 : i32, i32
  }
  func.func @transform_4(%arg0: i32, %arg1: i32, %arg2: i32) -> (i32, i32) {
    %c0_i32 = arith.constant 0 : i32
    return %arg0, %arg1 : i32, i32
  }
}

module attributes {stable_mosaic.version = 11 : i64} {
  func.func @kernel(%arg0: i32, %arg1: i32, %arg2: i32, %arg3: memref<32x256xbf16, #tpu.memory_space<vmem>>, %arg4: memref<256x256xbf16, #tpu.memory_space<vmem>>, %arg5: memref<2x256xf32, #tpu.memory_space<vmem>>, %arg6: memref<32x256xbf16, #tpu.memory_space<vmem>>, %arg7: memref<32x256xf32, #tpu.memory_space<vmem>>) attributes {dimension_semantics = [#tpu.dimension_semantics<parallel>, #tpu.dimension_semantics<parallel>, #tpu.dimension_semantics<arbitrary>], iteration_bounds = array<i64: 1, 2, 2>, scalar_prefetch = 0 : i64, scratch_operands = 1 : i64, tpu.core_type = #tpu.core_type<tc>, window_params = [{transform_indices = @transform_0, window_bounds = array<i64: 32, 256>}, {transform_indices = @transform_1, window_bounds = array<i64: 256, 256>}, {transform_indices = @transform_2, window_bounds = array<i64: 2, 256>}, {transform_indices = @transform_3, window_bounds = array<i64: 32, 256>}]} {
    %c0_i32 = arith.constant 0 : i32
    %0 = arith.cmpi eq, %arg2, %c0_i32 : i32
    %1 = arith.extui %0 : i1 to i32
    %c0_i32_0 = arith.constant 0 : i32
    %2 = arith.cmpi ne, %1, %c0_i32_0 : i32
    scf.if %2 {
      %cst_9 = arith.constant 0.000000e+00 : f32
      %12 = vector.broadcast %cst_9 : f32 to vector<32x256xf32>
      %c0_10 = arith.constant 0 : index
      %c0_11 = arith.constant 0 : index
      %13 = vector.load %arg7[%c0_10, %c0_11] : memref<32x256xf32, #tpu.memory_space<vmem>>, vector<32x256xf32>
      tpu.vector_store %arg7[%c0_10, %c0_11], %12 {strides = array<i32>} : memref<32x256xf32, #tpu.memory_space<vmem>>, vector<32x256xf32>,
    } else {
    }
    %c0 = arith.constant 0 : index
    %c0_1 = arith.constant 0 : index
    %3 = vector.load %arg7[%c0, %c0_1] : memref<32x256xf32, #tpu.memory_space<vmem>>, vector<32x256xf32>
    %c0_2 = arith.constant 0 : index
    %c0_3 = arith.constant 0 : index
    %4 = vector.load %arg3[%c0_2, %c0_3] : memref<32x256xbf16, #tpu.memory_space<vmem>>, vector<32x256xbf16>
    %c0_4 = arith.constant 0 : index
    %c0_5 = arith.constant 0 : index
    %5 = vector.load %arg4[%c0_4, %c0_5] : memref<256x256xbf16, #tpu.memory_space<vmem>>, vector<256x256xbf16>
    %cst = arith.constant dense<0.000000e+00> : vector<32x256xf32>
    %6 = tpu.matmul %4, %5, %cst {dimension_numbers = #tpu.dot_dimension_numbers<[1], [0], [0], [1], [0, 0, 1, 1], [], []>} : vector<32x256xbf16>, vector<256x256xbf16>, vector<32x256xf32> -> vector<32x256xf32>
    %7 = arith.addf %3, %6 : vector<32x256xf32>
    %c0_6 = arith.constant 0 : index
    %c0_7 = arith.constant 0 : index
    %8 = vector.load %arg7[%c0_6, %c0_7] : memref<32x256xf32, #tpu.memory_space<vmem>>, vector<32x256xf32>
    tpu.vector_store %arg7[%c0_6, %c0_7], %7 {strides = array<i32>} : memref<32x256xf32, #tpu.memory_space<vmem>>, vector<32x256xf32>,
    %c1_i32 = arith.constant 1 : i32
    %9 = arith.cmpi eq, %arg2, %c1_i32 : i32
    %10 = arith.extui %9 : i1 to i32
    %c0_i32_8 = arith.constant 0 : i32
    %11 = arith.cmpi ne, %10, %c0_i32_8 : i32
    scf.if %11 {
      %c0_9 = arith.constant 0 : index
      %c0_10 = arith.constant 0 : index
      %12 = vector.load %arg7[%c0_9, %c0_10] : memref<32x256xf32, #tpu.memory_space<vmem>>, vector<32x256xf32>
      %c0_11 = arith.constant 0 : index
      %c0_12 = arith.constant 0 : index
      %13 = vector.load %arg5[%c0_11, %c0_12] : memref<2x256xf32, #tpu.memory_space<vmem>>, vector<1x256xf32>
      %14 = vector.broadcast %13 : vector<1x256xf32> to vector<32x256xf32>
      %15 = arith.mulf %12, %14 : vector<32x256xf32>
      %c1 = arith.constant 1 : index
      %c0_13 = arith.constant 0 : index
      %16 = vector.load %arg5[%c1, %c0_13] : memref<2x256xf32, #tpu.memory_space<vmem>>, vector<1x256xf32>
      %17 = vector.broadcast %16 : vector<1x256xf32> to vector<32x256xf32>
      %18 = arith.addf %15, %17 : vector<32x256xf32>
      %cst_14 = arith.constant 0.000000e+00 : f32
      %19 = vector.broadcast %cst_14 : f32 to vector<32x256xf32>
      %20 = arith.maximumf %18, %19 : vector<32x256xf32>
      %21 = arith.truncf %20 : vector<32x256xf32> to vector<32x256xbf16>
      %c0_15 = arith.constant 0 : index
      %c0_16 = arith.constant 0 : index
      %22 = vector.load %arg6[%c0_15, %c0_16] : memref<32x256xbf16, #tpu.memory_space<vmem>>, vector<32x256xbf16>
      tpu.vector_store %arg6[%c0_15, %c0_16], %21 {strides = array<i32>} : memref<32x256xbf16, #tpu.memory_space<vmem>>, vector<32x256xbf16>,
    } else {
    }
    return
  }
  func.func @transform_0(%arg0: i32, %arg1: i32, %arg2: i32) -> (i32, i32) {
    %c0_i32 = arith.constant 0 : i32
    return %arg0, %arg2 : i32, i32
  }
  func.func @transform_1(%arg0: i32, %arg1: i32, %arg2: i32) -> (i32, i32) {
    %c0_i32 = arith.constant 0 : i32
    return %arg2, %arg1 : i32, i32
  }
  func.func @transform_2(%arg0: i32, %arg1: i32, %arg2: i32) -> (i32, i32) {
    %c0_i32 = arith.constant 0 : i32
    %c0_i32_0 = arith.constant 0 : i32
    return %c0_i32, %arg1 : i32, i32
  }
  func.func @transform_3(%arg0: i32, %arg1: i32, %arg2: i32) -> (i32, i32) {
    %c0_i32 = arith.constant 0 : i32
    return %arg0, %arg1 : i32, i32
  }
}

module attributes {stable_mosaic.version = 11 : i64} {
  func.func @kernel(%arg0: i32, %arg1: i32, %arg2: i32, %arg3: memref<8x256xbf16, #tpu.memory_space<vmem>>, %arg4: memref<256x128xbf16, #tpu.memory_space<vmem>>, %arg5: memref<2x128xf32, #tpu.memory_space<vmem>>, %arg6: memref<8x128xbf16, #tpu.memory_space<vmem>>, %arg7: memref<8x128xf32, #tpu.memory_space<vmem>>) attributes {dimension_semantics = [#tpu.dimension_semantics<parallel>, #tpu.dimension_semantics<parallel>, #tpu.dimension_semantics<arbitrary>], iteration_bounds = array<i64: 1, 3, 11>, scalar_prefetch = 0 : i64, scratch_operands = 1 : i64, tpu.core_type = #tpu.core_type<tc>, window_params = [{transform_indices = @transform_0, window_bounds = array<i64: 8, 256>}, {transform_indices = @transform_1, window_bounds = array<i64: 256, 128>}, {transform_indices = @transform_2, window_bounds = array<i64: 2, 128>}, {transform_indices = @transform_3, window_bounds = array<i64: 8, 128>}]} {
    %c0_i32 = arith.constant 0 : i32
    %0 = arith.cmpi eq, %arg2, %c0_i32 : i32
    %1 = arith.extui %0 : i1 to i32
    %c0_i32_0 = arith.constant 0 : i32
    %2 = arith.cmpi ne, %1, %c0_i32_0 : i32
    scf.if %2 {
      %cst_9 = arith.constant 0.000000e+00 : f32
      %12 = vector.broadcast %cst_9 : f32 to vector<8x128xf32>
      %c0_10 = arith.constant 0 : index
      %c0_11 = arith.constant 0 : index
      %13 = vector.load %arg7[%c0_10, %c0_11] : memref<8x128xf32, #tpu.memory_space<vmem>>, vector<8x128xf32>
      tpu.vector_store %arg7[%c0_10, %c0_11], %12 {strides = array<i32>} : memref<8x128xf32, #tpu.memory_space<vmem>>, vector<8x128xf32>,
    } else {
    }
    %c0 = arith.constant 0 : index
    %c0_1 = arith.constant 0 : index
    %3 = vector.load %arg7[%c0, %c0_1] : memref<8x128xf32, #tpu.memory_space<vmem>>, vector<8x128xf32>
    %c0_2 = arith.constant 0 : index
    %c0_3 = arith.constant 0 : index
    %4 = vector.load %arg3[%c0_2, %c0_3] : memref<8x256xbf16, #tpu.memory_space<vmem>>, vector<8x256xbf16>
    %c0_4 = arith.constant 0 : index
    %c0_5 = arith.constant 0 : index
    %5 = vector.load %arg4[%c0_4, %c0_5] : memref<256x128xbf16, #tpu.memory_space<vmem>>, vector<256x128xbf16>
    %cst = arith.constant dense<0.000000e+00> : vector<8x128xf32>
    %6 = tpu.matmul %4, %5, %cst {dimension_numbers = #tpu.dot_dimension_numbers<[1], [0], [0], [1], [0, 0, 1, 1], [], []>} : vector<8x256xbf16>, vector<256x128xbf16>, vector<8x128xf32> -> vector<8x128xf32>
    %7 = arith.addf %3, %6 : vector<8x128xf32>
    %c0_6 = arith.constant 0 : index
    %c0_7 = arith.constant 0 : index
    %8 = vector.load %arg7[%c0_6, %c0_7] : memref<8x128xf32, #tpu.memory_space<vmem>>, vector<8x128xf32>
    tpu.vector_store %arg7[%c0_6, %c0_7], %7 {strides = array<i32>} : memref<8x128xf32, #tpu.memory_space<vmem>>, vector<8x128xf32>,
    %c10_i32 = arith.constant 10 : i32
    %9 = arith.cmpi eq, %arg2, %c10_i32 : i32
    %10 = arith.extui %9 : i1 to i32
    %c0_i32_8 = arith.constant 0 : i32
    %11 = arith.cmpi ne, %10, %c0_i32_8 : i32
    scf.if %11 {
      %c0_9 = arith.constant 0 : index
      %c0_10 = arith.constant 0 : index
      %12 = vector.load %arg7[%c0_9, %c0_10] : memref<8x128xf32, #tpu.memory_space<vmem>>, vector<8x128xf32>
      %c0_11 = arith.constant 0 : index
      %c0_12 = arith.constant 0 : index
      %13 = vector.load %arg5[%c0_11, %c0_12] : memref<2x128xf32, #tpu.memory_space<vmem>>, vector<1x128xf32>
      %14 = vector.broadcast %13 : vector<1x128xf32> to vector<8x128xf32>
      %15 = arith.mulf %12, %14 : vector<8x128xf32>
      %c1 = arith.constant 1 : index
      %c0_13 = arith.constant 0 : index
      %16 = vector.load %arg5[%c1, %c0_13] : memref<2x128xf32, #tpu.memory_space<vmem>>, vector<1x128xf32>
      %17 = vector.broadcast %16 : vector<1x128xf32> to vector<8x128xf32>
      %18 = arith.addf %15, %17 : vector<8x128xf32>
      %cst_14 = arith.constant 0.000000e+00 : f32
      %19 = vector.broadcast %cst_14 : f32 to vector<8x128xf32>
      %20 = arith.maximumf %18, %19 : vector<8x128xf32>
      %21 = arith.truncf %20 : vector<8x128xf32> to vector<8x128xbf16>
      %c0_15 = arith.constant 0 : index
      %c0_16 = arith.constant 0 : index
      %22 = vector.load %arg6[%c0_15, %c0_16] : memref<8x128xbf16, #tpu.memory_space<vmem>>, vector<8x128xbf16>
      tpu.vector_store %arg6[%c0_15, %c0_16], %21 {strides = array<i32>} : memref<8x128xbf16, #tpu.memory_space<vmem>>, vector<8x128xbf16>,
    } else {
    }
    return
  }
  func.func @transform_0(%arg0: i32, %arg1: i32, %arg2: i32) -> (i32, i32) {
    %c0_i32 = arith.constant 0 : i32
    return %arg0, %arg2 : i32, i32
  }
  func.func @transform_1(%arg0: i32, %arg1: i32, %arg2: i32) -> (i32, i32) {
    %c0_i32 = arith.constant 0 : i32
    return %arg2, %arg1 : i32, i32
  }
  func.func @transform_2(%arg0: i32, %arg1: i32, %arg2: i32) -> (i32, i32) {
    %c0_i32 = arith.constant 0 : i32
    %c0_i32_0 = arith.constant 0 : i32
    return %c0_i32, %arg1 : i32, i32
  }
  func.func @transform_3(%arg0: i32, %arg1: i32, %arg2: i32) -> (i32, i32) {
    %c0_i32 = arith.constant 0 : i32
    return %arg0, %arg1 : i32, i32
  }
}

module attributes {stable_mosaic.version = 11 : i64} {
  func.func @kernel(%arg0: i32, %arg1: i32, %arg2: i32, %arg3: memref<8x256xbf16, #tpu.memory_space<vmem>>, %arg4: memref<256x256xbf16, #tpu.memory_space<vmem>>, %arg5: memref<2x256xf32, #tpu.memory_space<vmem>>, %arg6: memref<8x256xbf16, #tpu.memory_space<vmem>>, %arg7: memref<8x256xf32, #tpu.memory_space<vmem>>) attributes {dimension_semantics = [#tpu.dimension_semantics<parallel>, #tpu.dimension_semantics<parallel>, #tpu.dimension_semantics<arbitrary>], iteration_bounds = array<i64: 1, 4, 2>, scalar_prefetch = 0 : i64, scratch_operands = 1 : i64, tpu.core_type = #tpu.core_type<tc>, window_params = [{transform_indices = @transform_0, window_bounds = array<i64: 8, 256>}, {transform_indices = @transform_1, window_bounds = array<i64: 256, 256>}, {transform_indices = @transform_2, window_bounds = array<i64: 2, 256>}, {transform_indices = @transform_3, window_bounds = array<i64: 8, 256>}]} {
    %c0_i32 = arith.constant 0 : i32
    %0 = arith.cmpi eq, %arg2, %c0_i32 : i32
    %1 = arith.extui %0 : i1 to i32
    %c0_i32_0 = arith.constant 0 : i32
    %2 = arith.cmpi ne, %1, %c0_i32_0 : i32
    scf.if %2 {
      %cst_9 = arith.constant 0.000000e+00 : f32
      %12 = vector.broadcast %cst_9 : f32 to vector<8x256xf32>
      %c0_10 = arith.constant 0 : index
      %c0_11 = arith.constant 0 : index
      %13 = vector.load %arg7[%c0_10, %c0_11] : memref<8x256xf32, #tpu.memory_space<vmem>>, vector<8x256xf32>
      tpu.vector_store %arg7[%c0_10, %c0_11], %12 {strides = array<i32>} : memref<8x256xf32, #tpu.memory_space<vmem>>, vector<8x256xf32>,
    } else {
    }
    %c0 = arith.constant 0 : index
    %c0_1 = arith.constant 0 : index
    %3 = vector.load %arg7[%c0, %c0_1] : memref<8x256xf32, #tpu.memory_space<vmem>>, vector<8x256xf32>
    %c0_2 = arith.constant 0 : index
    %c0_3 = arith.constant 0 : index
    %4 = vector.load %arg3[%c0_2, %c0_3] : memref<8x256xbf16, #tpu.memory_space<vmem>>, vector<8x256xbf16>
    %c0_4 = arith.constant 0 : index
    %c0_5 = arith.constant 0 : index
    %5 = vector.load %arg4[%c0_4, %c0_5] : memref<256x256xbf16, #tpu.memory_space<vmem>>, vector<256x256xbf16>
    %cst = arith.constant dense<0.000000e+00> : vector<8x256xf32>
    %6 = tpu.matmul %4, %5, %cst {dimension_numbers = #tpu.dot_dimension_numbers<[1], [0], [0], [1], [0, 0, 1, 1], [], []>} : vector<8x256xbf16>, vector<256x256xbf16>, vector<8x256xf32> -> vector<8x256xf32>
    %7 = arith.addf %3, %6 : vector<8x256xf32>
    %c0_6 = arith.constant 0 : index
    %c0_7 = arith.constant 0 : index
    %8 = vector.load %arg7[%c0_6, %c0_7] : memref<8x256xf32, #tpu.memory_space<vmem>>, vector<8x256xf32>
    tpu.vector_store %arg7[%c0_6, %c0_7], %7 {strides = array<i32>} : memref<8x256xf32, #tpu.memory_space<vmem>>, vector<8x256xf32>,
    %c1_i32 = arith.constant 1 : i32
    %9 = arith.cmpi eq, %arg2, %c1_i32 : i32
    %10 = arith.extui %9 : i1 to i32
    %c0_i32_8 = arith.constant 0 : i32
    %11 = arith.cmpi ne, %10, %c0_i32_8 : i32
    scf.if %11 {
      %c0_9 = arith.constant 0 : index
      %c0_10 = arith.constant 0 : index
      %12 = vector.load %arg7[%c0_9, %c0_10] : memref<8x256xf32, #tpu.memory_space<vmem>>, vector<8x256xf32>
      %c0_11 = arith.constant 0 : index
      %c0_12 = arith.constant 0 : index
      %13 = vector.load %arg5[%c0_11, %c0_12] : memref<2x256xf32, #tpu.memory_space<vmem>>, vector<1x256xf32>
      %14 = vector.broadcast %13 : vector<1x256xf32> to vector<8x256xf32>
      %15 = arith.mulf %12, %14 : vector<8x256xf32>
      %c1 = arith.constant 1 : index
      %c0_13 = arith.constant 0 : index
      %16 = vector.load %arg5[%c1, %c0_13] : memref<2x256xf32, #tpu.memory_space<vmem>>, vector<1x256xf32>
      %17 = vector.broadcast %16 : vector<1x256xf32> to vector<8x256xf32>
      %18 = arith.addf %15, %17 : vector<8x256xf32>
      %19 = arith.truncf %18 : vector<8x256xf32> to vector<8x256xbf16>
      %c0_14 = arith.constant 0 : index
      %c0_15 = arith.constant 0 : index
      %20 = vector.load %arg6[%c0_14, %c0_15] : memref<8x256xbf16, #tpu.memory_space<vmem>>, vector<8x256xbf16>
      tpu.vector_store %arg6[%c0_14, %c0_15], %19 {strides = array<i32>} : memref<8x256xbf16, #tpu.memory_space<vmem>>, vector<8x256xbf16>,
    } else {
    }
    return
  }
  func.func @transform_0(%arg0: i32, %arg1: i32, %arg2: i32) -> (i32, i32) {
    %c0_i32 = arith.constant 0 : i32
    return %arg0, %arg2 : i32, i32
  }
  func.func @transform_1(%arg0: i32, %arg1: i32, %arg2: i32) -> (i32, i32) {
    %c0_i32 = arith.constant 0 : i32
    return %arg2, %arg1 : i32, i32
  }
  func.func @transform_2(%arg0: i32, %arg1: i32, %arg2: i32) -> (i32, i32) {
    %c0_i32 = arith.constant 0 : i32
    %c0_i32_0 = arith.constant 0 : i32
    return %c0_i32, %arg1 : i32, i32
  }
  func.func @transform_3(%arg0: i32, %arg1: i32, %arg2: i32) -> (i32, i32) {
    %c0_i32 = arith.constant 0 : i32
    return %arg0, %arg1 : i32, i32
  }
}

module attributes {stable_mosaic.version = 11 : i64} {
  func.func @kernel(%arg0: i32, %arg1: i32, %arg2: i32, %arg3: memref<8x256xbf16, #tpu.memory_space<vmem>>, %arg4: memref<256x256xbf16, #tpu.memory_space<vmem>>, %arg5: memref<2x256xf32, #tpu.memory_space<vmem>>, %arg6: memref<8x256xbf16, #tpu.memory_space<vmem>>, %arg7: memref<8x256xbf16, #tpu.memory_space<vmem>>, %arg8: memref<8x256xf32, #tpu.memory_space<vmem>>) attributes {dimension_semantics = [#tpu.dimension_semantics<parallel>, #tpu.dimension_semantics<parallel>, #tpu.dimension_semantics<arbitrary>], iteration_bounds = array<i64: 1, 4, 2>, scalar_prefetch = 0 : i64, scratch_operands = 1 : i64, tpu.core_type = #tpu.core_type<tc>, window_params = [{transform_indices = @transform_0, window_bounds = array<i64: 8, 256>}, {transform_indices = @transform_1, window_bounds = array<i64: 256, 256>}, {transform_indices = @transform_2, window_bounds = array<i64: 2, 256>}, {transform_indices = @transform_3, window_bounds = array<i64: 8, 256>}, {transform_indices = @transform_4, window_bounds = array<i64: 8, 256>}]} {
    %c0_i32 = arith.constant 0 : i32
    %0 = arith.cmpi eq, %arg2, %c0_i32 : i32
    %1 = arith.extui %0 : i1 to i32
    %c0_i32_0 = arith.constant 0 : i32
    %2 = arith.cmpi ne, %1, %c0_i32_0 : i32
    scf.if %2 {
      %cst_9 = arith.constant 0.000000e+00 : f32
      %12 = vector.broadcast %cst_9 : f32 to vector<8x256xf32>
      %c0_10 = arith.constant 0 : index
      %c0_11 = arith.constant 0 : index
      %13 = vector.load %arg8[%c0_10, %c0_11] : memref<8x256xf32, #tpu.memory_space<vmem>>, vector<8x256xf32>
      tpu.vector_store %arg8[%c0_10, %c0_11], %12 {strides = array<i32>} : memref<8x256xf32, #tpu.memory_space<vmem>>, vector<8x256xf32>,
    } else {
    }
    %c0 = arith.constant 0 : index
    %c0_1 = arith.constant 0 : index
    %3 = vector.load %arg8[%c0, %c0_1] : memref<8x256xf32, #tpu.memory_space<vmem>>, vector<8x256xf32>
    %c0_2 = arith.constant 0 : index
    %c0_3 = arith.constant 0 : index
    %4 = vector.load %arg3[%c0_2, %c0_3] : memref<8x256xbf16, #tpu.memory_space<vmem>>, vector<8x256xbf16>
    %c0_4 = arith.constant 0 : index
    %c0_5 = arith.constant 0 : index
    %5 = vector.load %arg4[%c0_4, %c0_5] : memref<256x256xbf16, #tpu.memory_space<vmem>>, vector<256x256xbf16>
    %cst = arith.constant dense<0.000000e+00> : vector<8x256xf32>
    %6 = tpu.matmul %4, %5, %cst {dimension_numbers = #tpu.dot_dimension_numbers<[1], [0], [0], [1], [0, 0, 1, 1], [], []>} : vector<8x256xbf16>, vector<256x256xbf16>, vector<8x256xf32> -> vector<8x256xf32>
    %7 = arith.addf %3, %6 : vector<8x256xf32>
    %c0_6 = arith.constant 0 : index
    %c0_7 = arith.constant 0 : index
    %8 = vector.load %arg8[%c0_6, %c0_7] : memref<8x256xf32, #tpu.memory_space<vmem>>, vector<8x256xf32>
    tpu.vector_store %arg8[%c0_6, %c0_7], %7 {strides = array<i32>} : memref<8x256xf32, #tpu.memory_space<vmem>>, vector<8x256xf32>,
    %c1_i32 = arith.constant 1 : i32
    %9 = arith.cmpi eq, %arg2, %c1_i32 : i32
    %10 = arith.extui %9 : i1 to i32
    %c0_i32_8 = arith.constant 0 : i32
    %11 = arith.cmpi ne, %10, %c0_i32_8 : i32
    scf.if %11 {
      %c0_9 = arith.constant 0 : index
      %c0_10 = arith.constant 0 : index
      %12 = vector.load %arg8[%c0_9, %c0_10] : memref<8x256xf32, #tpu.memory_space<vmem>>, vector<8x256xf32>
      %c0_11 = arith.constant 0 : index
      %c0_12 = arith.constant 0 : index
      %13 = vector.load %arg5[%c0_11, %c0_12] : memref<2x256xf32, #tpu.memory_space<vmem>>, vector<1x256xf32>
      %14 = vector.broadcast %13 : vector<1x256xf32> to vector<8x256xf32>
      %15 = arith.mulf %12, %14 : vector<8x256xf32>
      %c1 = arith.constant 1 : index
      %c0_13 = arith.constant 0 : index
      %16 = vector.load %arg5[%c1, %c0_13] : memref<2x256xf32, #tpu.memory_space<vmem>>, vector<1x256xf32>
      %17 = vector.broadcast %16 : vector<1x256xf32> to vector<8x256xf32>
      %18 = arith.addf %15, %17 : vector<8x256xf32>
      %c0_14 = arith.constant 0 : index
      %c0_15 = arith.constant 0 : index
      %19 = vector.load %arg6[%c0_14, %c0_15] : memref<8x256xbf16, #tpu.memory_space<vmem>>, vector<8x256xbf16>
      %20 = arith.extf %19 : vector<8x256xbf16> to vector<8x256xf32>
      %21 = arith.addf %18, %20 : vector<8x256xf32>
      %cst_16 = arith.constant 0.000000e+00 : f32
      %22 = vector.broadcast %cst_16 : f32 to vector<8x256xf32>
      %23 = arith.maximumf %21, %22 : vector<8x256xf32>
      %24 = arith.truncf %23 : vector<8x256xf32> to vector<8x256xbf16>
      %c0_17 = arith.constant 0 : index
      %c0_18 = arith.constant 0 : index
      %25 = vector.load %arg7[%c0_17, %c0_18] : memref<8x256xbf16, #tpu.memory_space<vmem>>, vector<8x256xbf16>
      tpu.vector_store %arg7[%c0_17, %c0_18], %24 {strides = array<i32>} : memref<8x256xbf16, #tpu.memory_space<vmem>>, vector<8x256xbf16>,
    } else {
    }
    return
  }
  func.func @transform_0(%arg0: i32, %arg1: i32, %arg2: i32) -> (i32, i32) {
    %c0_i32 = arith.constant 0 : i32
    return %arg0, %arg2 : i32, i32
  }
  func.func @transform_1(%arg0: i32, %arg1: i32, %arg2: i32) -> (i32, i32) {
    %c0_i32 = arith.constant 0 : i32
    return %arg2, %arg1 : i32, i32
  }
  func.func @transform_2(%arg0: i32, %arg1: i32, %arg2: i32) -> (i32, i32) {
    %c0_i32 = arith.constant 0 : i32
    %c0_i32_0 = arith.constant 0 : i32
    return %c0_i32, %arg1 : i32, i32
  }
  func.func @transform_3(%arg0: i32, %arg1: i32, %arg2: i32) -> (i32, i32) {
    %c0_i32 = arith.constant 0 : i32
    return %arg0, %arg1 : i32, i32
  }
  func.func @transform_4(%arg0: i32, %arg1: i32, %arg2: i32) -> (i32, i32) {
    %c0_i32 = arith.constant 0 : i32
    return %arg0, %arg1 : i32, i32
  }
}

module attributes {stable_mosaic.version = 11 : i64} {
  func.func @kernel(%arg0: i32, %arg1: i32, %arg2: i32, %arg3: memref<8x256xbf16, #tpu.memory_space<vmem>>, %arg4: memref<256x128xbf16, #tpu.memory_space<vmem>>, %arg5: memref<2x128xf32, #tpu.memory_space<vmem>>, %arg6: memref<8x128xbf16, #tpu.memory_space<vmem>>, %arg7: memref<8x128xf32, #tpu.memory_space<vmem>>) attributes {dimension_semantics = [#tpu.dimension_semantics<parallel>, #tpu.dimension_semantics<parallel>, #tpu.dimension_semantics<arbitrary>], iteration_bounds = array<i64: 1, 7, 4>, scalar_prefetch = 0 : i64, scratch_operands = 1 : i64, tpu.core_type = #tpu.core_type<tc>, window_params = [{transform_indices = @transform_0, window_bounds = array<i64: 8, 256>}, {transform_indices = @transform_1, window_bounds = array<i64: 256, 128>}, {transform_indices = @transform_2, window_bounds = array<i64: 2, 128>}, {transform_indices = @transform_3, window_bounds = array<i64: 8, 128>}]} {
    %c0_i32 = arith.constant 0 : i32
    %0 = arith.cmpi eq, %arg2, %c0_i32 : i32
    %1 = arith.extui %0 : i1 to i32
    %c0_i32_0 = arith.constant 0 : i32
    %2 = arith.cmpi ne, %1, %c0_i32_0 : i32
    scf.if %2 {
      %cst_9 = arith.constant 0.000000e+00 : f32
      %12 = vector.broadcast %cst_9 : f32 to vector<8x128xf32>
      %c0_10 = arith.constant 0 : index
      %c0_11 = arith.constant 0 : index
      %13 = vector.load %arg7[%c0_10, %c0_11] : memref<8x128xf32, #tpu.memory_space<vmem>>, vector<8x128xf32>
      tpu.vector_store %arg7[%c0_10, %c0_11], %12 {strides = array<i32>} : memref<8x128xf32, #tpu.memory_space<vmem>>, vector<8x128xf32>,
    } else {
    }
    %c0 = arith.constant 0 : index
    %c0_1 = arith.constant 0 : index
    %3 = vector.load %arg7[%c0, %c0_1] : memref<8x128xf32, #tpu.memory_space<vmem>>, vector<8x128xf32>
    %c0_2 = arith.constant 0 : index
    %c0_3 = arith.constant 0 : index
    %4 = vector.load %arg3[%c0_2, %c0_3] : memref<8x256xbf16, #tpu.memory_space<vmem>>, vector<8x256xbf16>
    %c0_4 = arith.constant 0 : index
    %c0_5 = arith.constant 0 : index
    %5 = vector.load %arg4[%c0_4, %c0_5] : memref<256x128xbf16, #tpu.memory_space<vmem>>, vector<256x128xbf16>
    %cst = arith.constant dense<0.000000e+00> : vector<8x128xf32>
    %6 = tpu.matmul %4, %5, %cst {dimension_numbers = #tpu.dot_dimension_numbers<[1], [0], [0], [1], [0, 0, 1, 1], [], []>} : vector<8x256xbf16>, vector<256x128xbf16>, vector<8x128xf32> -> vector<8x128xf32>
    %7 = arith.addf %3, %6 : vector<8x128xf32>
    %c0_6 = arith.constant 0 : index
    %c0_7 = arith.constant 0 : index
    %8 = vector.load %arg7[%c0_6, %c0_7] : memref<8x128xf32, #tpu.memory_space<vmem>>, vector<8x128xf32>
    tpu.vector_store %arg7[%c0_6, %c0_7], %7 {strides = array<i32>} : memref<8x128xf32, #tpu.memory_space<vmem>>, vector<8x128xf32>,
    %c3_i32 = arith.constant 3 : i32
    %9 = arith.cmpi eq, %arg2, %c3_i32 : i32
    %10 = arith.extui %9 : i1 to i32
    %c0_i32_8 = arith.constant 0 : i32
    %11 = arith.cmpi ne, %10, %c0_i32_8 : i32
    scf.if %11 {
      %c0_9 = arith.constant 0 : index
      %c0_10 = arith.constant 0 : index
      %12 = vector.load %arg7[%c0_9, %c0_10] : memref<8x128xf32, #tpu.memory_space<vmem>>, vector<8x128xf32>
      %c0_11 = arith.constant 0 : index
      %c0_12 = arith.constant 0 : index
      %13 = vector.load %arg5[%c0_11, %c0_12] : memref<2x128xf32, #tpu.memory_space<vmem>>, vector<1x128xf32>
      %14 = vector.broadcast %13 : vector<1x128xf32> to vector<8x128xf32>
      %15 = arith.mulf %12, %14 : vector<8x128xf32>
      %c1 = arith.constant 1 : index
      %c0_13 = arith.constant 0 : index
      %16 = vector.load %arg5[%c1, %c0_13] : memref<2x128xf32, #tpu.memory_space<vmem>>, vector<1x128xf32>
      %17 = vector.broadcast %16 : vector<1x128xf32> to vector<8x128xf32>
      %18 = arith.addf %15, %17 : vector<8x128xf32>
      %cst_14 = arith.constant 0.000000e+00 : f32
      %19 = vector.broadcast %cst_14 : f32 to vector<8x128xf32>
      %20 = arith.maximumf %18, %19 : vector<8x128xf32>
      %21 = arith.truncf %20 : vector<8x128xf32> to vector<8x128xbf16>
      %c0_15 = arith.constant 0 : index
      %c0_16 = arith.constant 0 : index
      %22 = vector.load %arg6[%c0_15, %c0_16] : memref<8x128xbf16, #tpu.memory_space<vmem>>, vector<8x128xbf16>
      tpu.vector_store %arg6[%c0_15, %c0_16], %21 {strides = array<i32>} : memref<8x128xbf16, #tpu.memory_space<vmem>>, vector<8x128xbf16>,
    } else {
    }
    return
  }
  func.func @transform_0(%arg0: i32, %arg1: i32, %arg2: i32) -> (i32, i32) {
    %c0_i32 = arith.constant 0 : i32
    return %arg0, %arg2 : i32, i32
  }
  func.func @transform_1(%arg0: i32, %arg1: i32, %arg2: i32) -> (i32, i32) {
    %c0_i32 = arith.constant 0 : i32
    return %arg2, %arg1 : i32, i32
  }
  func.func @transform_2(%arg0: i32, %arg1: i32, %arg2: i32) -> (i32, i32) {
    %c0_i32 = arith.constant 0 : i32
    %c0_i32_0 = arith.constant 0 : i32
    return %c0_i32, %arg1 : i32, i32
  }
  func.func @transform_3(%arg0: i32, %arg1: i32, %arg2: i32) -> (i32, i32) {
    %c0_i32 = arith.constant 0 : i32
    return %arg0, %arg1 : i32, i32
  }
}

module attributes {stable_mosaic.version = 11 : i64} {
  func.func @kernel(%arg0: i32, %arg1: i32, %arg2: i32, %arg3: memref<8x256xbf16, #tpu.memory_space<vmem>>, %arg4: memref<256x128xbf16, #tpu.memory_space<vmem>>, %arg5: memref<2x128xf32, #tpu.memory_space<vmem>>, %arg6: memref<8x128xbf16, #tpu.memory_space<vmem>>, %arg7: memref<8x128xf32, #tpu.memory_space<vmem>>) attributes {dimension_semantics = [#tpu.dimension_semantics<parallel>, #tpu.dimension_semantics<parallel>, #tpu.dimension_semantics<arbitrary>], iteration_bounds = array<i64: 1, 5, 22>, scalar_prefetch = 0 : i64, scratch_operands = 1 : i64, tpu.core_type = #tpu.core_type<tc>, window_params = [{transform_indices = @transform_0, window_bounds = array<i64: 8, 256>}, {transform_indices = @transform_1, window_bounds = array<i64: 256, 128>}, {transform_indices = @transform_2, window_bounds = array<i64: 2, 128>}, {transform_indices = @transform_3, window_bounds = array<i64: 8, 128>}]} {
    %c0_i32 = arith.constant 0 : i32
    %0 = arith.cmpi eq, %arg2, %c0_i32 : i32
    %1 = arith.extui %0 : i1 to i32
    %c0_i32_0 = arith.constant 0 : i32
    %2 = arith.cmpi ne, %1, %c0_i32_0 : i32
    scf.if %2 {
      %cst_9 = arith.constant 0.000000e+00 : f32
      %12 = vector.broadcast %cst_9 : f32 to vector<8x128xf32>
      %c0_10 = arith.constant 0 : index
      %c0_11 = arith.constant 0 : index
      %13 = vector.load %arg7[%c0_10, %c0_11] : memref<8x128xf32, #tpu.memory_space<vmem>>, vector<8x128xf32>
      tpu.vector_store %arg7[%c0_10, %c0_11], %12 {strides = array<i32>} : memref<8x128xf32, #tpu.memory_space<vmem>>, vector<8x128xf32>,
    } else {
    }
    %c0 = arith.constant 0 : index
    %c0_1 = arith.constant 0 : index
    %3 = vector.load %arg7[%c0, %c0_1] : memref<8x128xf32, #tpu.memory_space<vmem>>, vector<8x128xf32>
    %c0_2 = arith.constant 0 : index
    %c0_3 = arith.constant 0 : index
    %4 = vector.load %arg3[%c0_2, %c0_3] : memref<8x256xbf16, #tpu.memory_space<vmem>>, vector<8x256xbf16>
    %c0_4 = arith.constant 0 : index
    %c0_5 = arith.constant 0 : index
    %5 = vector.load %arg4[%c0_4, %c0_5] : memref<256x128xbf16, #tpu.memory_space<vmem>>, vector<256x128xbf16>
    %cst = arith.constant dense<0.000000e+00> : vector<8x128xf32>
    %6 = tpu.matmul %4, %5, %cst {dimension_numbers = #tpu.dot_dimension_numbers<[1], [0], [0], [1], [0, 0, 1, 1], [], []>} : vector<8x256xbf16>, vector<256x128xbf16>, vector<8x128xf32> -> vector<8x128xf32>
    %7 = arith.addf %3, %6 : vector<8x128xf32>
    %c0_6 = arith.constant 0 : index
    %c0_7 = arith.constant 0 : index
    %8 = vector.load %arg7[%c0_6, %c0_7] : memref<8x128xf32, #tpu.memory_space<vmem>>, vector<8x128xf32>
    tpu.vector_store %arg7[%c0_6, %c0_7], %7 {strides = array<i32>} : memref<8x128xf32, #tpu.memory_space<vmem>>, vector<8x128xf32>,
    %c21_i32 = arith.constant 21 : i32
    %9 = arith.cmpi eq, %arg2, %c21_i32 : i32
    %10 = arith.extui %9 : i1 to i32
    %c0_i32_8 = arith.constant 0 : i32
    %11 = arith.cmpi ne, %10, %c0_i32_8 : i32
    scf.if %11 {
      %c0_9 = arith.constant 0 : index
      %c0_10 = arith.constant 0 : index
      %12 = vector.load %arg7[%c0_9, %c0_10] : memref<8x128xf32, #tpu.memory_space<vmem>>, vector<8x128xf32>
      %c0_11 = arith.constant 0 : index
      %c0_12 = arith.constant 0 : index
      %13 = vector.load %arg5[%c0_11, %c0_12] : memref<2x128xf32, #tpu.memory_space<vmem>>, vector<1x128xf32>
      %14 = vector.broadcast %13 : vector<1x128xf32> to vector<8x128xf32>
      %15 = arith.mulf %12, %14 : vector<8x128xf32>
      %c1 = arith.constant 1 : index
      %c0_13 = arith.constant 0 : index
      %16 = vector.load %arg5[%c1, %c0_13] : memref<2x128xf32, #tpu.memory_space<vmem>>, vector<1x128xf32>
      %17 = vector.broadcast %16 : vector<1x128xf32> to vector<8x128xf32>
      %18 = arith.addf %15, %17 : vector<8x128xf32>
      %cst_14 = arith.constant 0.000000e+00 : f32
      %19 = vector.broadcast %cst_14 : f32 to vector<8x128xf32>
      %20 = arith.maximumf %18, %19 : vector<8x128xf32>
      %21 = arith.truncf %20 : vector<8x128xf32> to vector<8x128xbf16>
      %c0_15 = arith.constant 0 : index
      %c0_16 = arith.constant 0 : index
      %22 = vector.load %arg6[%c0_15, %c0_16] : memref<8x128xbf16, #tpu.memory_space<vmem>>, vector<8x128xbf16>
      tpu.vector_store %arg6[%c0_15, %c0_16], %21 {strides = array<i32>} : memref<8x128xbf16, #tpu.memory_space<vmem>>, vector<8x128xbf16>,
    } else {
    }
    return
  }
  func.func @transform_0(%arg0: i32, %arg1: i32, %arg2: i32) -> (i32, i32) {
    %c0_i32 = arith.constant 0 : i32
    return %arg0, %arg2 : i32, i32
  }
  func.func @transform_1(%arg0: i32, %arg1: i32, %arg2: i32) -> (i32, i32) {
    %c0_i32 = arith.constant 0 : i32
    return %arg2, %arg1 : i32, i32
  }
  func.func @transform_2(%arg0: i32, %arg1: i32, %arg2: i32) -> (i32, i32) {
    %c0_i32 = arith.constant 0 : i32
    %c0_i32_0 = arith.constant 0 : i32
    return %c0_i32, %arg1 : i32, i32
  }
  func.func @transform_3(%arg0: i32, %arg1: i32, %arg2: i32) -> (i32, i32) {
    %c0_i32 = arith.constant 0 : i32
    return %arg0, %arg1 : i32, i32
  }
}

module attributes {stable_mosaic.version = 11 : i64} {
  func.func @kernel(%arg0: i32, %arg1: i32, %arg2: i32, %arg3: memref<8x256xbf16, #tpu.memory_space<vmem>>, %arg4: memref<256x256xbf16, #tpu.memory_space<vmem>>, %arg5: memref<2x256xf32, #tpu.memory_space<vmem>>, %arg6: memref<8x256xbf16, #tpu.memory_space<vmem>>, %arg7: memref<8x256xf32, #tpu.memory_space<vmem>>) attributes {dimension_semantics = [#tpu.dimension_semantics<parallel>, #tpu.dimension_semantics<parallel>, #tpu.dimension_semantics<arbitrary>], iteration_bounds = array<i64: 1, 8, 4>, scalar_prefetch = 0 : i64, scratch_operands = 1 : i64, tpu.core_type = #tpu.core_type<tc>, window_params = [{transform_indices = @transform_0, window_bounds = array<i64: 8, 256>}, {transform_indices = @transform_1, window_bounds = array<i64: 256, 256>}, {transform_indices = @transform_2, window_bounds = array<i64: 2, 256>}, {transform_indices = @transform_3, window_bounds = array<i64: 8, 256>}]} {
    %c0_i32 = arith.constant 0 : i32
    %0 = arith.cmpi eq, %arg2, %c0_i32 : i32
    %1 = arith.extui %0 : i1 to i32
    %c0_i32_0 = arith.constant 0 : i32
    %2 = arith.cmpi ne, %1, %c0_i32_0 : i32
    scf.if %2 {
      %cst_9 = arith.constant 0.000000e+00 : f32
      %12 = vector.broadcast %cst_9 : f32 to vector<8x256xf32>
      %c0_10 = arith.constant 0 : index
      %c0_11 = arith.constant 0 : index
      %13 = vector.load %arg7[%c0_10, %c0_11] : memref<8x256xf32, #tpu.memory_space<vmem>>, vector<8x256xf32>
      tpu.vector_store %arg7[%c0_10, %c0_11], %12 {strides = array<i32>} : memref<8x256xf32, #tpu.memory_space<vmem>>, vector<8x256xf32>,
    } else {
    }
    %c0 = arith.constant 0 : index
    %c0_1 = arith.constant 0 : index
    %3 = vector.load %arg7[%c0, %c0_1] : memref<8x256xf32, #tpu.memory_space<vmem>>, vector<8x256xf32>
    %c0_2 = arith.constant 0 : index
    %c0_3 = arith.constant 0 : index
    %4 = vector.load %arg3[%c0_2, %c0_3] : memref<8x256xbf16, #tpu.memory_space<vmem>>, vector<8x256xbf16>
    %c0_4 = arith.constant 0 : index
    %c0_5 = arith.constant 0 : index
    %5 = vector.load %arg4[%c0_4, %c0_5] : memref<256x256xbf16, #tpu.memory_space<vmem>>, vector<256x256xbf16>
    %cst = arith.constant dense<0.000000e+00> : vector<8x256xf32>
    %6 = tpu.matmul %4, %5, %cst {dimension_numbers = #tpu.dot_dimension_numbers<[1], [0], [0], [1], [0, 0, 1, 1], [], []>} : vector<8x256xbf16>, vector<256x256xbf16>, vector<8x256xf32> -> vector<8x256xf32>
    %7 = arith.addf %3, %6 : vector<8x256xf32>
    %c0_6 = arith.constant 0 : index
    %c0_7 = arith.constant 0 : index
    %8 = vector.load %arg7[%c0_6, %c0_7] : memref<8x256xf32, #tpu.memory_space<vmem>>, vector<8x256xf32>
    tpu.vector_store %arg7[%c0_6, %c0_7], %7 {strides = array<i32>} : memref<8x256xf32, #tpu.memory_space<vmem>>, vector<8x256xf32>,
    %c3_i32 = arith.constant 3 : i32
    %9 = arith.cmpi eq, %arg2, %c3_i32 : i32
    %10 = arith.extui %9 : i1 to i32
    %c0_i32_8 = arith.constant 0 : i32
    %11 = arith.cmpi ne, %10, %c0_i32_8 : i32
    scf.if %11 {
      %c0_9 = arith.constant 0 : index
      %c0_10 = arith.constant 0 : index
      %12 = vector.load %arg7[%c0_9, %c0_10] : memref<8x256xf32, #tpu.memory_space<vmem>>, vector<8x256xf32>
      %c0_11 = arith.constant 0 : index
      %c0_12 = arith.constant 0 : index
      %13 = vector.load %arg5[%c0_11, %c0_12] : memref<2x256xf32, #tpu.memory_space<vmem>>, vector<1x256xf32>
      %14 = vector.broadcast %13 : vector<1x256xf32> to vector<8x256xf32>
      %15 = arith.mulf %12, %14 : vector<8x256xf32>
      %c1 = arith.constant 1 : index
      %c0_13 = arith.constant 0 : index
      %16 = vector.load %arg5[%c1, %c0_13] : memref<2x256xf32, #tpu.memory_space<vmem>>, vector<1x256xf32>
      %17 = vector.broadcast %16 : vector<1x256xf32> to vector<8x256xf32>
      %18 = arith.addf %15, %17 : vector<8x256xf32>
      %19 = arith.truncf %18 : vector<8x256xf32> to vector<8x256xbf16>
      %c0_14 = arith.constant 0 : index
      %c0_15 = arith.constant 0 : index
      %20 = vector.load %arg6[%c0_14, %c0_15] : memref<8x256xbf16, #tpu.memory_space<vmem>>, vector<8x256xbf16>
      tpu.vector_store %arg6[%c0_14, %c0_15], %19 {strides = array<i32>} : memref<8x256xbf16, #tpu.memory_space<vmem>>, vector<8x256xbf16>,
    } else {
    }
    return
  }
  func.func @transform_0(%arg0: i32, %arg1: i32, %arg2: i32) -> (i32, i32) {
    %c0_i32 = arith.constant 0 : i32
    return %arg0, %arg2 : i32, i32
  }
  func.func @transform_1(%arg0: i32, %arg1: i32, %arg2: i32) -> (i32, i32) {
    %c0_i32 = arith.constant 0 : i32
    return %arg2, %arg1 : i32, i32
  }
  func.func @transform_2(%arg0: i32, %arg1: i32, %arg2: i32) -> (i32, i32) {
    %c0_i32 = arith.constant 0 : i32
    %c0_i32_0 = arith.constant 0 : i32
    return %c0_i32, %arg1 : i32, i32
  }
  func.func @transform_3(%arg0: i32, %arg1: i32, %arg2: i32) -> (i32, i32) {
    %c0_i32 = arith.constant 0 : i32
    return %arg0, %arg1 : i32, i32
  }
}

module attributes {stable_mosaic.version = 11 : i64} {
  func.func @kernel(%arg0: i32, %arg1: i32, %arg2: i32, %arg3: memref<8x128xbf16, #tpu.memory_space<vmem>>, %arg4: memref<128x256xbf16, #tpu.memory_space<vmem>>, %arg5: memref<2x256xf32, #tpu.memory_space<vmem>>, %arg6: memref<8x256xbf16, #tpu.memory_space<vmem>>, %arg7: memref<8x256xbf16, #tpu.memory_space<vmem>>, %arg8: memref<8x256xf32, #tpu.memory_space<vmem>>) attributes {dimension_semantics = [#tpu.dimension_semantics<parallel>, #tpu.dimension_semantics<parallel>, #tpu.dimension_semantics<arbitrary>], iteration_bounds = array<i64: 1, 8, 7>, scalar_prefetch = 0 : i64, scratch_operands = 1 : i64, tpu.core_type = #tpu.core_type<tc>, window_params = [{transform_indices = @transform_0, window_bounds = array<i64: 8, 128>}, {transform_indices = @transform_1, window_bounds = array<i64: 128, 256>}, {transform_indices = @transform_2, window_bounds = array<i64: 2, 256>}, {transform_indices = @transform_3, window_bounds = array<i64: 8, 256>}, {transform_indices = @transform_4, window_bounds = array<i64: 8, 256>}]} {
    %c0_i32 = arith.constant 0 : i32
    %0 = arith.cmpi eq, %arg2, %c0_i32 : i32
    %1 = arith.extui %0 : i1 to i32
    %c0_i32_0 = arith.constant 0 : i32
    %2 = arith.cmpi ne, %1, %c0_i32_0 : i32
    scf.if %2 {
      %cst_9 = arith.constant 0.000000e+00 : f32
      %12 = vector.broadcast %cst_9 : f32 to vector<8x256xf32>
      %c0_10 = arith.constant 0 : index
      %c0_11 = arith.constant 0 : index
      %13 = vector.load %arg8[%c0_10, %c0_11] : memref<8x256xf32, #tpu.memory_space<vmem>>, vector<8x256xf32>
      tpu.vector_store %arg8[%c0_10, %c0_11], %12 {strides = array<i32>} : memref<8x256xf32, #tpu.memory_space<vmem>>, vector<8x256xf32>,
    } else {
    }
    %c0 = arith.constant 0 : index
    %c0_1 = arith.constant 0 : index
    %3 = vector.load %arg8[%c0, %c0_1] : memref<8x256xf32, #tpu.memory_space<vmem>>, vector<8x256xf32>
    %c0_2 = arith.constant 0 : index
    %c0_3 = arith.constant 0 : index
    %4 = vector.load %arg3[%c0_2, %c0_3] : memref<8x128xbf16, #tpu.memory_space<vmem>>, vector<8x128xbf16>
    %c0_4 = arith.constant 0 : index
    %c0_5 = arith.constant 0 : index
    %5 = vector.load %arg4[%c0_4, %c0_5] : memref<128x256xbf16, #tpu.memory_space<vmem>>, vector<128x256xbf16>
    %cst = arith.constant dense<0.000000e+00> : vector<8x256xf32>
    %6 = tpu.matmul %4, %5, %cst {dimension_numbers = #tpu.dot_dimension_numbers<[1], [0], [0], [1], [0, 0, 1, 1], [], []>} : vector<8x128xbf16>, vector<128x256xbf16>, vector<8x256xf32> -> vector<8x256xf32>
    %7 = arith.addf %3, %6 : vector<8x256xf32>
    %c0_6 = arith.constant 0 : index
    %c0_7 = arith.constant 0 : index
    %8 = vector.load %arg8[%c0_6, %c0_7] : memref<8x256xf32, #tpu.memory_space<vmem>>, vector<8x256xf32>
    tpu.vector_store %arg8[%c0_6, %c0_7], %7 {strides = array<i32>} : memref<8x256xf32, #tpu.memory_space<vmem>>, vector<8x256xf32>,
    %c6_i32 = arith.constant 6 : i32
    %9 = arith.cmpi eq, %arg2, %c6_i32 : i32
    %10 = arith.extui %9 : i1 to i32
    %c0_i32_8 = arith.constant 0 : i32
    %11 = arith.cmpi ne, %10, %c0_i32_8 : i32
    scf.if %11 {
      %c0_9 = arith.constant 0 : index
      %c0_10 = arith.constant 0 : index
      %12 = vector.load %arg8[%c0_9, %c0_10] : memref<8x256xf32, #tpu.memory_space<vmem>>, vector<8x256xf32>
      %c0_11 = arith.constant 0 : index
      %c0_12 = arith.constant 0 : index
      %13 = vector.load %arg5[%c0_11, %c0_12] : memref<2x256xf32, #tpu.memory_space<vmem>>, vector<1x256xf32>
      %14 = vector.broadcast %13 : vector<1x256xf32> to vector<8x256xf32>
      %15 = arith.mulf %12, %14 : vector<8x256xf32>
      %c1 = arith.constant 1 : index
      %c0_13 = arith.constant 0 : index
      %16 = vector.load %arg5[%c1, %c0_13] : memref<2x256xf32, #tpu.memory_space<vmem>>, vector<1x256xf32>
      %17 = vector.broadcast %16 : vector<1x256xf32> to vector<8x256xf32>
      %18 = arith.addf %15, %17 : vector<8x256xf32>
      %c0_14 = arith.constant 0 : index
      %c0_15 = arith.constant 0 : index
      %19 = vector.load %arg6[%c0_14, %c0_15] : memref<8x256xbf16, #tpu.memory_space<vmem>>, vector<8x256xbf16>
      %20 = arith.extf %19 : vector<8x256xbf16> to vector<8x256xf32>
      %21 = arith.addf %18, %20 : vector<8x256xf32>
      %cst_16 = arith.constant 0.000000e+00 : f32
      %22 = vector.broadcast %cst_16 : f32 to vector<8x256xf32>
      %23 = arith.maximumf %21, %22 : vector<8x256xf32>
      %24 = arith.truncf %23 : vector<8x256xf32> to vector<8x256xbf16>
      %c0_17 = arith.constant 0 : index
      %c0_18 = arith.constant 0 : index
      %25 = vector.load %arg7[%c0_17, %c0_18] : memref<8x256xbf16, #tpu.memory_space<vmem>>, vector<8x256xbf16>
      tpu.vector_store %arg7[%c0_17, %c0_18], %24 {strides = array<i32>} : memref<8x256xbf16, #tpu.memory_space<vmem>>, vector<8x256xbf16>,
    } else {
    }
    return
  }
  func.func @transform_0(%arg0: i32, %arg1: i32, %arg2: i32) -> (i32, i32) {
    %c0_i32 = arith.constant 0 : i32
    return %arg0, %arg2 : i32, i32
  }
  func.func @transform_1(%arg0: i32, %arg1: i32, %arg2: i32) -> (i32, i32) {
    %c0_i32 = arith.constant 0 : i32
    return %arg2, %arg1 : i32, i32
  }
  func.func @transform_2(%arg0: i32, %arg1: i32, %arg2: i32) -> (i32, i32) {
    %c0_i32 = arith.constant 0 : i32
    %c0_i32_0 = arith.constant 0 : i32
    return %c0_i32, %arg1 : i32, i32
  }
  func.func @transform_3(%arg0: i32, %arg1: i32, %arg2: i32) -> (i32, i32) {
    %c0_i32 = arith.constant 0 : i32
    return %arg0, %arg1 : i32, i32
  }
  func.func @transform_4(%arg0: i32, %arg1: i32, %arg2: i32) -> (i32, i32) {
    %c0_i32 = arith.constant 0 : i32
    return %arg0, %arg1 : i32, i32
  }
}

module attributes {stable_mosaic.version = 11 : i64} {
  func.func @kernel(%arg0: i32, %arg1: i32, %arg2: i32, %arg3: memref<8x256xbf16, #tpu.memory_space<vmem>>, %arg4: memref<256x128xbf16, #tpu.memory_space<vmem>>, %arg5: memref<2x128xf32, #tpu.memory_space<vmem>>, %arg6: memref<8x128xf32, #tpu.memory_space<vmem>>, %arg7: memref<8x128xf32, #tpu.memory_space<vmem>>) attributes {dimension_semantics = [#tpu.dimension_semantics<parallel>, #tpu.dimension_semantics<parallel>, #tpu.dimension_semantics<arbitrary>], iteration_bounds = array<i64: 1, 1, 8>, scalar_prefetch = 0 : i64, scratch_operands = 1 : i64, tpu.core_type = #tpu.core_type<tc>, window_params = [{transform_indices = @transform_0, window_bounds = array<i64: 8, 256>}, {transform_indices = @transform_1, window_bounds = array<i64: 256, 128>}, {transform_indices = @transform_2, window_bounds = array<i64: 2, 128>}, {transform_indices = @transform_3, window_bounds = array<i64: 8, 128>}]} {
    %c0_i32 = arith.constant 0 : i32
    %0 = arith.cmpi eq, %arg2, %c0_i32 : i32
    %1 = arith.extui %0 : i1 to i32
    %c0_i32_0 = arith.constant 0 : i32
    %2 = arith.cmpi ne, %1, %c0_i32_0 : i32
    scf.if %2 {
      %cst_9 = arith.constant 0.000000e+00 : f32
      %12 = vector.broadcast %cst_9 : f32 to vector<8x128xf32>
      %c0_10 = arith.constant 0 : index
      %c0_11 = arith.constant 0 : index
      %13 = vector.load %arg7[%c0_10, %c0_11] : memref<8x128xf32, #tpu.memory_space<vmem>>, vector<8x128xf32>
      tpu.vector_store %arg7[%c0_10, %c0_11], %12 {strides = array<i32>} : memref<8x128xf32, #tpu.memory_space<vmem>>, vector<8x128xf32>,
    } else {
    }
    %c0 = arith.constant 0 : index
    %c0_1 = arith.constant 0 : index
    %3 = vector.load %arg7[%c0, %c0_1] : memref<8x128xf32, #tpu.memory_space<vmem>>, vector<8x128xf32>
    %c0_2 = arith.constant 0 : index
    %c0_3 = arith.constant 0 : index
    %4 = vector.load %arg3[%c0_2, %c0_3] : memref<8x256xbf16, #tpu.memory_space<vmem>>, vector<8x256xbf16>
    %c0_4 = arith.constant 0 : index
    %c0_5 = arith.constant 0 : index
    %5 = vector.load %arg4[%c0_4, %c0_5] : memref<256x128xbf16, #tpu.memory_space<vmem>>, vector<256x128xbf16>
    %cst = arith.constant dense<0.000000e+00> : vector<8x128xf32>
    %6 = tpu.matmul %4, %5, %cst {dimension_numbers = #tpu.dot_dimension_numbers<[1], [0], [0], [1], [0, 0, 1, 1], [], []>} : vector<8x256xbf16>, vector<256x128xbf16>, vector<8x128xf32> -> vector<8x128xf32>
    %7 = arith.addf %3, %6 : vector<8x128xf32>
    %c0_6 = arith.constant 0 : index
    %c0_7 = arith.constant 0 : index
    %8 = vector.load %arg7[%c0_6, %c0_7] : memref<8x128xf32, #tpu.memory_space<vmem>>, vector<8x128xf32>
    tpu.vector_store %arg7[%c0_6, %c0_7], %7 {strides = array<i32>} : memref<8x128xf32, #tpu.memory_space<vmem>>, vector<8x128xf32>,
    %c7_i32 = arith.constant 7 : i32
    %9 = arith.cmpi eq, %arg2, %c7_i32 : i32
    %10 = arith.extui %9 : i1 to i32
    %c0_i32_8 = arith.constant 0 : i32
    %11 = arith.cmpi ne, %10, %c0_i32_8 : i32
    scf.if %11 {
      %c0_9 = arith.constant 0 : index
      %c0_10 = arith.constant 0 : index
      %12 = vector.load %arg7[%c0_9, %c0_10] : memref<8x128xf32, #tpu.memory_space<vmem>>, vector<8x128xf32>
      %c0_11 = arith.constant 0 : index
      %c0_12 = arith.constant 0 : index
      %13 = vector.load %arg5[%c0_11, %c0_12] : memref<2x128xf32, #tpu.memory_space<vmem>>, vector<1x128xf32>
      %14 = vector.broadcast %13 : vector<1x128xf32> to vector<8x128xf32>
      %15 = arith.mulf %12, %14 : vector<8x128xf32>
      %c1 = arith.constant 1 : index
      %c0_13 = arith.constant 0 : index
      %16 = vector.load %arg5[%c1, %c0_13] : memref<2x128xf32, #tpu.memory_space<vmem>>, vector<1x128xf32>
      %17 = vector.broadcast %16 : vector<1x128xf32> to vector<8x128xf32>
      %18 = arith.addf %15, %17 : vector<8x128xf32>
      %c0_14 = arith.constant 0 : index
      %c0_15 = arith.constant 0 : index
      %19 = vector.load %arg6[%c0_14, %c0_15] : memref<8x128xf32, #tpu.memory_space<vmem>>, vector<8x128xf32>
      tpu.vector_store %arg6[%c0_14, %c0_15], %18 {strides = array<i32>} : memref<8x128xf32, #tpu.memory_space<vmem>>, vector<8x128xf32>,
    } else {
    }
    return
  }
  func.func @transform_0(%arg0: i32, %arg1: i32, %arg2: i32) -> (i32, i32) {
    %c0_i32 = arith.constant 0 : i32
    return %arg0, %arg2 : i32, i32
  }
  func.func @transform_1(%arg0: i32, %arg1: i32, %arg2: i32) -> (i32, i32) {
    %c0_i32 = arith.constant 0 : i32
    return %arg2, %arg1 : i32, i32
  }
  func.func @transform_2(%arg0: i32, %arg1: i32, %arg2: i32) -> (i32, i32) {
    %c0_i32 = arith.constant 0 : i32
    %c0_i32_0 = arith.constant 0 : i32
    return %c0_i32, %arg1 : i32, i32
  }
  func.func @transform_3(%arg0: i32, %arg1: i32, %arg2: i32) -> (i32, i32) {
    %c0_i32 = arith.constant 0 : i32
    return %arg0, %arg1 : i32, i32
  }
}

</mosaic_0001>

<bundles_post_ra>
// kernel: _lambda_.19
= control target key start
LH: loop header
LB: loop body
LE: loop exit
PB: predicated region body
PF: predicated region fallthrough
CT: control target
= control target key end

     0   :  { %s782_s12 = smov 0   ;;  %s784_s13 = smov 0   ;;  %s855_s0 = inlined_call_operand.vmem [shape: bf16[128,128], index: 0, kind: input, shape index: {}]   ;;  %s856_s1 = inlined_call_operand.vmem [shape: bf16[128,128], index: 1, kind: input, shape index: {}]   ;;  %s857_s2 = inlined_call_operand.vmem [shape: f32[2,128], index: 2, kind: input, shape index: {}]   ;;  %s858_s3 = inlined_call_operand.vmem [shape: bf16[128,128], index: 3, kind: output, shape index: {}]  }
   0x1   :  { %s786_s14 = smov 0  }
   0x2 LB: > { %s32_s15 = sadd.s32 1, %s756_s13  ;;  %p598_p0 = scmp.ge.s32.totalorder %s760_s14, 1  ;;  %s760_s14 = sphi %s786_s14, %s13_s14   ;;  %s756_s13 = sphi %s784_s13, %s860_s13   ;;  %s752_s12 = sphi %s782_s12, %s859_s12  }
   0x3   : > { %p34_p1 = scmp.ge.s32.totalorder %s32_s15, 2  ;;  %p189_p2 = scmp.lt.s32.totalorder %s760_s14, 3 }
   0x5   : > { %s862_s15 = smov (%p34_p1, %s32_s15), 0  ;;  %p190_p3 = pnand %p598_p0, %p189_p2 }
   0x6   : > { %s599_s24 = sshll.u32 (!%p190_p3), %s752_s12, 3 }
   0x7   : > { %193 = sbr.rel (%p190_p3) target bundleno = 195 (0xc3), region = 32  ;;  %p232_p4 = scmp.lt.s32.totalorder (!%p190_p3), %s599_s24, 15 }
   0xc   : > { %v664_v0 = vld [vmem:[%s856_s1 + $0x38] sm:$0xff]  ;;  %v663_v1 = vld [vmem:[%s856_s1 + $0x30] sm:$0xff]  ;;  %v662_v2 = vld [vmem:[%s856_s1 + $0x28] sm:$0xff]  ;;  %s864_s24 = smov (!%p232_p4, %s599_s24), 15 }
   0xd   : > { %378 = vmatpush.bf16.msra.mxu0 %v664_v0  ;;  %688 = vmatpush.bf16.msra.mxu1 %v664_v0  ;;  %v661_v3 = vld [vmem:[%s856_s1 + $0x20] sm:$0xff]  ;;  %v660_v4 = vld [vmem:[%s856_s1 + $0x18] sm:$0xff]  ;;  %v659_v5 = vld [vmem:[%s856_s1 + $0x10] sm:$0xff]  ;;  %s600_s4 = sshll.u32 %s864_s24, 2 }
   0xe   : > { %689 = vmatpush.bf16.msra.mxu2 %v664_v0  ;;  %690 = vmatpush.bf16.msra.mxu3 %v664_v0  ;;  %v658_v6 = vld [vmem:[%s856_s1 + $0x8] sm:$0xff]  ;;  %v657_v7 = vld [vmem:[%s856_s1] sm:$0xff]  ;;  %s238_s9 = scalar_lea.vmem %s855_s0, %s600_s4  ;;  %s260_s19 = scalar_lea.vmem %s858_s3, %s600_s4 }
   0xf   : > { %v653_v8 = vld [vmem:[%s238_s9] sm:$0xff]  ;;  %v654_v9 = vld [vmem:[%s238_s9 + $0x8] sm:$0xff]  ;;  %v655_v10 = vld [vmem:[%s238_s9 + $0x10] sm:$0xff] }
  0x10   : > { %v656_v11 = vld [vmem:[%s238_s9 + $0x18] sm:$0xff]  ;;  %v736_v14 = vld [vmem:[%s857_s2] ss:$0 sm:$0xff]  ;;  %v737_v16 = vld [vmem:[%s857_s2 + $0x1] ss:$0 sm:$0xff] }
  0x11   : > { %379 = vmatpush.bf16.msra.mxu0 %v663_v1  ;;  %691 = vmatpush.bf16.msra.mxu1 %v663_v1 }
  0x12   : > { %692 = vmatpush.bf16.msra.mxu2 %v663_v1  ;;  %693 = vmatpush.bf16.msra.mxu3 %v663_v1 }
  0x15   : > { %380 = vmatpush.bf16.msra.mxu0 %v662_v2  ;;  %694 = vmatpush.bf16.msra.mxu1 %v662_v2 }
  0x16   : > { %695 = vmatpush.bf16.msra.mxu2 %v662_v2  ;;  %696 = vmatpush.bf16.msra.mxu3 %v662_v2 }
  0x19   : > { %381 = vmatpush.bf16.msra.mxu0 %v661_v3  ;;  %697 = vmatpush.bf16.msra.mxu1 %v661_v3 }
  0x1a   : > { %698 = vmatpush.bf16.msra.mxu2 %v661_v3  ;;  %699 = vmatpush.bf16.msra.mxu3 %v661_v3 }
  0x1d   : > { %382 = vmatpush.bf16.msra.mxu0 %v660_v4  ;;  %700 = vmatpush.bf16.msra.mxu1 %v660_v4 }
  0x1e   : > { %701 = vmatpush.bf16.msra.mxu2 %v660_v4  ;;  %702 = vmatpush.bf16.msra.mxu3 %v660_v4 }
  0x21   : > { %383 = vmatpush.bf16.msra.mxu0 %v659_v5  ;;  %703 = vmatpush.bf16.msra.mxu1 %v659_v5 }
  0x22   : > { %704 = vmatpush.bf16.msra.mxu2 %v659_v5  ;;  %705 = vmatpush.bf16.msra.mxu3 %v659_v5 }
  0x25   : > { %384 = vmatpush.bf16.msra.mxu0 %v658_v6  ;;  %706 = vmatpush.bf16.msra.mxu1 %v658_v6 }
  0x26   : > { %707 = vmatpush.bf16.msra.mxu2 %v658_v6  ;;  %708 = vmatpush.bf16.msra.mxu3 %v658_v6 }
  0x29   : > { %385 = vmatpush.bf16.msra.mxu0 %v657_v7  ;;  %709 = vmatpush.bf16.msra.mxu1 %v657_v7 }
  0x2a   : > { %710 = vmatpush.bf16.msra.mxu2 %v657_v7  ;;  %711 = vmatpush.bf16.msra.mxu3 %v657_v7 }
  0x2c   : > { %386 = vmatmul.bf16.vlgmr.msra.gmra.mxu0 %v653_v8  ;;  %391 = vmatmul.bf16.vlgmr.msra.gmra.mxu1 %v654_v9 }
  0x2d   : > { %396 = vmatmul.bf16.vlgmr.msra.gmra.mxu2 %v655_v10  ;;  %401 = vmatmul.bf16.vlgmr.msra.gmra.mxu3 %v656_v11 }
  0xa9   : > { %v387_v12 = vpop.f32.mrf.mxu0  ;;  %v392_v13 = vpop.f32.mrf.mxu1 }
  0xaa   : > { %v436_v15 = vmul.f32 %v736_v14, %v387_v12  ;;  %v438_v17 = vmul.f32 %v736_v14, %v392_v13 }
  0xac   : > { %v446_v22 = vadd.f32 %v737_v16, %v436_v15  ;;  %v448_v23 = vadd.f32 %v737_v16, %v438_v17 }
  0xae   : > { %v454_v30 = vmax.f32 %v446_v22, 0.0  ;;  %v456_v31 = vmax.f32 %v448_v23, 0.0 }
  0xb0   : > { %v397_v18 = vpop.f32.mrf.mxu2  ;;  %v402_v19 = vpop.f32.mrf.mxu3 }
  0xb1   : > { %v389_v20 = vpop.f32.mrf.mxu0  ;;  %v394_v21 = vpop.f32.mrf.mxu1  ;;  %v440_v28 = vmul.f32 %v736_v14, %v397_v18  ;;  %v442_v29 = vmul.f32 %v736_v14, %v402_v19 }
  0xb2   : > { %v437_v24 = vmul.f32 %v736_v14, %v389_v20  ;;  %v439_v25 = vmul.f32 %v736_v14, %v394_v21 }
  0xb3   : > { %v450_v38 = vadd.f32 %v737_v16, %v440_v28  ;;  %v452_v39 = vadd.f32 %v737_v16, %v442_v29 }
  0xb4   : > { %v447_v26 = vadd.f32 %v737_v16, %v437_v24  ;;  %v449_v27 = vadd.f32 %v737_v16, %v439_v25 }
  0xb5   : > { %v458_v44 = vmax.f32 %v450_v38, 0.0  ;;  %v460_v45 = vmax.f32 %v452_v39, 0.0 }
  0xb6   : > { %v455_v32 = vmax.f32 %v447_v26, 0.0  ;;  %v457_v33 = vmax.f32 %v449_v27, 0.0 }
  0xb8   : > { %v668_v34 = vpack.c.bf16 %v455_v32, %v454_v30  ;;  %v673_v35 = vpack.c.bf16 %v457_v33, %v456_v31  ;;  %v399_v36 = vpop.f32.mrf.mxu2  ;;  %v404_v37 = vpop.f32.mrf.mxu3 }
  0xb9   : > { %v441_v40 = vmul.f32 %v736_v14, %v399_v36  ;;  %v443_v41 = vmul.f32 %v736_v14, %v404_v37 }
  0xba   : > { %669 = vst [vmem:[%s260_s19] sm:$0xff] %v668_v34  }
  0xbb   : > { %685 = vst [vmem:[%s260_s19 + $0x8] sm:$0xff] %v673_v35   ;;  %v451_v42 = vadd.f32 %v737_v16, %v441_v40  ;;  %v453_v43 = vadd.f32 %v737_v16, %v443_v41 }
  0xbd   : > { %v459_v46 = vmax.f32 %v451_v42, 0.0  ;;  %v461_v47 = vmax.f32 %v453_v43, 0.0 }
  0xbf   : > { %v678_v48 = vpack.c.bf16 %v459_v46, %v458_v44  ;;  %v683_v49 = vpack.c.bf16 %v461_v47, %v460_v45 }
  0xc1   : > { %686 = vst [vmem:[%s260_s19 + $0x10] sm:$0xff] %v678_v48  }
  0xc2   : > { %687 = vst [vmem:[%s260_s19 + $0x18] sm:$0xff] %v683_v49  }
  0xc3 PF: > { %s13_s14 = sadd.s32 1, %s760_s14   ;;  %s859_s12 = smov %s756_s13 }
  0xc4   : > { %p10_p5 = scmp.ge.s32.totalorder %s13_s14, 4   ;;  %s860_s13 = smov %s862_s15 }
  0xc6   :  { %12 = sbr.rel (!%p10_p5) target bundleno = 2 (0x2), region = 76 }

// kernel: _lambda_.18
= control target key start
LH: loop header
LB: loop body
LE: loop exit
PB: predicated region body
PF: predicated region fallthrough
CT: control target
= control target key end

     0   :  { %s1652_s12 = smov 0   ;;  %s1654_s13 = smov 0   ;;  %s1898_s0 = inlined_call_operand.vmem [shape: bf16[512,256], index: 0, kind: input, shape index: {}]   ;;  %s1899_s1 = inlined_call_operand.vmem [shape: bf16[256,128], index: 1, kind: input, shape index: {}]   ;;  %s1900_s2 = inlined_call_operand.vmem [shape: f32[2,128], index: 2, kind: input, shape index: {}]   ;;  %s1901_s3 = inlined_call_operand.vmem [shape: bf16[512,128], index: 3, kind: output, shape index: {}]  }
   0x1   :  { %s1656_s14 = smov 0  }
   0x2 LB: > { %s32_s15 = sadd.s32 1, %s1626_s13  ;;  %p1222_p0 = scmp.ge.s32.totalorder %s1630_s14, 1  ;;  %s1630_s14 = sphi %s1656_s14, %s13_s14   ;;  %s1626_s13 = sphi %s1654_s13, %s1903_s13   ;;  %s1622_s12 = sphi %s1652_s12, %s1902_s12  }
   0x3   : > { %p34_p1 = scmp.ge.s32.totalorder %s32_s15, 2  ;;  %p192_p2 = scmp.lt.s32.totalorder %s1630_s14, 3 }
   0x5   : > { %s1905_s15 = smov (%p34_p1, %s32_s15), 0  ;;  %p193_p3 = pnand %p1222_p0, %p192_p2 }
   0x6   : > { %s1223_s28 = sshll.u32 (!%p193_p3), %s1622_s12, 5 }
   0x7   : > { %196 = sbr.rel (%p193_p3) target bundleno = 308 (0x134), region = 32  ;;  %p238_p4 = scmp.lt.s32.totalorder (!%p193_p3), %s1223_s28, 63 }
   0xc   : > { %v1462_v0 = vld [vmem:[%s1899_s1 + $0x38] sm:$0xff]  ;;  %v1461_v2 = vld [vmem:[%s1899_s1 + $0x30] sm:$0xff]  ;;  %v1460_v4 = vld [vmem:[%s1899_s1 + $0x28] sm:$0xff]  ;;  %s1907_s28 = smov (!%p238_p4, %s1223_s28), 63 }
   0xd   : > { %v1470_v1 = vld [vmem:[%s1899_s1 + $0x78] sm:$0xff]  ;;  %658 = vmatpush.bf16.msra.mxu0 %v1462_v0  ;;  %1566 = vmatpush.bf16.msra.mxu2 %v1462_v0  ;;  %v1469_v3 = vld [vmem:[%s1899_s1 + $0x70] sm:$0xff]  ;;  %v1468_v5 = vld [vmem:[%s1899_s1 + $0x68] sm:$0xff]  ;;  %s1422_s17 = sshll.u32 %s1907_s28, 3  ;;  %s1227_s7 = sshll.u32 %s1907_s28, 2 }
   0xe   : > { %747 = vmatpush.bf16.msra.mxu1 %v1470_v1  ;;  %1574 = vmatpush.bf16.msra.mxu3 %v1470_v1  ;;  %v1459_v6 = vld [vmem:[%s1899_s1 + $0x20] sm:$0xff]  ;;  %v1458_v8 = vld [vmem:[%s1899_s1 + $0x18] sm:$0xff]  ;;  %v1457_v10 = vld [vmem:[%s1899_s1 + $0x10] sm:$0xff]  ;;  %s1718_s22 = scalar_lea.vmem %s1898_s0, %s1422_s17  ;;  %s1812_s10 = scalar_lea.vmem %s1901_s3, %s1227_s7 }
   0xf   : > { %v1467_v7 = vld [vmem:[%s1899_s1 + $0x60] sm:$0xff]  ;;  %v1466_v9 = vld [vmem:[%s1899_s1 + $0x58] sm:$0xff]  ;;  %v1465_v11 = vld [vmem:[%s1899_s1 + $0x50] sm:$0xff] }
  0x10   : > { %v1456_v12 = vld [vmem:[%s1899_s1 + $0x8] sm:$0xff]  ;;  %v1455_v14 = vld [vmem:[%s1899_s1] sm:$0xff]  ;;  %v1238_v28 = vld [vmem:[%s1718_s22 + $0x10] sm:$0xf] }
  0x11   : > { %659 = vmatpush.bf16.msra.mxu0 %v1461_v2  ;;  %1567 = vmatpush.bf16.msra.mxu2 %v1461_v2  ;;  %v1464_v13 = vld [vmem:[%s1899_s1 + $0x48] sm:$0xff]  ;;  %v1463_v15 = vld [vmem:[%s1899_s1 + $0x40] sm:$0xff]  ;;  %v1426_v29 = vld [vmem:[%s1718_s22 + $0x14] sm:$0xf0] }
  0x12   : > { %748 = vmatpush.bf16.msra.mxu1 %v1469_v3  ;;  %1575 = vmatpush.bf16.msra.mxu3 %v1469_v3  ;;  %v1230_v16 = vld [vmem:[%s1718_s22] sm:$0xf]  ;;  %v1424_v17 = vld [vmem:[%s1718_s22 + $0x4] sm:$0xf0]  ;;  %v1423_v20 = vld [vmem:[%s1718_s22 + $0x4] sm:$0xf]  ;;  %v1239_v36 = vor.u32 %v1426_v29, %v1238_v28 }
  0x13   : > { %v1294_v18 = vld [vmem:[%s1718_s22 + $0x80] sm:$0xf]  ;;  %v1440_v19 = vld [vmem:[%s1718_s22 + $0x84] sm:$0xf0]  ;;  %v1232_v21 = vld [vmem:[%s1718_s22 + $0x8] sm:$0xf0]  ;;  %v1231_v24 = vor.u32 %v1424_v17, %v1230_v16 }
  0x14   : > { %v1439_v22 = vld [vmem:[%s1718_s22 + $0x84] sm:$0xf]  ;;  %v1296_v23 = vld [vmem:[%s1718_s22 + $0x88] sm:$0xf0]  ;;  %v1295_v25 = vor.u32 %v1440_v19, %v1294_v18  ;;  %v1235_v26 = vor.u32 %v1423_v20, %v1232_v21  ;;  %v1302_v30 = vld [vmem:[%s1718_s22 + $0x90] sm:$0xf] }
  0x15   : > { %660 = vmatpush.bf16.msra.mxu0 %v1460_v4  ;;  %1568 = vmatpush.bf16.msra.mxu2 %v1460_v4  ;;  %v1299_v27 = vor.u32 %v1439_v22, %v1296_v23  ;;  %v1442_v31 = vld [vmem:[%s1718_s22 + $0x94] sm:$0xf0]  ;;  %v1425_v32 = vld [vmem:[%s1718_s22 + $0x14] sm:$0xf]  ;;  %v1240_v33 = vld [vmem:[%s1718_s22 + $0x18] sm:$0xf0] }
  0x16   : > { %749 = vmatpush.bf16.msra.mxu1 %v1468_v5  ;;  %1576 = vmatpush.bf16.msra.mxu3 %v1468_v5  ;;  %v1441_v34 = vld [vmem:[%s1718_s22 + $0x94] sm:$0xf]  ;;  %v1304_v35 = vld [vmem:[%s1718_s22 + $0x98] sm:$0xf0]  ;;  %v1303_v37 = vor.u32 %v1442_v31, %v1302_v30  ;;  %v1243_v38 = vor.u32 %v1425_v32, %v1240_v33  ;;  %v1246_v40 = vld [vmem:[%s1718_s22 + $0x20] sm:$0xf] }
  0x17   : > { %v1307_v39 = vor.u32 %v1441_v34, %v1304_v35  ;;  %v1428_v41 = vld [vmem:[%s1718_s22 + $0x24] sm:$0xf0]  ;;  %v1310_v42 = vld [vmem:[%s1718_s22 + $0xa0] sm:$0xf]  ;;  %v1427_v44 = vld [vmem:[%s1718_s22 + $0x24] sm:$0xf] }
  0x18   : > { %v1444_v43 = vld [vmem:[%s1718_s22 + $0xa4] sm:$0xf0]  ;;  %v1248_v45 = vld [vmem:[%s1718_s22 + $0x28] sm:$0xf0]  ;;  %v1443_v46 = vld [vmem:[%s1718_s22 + $0xa4] sm:$0xf]  ;;  %v1247_v48 = vor.u32 %v1428_v41, %v1246_v40 }
  0x19   : > { %661 = vmatpush.bf16.msra.mxu0 %v1459_v6  ;;  %1569 = vmatpush.bf16.msra.mxu2 %v1459_v6  ;;  %v1312_v47 = vld [vmem:[%s1718_s22 + $0xa8] sm:$0xf0]  ;;  %v1311_v49 = vor.u32 %v1444_v43, %v1310_v42  ;;  %v1251_v50 = vor.u32 %v1427_v44, %v1248_v45  ;;  %v1254_v52 = vld [vmem:[%s1718_s22 + $0x30] sm:$0xf]  ;;  %v1430_v53 = vld [vmem:[%s1718_s22 + $0x34] sm:$0xf0] }
  0x1a   : > { %750 = vmatpush.bf16.msra.mxu1 %v1467_v7  ;;  %1577 = vmatpush.bf16.msra.mxu3 %v1467_v7  ;;  %v1315_v51 = vor.u32 %v1443_v46, %v1312_v47  ;;  %v1318_v54 = vld [vmem:[%s1718_s22 + $0xb0] sm:$0xf]  ;;  %v1446_v55 = vld [vmem:[%s1718_s22 + $0xb4] sm:$0xf0]  ;;  %v1429_v56 = vld [vmem:[%s1718_s22 + $0x34] sm:$0xf]  ;;  %v1255_v60 = vor.u32 %v1430_v53, %v1254_v52 }
  0x1b   : > { %v1256_v57 = vld [vmem:[%s1718_s22 + $0x38] sm:$0xf0]  ;;  %v1445_v58 = vld [vmem:[%s1718_s22 + $0xb4] sm:$0xf]  ;;  %v1319_v61 = vor.u32 %v1446_v55, %v1318_v54  ;;  %v1262_v0 = vld [vmem:[%s1718_s22 + $0x40] sm:$0xf] }
  0x1c   : > { %v1320_v59 = vld [vmem:[%s1718_s22 + $0xb8] sm:$0xf0]  ;;  %v1259_v62 = vor.u32 %v1429_v56, %v1256_v57  ;;  %v1432_v1 = vld [vmem:[%s1718_s22 + $0x44] sm:$0xf0]  ;;  %v1326_v2 = vld [vmem:[%s1718_s22 + $0xc0] sm:$0xf] }
  0x1d   : > { %662 = vmatpush.bf16.msra.mxu0 %v1458_v8  ;;  %1570 = vmatpush.bf16.msra.mxu2 %v1458_v8  ;;  %v1323_v63 = vor.u32 %v1445_v58, %v1320_v59  ;;  %v1448_v3 = vld [vmem:[%s1718_s22 + $0xc4] sm:$0xf0]  ;;  %v1431_v4 = vld [vmem:[%s1718_s22 + $0x44] sm:$0xf]  ;;  %v1264_v5 = vld [vmem:[%s1718_s22 + $0x48] sm:$0xf0]  ;;  %v1263_v8 = vor.u32 %v1432_v1, %v1262_v0 }
  0x1e   : > { %751 = vmatpush.bf16.msra.mxu1 %v1466_v9  ;;  %1578 = vmatpush.bf16.msra.mxu3 %v1466_v9  ;;  %v1447_v6 = vld [vmem:[%s1718_s22 + $0xc4] sm:$0xf]  ;;  %v1328_v7 = vld [vmem:[%s1718_s22 + $0xc8] sm:$0xf0]  ;;  %v1327_v9 = vor.u32 %v1448_v3, %v1326_v2  ;;  %v1433_v16 = vld [vmem:[%s1718_s22 + $0x54] sm:$0xf] }
  0x1f   : > { %v1272_v17 = vld [vmem:[%s1718_s22 + $0x58] sm:$0xf0]  ;;  %v1449_v18 = vld [vmem:[%s1718_s22 + $0xd4] sm:$0xf]  ;;  %v1435_v28 = vld [vmem:[%s1718_s22 + $0x64] sm:$0xf] }
  0x20   : > { %v1336_v19 = vld [vmem:[%s1718_s22 + $0xd8] sm:$0xf0]  ;;  %v1275_v22 = vor.u32 %v1433_v16, %v1272_v17  ;;  %v1280_v29 = vld [vmem:[%s1718_s22 + $0x68] sm:$0xf0]  ;;  %v1451_v30 = vld [vmem:[%s1718_s22 + $0xe4] sm:$0xf] }
  0x21   : > { %663 = vmatpush.bf16.msra.mxu0 %v1457_v10  ;;  %1571 = vmatpush.bf16.msra.mxu2 %v1457_v10  ;;  %v1267_v10 = vor.u32 %v1431_v4, %v1264_v5  ;;  %v1339_v23 = vor.u32 %v1449_v18, %v1336_v19  ;;  %v1344_v31 = vld [vmem:[%s1718_s22 + $0xe8] sm:$0xf0]  ;;  %v1283_v34 = vor.u32 %v1435_v28, %v1280_v29  ;;  %v1437_v40 = vld [vmem:[%s1718_s22 + $0x74] sm:$0xf]  ;;  %v1288_v41 = vld [vmem:[%s1718_s22 + $0x78] sm:$0xf0] }
  0x22   : > { %752 = vmatpush.bf16.msra.mxu1 %v1465_v11  ;;  %1579 = vmatpush.bf16.msra.mxu3 %v1465_v11  ;;  %v1331_v11 = vor.u32 %v1447_v6, %v1328_v7  ;;  %v1347_v35 = vor.u32 %v1451_v30, %v1344_v31  ;;  %v1453_v42 = vld [vmem:[%s1718_s22 + $0xf4] sm:$0xf]  ;;  %v1352_v43 = vld [vmem:[%s1718_s22 + $0xf8] sm:$0xf0]  ;;  %v1291_v46 = vor.u32 %v1437_v40, %v1288_v41  ;;  %v1802_v55 = vld [vmem:[%s1900_s2 + $0x1] ss:$0 sm:$0xff] }
  0x23   : > { %v1355_v47 = vor.u32 %v1453_v42, %v1352_v43 }
  0x25   : > { %664 = vmatpush.bf16.msra.mxu0 %v1456_v12  ;;  %1572 = vmatpush.bf16.msra.mxu2 %v1456_v12  ;;  %v1270_v12 = vld [vmem:[%s1718_s22 + $0x50] sm:$0xf] }
  0x26   : > { %753 = vmatpush.bf16.msra.mxu1 %v1464_v13  ;;  %1580 = vmatpush.bf16.msra.mxu3 %v1464_v13  ;;  %v1434_v13 = vld [vmem:[%s1718_s22 + $0x54] sm:$0xf0] }
  0x27   : > { %v1271_v20 = vor.u32 %v1434_v13, %v1270_v12 }
  0x29   : > { %665 = vmatpush.bf16.msra.mxu0 %v1455_v14  ;;  %1573 = vmatpush.bf16.msra.mxu2 %v1455_v14  ;;  %v1334_v14 = vld [vmem:[%s1718_s22 + $0xd0] sm:$0xf] }
  0x2a   : > { %754 = vmatpush.bf16.msra.mxu1 %v1463_v15  ;;  %1581 = vmatpush.bf16.msra.mxu3 %v1463_v15  ;;  %v1450_v15 = vld [vmem:[%s1718_s22 + $0xd4] sm:$0xf0] }
  0x2b   : > { %v1335_v21 = vor.u32 %v1450_v15, %v1334_v14 }
  0x2c   : > { %666 = vmatmul.bf16.vlgmr.msra.gmra.mxu0 %v1231_v24  ;;  %706 = vmatmul.bf16.vlgmr.msra.gmra.mxu2 %v1295_v25  ;;  %v1278_v24 = vld [vmem:[%s1718_s22 + $0x60] sm:$0xf]  ;;  %v1436_v25 = vld [vmem:[%s1718_s22 + $0x64] sm:$0xf0] }
  0x2d   : > { %755 = vmatmul.bf16.vlgmr.msra.gmra.mxu1 %v1235_v26  ;;  %795 = vmatmul.bf16.vlgmr.msra.gmra.mxu3 %v1299_v27  ;;  %v1342_v26 = vld [vmem:[%s1718_s22 + $0xe0] sm:$0xf]  ;;  %v1452_v27 = vld [vmem:[%s1718_s22 + $0xe4] sm:$0xf0]  ;;  %v1279_v32 = vor.u32 %v1436_v25, %v1278_v24 }
  0x2e   : > { %v1343_v33 = vor.u32 %v1452_v27, %v1342_v26 }
  0x3c   : > { %671 = vmatmul.bf16.gmra.mxu0 %v1239_v36  ;;  %711 = vmatmul.bf16.gmra.mxu2 %v1303_v37  ;;  %v1286_v36 = vld [vmem:[%s1718_s22 + $0x70] sm:$0xf]  ;;  %v1438_v37 = vld [vmem:[%s1718_s22 + $0x74] sm:$0xf0] }
  0x3d   : > { %760 = vmatmul.bf16.gmra.mxu1 %v1243_v38  ;;  %800 = vmatmul.bf16.gmra.mxu3 %v1307_v39  ;;  %v1350_v38 = vld [vmem:[%s1718_s22 + $0xf0] sm:$0xf]  ;;  %v1454_v39 = vld [vmem:[%s1718_s22 + $0xf4] sm:$0xf0]  ;;  %v1287_v44 = vor.u32 %v1438_v37, %v1286_v36 }
  0x3e   : > { %v1351_v45 = vor.u32 %v1454_v39, %v1350_v38 }
  0x4c   : > { %676 = vmatmul.bf16.gmra.mxu0 %v1247_v48  ;;  %716 = vmatmul.bf16.gmra.mxu2 %v1311_v49 }
  0x4d   : > { %765 = vmatmul.bf16.gmra.mxu1 %v1251_v50  ;;  %805 = vmatmul.bf16.gmra.mxu3 %v1315_v51  ;;  %v1796_v51 = vld [vmem:[%s1900_s2] ss:$0 sm:$0xff] }
  0x5c   : > { %681 = vmatmul.bf16.gmra.mxu0 %v1255_v60  ;;  %721 = vmatmul.bf16.gmra.mxu2 %v1319_v61 }
  0x5d   : > { %770 = vmatmul.bf16.gmra.mxu1 %v1259_v62  ;;  %810 = vmatmul.bf16.gmra.mxu3 %v1323_v63 }
  0x6c   : > { %686 = vmatmul.bf16.gmra.mxu0 %v1263_v8  ;;  %726 = vmatmul.bf16.gmra.mxu2 %v1327_v9 }
  0x6d   : > { %775 = vmatmul.bf16.gmra.mxu1 %v1267_v10  ;;  %815 = vmatmul.bf16.gmra.mxu3 %v1331_v11 }
  0x7c   : > { %691 = vmatmul.bf16.gmra.mxu0 %v1271_v20  ;;  %731 = vmatmul.bf16.gmra.mxu2 %v1335_v21 }
  0x7d   : > { %780 = vmatmul.bf16.gmra.mxu1 %v1275_v22  ;;  %820 = vmatmul.bf16.gmra.mxu3 %v1339_v23 }
  0x8c   : > { %696 = vmatmul.bf16.gmra.mxu0 %v1279_v32  ;;  %736 = vmatmul.bf16.gmra.mxu2 %v1343_v33 }
  0x8d   : > { %785 = vmatmul.bf16.gmra.mxu1 %v1283_v34  ;;  %825 = vmatmul.bf16.gmra.mxu3 %v1347_v35 }
  0x9c   : > { %701 = vmatmul.bf16.gmra.mxu0 %v1287_v44  ;;  %741 = vmatmul.bf16.gmra.mxu2 %v1351_v45 }
  0x9d   : > { %790 = vmatmul.bf16.gmra.mxu1 %v1291_v46  ;;  %830 = vmatmul.bf16.gmra.mxu3 %v1355_v47 }
  0xa9   : > { %v667_v48 = vpop.f32.mrf.mxu0 }
  0xaa   : > { %v756_v49 = vpop.f32.mrf.mxu1 }
  0xab   : > { %v757_v50 = vadd.f32 %v756_v49, %v667_v48 }
  0xad   : > { %v937_v54 = vmul.f32 %v1796_v51, %v757_v50 }
  0xaf   : > { %v707_v52 = vpop.f32.mrf.mxu2  ;;  %v971_v60 = vadd.f32 %v1802_v55, %v937_v54 }
  0xb0   : > { %v796_v53 = vpop.f32.mrf.mxu3 }
  0xb1   : > { %v669_v56 = vpop.f32.mrf.mxu0  ;;  %v797_v58 = vadd.f32 %v796_v53, %v707_v52  ;;  %v1003_v2 = vmax.f32 %v971_v60, 0.0 }
  0xb2   : > { %v758_v57 = vpop.f32.mrf.mxu1 }
  0xb3   : > { %v759_v59 = vadd.f32 %v758_v57, %v669_v56  ;;  %v953_v62 = vmul.f32 %v1796_v51, %v797_v58 }
  0xb5   : > { %v938_v61 = vmul.f32 %v1796_v51, %v759_v59  ;;  %v987_v7 = vadd.f32 %v1802_v55, %v953_v62 }
  0xb7   : > { %v972_v63 = vadd.f32 %v1802_v55, %v938_v61  ;;  %v709_v0 = vpop.f32.mrf.mxu2  ;;  %v1019_v12 = vmax.f32 %v987_v7, 0.0 }
  0xb8   : > { %v798_v1 = vpop.f32.mrf.mxu3 }
  0xb9   : > { %v1004_v3 = vmax.f32 %v972_v63, 0.0  ;;  %v799_v4 = vadd.f32 %v798_v1, %v709_v0  ;;  %v672_v5 = vpop.f32.mrf.mxu0 }
  0xba   : > { %v761_v6 = vpop.f32.mrf.mxu1 }
  0xbb   : > { %v1474_v8 = vpack.c.bf16 %v1004_v3, %v1003_v2  ;;  %v954_v9 = vmul.f32 %v1796_v51, %v799_v4  ;;  %v762_v11 = vadd.f32 %v761_v6, %v672_v5 }
  0xbd   : > { %1475 = vst [vmem:[%s1812_s10] sm:$0xff] %v1474_v8   ;;  %v988_v10 = vadd.f32 %v1802_v55, %v954_v9  ;;  %v939_v17 = vmul.f32 %v1796_v51, %v762_v11 }
  0xbf   : > { %v1020_v13 = vmax.f32 %v988_v10, 0.0  ;;  %v712_v14 = vpop.f32.mrf.mxu2  ;;  %v973_v22 = vadd.f32 %v1802_v55, %v939_v17 }
  0xc0   : > { %v801_v15 = vpop.f32.mrf.mxu3 }
  0xc1   : > { %v1514_v16 = vpack.c.bf16 %v1020_v13, %v1019_v12  ;;  %v674_v18 = vpop.f32.mrf.mxu0  ;;  %v802_v20 = vadd.f32 %v801_v15, %v712_v14  ;;  %v1005_v28 = vmax.f32 %v973_v22, 0.0 }
  0xc2   : > { %v763_v19 = vpop.f32.mrf.mxu1 }
  0xc3   : > { %1558 = vst [vmem:[%s1812_s10 + $0x40] sm:$0xff] %v1514_v16   ;;  %v764_v21 = vadd.f32 %v763_v19, %v674_v18  ;;  %v955_v24 = vmul.f32 %v1796_v51, %v802_v20 }
  0xc5   : > { %v940_v23 = vmul.f32 %v1796_v51, %v764_v21  ;;  %v989_v33 = vadd.f32 %v1802_v55, %v955_v24 }
  0xc7   : > { %v974_v25 = vadd.f32 %v1802_v55, %v940_v23  ;;  %v714_v26 = vpop.f32.mrf.mxu2  ;;  %v1021_v38 = vmax.f32 %v989_v33, 0.0 }
  0xc8   : > { %v803_v27 = vpop.f32.mrf.mxu3 }
  0xc9   : > { %v1006_v29 = vmax.f32 %v974_v25, 0.0  ;;  %v804_v30 = vadd.f32 %v803_v27, %v714_v26  ;;  %v677_v31 = vpop.f32.mrf.mxu0 }
  0xca   : > { %v766_v32 = vpop.f32.mrf.mxu1 }
  0xcb   : > { %v1479_v34 = vpack.c.bf16 %v1006_v29, %v1005_v28  ;;  %v956_v35 = vmul.f32 %v1796_v51, %v804_v30  ;;  %v767_v37 = vadd.f32 %v766_v32, %v677_v31 }
  0xcd   : > { %1551 = vst [vmem:[%s1812_s10 + $0x8] sm:$0xff] %v1479_v34   ;;  %v990_v36 = vadd.f32 %v1802_v55, %v956_v35  ;;  %v941_v43 = vmul.f32 %v1796_v51, %v767_v37 }
  0xcf   : > { %v1022_v39 = vmax.f32 %v990_v36, 0.0  ;;  %v717_v40 = vpop.f32.mrf.mxu2  ;;  %v975_v48 = vadd.f32 %v1802_v55, %v941_v43 }
  0xd0   : > { %v806_v41 = vpop.f32.mrf.mxu3 }
  0xd1   : > { %v1519_v42 = vpack.c.bf16 %v1022_v39, %v1021_v38  ;;  %v679_v44 = vpop.f32.mrf.mxu0  ;;  %v807_v46 = vadd.f32 %v806_v41, %v717_v40  ;;  %v1007_v56 = vmax.f32 %v975_v48, 0.0 }
  0xd2   : > { %v768_v45 = vpop.f32.mrf.mxu1 }
  0xd3   : > { %1559 = vst [vmem:[%s1812_s10 + $0x48] sm:$0xff] %v1519_v42   ;;  %v769_v47 = vadd.f32 %v768_v45, %v679_v44  ;;  %v957_v50 = vmul.f32 %v1796_v51, %v807_v46 }
  0xd5   : > { %v942_v49 = vmul.f32 %v1796_v51, %v769_v47  ;;  %v991_v61 = vadd.f32 %v1802_v55, %v957_v50 }
  0xd7   : > { %v976_v52 = vadd.f32 %v1802_v55, %v942_v49  ;;  %v719_v53 = vpop.f32.mrf.mxu2  ;;  %v1023_v2 = vmax.f32 %v991_v61, 0.0 }
  0xd8   : > { %v808_v54 = vpop.f32.mrf.mxu3 }
  0xd9   : > { %v1008_v57 = vmax.f32 %v976_v52, 0.0  ;;  %v809_v58 = vadd.f32 %v808_v54, %v719_v53  ;;  %v682_v59 = vpop.f32.mrf.mxu0 }
  0xda   : > { %v771_v60 = vpop.f32.mrf.mxu1 }
  0xdb   : > { %v1484_v62 = vpack.c.bf16 %v1008_v57, %v1007_v56  ;;  %v958_v63 = vmul.f32 %v1796_v51, %v809_v58  ;;  %v772_v1 = vadd.f32 %v771_v60, %v682_v59 }
  0xdd   : > { %1552 = vst [vmem:[%s1812_s10 + $0x10] sm:$0xff] %v1484_v62   ;;  %v992_v0 = vadd.f32 %v1802_v55, %v958_v63  ;;  %v943_v7 = vmul.f32 %v1796_v51, %v772_v1 }
  0xdf   : > { %v1024_v3 = vmax.f32 %v992_v0, 0.0  ;;  %v722_v4 = vpop.f32.mrf.mxu2  ;;  %v977_v12 = vadd.f32 %v1802_v55, %v943_v7 }
  0xe0   : > { %v811_v5 = vpop.f32.mrf.mxu3 }
  0xe1   : > { %v1524_v6 = vpack.c.bf16 %v1024_v3, %v1023_v2  ;;  %v684_v8 = vpop.f32.mrf.mxu0  ;;  %v812_v10 = vadd.f32 %v811_v5, %v722_v4  ;;  %v1009_v18 = vmax.f32 %v977_v12, 0.0 }
  0xe2   : > { %v773_v9 = vpop.f32.mrf.mxu1 }
  0xe3   : > { %1560 = vst [vmem:[%s1812_s10 + $0x50] sm:$0xff] %v1524_v6   ;;  %v774_v11 = vadd.f32 %v773_v9, %v684_v8  ;;  %v959_v14 = vmul.f32 %v1796_v51, %v812_v10 }
  0xe5   : > { %v944_v13 = vmul.f32 %v1796_v51, %v774_v11  ;;  %v993_v23 = vadd.f32 %v1802_v55, %v959_v14 }
  0xe7   : > { %v978_v15 = vadd.f32 %v1802_v55, %v944_v13  ;;  %v724_v16 = vpop.f32.mrf.mxu2  ;;  %v1025_v28 = vmax.f32 %v993_v23, 0.0 }
  0xe8   : > { %v813_v17 = vpop.f32.mrf.mxu3 }
  0xe9   : > { %v1010_v19 = vmax.f32 %v978_v15, 0.0  ;;  %v814_v20 = vadd.f32 %v813_v17, %v724_v16  ;;  %v687_v21 = vpop.f32.mrf.mxu0 }
  0xea   : > { %v776_v22 = vpop.f32.mrf.mxu1 }
  0xeb   : > { %v1489_v24 = vpack.c.bf16 %v1010_v19, %v1009_v18  ;;  %v960_v25 = vmul.f32 %v1796_v51, %v814_v20  ;;  %v777_v27 = vadd.f32 %v776_v22, %v687_v21 }
  0xed   : > { %1553 = vst [vmem:[%s1812_s10 + $0x18] sm:$0xff] %v1489_v24   ;;  %v994_v26 = vadd.f32 %v1802_v55, %v960_v25  ;;  %v945_v33 = vmul.f32 %v1796_v51, %v777_v27 }
  0xef   : > { %v1026_v29 = vmax.f32 %v994_v26, 0.0  ;;  %v727_v30 = vpop.f32.mrf.mxu2  ;;  %v979_v38 = vadd.f32 %v1802_v55, %v945_v33 }
  0xf0   : > { %v816_v31 = vpop.f32.mrf.mxu3 }
  0xf1   : > { %v1529_v32 = vpack.c.bf16 %v1026_v29, %v1025_v28  ;;  %v689_v34 = vpop.f32.mrf.mxu0  ;;  %v817_v36 = vadd.f32 %v816_v31, %v727_v30  ;;  %v1011_v44 = vmax.f32 %v979_v38, 0.0 }
  0xf2   : > { %v778_v35 = vpop.f32.mrf.mxu1 }
  0xf3   : > { %1561 = vst [vmem:[%s1812_s10 + $0x58] sm:$0xff] %v1529_v32   ;;  %v779_v37 = vadd.f32 %v778_v35, %v689_v34  ;;  %v961_v40 = vmul.f32 %v1796_v51, %v817_v36 }
  0xf5   : > { %v946_v39 = vmul.f32 %v1796_v51, %v779_v37  ;;  %v995_v49 = vadd.f32 %v1802_v55, %v961_v40 }
  0xf7   : > { %v980_v41 = vadd.f32 %v1802_v55, %v946_v39  ;;  %v729_v42 = vpop.f32.mrf.mxu2  ;;  %v1027_v56 = vmax.f32 %v995_v49, 0.0 }
  0xf8   : > { %v818_v43 = vpop.f32.mrf.mxu3 }
  0xf9   : > { %v1012_v45 = vmax.f32 %v980_v41, 0.0  ;;  %v819_v46 = vadd.f32 %v818_v43, %v729_v42  ;;  %v692_v47 = vpop.f32.mrf.mxu0 }
  0xfa   : > { %v781_v48 = vpop.f32.mrf.mxu1 }
  0xfb   : > { %v1494_v50 = vpack.c.bf16 %v1012_v45, %v1011_v44  ;;  %v962_v52 = vmul.f32 %v1796_v51, %v819_v46  ;;  %v782_v54 = vadd.f32 %v781_v48, %v692_v47 }
  0xfd   : > { %1554 = vst [vmem:[%s1812_s10 + $0x20] sm:$0xff] %v1494_v50   ;;  %v996_v53 = vadd.f32 %v1802_v55, %v962_v52  ;;  %v947_v61 = vmul.f32 %v1796_v51, %v782_v54 }
  0xff   : > { %v1028_v57 = vmax.f32 %v996_v53, 0.0  ;;  %v732_v58 = vpop.f32.mrf.mxu2  ;;  %v981_v2 = vadd.f32 %v1802_v55, %v947_v61 }
 0x100   : > { %v821_v59 = vpop.f32.mrf.mxu3 }
 0x101   : > { %v1534_v60 = vpack.c.bf16 %v1028_v57, %v1027_v56  ;;  %v694_v62 = vpop.f32.mrf.mxu0  ;;  %v822_v0 = vadd.f32 %v821_v59, %v732_v58  ;;  %v1013_v8 = vmax.f32 %v981_v2, 0.0 }
 0x102   : > { %v783_v63 = vpop.f32.mrf.mxu1 }
 0x103   : > { %1562 = vst [vmem:[%s1812_s10 + $0x60] sm:$0xff] %v1534_v60   ;;  %v784_v1 = vadd.f32 %v783_v63, %v694_v62  ;;  %v963_v4 = vmul.f32 %v1796_v51, %v822_v0 }
 0x105   : > { %v948_v3 = vmul.f32 %v1796_v51, %v784_v1  ;;  %v997_v13 = vadd.f32 %v1802_v55, %v963_v4 }
 0x107   : > { %v982_v5 = vadd.f32 %v1802_v55, %v948_v3  ;;  %v734_v6 = vpop.f32.mrf.mxu2  ;;  %v1029_v18 = vmax.f32 %v997_v13, 0.0 }
 0x108   : > { %v823_v7 = vpop.f32.mrf.mxu3 }
 0x109   : > { %v1014_v9 = vmax.f32 %v982_v5, 0.0  ;;  %v824_v10 = vadd.f32 %v823_v7, %v734_v6  ;;  %v697_v11 = vpop.f32.mrf.mxu0 }
 0x10a   : > { %v786_v12 = vpop.f32.mrf.mxu1 }
 0x10b   : > { %v1499_v14 = vpack.c.bf16 %v1014_v9, %v1013_v8  ;;  %v964_v15 = vmul.f32 %v1796_v51, %v824_v10  ;;  %v787_v17 = vadd.f32 %v786_v12, %v697_v11 }
 0x10d   : > { %1555 = vst [vmem:[%s1812_s10 + $0x28] sm:$0xff] %v1499_v14   ;;  %v998_v16 = vadd.f32 %v1802_v55, %v964_v15  ;;  %v949_v23 = vmul.f32 %v1796_v51, %v787_v17 }
 0x10f   : > { %v1030_v19 = vmax.f32 %v998_v16, 0.0  ;;  %v737_v20 = vpop.f32.mrf.mxu2  ;;  %v983_v28 = vadd.f32 %v1802_v55, %v949_v23 }
 0x110   : > { %v826_v21 = vpop.f32.mrf.mxu3 }
 0x111   : > { %v1539_v22 = vpack.c.bf16 %v1030_v19, %v1029_v18  ;;  %v699_v24 = vpop.f32.mrf.mxu0  ;;  %v827_v26 = vadd.f32 %v826_v21, %v737_v20  ;;  %v1015_v34 = vmax.f32 %v983_v28, 0.0 }
 0x112   : > { %v788_v25 = vpop.f32.mrf.mxu1 }
 0x113   : > { %1563 = vst [vmem:[%s1812_s10 + $0x68] sm:$0xff] %v1539_v22   ;;  %v789_v27 = vadd.f32 %v788_v25, %v699_v24  ;;  %v965_v30 = vmul.f32 %v1796_v51, %v827_v26 }
 0x115   : > { %v950_v29 = vmul.f32 %v1796_v51, %v789_v27  ;;  %v999_v39 = vadd.f32 %v1802_v55, %v965_v30 }
 0x117   : > { %v984_v31 = vadd.f32 %v1802_v55, %v950_v29  ;;  %v739_v32 = vpop.f32.mrf.mxu2  ;;  %v1031_v44 = vmax.f32 %v999_v39, 0.0 }
 0x118   : > { %v828_v33 = vpop.f32.mrf.mxu3 }
 0x119   : > { %v1016_v35 = vmax.f32 %v984_v31, 0.0  ;;  %v829_v36 = vadd.f32 %v828_v33, %v739_v32  ;;  %v702_v37 = vpop.f32.mrf.mxu0 }
 0x11a   : > { %v791_v38 = vpop.f32.mrf.mxu1 }
 0x11b   : > { %v1504_v40 = vpack.c.bf16 %v1016_v35, %v1015_v34  ;;  %v966_v41 = vmul.f32 %v1796_v51, %v829_v36  ;;  %v792_v43 = vadd.f32 %v791_v38, %v702_v37 }
 0x11d   : > { %1556 = vst [vmem:[%s1812_s10 + $0x30] sm:$0xff] %v1504_v40   ;;  %v1000_v42 = vadd.f32 %v1802_v55, %v966_v41  ;;  %v951_v49 = vmul.f32 %v1796_v51, %v792_v43 }
 0x11f   : > { %v1032_v45 = vmax.f32 %v1000_v42, 0.0  ;;  %v742_v46 = vpop.f32.mrf.mxu2  ;;  %v985_v56 = vadd.f32 %v1802_v55, %v951_v49 }
 0x120   : > { %v831_v47 = vpop.f32.mrf.mxu3 }
 0x121   : > { %v1544_v48 = vpack.c.bf16 %v1032_v45, %v1031_v44  ;;  %v704_v50 = vpop.f32.mrf.mxu0  ;;  %v832_v53 = vadd.f32 %v831_v47, %v742_v46  ;;  %v1017_v62 = vmax.f32 %v985_v56, 0.0 }
 0x122   : > { %v793_v52 = vpop.f32.mrf.mxu1 }
 0x123   : > { %1564 = vst [vmem:[%s1812_s10 + $0x70] sm:$0xff] %v1544_v48   ;;  %v794_v54 = vadd.f32 %v793_v52, %v704_v50  ;;  %v967_v58 = vmul.f32 %v1796_v51, %v832_v53 }
 0x125   : > { %v952_v57 = vmul.f32 %v1796_v51, %v794_v54  ;;  %v1001_v1 = vadd.f32 %v1802_v55, %v967_v58 }
 0x127   : > { %v986_v59 = vadd.f32 %v1802_v55, %v952_v57  ;;  %v744_v60 = vpop.f32.mrf.mxu2  ;;  %v1033_v5 = vmax.f32 %v1001_v1, 0.0 }
 0x128   : > { %v833_v61 = vpop.f32.mrf.mxu3 }
 0x129   : > { %v1018_v63 = vmax.f32 %v986_v59, 0.0  ;;  %v834_v0 = vadd.f32 %v833_v61, %v744_v60 }
 0x12b   : > { %v1509_v2 = vpack.c.bf16 %v1018_v63, %v1017_v62  ;;  %v968_v3 = vmul.f32 %v1796_v51, %v834_v0 }
 0x12d   : > { %1557 = vst [vmem:[%s1812_s10 + $0x38] sm:$0xff] %v1509_v2   ;;  %v1002_v4 = vadd.f32 %v1802_v55, %v968_v3 }
 0x12f   : > { %v1034_v6 = vmax.f32 %v1002_v4, 0.0 }
 0x131   : > { %v1549_v7 = vpack.c.bf16 %v1034_v6, %v1033_v5 }
 0x133   : > { %1565 = vst [vmem:[%s1812_s10 + $0x78] sm:$0xff] %v1549_v7  }
 0x134 PF: > { %s13_s14 = sadd.s32 1, %s1630_s14   ;;  %s1902_s12 = smov %s1626_s13 }
 0x135   : > { %p10_p5 = scmp.ge.s32.totalorder %s13_s14, 4   ;;  %s1903_s13 = smov %s1905_s15 }
 0x137   :  { %12 = sbr.rel (!%p10_p5) target bundleno = 2 (0x2), region = 76 }

// kernel: _lambda_.20
= control target key start
LH: loop header
LB: loop body
LE: loop exit
PB: predicated region body
PF: predicated region fallthrough
CT: control target
= control target key end

     0   :  { %s1082_s12 = smov 0   ;;  %s1084_s13 = smov 0   ;;  %s1224_s0 = inlined_call_operand.vmem [shape: bf16[128,768], index: 0, kind: input, shape index: {}]   ;;  %s1225_s1 = inlined_call_operand.vmem [shape: bf16[768,128], index: 1, kind: input, shape index: {}]   ;;  %s1226_s2 = inlined_call_operand.vmem [shape: f32[2,128], index: 2, kind: input, shape index: {}]   ;;  %s1227_s3 = inlined_call_operand.vmem [shape: bf16[128,128], index: 3, kind: output, shape index: {}]  }
   0x1   :  { %s1086_s14 = smov 0   ;;  %s1088_s15 = smov 0  }
   0x2   :  { %s1090_s16 = smov 0   ;;  %s1092_s17 = smov 0  }
   0x3   :  { %s1094_s18 = smov 0  }
   0x4 LB: > { %s25_s19 = sadd.s32 1, %s1051_s16  ;;  %s32_s20 = sadd.s32 1, %s1055_s17  ;;  %s1059_s18 = sphi %s1094_s18, %s13_s18   ;;  %s1055_s17 = sphi %s1092_s17, %s1233_s17   ;;  %s1051_s16 = sphi %s1090_s16, %s1232_s16   ;;  %s1047_s15 = sphi %s1088_s15, %s1231_s15   ;;  %s1043_s14 = sphi %s1086_s14, %s1230_s14   ;;  %s1039_s13 = sphi %s1084_s13, %s1229_s13   ;;  %s1035_s12 = sphi %s1082_s12, %s1228_s12  }
   0x5   : > { %p26_p0 = scmp.ge.s32.totalorder %s25_s19, 3  ;;  %p48_p1 = scmp.ne.s32.totalorder %s1039_s13, %s1035_s12 }
   0x6   : > { %p49_p2 = scmp.eq.s32.totalorder %s1059_s18, 0  ;;  %s41_s24 = sadd.s32 1, %s1039_s13 }
   0x7   : > { %s1235_s19 = smov (%p26_p0, %s25_s19), 0  ;;  %s1237_s20 = smov (!%p26_p0, %s32_s20), %s1055_s17 }
   0x8   : > { %p50_p3 = por %p49_p2, %p48_p1  ;;  %p34_p4 = scmp.ge.s32.totalorder %s1237_s20, 2 }
   0x9   : > { %s37_s21 = ssub.s32 %s1051_s16, %s1235_s19  ;;  %p770_p6 = scmp.ge.s32.totalorder %s1059_s18, 6 }
   0xa   : > { %s1239_s20 = smov (%p34_p4, %s1237_s20), 0 }
   0xb   : > { %s36_s22 = ssub.s32 %s1055_s17, %s1239_s20  ;;  %163 = sbr.rel (%p770_p6) target bundleno = 32 (0x20), region = 20 }
   0xc   : > { %s38_s23 = sor.u32 %s37_s21, %s36_s22 }
   0xd   : > { %p39_p5 = scmp.eq.s32.totalorder %s38_s23, 0 }
   0xf   : > { %s1133_s25 = scalar_select %p39_p5, %s1039_s13, %s41_s24  }
  0x10   : > { %166 = sbr.rel (!%p50_p3) target bundleno = 32 (0x20), region = 24  ;;  %s168_s26 = sand.u32 (%p50_p3), 1, %s1039_s13  }
  0x11   : > { %s773_s27 = sshll.u32 (%p50_p3), %s1051_s16, 1  ;;  %s771_s28 = sshll.u32 (%p50_p3), %s168_s26, 6 }
  0x12   : > { %s945_s29 = smul.u32 (%p50_p3), 48, %s1055_s17  ;;  %s170_s8 = scalar_lea.vmem (%p50_p3), [#allocation3], %s771_s28 }
  0x14   : > { %s174_s30 = sadd.s32 (%p50_p3), %s945_s29, %s773_s27 }
  0x15   : > { %s775_s4 = sshll.u32 %s174_s30, 2 }
  0x16   : > { %s176_s7 = scalar_lea.vmem %s1224_s0, %s775_s4 }
  0x17   : > { %v219_v0 = vld [vmem:[%s176_s7] sm:$0xff]  ;;  %v221_v1 = vld [vmem:[%s176_s7 + $0x18] sm:$0xff]  ;;  %v223_v2 = vld [vmem:[%s176_s7 + $0x30] sm:$0xff] }
  0x18   : > { %220 = vst [vmem:[%s170_s8] sm:$0xff] %v219_v0  ;;  %v225_v3 = vld [vmem:[%s176_s7 + $0x48] sm:$0xff]  ;;  %v227_v4 = vld [vmem:[%s176_s7 + $0x60] sm:$0xff]  ;;  %v229_v5 = vld [vmem:[%s176_s7 + $0x78] sm:$0xff] }
  0x19   : > { %222 = vst [vmem:[%s170_s8 + $0x8] sm:$0xff] %v221_v1  ;;  %v231_v6 = vld [vmem:[%s176_s7 + $0x90] sm:$0xff]  ;;  %v233_v7 = vld [vmem:[%s176_s7 + $0xa8] sm:$0xff] }
  0x1a   : > { %224 = vst [vmem:[%s170_s8 + $0x10] sm:$0xff] %v223_v2 }
  0x1b   : > { %226 = vst [vmem:[%s170_s8 + $0x18] sm:$0xff] %v225_v3 }
  0x1c   : > { %228 = vst [vmem:[%s170_s8 + $0x20] sm:$0xff] %v227_v4 }
  0x1d   : > { %230 = vst [vmem:[%s170_s8 + $0x28] sm:$0xff] %v229_v5 }
  0x1e   : > { %232 = vst [vmem:[%s170_s8 + $0x30] sm:$0xff] %v231_v6 }
  0x1f   : > { %234 = vst [vmem:[%s170_s8 + $0x38] sm:$0xff] %v233_v7 }
  0x20 PF: > { %p776_p7 = scmp.ge.s32.totalorder %s1059_s18, 1  ;;  %p251_p8 = scmp.lt.s32.totalorder %s1059_s18, 7 }
  0x22   : > { %p252_p9 = pnand %p776_p7, %p251_p8 }
  0x23   : > { %s258_s9 = sand.u32 (!%p252_p9), 1, %s1035_s12   ;;  %s778_s10 = sshll.u32 (!%p252_p9), %s1043_s14, 5 }
  0x24   : > { %255 = sbr.rel (%p252_p9) target bundleno = 268 (0x10c), region = 66  ;;  %s777_s11 = sshll.u32 (!%p252_p9), %s258_s9, 6 }
  0x25   : > { %p299_p10 = scmp.lt.s32.totalorder (!%p252_p9), %s778_s10, 95  ;;  %s780_s21 = sshll.u32 (!%p252_p9), %s1047_s15, 3 }
  0x26   : > { %p312_p11 = scmp.lt.s32.totalorder (!%p252_p9), %s780_s21, 15  ;;  %s1157_s12 = scalar_lea.vmem (!%p252_p9), [#allocation3], %s777_s11 }
  0x27   : > { %p782_p12 = scmp.ne.s32.totalorder (!%p252_p9), %s1043_s14, 0 }
  0x29   : > { %s1241_s10 = smov (!%p299_p10, %s778_s10), 95  ;;  %s1243_s21 = smov (!%p312_p11, %s780_s21), 15 }
  0x2a   : > { %s779_s22 = sshll.u32 %s1241_s10, 2  ;;  %s781_s27 = sshll.u32 %s1243_s21, 2 }
  0x2b   : > { %s1150_s26 = scalar_lea.vmem %s1225_s1, %s779_s22  ;;  %s1155_s30 = scalar_lea.vmem %s1227_s3, %s781_s27 }
  0x2c   : > { %323 = sbr.rel (%p782_p12) target bundleno = 58 (0x3a), region = 74 }
  0x31   : > { %v1061_v8 = vmov 0.0  }
  0x32   : > { %324 = vst [vmem:[#allocation2 + $0x30] sm:$0xff] %v1061_v8 }
  0x33   : > { %325 = vst [vmem:[#allocation2] sm:$0xff] %v1061_v8 }
  0x34   : > { %326 = vst [vmem:[#allocation2 + $0x18] sm:$0xff] %v1061_v8 }
  0x35   : > { %327 = vst [vmem:[#allocation2 + $0x10] sm:$0xff] %v1061_v8 }
  0x36   : > { %328 = vst [vmem:[#allocation2 + $0x8] sm:$0xff] %v1061_v8 }
  0x37   : > { %329 = vst [vmem:[#allocation2 + $0x20] sm:$0xff] %v1061_v8 }
  0x38   : > { %330 = vst [vmem:[#allocation2 + $0x28] sm:$0xff] %v1061_v8 }
  0x39   : > { %331 = vst [vmem:[#allocation2 + $0x38] sm:$0xff] %v1061_v8 }
  0x3a PF: > { %v897_v9 = vld [vmem:[%s1150_s26 + $0x38] sm:$0xff]  ;;  %v896_v11 = vld [vmem:[%s1150_s26 + $0x30] sm:$0xff]  ;;  %v895_v13 = vld [vmem:[%s1150_s26 + $0x28] sm:$0xff]  ;;  %p879_p13 = scmp.ne.s32.totalorder %s1043_s14, 2 }
  0x3b   : > { %v905_v10 = vld [vmem:[%s1150_s26 + $0x78] sm:$0xff]  ;;  %516 = vmatpush.bf16.msra.mxu0 %v897_v9  ;;  %929 = vmatpush.bf16.msra.mxu2 %v897_v9  ;;  %v904_v12 = vld [vmem:[%s1150_s26 + $0x70] sm:$0xff]  ;;  %v903_v14 = vld [vmem:[%s1150_s26 + $0x68] sm:$0xff] }
  0x3c   : > { %545 = vmatpush.bf16.msra.mxu1 %v905_v10  ;;  %937 = vmatpush.bf16.msra.mxu3 %v905_v10  ;;  %v894_v15 = vld [vmem:[%s1150_s26 + $0x20] sm:$0xff]  ;;  %v893_v17 = vld [vmem:[%s1150_s26 + $0x18] sm:$0xff]  ;;  %v892_v19 = vld [vmem:[%s1150_s26 + $0x10] sm:$0xff] }
  0x3d   : > { %v902_v16 = vld [vmem:[%s1150_s26 + $0x60] sm:$0xff]  ;;  %v901_v18 = vld [vmem:[%s1150_s26 + $0x58] sm:$0xff]  ;;  %v900_v20 = vld [vmem:[%s1150_s26 + $0x50] sm:$0xff] }
  0x3e   : > { %v891_v21 = vld [vmem:[%s1150_s26 + $0x8] sm:$0xff]  ;;  %v890_v23 = vld [vmem:[%s1150_s26] sm:$0xff]  ;;  %v793_v37 = vld [vmem:[%s1157_s12 + $0x10] sm:$0xf] }
  0x3f   : > { %517 = vmatpush.bf16.msra.mxu0 %v896_v11  ;;  %930 = vmatpush.bf16.msra.mxu2 %v896_v11  ;;  %v899_v22 = vld [vmem:[%s1150_s26 + $0x48] sm:$0xff]  ;;  %v898_v24 = vld [vmem:[%s1150_s26 + $0x40] sm:$0xff]  ;;  %v885_v38 = vld [vmem:[%s1157_s12 + $0x14] sm:$0xf0] }
  0x40   : > { %546 = vmatpush.bf16.msra.mxu1 %v904_v12  ;;  %938 = vmatpush.bf16.msra.mxu3 %v904_v12  ;;  %v785_v25 = vld [vmem:[%s1157_s12] sm:$0xf]  ;;  %v883_v26 = vld [vmem:[%s1157_s12 + $0x4] sm:$0xf0]  ;;  %v882_v29 = vld [vmem:[%s1157_s12 + $0x4] sm:$0xf]  ;;  %v794_v45 = vor.u32 %v885_v38, %v793_v37 }
  0x41   : > { %v801_v27 = vld [vmem:[%s1157_s12 + $0x20] sm:$0xf]  ;;  %v887_v28 = vld [vmem:[%s1157_s12 + $0x24] sm:$0xf0]  ;;  %v787_v30 = vld [vmem:[%s1157_s12 + $0x8] sm:$0xf0]  ;;  %v786_v33 = vor.u32 %v883_v26, %v785_v25 }
  0x42   : > { %v886_v31 = vld [vmem:[%s1157_s12 + $0x24] sm:$0xf]  ;;  %v803_v32 = vld [vmem:[%s1157_s12 + $0x28] sm:$0xf0]  ;;  %v802_v34 = vor.u32 %v887_v28, %v801_v27  ;;  %v790_v35 = vor.u32 %v882_v29, %v787_v30  ;;  %v809_v39 = vld [vmem:[%s1157_s12 + $0x30] sm:$0xf] }
  0x43   : > { %518 = vmatpush.bf16.msra.mxu0 %v895_v13  ;;  %931 = vmatpush.bf16.msra.mxu2 %v895_v13  ;;  %v806_v36 = vor.u32 %v886_v31, %v803_v32  ;;  %v889_v40 = vld [vmem:[%s1157_s12 + $0x34] sm:$0xf0]  ;;  %v884_v41 = vld [vmem:[%s1157_s12 + $0x14] sm:$0xf]  ;;  %v795_v42 = vld [vmem:[%s1157_s12 + $0x18] sm:$0xf0] }
  0x44   : > { %547 = vmatpush.bf16.msra.mxu1 %v903_v14  ;;  %939 = vmatpush.bf16.msra.mxu3 %v903_v14  ;;  %v888_v43 = vld [vmem:[%s1157_s12 + $0x34] sm:$0xf]  ;;  %v811_v44 = vld [vmem:[%s1157_s12 + $0x38] sm:$0xf0]  ;;  %v810_v46 = vor.u32 %v889_v40, %v809_v39  ;;  %v798_v47 = vor.u32 %v884_v41, %v795_v42  ;;  %v336_v55 = vld [vmem:[#allocation2 + $0x8] sm:$0xff] }
  0x45   : > { %v814_v48 = vor.u32 %v888_v43, %v811_v44  ;;  %v332_v50 = vld [vmem:[#allocation2 + $0x30] sm:$0xff]  ;;  %v333_v59 = vld [vmem:[#allocation2] sm:$0xff]  ;;  %v334_v5 = vld [vmem:[#allocation2 + $0x18] sm:$0xff] }
  0x46   : > { %v337_v1 = vld [vmem:[#allocation2 + $0x20] sm:$0xff]  ;;  %v338_v11 = vld [vmem:[#allocation2 + $0x28] sm:$0xff] }
  0x47   : > { %519 = vmatpush.bf16.msra.mxu0 %v894_v15  ;;  %932 = vmatpush.bf16.msra.mxu2 %v894_v15  ;;  %v335_v15 = vld [vmem:[#allocation2 + $0x10] sm:$0xff] }
  0x48   : > { %548 = vmatpush.bf16.msra.mxu1 %v902_v16  ;;  %940 = vmatpush.bf16.msra.mxu3 %v902_v16 }
  0x4b   : > { %520 = vmatpush.bf16.msra.mxu0 %v893_v17  ;;  %933 = vmatpush.bf16.msra.mxu2 %v893_v17 }
  0x4c   : > { %549 = vmatpush.bf16.msra.mxu1 %v901_v18  ;;  %941 = vmatpush.bf16.msra.mxu3 %v901_v18 }
  0x4f   : > { %521 = vmatpush.bf16.msra.mxu0 %v892_v19  ;;  %934 = vmatpush.bf16.msra.mxu2 %v892_v19 }
  0x50   : > { %550 = vmatpush.bf16.msra.mxu1 %v900_v20  ;;  %942 = vmatpush.bf16.msra.mxu3 %v900_v20 }
  0x53   : > { %522 = vmatpush.bf16.msra.mxu0 %v891_v21  ;;  %935 = vmatpush.bf16.msra.mxu2 %v891_v21  ;;  %v339_v21 = vld [vmem:[#allocation2 + $0x38] sm:$0xff] }
  0x54   : > { %551 = vmatpush.bf16.msra.mxu1 %v899_v22  ;;  %943 = vmatpush.bf16.msra.mxu3 %v899_v22 }
  0x57   : > { %523 = vmatpush.bf16.msra.mxu0 %v890_v23  ;;  %936 = vmatpush.bf16.msra.mxu2 %v890_v23 }
  0x58   : > { %552 = vmatpush.bf16.msra.mxu1 %v898_v24  ;;  %944 = vmatpush.bf16.msra.mxu3 %v898_v24 }
  0x5a   : > { %524 = vmatmul.bf16.vlgmr.msra.gmra.mxu0 %v786_v33  ;;  %534 = vmatmul.bf16.vlgmr.msra.gmra.mxu2 %v802_v34 }
  0x5b   : > { %553 = vmatmul.bf16.vlgmr.msra.gmra.mxu1 %v790_v35  ;;  %563 = vmatmul.bf16.vlgmr.msra.gmra.mxu3 %v806_v36 }
  0x6a   : > { %529 = vmatmul.bf16.gmra.mxu0 %v794_v45  ;;  %539 = vmatmul.bf16.gmra.mxu2 %v810_v46 }
  0x6b   : > { %558 = vmatmul.bf16.gmra.mxu1 %v798_v47  ;;  %568 = vmatmul.bf16.gmra.mxu3 %v814_v48 }
  0xd7   : > { %v525_v49 = vpop.f32.mrf.mxu0 }
  0xd8   : > { %v554_v51 = vpop.f32.mrf.mxu1 }
  0xd9   : > { %v555_v52 = vadd.f32 %v554_v51, %v525_v49 }
  0xdb   : > { %v574_v53 = vadd.f32 %v555_v52, %v332_v50 }
  0xdd   : > { %582 = vst [vmem:[#allocation2 + $0x30] sm:$0xff] %v574_v53  ;;  %v535_v54 = vpop.f32.mrf.mxu2 }
  0xde   : > { %v564_v56 = vpop.f32.mrf.mxu3 }
  0xdf   : > { %v565_v57 = vadd.f32 %v564_v56, %v535_v54  ;;  %v527_v58 = vpop.f32.mrf.mxu0 }
  0xe0   : > { %v556_v60 = vpop.f32.mrf.mxu1 }
  0xe1   : > { %v578_v61 = vadd.f32 %v565_v57, %v336_v55  ;;  %v557_v62 = vadd.f32 %v556_v60, %v527_v58 }
  0xe3   : > { %586 = vst [vmem:[#allocation2 + $0x8] sm:$0xff] %v578_v61  ;;  %v575_v63 = vadd.f32 %v557_v62, %v333_v59 }
  0xe5   : > { %583 = vst [vmem:[#allocation2] sm:$0xff] %v575_v63  ;;  %v537_v0 = vpop.f32.mrf.mxu2 }
  0xe6   : > { %v566_v2 = vpop.f32.mrf.mxu3 }
  0xe7   : > { %v567_v3 = vadd.f32 %v566_v2, %v537_v0  ;;  %v530_v4 = vpop.f32.mrf.mxu0 }
  0xe8   : > { %v559_v6 = vpop.f32.mrf.mxu1 }
  0xe9   : > { %v579_v7 = vadd.f32 %v567_v3, %v337_v1  ;;  %v560_v8 = vadd.f32 %v559_v6, %v530_v4 }
  0xeb   : > { %587 = vst [vmem:[#allocation2 + $0x20] sm:$0xff] %v579_v7  ;;  %v576_v9 = vadd.f32 %v560_v8, %v334_v5 }
  0xed   : > { %584 = vst [vmem:[#allocation2 + $0x18] sm:$0xff] %v576_v9  ;;  %v540_v10 = vpop.f32.mrf.mxu2 }
  0xee   : > { %v569_v12 = vpop.f32.mrf.mxu3 }
  0xef   : > { %v570_v13 = vadd.f32 %v569_v12, %v540_v10  ;;  %v532_v14 = vpop.f32.mrf.mxu0 }
  0xf0   : > { %v561_v16 = vpop.f32.mrf.mxu1 }
  0xf1   : > { %v580_v17 = vadd.f32 %v570_v13, %v338_v11  ;;  %v562_v18 = vadd.f32 %v561_v16, %v532_v14 }
  0xf3   : > { %588 = vst [vmem:[#allocation2 + $0x28] sm:$0xff] %v580_v17  ;;  %v577_v19 = vadd.f32 %v562_v18, %v335_v15 }
  0xf5   : > { %585 = vst [vmem:[#allocation2 + $0x10] sm:$0xff] %v577_v19  ;;  %v542_v20 = vpop.f32.mrf.mxu2 }
  0xf6   : > { %v571_v22 = vpop.f32.mrf.mxu3 }
  0xf7   : > { %v572_v23 = vadd.f32 %v571_v22, %v542_v20  ;;  %593 = sbr.rel (%p879_p13) target bundleno = 268 (0x10c), region = 78 }
  0xf9   : > { %v581_v24 = vadd.f32 %v572_v23, %v339_v21 }
  0xfb   : > { %589 = vst [vmem:[#allocation2 + $0x38] sm:$0xff] %v581_v24 }
  0xfc   : > { %v594_v25 = vld [vmem:[#allocation2 + $0x30] sm:$0xff]  ;;  %v595_v26 = vld [vmem:[#allocation2] sm:$0xff]  ;;  %v596_v29 = vld [vmem:[#allocation2 + $0x18] sm:$0xff] }
  0xfd   : > { %v1003_v27 = vld [vmem:[%s1226_s2] ss:$0 sm:$0xff]  ;;  %v1004_v28 = vld [vmem:[%s1226_s2 + $0x1] ss:$0 sm:$0xff]  ;;  %v597_v30 = vld [vmem:[#allocation2 + $0x10] sm:$0xff] }
  0xfe   : > { %v598_v31 = vld [vmem:[#allocation2 + $0x8] sm:$0xff]  ;;  %v604_v32 = vmul.f32 %v1003_v27, %v594_v25  ;;  %v605_v33 = vmul.f32 %v1003_v27, %v595_v26  ;;  %v606_v34 = vmul.f32 %v1003_v27, %v596_v29  ;;  %v607_v35 = vmul.f32 %v1003_v27, %v597_v30  ;;  %v599_v36 = vld [vmem:[#allocation2 + $0x20] sm:$0xff] }
  0xff   : > { %v600_v37 = vld [vmem:[#allocation2 + $0x28] sm:$0xff]  ;;  %v608_v39 = vmul.f32 %v1003_v27, %v598_v31  ;;  %v609_v40 = vmul.f32 %v1003_v27, %v599_v36 }
 0x100   : > { %v610_v41 = vmul.f32 %v1003_v27, %v600_v37  ;;  %v614_v43 = vadd.f32 %v1004_v28, %v604_v32  ;;  %v615_v44 = vadd.f32 %v1004_v28, %v605_v33  ;;  %v616_v45 = vadd.f32 %v1004_v28, %v606_v34 }
 0x101   : > { %v617_v46 = vadd.f32 %v1004_v28, %v607_v35  ;;  %v618_v47 = vadd.f32 %v1004_v28, %v608_v39  ;;  %v619_v48 = vadd.f32 %v1004_v28, %v609_v40 }
 0x102   : > { %v601_v38 = vld [vmem:[#allocation2 + $0x38] sm:$0xff]  ;;  %v620_v49 = vadd.f32 %v1004_v28, %v610_v41  ;;  %v622_v51 = vmax.f32 %v614_v43, 0.0  ;;  %v623_v52 = vmax.f32 %v615_v44, 0.0  ;;  %v624_v53 = vmax.f32 %v616_v45, 0.0 }
 0x103   : > { %v611_v42 = vmul.f32 %v1003_v27, %v601_v38  ;;  %v625_v54 = vmax.f32 %v617_v46, 0.0  ;;  %v626_v55 = vmax.f32 %v618_v47, 0.0  ;;  %v627_v56 = vmax.f32 %v619_v48, 0.0 }
 0x104   : > { %v628_v57 = vmax.f32 %v620_v49, 0.0  ;;  %v909_v59 = vpack.c.bf16 %v623_v52, %v622_v51 }
 0x105   : > { %v621_v50 = vadd.f32 %v1004_v28, %v611_v42  ;;  %v914_v60 = vpack.c.bf16 %v625_v54, %v624_v53  ;;  %v919_v61 = vpack.c.bf16 %v627_v56, %v626_v55 }
 0x106   : > { %910 = vst [vmem:[%s1155_s30] sm:$0xff] %v909_v59  }
 0x107   : > { %v629_v58 = vmax.f32 %v621_v50, 0.0  ;;  %926 = vst [vmem:[%s1155_s30 + $0x8] sm:$0xff] %v914_v60  }
 0x108   : > { %927 = vst [vmem:[%s1155_s30 + $0x10] sm:$0xff] %v919_v61  }
 0x109   : > { %v924_v62 = vpack.c.bf16 %v629_v58, %v628_v57 }
 0x10b   : > { %928 = vst [vmem:[%s1155_s30 + $0x18] sm:$0xff] %v924_v62  }
 0x10c PF: > { %s13_s18 = sadd.s32 1, %s1059_s18   ;;  %s1228_s12 = smov %s1039_s13 }
 0x10d   : > { %p10_p0 = scmp.ge.s32.totalorder %s13_s18, 8   ;;  %s1229_s13 = smov %s1133_s25 }
 0x10e   : > { %s1230_s14 = smov %s1051_s16  ;;  %s1231_s15 = smov %s1055_s17 }
 0x10f   : > { %s1232_s16 = smov %s1235_s19  ;;  %s1233_s17 = smov %s1239_s20 }
 0x110   :  { %12 = sbr.rel (!%p10_p0) target bundleno = 4 (0x4), region = 119 }

// kernel: _lambda_.21
= control target key start
LH: loop header
LB: loop body
LE: loop exit
PB: predicated region body
PF: predicated region fallthrough
CT: control target
= control target key end

     0   :  { %s940_s12 = smov 0   ;;  %s942_s13 = smov 0   ;;  %s1122_s0 = inlined_call_operand.vmem [shape: bf16[128,128], index: 0, kind: input, shape index: {}]   ;;  %s1123_s1 = inlined_call_operand.vmem [shape: bf16[128,256], index: 1, kind: input, shape index: {}]   ;;  %s1124_s2 = inlined_call_operand.vmem [shape: f32[2,256], index: 2, kind: input, shape index: {}]   ;;  %s1125_s3 = inlined_call_operand.vmem [shape: bf16[128,256], index: 3, kind: output, shape index: {}]  }
   0x1   :  { %s944_s14 = smov 0  }
   0x2 LB: > { %s32_s15 = sadd.s32 1, %s914_s13  ;;  %p746_p0 = scmp.ge.s32.totalorder %s918_s14, 1  ;;  %s918_s14 = sphi %s944_s14, %s13_s14   ;;  %s914_s13 = sphi %s942_s13, %s1127_s13   ;;  %s910_s12 = sphi %s940_s12, %s1126_s12  }
   0x3   : > { %p34_p1 = scmp.ge.s32.totalorder %s32_s15, 2  ;;  %p194_p2 = scmp.lt.s32.totalorder %s918_s14, 3 }
   0x5   : > { %s1129_s15 = smov (%p34_p1, %s32_s15), 0  ;;  %p195_p3 = pnand %p746_p0, %p194_p2 }
   0x6   : > { %s747_s6 = sshll.u32 (!%p195_p3), %s910_s12, 3 }
   0x7   : > { %198 = sbr.rel (%p195_p3) target bundleno = 210 (0xd2), region = 32  ;;  %p242_p4 = scmp.lt.s32.totalorder (!%p195_p3), %s747_s6, 15 }
   0xc   : > { %v826_v0 = vld [vmem:[%s1123_s1 + $0x70] sm:$0xf]  ;;  %v855_v1 = vld [vmem:[%s1123_s1 + $0x74] sm:$0xf0]  ;;  %v854_v2 = vld [vmem:[%s1123_s1 + $0x74] sm:$0xf] }
   0xd   : > { %v827_v3 = vor.u32 %v855_v1, %v826_v0  ;;  %v828_v4 = vld [vmem:[%s1123_s1 + $0x78] sm:$0xf0]  ;;  %v818_v5 = vld [vmem:[%s1123_s1 + $0x60] sm:$0xf]  ;;  %v853_v6 = vld [vmem:[%s1123_s1 + $0x64] sm:$0xf0] }
   0xe   : > { %v831_v7 = vor.u32 %v854_v2, %v828_v4  ;;  %v852_v8 = vld [vmem:[%s1123_s1 + $0x64] sm:$0xf]  ;;  %v820_v9 = vld [vmem:[%s1123_s1 + $0x68] sm:$0xf0]  ;;  %v819_v10 = vor.u32 %v853_v6, %v818_v5  ;;  %v810_v12 = vld [vmem:[%s1123_s1 + $0x50] sm:$0xf] }
   0xf   : > { %444 = vmatpush.bf16.msra.mxu0 %v827_v3  ;;  %856 = vmatpush.bf16.msra.mxu2 %v827_v3  ;;  %v823_v11 = vor.u32 %v852_v8, %v820_v9  ;;  %v851_v13 = vld [vmem:[%s1123_s1 + $0x54] sm:$0xf0]  ;;  %v850_v14 = vld [vmem:[%s1123_s1 + $0x54] sm:$0xf]  ;;  %v812_v15 = vld [vmem:[%s1123_s1 + $0x58] sm:$0xf0] }
  0x10   : > { %473 = vmatpush.bf16.msra.mxu1 %v831_v7  ;;  %864 = vmatpush.bf16.msra.mxu3 %v831_v7  ;;  %v811_v16 = vor.u32 %v851_v13, %v810_v12  ;;  %v815_v17 = vor.u32 %v850_v14, %v812_v15  ;;  %v802_v18 = vld [vmem:[%s1123_s1 + $0x40] sm:$0xf]  ;;  %v849_v19 = vld [vmem:[%s1123_s1 + $0x44] sm:$0xf0]  ;;  %v848_v20 = vld [vmem:[%s1123_s1 + $0x44] sm:$0xf] }
  0x11   : > { %v804_v21 = vld [vmem:[%s1123_s1 + $0x48] sm:$0xf0]  ;;  %v803_v22 = vor.u32 %v849_v19, %v802_v18  ;;  %v794_v24 = vld [vmem:[%s1123_s1 + $0x30] sm:$0xf]  ;;  %v847_v25 = vld [vmem:[%s1123_s1 + $0x34] sm:$0xf0] }
  0x12   : > { %v807_v23 = vor.u32 %v848_v20, %v804_v21  ;;  %v846_v26 = vld [vmem:[%s1123_s1 + $0x34] sm:$0xf]  ;;  %v796_v27 = vld [vmem:[%s1123_s1 + $0x38] sm:$0xf0]  ;;  %v795_v28 = vor.u32 %v847_v25, %v794_v24  ;;  %v786_v30 = vld [vmem:[%s1123_s1 + $0x20] sm:$0xf] }
  0x13   : > { %445 = vmatpush.bf16.msra.mxu0 %v819_v10  ;;  %857 = vmatpush.bf16.msra.mxu2 %v819_v10  ;;  %v799_v29 = vor.u32 %v846_v26, %v796_v27  ;;  %v845_v31 = vld [vmem:[%s1123_s1 + $0x24] sm:$0xf0]  ;;  %v844_v32 = vld [vmem:[%s1123_s1 + $0x24] sm:$0xf]  ;;  %v788_v33 = vld [vmem:[%s1123_s1 + $0x28] sm:$0xf0] }
  0x14   : > { %474 = vmatpush.bf16.msra.mxu1 %v823_v11  ;;  %865 = vmatpush.bf16.msra.mxu3 %v823_v11  ;;  %v787_v34 = vor.u32 %v845_v31, %v786_v30  ;;  %v791_v35 = vor.u32 %v844_v32, %v788_v33  ;;  %v778_v36 = vld [vmem:[%s1123_s1 + $0x10] sm:$0xf]  ;;  %v843_v37 = vld [vmem:[%s1123_s1 + $0x14] sm:$0xf0]  ;;  %s1131_s6 = smov (!%p242_p4, %s747_s6), 15 }
  0x15   : > { %v842_v38 = vld [vmem:[%s1123_s1 + $0x14] sm:$0xf]  ;;  %v780_v39 = vld [vmem:[%s1123_s1 + $0x18] sm:$0xf0]  ;;  %v779_v40 = vor.u32 %v843_v37, %v778_v36  ;;  %v770_v42 = vld [vmem:[%s1123_s1] sm:$0xf] }
  0x16   : > { %v783_v41 = vor.u32 %v842_v38, %v780_v39  ;;  %v841_v43 = vld [vmem:[%s1123_s1 + $0x4] sm:$0xf0]  ;;  %s748_s30 = sshll.u32 %s1131_s6, 2  ;;  %v840_v44 = vld [vmem:[%s1123_s1 + $0x4] sm:$0xf]  ;;  %s835_s19 = sshll.u32 %s1131_s6, 3 }
  0x17   : > { %446 = vmatpush.bf16.msra.mxu0 %v811_v16  ;;  %858 = vmatpush.bf16.msra.mxu2 %v811_v16  ;;  %v772_v45 = vld [vmem:[%s1123_s1 + $0x8] sm:$0xf0]  ;;  %v771_v46 = vor.u32 %v841_v43, %v770_v42  ;;  %s248_s11 = scalar_lea.vmem %s1122_s0, %s748_s30  ;;  %v553_v52 = vld [vmem:[%s1124_s2] ss:$2 sm:$0x3]  ;;  %s1082_s22 = scalar_lea.vmem %s1125_s3, %s835_s19 }
  0x18   : > { %475 = vmatpush.bf16.msra.mxu1 %v815_v17  ;;  %866 = vmatpush.bf16.msra.mxu3 %v815_v17  ;;  %v775_v47 = vor.u32 %v840_v44, %v772_v45  ;;  %v836_v48 = vld [vmem:[%s248_s11] sm:$0xff]  ;;  %v838_v49 = vld [vmem:[%s248_s11 + $0x10] sm:$0xff]  ;;  %v837_v50 = vld [vmem:[%s248_s11 + $0x8] sm:$0xff]  ;;  %v555_v54 = vperm.slane %v553_v52, 0  ;;  %v1069_v55 = vperm.slane %v553_v52, 1 }
  0x19   : > { %v839_v51 = vld [vmem:[%s248_s11 + $0x18] sm:$0xff]  ;;  %v832_v53 = vld [vmem:[%s1124_s2 + $0x1] ss:$2 sm:$0x3] }
  0x1a   : > { %v1071_v56 = vperm.slane %v832_v53, 0  ;;  %v1073_v58 = vperm.slane %v832_v53, 1 }
  0x1b   : > { %447 = vmatpush.bf16.msra.mxu0 %v803_v22  ;;  %859 = vmatpush.bf16.msra.mxu2 %v803_v22 }
  0x1c   : > { %476 = vmatpush.bf16.msra.mxu1 %v807_v23  ;;  %867 = vmatpush.bf16.msra.mxu3 %v807_v23 }
  0x1f   : > { %448 = vmatpush.bf16.msra.mxu0 %v795_v28  ;;  %860 = vmatpush.bf16.msra.mxu2 %v795_v28 }
  0x20   : > { %477 = vmatpush.bf16.msra.mxu1 %v799_v29  ;;  %868 = vmatpush.bf16.msra.mxu3 %v799_v29 }
  0x23   : > { %449 = vmatpush.bf16.msra.mxu0 %v787_v34  ;;  %861 = vmatpush.bf16.msra.mxu2 %v787_v34 }
  0x24   : > { %478 = vmatpush.bf16.msra.mxu1 %v791_v35  ;;  %869 = vmatpush.bf16.msra.mxu3 %v791_v35 }
  0x27   : > { %450 = vmatpush.bf16.msra.mxu0 %v779_v40  ;;  %862 = vmatpush.bf16.msra.mxu2 %v779_v40 }
  0x28   : > { %479 = vmatpush.bf16.msra.mxu1 %v783_v41  ;;  %870 = vmatpush.bf16.msra.mxu3 %v783_v41 }
  0x2b   : > { %451 = vmatpush.bf16.msra.mxu0 %v771_v46  ;;  %863 = vmatpush.bf16.msra.mxu2 %v771_v46 }
  0x2c   : > { %480 = vmatpush.bf16.msra.mxu1 %v775_v47  ;;  %871 = vmatpush.bf16.msra.mxu3 %v775_v47 }
  0x2e   : > { %452 = vmatmul.bf16.vlgmr.msra.gmra.mxu0 %v836_v48  ;;  %462 = vmatmul.bf16.vlgmr.msra.gmra.mxu2 %v838_v49 }
  0x2f   : > { %481 = vmatmul.bf16.vlgmr.msra.gmra.mxu1 %v836_v48  ;;  %491 = vmatmul.bf16.vlgmr.msra.gmra.mxu3 %v838_v49 }
  0x3e   : > { %457 = vmatmul.bf16.gmra.mxu0 %v837_v50  ;;  %467 = vmatmul.bf16.gmra.mxu2 %v839_v51 }
  0x3f   : > { %486 = vmatmul.bf16.gmra.mxu1 %v837_v50  ;;  %496 = vmatmul.bf16.gmra.mxu3 %v839_v51 }
  0xab   : > { %v453_v57 = vpop.f32.mrf.mxu0 }
  0xac   : > { %v559_v59 = vmul.f32 %v555_v54, %v453_v57  ;;  %v482_v60 = vpop.f32.mrf.mxu1 }
  0xad   : > { %v560_v61 = vmul.f32 %v1069_v55, %v482_v60 }
  0xae   : > { %v582_v62 = vadd.f32 %v1071_v56, %v559_v59 }
  0xaf   : > { %v583_v63 = vadd.f32 %v1073_v58, %v560_v61 }
  0xb1   : > { %v598_v0 = vpack.c.bf16 %v583_v63, %v582_v62  ;;  %v463_v1 = vpop.f32.mrf.mxu2 }
  0xb2   : > { %v567_v2 = vmul.f32 %v555_v54, %v463_v1  ;;  %v492_v3 = vpop.f32.mrf.mxu3 }
  0xb3   : > { %606 = vst [vmem:[%s1082_s22] sm:$0xff] %v598_v0  ;;  %v568_v4 = vmul.f32 %v1069_v55, %v492_v3  ;;  %v455_v5 = vpop.f32.mrf.mxu0 }
  0xb4   : > { %v590_v6 = vadd.f32 %v1071_v56, %v567_v2  ;;  %v561_v7 = vmul.f32 %v555_v54, %v455_v5  ;;  %v484_v8 = vpop.f32.mrf.mxu1 }
  0xb5   : > { %v591_v9 = vadd.f32 %v1073_v58, %v568_v4  ;;  %v562_v10 = vmul.f32 %v1069_v55, %v484_v8 }
  0xb6   : > { %v584_v11 = vadd.f32 %v1071_v56, %v561_v7 }
  0xb7   : > { %v602_v12 = vpack.c.bf16 %v591_v9, %v590_v6  ;;  %v585_v13 = vadd.f32 %v1073_v58, %v562_v10 }
  0xb9   : > { %610 = vst [vmem:[%s1082_s22 + $0x20] sm:$0xff] %v602_v12  ;;  %v599_v14 = vpack.c.bf16 %v585_v13, %v584_v11  ;;  %v465_v15 = vpop.f32.mrf.mxu2 }
  0xba   : > { %v569_v16 = vmul.f32 %v555_v54, %v465_v15  ;;  %v494_v17 = vpop.f32.mrf.mxu3 }
  0xbb   : > { %607 = vst [vmem:[%s1082_s22 + $0x8] sm:$0xff] %v599_v14  ;;  %v570_v18 = vmul.f32 %v1069_v55, %v494_v17  ;;  %v458_v19 = vpop.f32.mrf.mxu0 }
  0xbc   : > { %v592_v20 = vadd.f32 %v1071_v56, %v569_v16  ;;  %v563_v21 = vmul.f32 %v555_v54, %v458_v19  ;;  %v487_v22 = vpop.f32.mrf.mxu1 }
  0xbd   : > { %v593_v23 = vadd.f32 %v1073_v58, %v570_v18  ;;  %v564_v24 = vmul.f32 %v1069_v55, %v487_v22 }
  0xbe   : > { %v586_v25 = vadd.f32 %v1071_v56, %v563_v21 }
  0xbf   : > { %v603_v26 = vpack.c.bf16 %v593_v23, %v592_v20  ;;  %v587_v27 = vadd.f32 %v1073_v58, %v564_v24 }
  0xc1   : > { %611 = vst [vmem:[%s1082_s22 + $0x28] sm:$0xff] %v603_v26  ;;  %v600_v28 = vpack.c.bf16 %v587_v27, %v586_v25  ;;  %v468_v29 = vpop.f32.mrf.mxu2 }
  0xc2   : > { %v571_v30 = vmul.f32 %v555_v54, %v468_v29  ;;  %v497_v31 = vpop.f32.mrf.mxu3 }
  0xc3   : > { %608 = vst [vmem:[%s1082_s22 + $0x10] sm:$0xff] %v600_v28  ;;  %v572_v32 = vmul.f32 %v1069_v55, %v497_v31  ;;  %v460_v33 = vpop.f32.mrf.mxu0 }
  0xc4   : > { %v594_v34 = vadd.f32 %v1071_v56, %v571_v30  ;;  %v565_v35 = vmul.f32 %v555_v54, %v460_v33  ;;  %v489_v36 = vpop.f32.mrf.mxu1 }
  0xc5   : > { %v595_v37 = vadd.f32 %v1073_v58, %v572_v32  ;;  %v566_v38 = vmul.f32 %v1069_v55, %v489_v36 }
  0xc6   : > { %v588_v39 = vadd.f32 %v1071_v56, %v565_v35 }
  0xc7   : > { %v604_v40 = vpack.c.bf16 %v595_v37, %v594_v34  ;;  %v589_v41 = vadd.f32 %v1073_v58, %v566_v38 }
  0xc9   : > { %612 = vst [vmem:[%s1082_s22 + $0x30] sm:$0xff] %v604_v40  ;;  %v601_v42 = vpack.c.bf16 %v589_v41, %v588_v39  ;;  %v470_v43 = vpop.f32.mrf.mxu2 }
  0xca   : > { %v573_v44 = vmul.f32 %v555_v54, %v470_v43  ;;  %v499_v45 = vpop.f32.mrf.mxu3 }
  0xcb   : > { %609 = vst [vmem:[%s1082_s22 + $0x18] sm:$0xff] %v601_v42  ;;  %v574_v46 = vmul.f32 %v1069_v55, %v499_v45 }
  0xcc   : > { %v596_v47 = vadd.f32 %v1071_v56, %v573_v44 }
  0xcd   : > { %v597_v48 = vadd.f32 %v1073_v58, %v574_v46 }
  0xcf   : > { %v605_v49 = vpack.c.bf16 %v597_v48, %v596_v47 }
  0xd1   : > { %613 = vst [vmem:[%s1082_s22 + $0x38] sm:$0xff] %v605_v49 }
  0xd2 PF: > { %s13_s14 = sadd.s32 1, %s918_s14   ;;  %s1126_s12 = smov %s914_s13 }
  0xd3   : > { %p10_p5 = scmp.ge.s32.totalorder %s13_s14, 4   ;;  %s1127_s13 = smov %s1129_s15 }
  0xd5   :  { %12 = sbr.rel (!%p10_p5) target bundleno = 2 (0x2), region = 77 }

// kernel: _lambda_.22
= control target key start
LH: loop header
LB: loop body
LE: loop exit
PB: predicated region body
PF: predicated region fallthrough
CT: control target
= control target key end

     0   :  { %s1091_s15 = smov 0   ;;  %s1093_s16 = smov 0   ;;  %s1300_s0 = inlined_call_operand.vmem [shape: bf16[128,128], index: 0, kind: input, shape index: {}]   ;;  %s1301_s1 = inlined_call_operand.vmem [shape: bf16[128,256], index: 1, kind: input, shape index: {}]   ;;  %s1302_s2 = inlined_call_operand.vmem [shape: f32[2,256], index: 2, kind: input, shape index: {}]   ;;  %s1303_s3 = inlined_call_operand.vmem [shape: bf16[128,256], index: 3, kind: input, shape index: {}]   ;;  %s1304_s4 = inlined_call_operand.vmem [shape: bf16[128,256], index: 4, kind: output, shape index: {}]  }
   0x1   :  { %s1095_s17 = smov 0  }
   0x2 LB: > { %s33_s18 = sadd.s32 1, %s1060_s16  ;;  %p888_p0 = scmp.ge.s32.totalorder %s1064_s17, 1  ;;  %s1064_s17 = sphi %s1095_s17, %s14_s17   ;;  %s1060_s16 = sphi %s1093_s16, %s1306_s16   ;;  %s1056_s15 = sphi %s1091_s15, %s1305_s15  }
   0x3   : > { %p35_p1 = scmp.ge.s32.totalorder %s33_s18, 2  ;;  %p238_p2 = scmp.lt.s32.totalorder %s1064_s17, 3 }
   0x5   : > { %s1308_s18 = smov (%p35_p1, %s33_s18), 0  ;;  %p239_p3 = pnand %p888_p0, %p238_p2 }
   0x6   : > { %s889_s11 = sshll.u32 (!%p239_p3), %s1056_s15, 3 }
   0x7   : > { %242 = sbr.rel (%p239_p3) target bundleno = 214 (0xd6), region = 36  ;;  %p298_p4 = scmp.lt.s32.totalorder (!%p239_p3), %s889_s11, 15 }
   0xc   : > { %v971_v0 = vld [vmem:[%s1301_s1 + $0x70] sm:$0xf]  ;;  %v1001_v1 = vld [vmem:[%s1301_s1 + $0x74] sm:$0xf0]  ;;  %v1000_v2 = vld [vmem:[%s1301_s1 + $0x74] sm:$0xf] }
   0xd   : > { %v972_v3 = vor.u32 %v1001_v1, %v971_v0  ;;  %v973_v4 = vld [vmem:[%s1301_s1 + $0x78] sm:$0xf0]  ;;  %v963_v5 = vld [vmem:[%s1301_s1 + $0x60] sm:$0xf]  ;;  %v999_v6 = vld [vmem:[%s1301_s1 + $0x64] sm:$0xf0] }
   0xe   : > { %v976_v7 = vor.u32 %v1000_v2, %v973_v4  ;;  %v998_v8 = vld [vmem:[%s1301_s1 + $0x64] sm:$0xf]  ;;  %v965_v9 = vld [vmem:[%s1301_s1 + $0x68] sm:$0xf0]  ;;  %v964_v10 = vor.u32 %v999_v6, %v963_v5  ;;  %v955_v12 = vld [vmem:[%s1301_s1 + $0x50] sm:$0xf] }
   0xf   : > { %512 = vmatpush.bf16.msra.mxu0 %v972_v3  ;;  %1002 = vmatpush.bf16.msra.mxu2 %v972_v3  ;;  %v968_v11 = vor.u32 %v998_v8, %v965_v9  ;;  %v997_v13 = vld [vmem:[%s1301_s1 + $0x54] sm:$0xf0]  ;;  %v996_v14 = vld [vmem:[%s1301_s1 + $0x54] sm:$0xf]  ;;  %v957_v15 = vld [vmem:[%s1301_s1 + $0x58] sm:$0xf0] }
  0x10   : > { %541 = vmatpush.bf16.msra.mxu1 %v976_v7  ;;  %1010 = vmatpush.bf16.msra.mxu3 %v976_v7  ;;  %v956_v16 = vor.u32 %v997_v13, %v955_v12  ;;  %v960_v17 = vor.u32 %v996_v14, %v957_v15  ;;  %v947_v18 = vld [vmem:[%s1301_s1 + $0x40] sm:$0xf]  ;;  %v995_v19 = vld [vmem:[%s1301_s1 + $0x44] sm:$0xf0]  ;;  %v994_v20 = vld [vmem:[%s1301_s1 + $0x44] sm:$0xf] }
  0x11   : > { %v949_v21 = vld [vmem:[%s1301_s1 + $0x48] sm:$0xf0]  ;;  %v948_v22 = vor.u32 %v995_v19, %v947_v18  ;;  %v939_v24 = vld [vmem:[%s1301_s1 + $0x30] sm:$0xf]  ;;  %v993_v25 = vld [vmem:[%s1301_s1 + $0x34] sm:$0xf0] }
  0x12   : > { %v952_v23 = vor.u32 %v994_v20, %v949_v21  ;;  %v992_v26 = vld [vmem:[%s1301_s1 + $0x34] sm:$0xf]  ;;  %v941_v27 = vld [vmem:[%s1301_s1 + $0x38] sm:$0xf0]  ;;  %v940_v28 = vor.u32 %v993_v25, %v939_v24  ;;  %v931_v30 = vld [vmem:[%s1301_s1 + $0x20] sm:$0xf] }
  0x13   : > { %513 = vmatpush.bf16.msra.mxu0 %v964_v10  ;;  %1003 = vmatpush.bf16.msra.mxu2 %v964_v10  ;;  %v944_v29 = vor.u32 %v992_v26, %v941_v27  ;;  %v991_v31 = vld [vmem:[%s1301_s1 + $0x24] sm:$0xf0]  ;;  %v990_v32 = vld [vmem:[%s1301_s1 + $0x24] sm:$0xf]  ;;  %v933_v33 = vld [vmem:[%s1301_s1 + $0x28] sm:$0xf0] }
  0x14   : > { %542 = vmatpush.bf16.msra.mxu1 %v968_v11  ;;  %1011 = vmatpush.bf16.msra.mxu3 %v968_v11  ;;  %v932_v34 = vor.u32 %v991_v31, %v931_v30  ;;  %v936_v35 = vor.u32 %v990_v32, %v933_v33  ;;  %v923_v36 = vld [vmem:[%s1301_s1 + $0x10] sm:$0xf]  ;;  %v989_v37 = vld [vmem:[%s1301_s1 + $0x14] sm:$0xf0]  ;;  %s1310_s11 = smov (!%p298_p4, %s889_s11), 15 }
  0x15   : > { %v988_v38 = vld [vmem:[%s1301_s1 + $0x14] sm:$0xf]  ;;  %v925_v39 = vld [vmem:[%s1301_s1 + $0x18] sm:$0xf0]  ;;  %v924_v40 = vor.u32 %v989_v37, %v923_v36  ;;  %v915_v42 = vld [vmem:[%s1301_s1] sm:$0xf] }
  0x16   : > { %v928_v41 = vor.u32 %v988_v38, %v925_v39  ;;  %v987_v43 = vld [vmem:[%s1301_s1 + $0x4] sm:$0xf0]  ;;  %s890_s9 = sshll.u32 %s1310_s11, 2  ;;  %v986_v44 = vld [vmem:[%s1301_s1 + $0x4] sm:$0xf]  ;;  %s980_s15 = sshll.u32 %s1310_s11, 3 }
  0x17   : > { %514 = vmatpush.bf16.msra.mxu0 %v956_v16  ;;  %1004 = vmatpush.bf16.msra.mxu2 %v956_v16  ;;  %v917_v45 = vld [vmem:[%s1301_s1 + $0x8] sm:$0xf0]  ;;  %v916_v46 = vor.u32 %v987_v43, %v915_v42  ;;  %s304_s21 = scalar_lea.vmem %s1300_s0, %s890_s9  ;;  %v621_v52 = vld [vmem:[%s1302_s2] ss:$2 sm:$0x3]  ;;  %s1223_s26 = scalar_lea.vmem %s1303_s3, %s980_s15 }
  0x18   : > { %543 = vmatpush.bf16.msra.mxu1 %v960_v17  ;;  %1012 = vmatpush.bf16.msra.mxu3 %v960_v17  ;;  %v920_v47 = vor.u32 %v986_v44, %v917_v45  ;;  %v982_v48 = vld [vmem:[%s304_s21] sm:$0xff]  ;;  %v984_v49 = vld [vmem:[%s304_s21 + $0x10] sm:$0xff]  ;;  %v983_v50 = vld [vmem:[%s304_s21 + $0x8] sm:$0xff]  ;;  %v1228_v54 = vperm.slane %v621_v52, 0  ;;  %v1231_v56 = vperm.slane %v621_v52, 1  ;;  %s1250_s5 = scalar_lea.vmem %s1304_s4, %s980_s15 }
  0x19   : > { %v985_v51 = vld [vmem:[%s304_s21 + $0x18] sm:$0xff]  ;;  %v977_v53 = vld [vmem:[%s1302_s2 + $0x1] ss:$2 sm:$0x3]  ;;  %v667_v7 = vld [vmem:[%s1223_s26 + $0x8] sm:$0xff] }
  0x1a   : > { %v666_v55 = vld [vmem:[%s1223_s26] sm:$0xff]  ;;  %v1233_v57 = vperm.slane %v977_v53, 0  ;;  %v1235_v59 = vperm.slane %v977_v53, 1  ;;  %v676_v18 = vunpack.c.l.bf16 %v667_v7 }
  0x1b   : > { %515 = vmatpush.bf16.msra.mxu0 %v948_v22  ;;  %1005 = vmatpush.bf16.msra.mxu2 %v948_v22  ;;  %v674_v61 = vunpack.c.l.bf16 %v666_v55  ;;  %v675_v0 = vunpack.c.h.bf16 %v666_v55  ;;  %v670_v3 = vld [vmem:[%s1223_s26 + $0x20] sm:$0xff] }
  0x1c   : > { %544 = vmatpush.bf16.msra.mxu1 %v952_v23  ;;  %1013 = vmatpush.bf16.msra.mxu3 %v952_v23  ;;  %v682_v10 = vunpack.c.l.bf16 %v670_v3  ;;  %v683_v14 = vunpack.c.h.bf16 %v670_v3  ;;  %v677_v23 = vunpack.c.h.bf16 %v667_v7 }
  0x1f   : > { %516 = vmatpush.bf16.msra.mxu0 %v940_v28  ;;  %1006 = vmatpush.bf16.msra.mxu2 %v940_v28  ;;  %v671_v28 = vld [vmem:[%s1223_s26 + $0x28] sm:$0xff] }
  0x20   : > { %545 = vmatpush.bf16.msra.mxu1 %v944_v29  ;;  %1014 = vmatpush.bf16.msra.mxu3 %v944_v29  ;;  %v684_v37 = vunpack.c.l.bf16 %v671_v28  ;;  %v685_v42 = vunpack.c.h.bf16 %v671_v28 }
  0x23   : > { %517 = vmatpush.bf16.msra.mxu0 %v932_v34  ;;  %1007 = vmatpush.bf16.msra.mxu2 %v932_v34  ;;  %v668_v34 = vld [vmem:[%s1223_s26 + $0x10] sm:$0xff] }
  0x24   : > { %546 = vmatpush.bf16.msra.mxu1 %v936_v35  ;;  %1015 = vmatpush.bf16.msra.mxu3 %v936_v35 }
  0x27   : > { %518 = vmatpush.bf16.msra.mxu0 %v924_v40  ;;  %1008 = vmatpush.bf16.msra.mxu2 %v924_v40 }
  0x28   : > { %547 = vmatpush.bf16.msra.mxu1 %v928_v41  ;;  %1016 = vmatpush.bf16.msra.mxu3 %v928_v41 }
  0x2b   : > { %519 = vmatpush.bf16.msra.mxu0 %v916_v46  ;;  %1009 = vmatpush.bf16.msra.mxu2 %v916_v46  ;;  %v678_v46 = vunpack.c.l.bf16 %v668_v34 }
  0x2c   : > { %548 = vmatpush.bf16.msra.mxu1 %v920_v47  ;;  %1017 = vmatpush.bf16.msra.mxu3 %v920_v47 }
  0x2e   : > { %520 = vmatmul.bf16.vlgmr.msra.gmra.mxu0 %v982_v48  ;;  %530 = vmatmul.bf16.vlgmr.msra.gmra.mxu2 %v984_v49 }
  0x2f   : > { %549 = vmatmul.bf16.vlgmr.msra.gmra.mxu1 %v982_v48  ;;  %559 = vmatmul.bf16.vlgmr.msra.gmra.mxu3 %v984_v49 }
  0x3e   : > { %525 = vmatmul.bf16.gmra.mxu0 %v983_v50  ;;  %535 = vmatmul.bf16.gmra.mxu2 %v985_v51 }
  0x3f   : > { %554 = vmatmul.bf16.gmra.mxu1 %v983_v50  ;;  %564 = vmatmul.bf16.gmra.mxu3 %v985_v51  ;;  %v679_v51 = vunpack.c.h.bf16 %v668_v34 }
  0xab   : > { %v521_v58 = vpop.f32.mrf.mxu0 }
  0xac   : > { %v627_v60 = vmul.f32 %v1228_v54, %v521_v58  ;;  %v550_v62 = vpop.f32.mrf.mxu1 }
  0xad   : > { %v628_v63 = vmul.f32 %v1231_v56, %v550_v62 }
  0xae   : > { %v650_v1 = vadd.f32 %v1233_v57, %v627_v60  ;;  %v672_v60 = vld [vmem:[%s1223_s26 + $0x30] sm:$0xff] }
  0xaf   : > { %v651_v2 = vadd.f32 %v1235_v59, %v628_v63 }
  0xb0   : > { %v690_v4 = vadd.f32 %v674_v61, %v650_v1 }
  0xb1   : > { %v691_v5 = vadd.f32 %v675_v0, %v651_v2  ;;  %v531_v6 = vpop.f32.mrf.mxu2  ;;  %v669_v2 = vld [vmem:[%s1223_s26 + $0x18] sm:$0xff] }
  0xb2   : > { %v706_v8 = vmax.f32 %v690_v4, 0.0  ;;  %v635_v9 = vmul.f32 %v1228_v54, %v531_v6  ;;  %v560_v11 = vpop.f32.mrf.mxu3 }
  0xb3   : > { %v707_v12 = vmax.f32 %v691_v5, 0.0  ;;  %v636_v13 = vmul.f32 %v1231_v56, %v560_v11  ;;  %v523_v15 = vpop.f32.mrf.mxu0  ;;  %v686_v5 = vunpack.c.l.bf16 %v672_v60 }
  0xb4   : > { %v658_v16 = vadd.f32 %v1233_v57, %v635_v9  ;;  %v629_v17 = vmul.f32 %v1228_v54, %v523_v15  ;;  %v552_v19 = vpop.f32.mrf.mxu1 }
  0xb5   : > { %v722_v20 = vpack.c.bf16 %v707_v12, %v706_v8  ;;  %v659_v21 = vadd.f32 %v1235_v59, %v636_v13  ;;  %v630_v22 = vmul.f32 %v1231_v56, %v552_v19  ;;  %v681_v19 = vunpack.c.h.bf16 %v669_v2 }
  0xb6   : > { %v698_v24 = vadd.f32 %v682_v10, %v658_v16  ;;  %v652_v25 = vadd.f32 %v1233_v57, %v629_v17  ;;  %v687_v10 = vunpack.c.h.bf16 %v672_v60 }
  0xb7   : > { %730 = vst [vmem:[%s1250_s5] sm:$0xff] %v722_v20  ;;  %v699_v26 = vadd.f32 %v683_v14, %v659_v21  ;;  %v653_v27 = vadd.f32 %v1235_v59, %v630_v22  ;;  %v680_v14 = vunpack.c.l.bf16 %v669_v2 }
  0xb8   : > { %v714_v29 = vmax.f32 %v698_v24, 0.0  ;;  %v692_v30 = vadd.f32 %v676_v18, %v652_v25  ;;  %v673_v24 = vld [vmem:[%s1223_s26 + $0x38] sm:$0xff] }
  0xb9   : > { %v715_v31 = vmax.f32 %v699_v26, 0.0  ;;  %v693_v32 = vadd.f32 %v677_v23, %v653_v27  ;;  %v533_v33 = vpop.f32.mrf.mxu2 }
  0xba   : > { %v708_v35 = vmax.f32 %v692_v30, 0.0  ;;  %v637_v36 = vmul.f32 %v1228_v54, %v533_v33  ;;  %v562_v38 = vpop.f32.mrf.mxu3 }
  0xbb   : > { %v726_v39 = vpack.c.bf16 %v715_v31, %v714_v29  ;;  %v709_v40 = vmax.f32 %v693_v32, 0.0  ;;  %v638_v41 = vmul.f32 %v1231_v56, %v562_v38  ;;  %v526_v43 = vpop.f32.mrf.mxu0  ;;  %v688_v32 = vunpack.c.l.bf16 %v673_v24 }
  0xbc   : > { %v660_v44 = vadd.f32 %v1233_v57, %v637_v36  ;;  %v631_v45 = vmul.f32 %v1228_v54, %v526_v43  ;;  %v555_v47 = vpop.f32.mrf.mxu1 }
  0xbd   : > { %734 = vst [vmem:[%s1250_s5 + $0x20] sm:$0xff] %v726_v39  ;;  %v723_v48 = vpack.c.bf16 %v709_v40, %v708_v35  ;;  %v661_v49 = vadd.f32 %v1235_v59, %v638_v41  ;;  %v632_v50 = vmul.f32 %v1231_v56, %v555_v47 }
  0xbe   : > { %v700_v52 = vadd.f32 %v684_v37, %v660_v44  ;;  %v654_v53 = vadd.f32 %v1233_v57, %v631_v45  ;;  %v689_v37 = vunpack.c.h.bf16 %v673_v24 }
  0xbf   : > { %731 = vst [vmem:[%s1250_s5 + $0x8] sm:$0xff] %v723_v48  ;;  %v701_v55 = vadd.f32 %v685_v42, %v661_v49  ;;  %v655_v58 = vadd.f32 %v1235_v59, %v632_v50 }
  0xc0   : > { %v716_v61 = vmax.f32 %v700_v52, 0.0  ;;  %v694_v62 = vadd.f32 %v678_v46, %v654_v53 }
  0xc1   : > { %v717_v63 = vmax.f32 %v701_v55, 0.0  ;;  %v695_v0 = vadd.f32 %v679_v51, %v655_v58  ;;  %v536_v1 = vpop.f32.mrf.mxu2 }
  0xc2   : > { %v710_v3 = vmax.f32 %v694_v62, 0.0  ;;  %v639_v4 = vmul.f32 %v1228_v54, %v536_v1  ;;  %v565_v6 = vpop.f32.mrf.mxu3 }
  0xc3   : > { %v727_v7 = vpack.c.bf16 %v717_v63, %v716_v61  ;;  %v711_v8 = vmax.f32 %v695_v0, 0.0  ;;  %v640_v9 = vmul.f32 %v1231_v56, %v565_v6  ;;  %v528_v11 = vpop.f32.mrf.mxu0 }
  0xc4   : > { %v662_v12 = vadd.f32 %v1233_v57, %v639_v4  ;;  %v633_v13 = vmul.f32 %v1228_v54, %v528_v11  ;;  %v557_v15 = vpop.f32.mrf.mxu1 }
  0xc5   : > { %735 = vst [vmem:[%s1250_s5 + $0x28] sm:$0xff] %v727_v7  ;;  %v724_v16 = vpack.c.bf16 %v711_v8, %v710_v3  ;;  %v663_v17 = vadd.f32 %v1235_v59, %v640_v9  ;;  %v634_v18 = vmul.f32 %v1231_v56, %v557_v15 }
  0xc6   : > { %v702_v20 = vadd.f32 %v686_v5, %v662_v12  ;;  %v656_v21 = vadd.f32 %v1233_v57, %v633_v13 }
  0xc7   : > { %732 = vst [vmem:[%s1250_s5 + $0x10] sm:$0xff] %v724_v16  ;;  %v703_v22 = vadd.f32 %v687_v10, %v663_v17  ;;  %v657_v23 = vadd.f32 %v1235_v59, %v634_v18 }
  0xc8   : > { %v718_v25 = vmax.f32 %v702_v20, 0.0  ;;  %v696_v26 = vadd.f32 %v680_v14, %v656_v21 }
  0xc9   : > { %v719_v27 = vmax.f32 %v703_v22, 0.0  ;;  %v697_v28 = vadd.f32 %v681_v19, %v657_v23  ;;  %v538_v29 = vpop.f32.mrf.mxu2 }
  0xca   : > { %v712_v30 = vmax.f32 %v696_v26, 0.0  ;;  %v641_v31 = vmul.f32 %v1228_v54, %v538_v29  ;;  %v567_v33 = vpop.f32.mrf.mxu3 }
  0xcb   : > { %v728_v34 = vpack.c.bf16 %v719_v27, %v718_v25  ;;  %v713_v35 = vmax.f32 %v697_v28, 0.0  ;;  %v642_v36 = vmul.f32 %v1231_v56, %v567_v33 }
  0xcc   : > { %v664_v38 = vadd.f32 %v1233_v57, %v641_v31 }
  0xcd   : > { %736 = vst [vmem:[%s1250_s5 + $0x30] sm:$0xff] %v728_v34  ;;  %v725_v39 = vpack.c.bf16 %v713_v35, %v712_v30  ;;  %v665_v40 = vadd.f32 %v1235_v59, %v642_v36 }
  0xce   : > { %v704_v41 = vadd.f32 %v688_v32, %v664_v38 }
  0xcf   : > { %733 = vst [vmem:[%s1250_s5 + $0x18] sm:$0xff] %v725_v39  ;;  %v705_v42 = vadd.f32 %v689_v37, %v665_v40 }
  0xd0   : > { %v720_v43 = vmax.f32 %v704_v41, 0.0 }
  0xd1   : > { %v721_v44 = vmax.f32 %v705_v42, 0.0 }
  0xd3   : > { %v729_v54 = vpack.c.bf16 %v721_v44, %v720_v43 }
  0xd5   : > { %737 = vst [vmem:[%s1250_s5 + $0x38] sm:$0xff] %v729_v54 }
  0xd6 PF: > { %s14_s17 = sadd.s32 1, %s1064_s17   ;;  %s1305_s15 = smov %s1060_s16 }
  0xd7   : > { %p11_p5 = scmp.ge.s32.totalorder %s14_s17, 4   ;;  %s1306_s16 = smov %s1308_s18 }
  0xd9   :  { %13 = sbr.rel (!%p11_p5) target bundleno = 2 (0x2), region = 84 }

// kernel: _lambda_.23
= control target key start
LH: loop header
LB: loop body
LE: loop exit
PB: predicated region body
PF: predicated region fallthrough
CT: control target
= control target key end

     0   :  { %s1223_s12 = smov 0   ;;  %s1225_s13 = smov 0   ;;  %s1532_s0 = inlined_call_operand.vmem [shape: bf16[128,256], index: 0, kind: input, shape index: {}]   ;;  %s1533_s1 = inlined_call_operand.vmem [shape: bf16[256,256], index: 1, kind: input, shape index: {}]   ;;  %s1534_s2 = inlined_call_operand.vmem [shape: f32[2,256], index: 2, kind: input, shape index: {}]   ;;  %s1535_s3 = inlined_call_operand.vmem [shape: bf16[128,256], index: 3, kind: output, shape index: {}]  }
   0x1   :  { %s1227_s14 = smov 0  }
   0x2 LB: > { %s32_s15 = sadd.s32 1, %s1197_s13  ;;  %p943_p0 = scmp.ge.s32.totalorder %s1201_s14, 1  ;;  %s1201_s14 = sphi %s1227_s14, %s13_s14   ;;  %s1197_s13 = sphi %s1225_s13, %s1537_s13   ;;  %s1193_s12 = sphi %s1223_s12, %s1536_s12  }
   0x3   : > { %p34_p1 = scmp.ge.s32.totalorder %s32_s15, 2  ;;  %p197_p2 = scmp.lt.s32.totalorder %s1201_s14, 3 }
   0x5   : > { %s1539_s15 = smov (%p34_p1, %s32_s15), 0  ;;  %p198_p3 = pnand %p943_p0, %p197_p2 }
   0x6   : > { %s944_s5 = sshll.u32 (!%p198_p3), %s1193_s12, 3 }
   0x7   : > { %201 = sbr.rel (%p198_p3) target bundleno = 247 (0xf7), region = 32  ;;  %p248_p4 = scmp.lt.s32.totalorder (!%p198_p3), %s944_s5, 15 }
   0xc   : > { %v1040_v0 = vld [vmem:[%s1533_s1 + $0x70] sm:$0xf]  ;;  %v1138_v1 = vld [vmem:[%s1533_s1 + $0x74] sm:$0xf0]  ;;  %v1137_v5 = vld [vmem:[%s1533_s1 + $0x74] sm:$0xf] }
   0xd   : > { %v1104_v2 = vld [vmem:[%s1533_s1 + $0xf0] sm:$0xf]  ;;  %v1041_v3 = vor.u32 %v1138_v1, %v1040_v0  ;;  %v1154_v4 = vld [vmem:[%s1533_s1 + $0xf4] sm:$0xf0]  ;;  %v1042_v6 = vld [vmem:[%s1533_s1 + $0x78] sm:$0xf0] }
   0xe   : > { %v1105_v7 = vor.u32 %v1154_v4, %v1104_v2  ;;  %v1045_v8 = vor.u32 %v1137_v5, %v1042_v6  ;;  %v1153_v9 = vld [vmem:[%s1533_s1 + $0xf4] sm:$0xf]  ;;  %v1106_v10 = vld [vmem:[%s1533_s1 + $0xf8] sm:$0xf0]  ;;  %v1032_v11 = vld [vmem:[%s1533_s1 + $0x60] sm:$0xf] }
   0xf   : > { %564 = vmatpush.bf16.msra.mxu0 %v1041_v3  ;;  %v1109_v12 = vor.u32 %v1153_v9, %v1106_v10  ;;  %v1136_v13 = vld [vmem:[%s1533_s1 + $0x64] sm:$0xf0]  ;;  %v1096_v14 = vld [vmem:[%s1533_s1 + $0xe0] sm:$0xf]  ;;  %v1135_v18 = vld [vmem:[%s1533_s1 + $0x64] sm:$0xf] }
  0x10   : > { %v1152_v15 = vld [vmem:[%s1533_s1 + $0xe4] sm:$0xf0]  ;;  %593 = vmatpush.bf16.msra.mxu1 %v1105_v7  ;;  %622 = vmatpush.bf16.msra.mxu2 %v1045_v8  ;;  %v1033_v16 = vor.u32 %v1136_v13, %v1032_v11  ;;  %v1034_v19 = vld [vmem:[%s1533_s1 + $0x68] sm:$0xf0]  ;;  %v1151_v20 = vld [vmem:[%s1533_s1 + $0xe4] sm:$0xf] }
  0x11   : > { %v1097_v17 = vor.u32 %v1152_v15, %v1096_v14  ;;  %651 = vmatpush.bf16.msra.mxu3 %v1109_v12  ;;  %v1037_v21 = vor.u32 %v1135_v18, %v1034_v19  ;;  %v1098_v22 = vld [vmem:[%s1533_s1 + $0xe8] sm:$0xf0]  ;;  %v1024_v23 = vld [vmem:[%s1533_s1 + $0x50] sm:$0xf]  ;;  %v1134_v24 = vld [vmem:[%s1533_s1 + $0x54] sm:$0xf0] }
  0x12   : > { %v1101_v25 = vor.u32 %v1151_v20, %v1098_v22  ;;  %v1088_v26 = vld [vmem:[%s1533_s1 + $0xd0] sm:$0xf]  ;;  %v1150_v27 = vld [vmem:[%s1533_s1 + $0xd4] sm:$0xf0]  ;;  %v1133_v28 = vld [vmem:[%s1533_s1 + $0x54] sm:$0xf]  ;;  %v1025_v29 = vor.u32 %v1134_v24, %v1024_v23 }
  0x13   : > { %565 = vmatpush.bf16.msra.mxu0 %v1033_v16  ;;  %v1026_v30 = vld [vmem:[%s1533_s1 + $0x58] sm:$0xf0]  ;;  %v1149_v31 = vld [vmem:[%s1533_s1 + $0xd4] sm:$0xf]  ;;  %v1089_v33 = vor.u32 %v1150_v27, %v1088_v26  ;;  %v1016_v35 = vld [vmem:[%s1533_s1 + $0x40] sm:$0xf] }
  0x14   : > { %v1090_v32 = vld [vmem:[%s1533_s1 + $0xd8] sm:$0xf0]  ;;  %594 = vmatpush.bf16.msra.mxu1 %v1097_v17  ;;  %623 = vmatpush.bf16.msra.mxu2 %v1037_v21  ;;  %v1029_v34 = vor.u32 %v1133_v28, %v1026_v30  ;;  %v1132_v36 = vld [vmem:[%s1533_s1 + $0x44] sm:$0xf0]  ;;  %v1080_v37 = vld [vmem:[%s1533_s1 + $0xc0] sm:$0xf] }
  0x15   : > { %652 = vmatpush.bf16.msra.mxu3 %v1101_v25  ;;  %v1093_v38 = vor.u32 %v1149_v31, %v1090_v32  ;;  %v1148_v39 = vld [vmem:[%s1533_s1 + $0xc4] sm:$0xf0]  ;;  %v1131_v40 = vld [vmem:[%s1533_s1 + $0x44] sm:$0xf]  ;;  %v1018_v41 = vld [vmem:[%s1533_s1 + $0x48] sm:$0xf0]  ;;  %v1017_v44 = vor.u32 %v1132_v36, %v1016_v35 }
  0x16   : > { %v1147_v42 = vld [vmem:[%s1533_s1 + $0xc4] sm:$0xf]  ;;  %v1082_v43 = vld [vmem:[%s1533_s1 + $0xc8] sm:$0xf0]  ;;  %v1081_v45 = vor.u32 %v1148_v39, %v1080_v37  ;;  %v1021_v46 = vor.u32 %v1131_v40, %v1018_v41  ;;  %v1008_v47 = vld [vmem:[%s1533_s1 + $0x30] sm:$0xf] }
  0x17   : > { %566 = vmatpush.bf16.msra.mxu0 %v1025_v29  ;;  %v1130_v48 = vld [vmem:[%s1533_s1 + $0x34] sm:$0xf0]  ;;  %v1072_v49 = vld [vmem:[%s1533_s1 + $0xb0] sm:$0xf]  ;;  %v1085_v50 = vor.u32 %v1147_v42, %v1082_v43  ;;  %v1129_v52 = vld [vmem:[%s1533_s1 + $0x34] sm:$0xf] }
  0x18   : > { %595 = vmatpush.bf16.msra.mxu1 %v1089_v33  ;;  %624 = vmatpush.bf16.msra.mxu2 %v1029_v34  ;;  %v1146_v51 = vld [vmem:[%s1533_s1 + $0xb4] sm:$0xf0]  ;;  %v1010_v53 = vld [vmem:[%s1533_s1 + $0x38] sm:$0xf0]  ;;  %v1145_v54 = vld [vmem:[%s1533_s1 + $0xb4] sm:$0xf]  ;;  %v1009_v56 = vor.u32 %v1130_v48, %v1008_v47 }
  0x19   : > { %653 = vmatpush.bf16.msra.mxu3 %v1093_v38  ;;  %v1074_v55 = vld [vmem:[%s1533_s1 + $0xb8] sm:$0xf0]  ;;  %v1073_v57 = vor.u32 %v1146_v51, %v1072_v49  ;;  %v1013_v58 = vor.u32 %v1129_v52, %v1010_v53  ;;  %v1000_v59 = vld [vmem:[%s1533_s1 + $0x20] sm:$0xf]  ;;  %v1128_v60 = vld [vmem:[%s1533_s1 + $0x24] sm:$0xf0] }
  0x1a   : > { %v1064_v61 = vld [vmem:[%s1533_s1 + $0xa0] sm:$0xf]  ;;  %v1077_v62 = vor.u32 %v1145_v54, %v1074_v55  ;;  %v1144_v63 = vld [vmem:[%s1533_s1 + $0xa4] sm:$0xf0]  ;;  %v1127_v0 = vld [vmem:[%s1533_s1 + $0x24] sm:$0xf]  ;;  %v1001_v4 = vor.u32 %v1128_v60, %v1000_v59 }
  0x1b   : > { %567 = vmatpush.bf16.msra.mxu0 %v1017_v44  ;;  %v1002_v1 = vld [vmem:[%s1533_s1 + $0x28] sm:$0xf0]  ;;  %v1143_v2 = vld [vmem:[%s1533_s1 + $0xa4] sm:$0xf]  ;;  %v992_v5 = vld [vmem:[%s1533_s1 + $0x10] sm:$0xf]  ;;  %v1065_v6 = vor.u32 %v1144_v63, %v1064_v61 }
  0x1c   : > { %596 = vmatpush.bf16.msra.mxu1 %v1081_v45  ;;  %625 = vmatpush.bf16.msra.mxu2 %v1021_v46  ;;  %v1066_v3 = vld [vmem:[%s1533_s1 + $0xa8] sm:$0xf0]  ;;  %v1005_v7 = vor.u32 %v1127_v0, %v1002_v1  ;;  %v1126_v8 = vld [vmem:[%s1533_s1 + $0x14] sm:$0xf0]  ;;  %v1056_v9 = vld [vmem:[%s1533_s1 + $0x90] sm:$0xf] }
  0x1d   : > { %654 = vmatpush.bf16.msra.mxu3 %v1085_v50  ;;  %v1142_v10 = vld [vmem:[%s1533_s1 + $0x94] sm:$0xf0]  ;;  %v1069_v11 = vor.u32 %v1143_v2, %v1066_v3  ;;  %v1125_v12 = vld [vmem:[%s1533_s1 + $0x14] sm:$0xf]  ;;  %v994_v13 = vld [vmem:[%s1533_s1 + $0x18] sm:$0xf0]  ;;  %v993_v16 = vor.u32 %v1126_v8, %v992_v5 }
  0x1e   : > { %v1141_v14 = vld [vmem:[%s1533_s1 + $0x94] sm:$0xf]  ;;  %v1058_v15 = vld [vmem:[%s1533_s1 + $0x98] sm:$0xf0]  ;;  %v984_v17 = vld [vmem:[%s1533_s1] sm:$0xf]  ;;  %v1057_v18 = vor.u32 %v1142_v10, %v1056_v9  ;;  %v997_v19 = vor.u32 %v1125_v12, %v994_v13 }
  0x1f   : > { %568 = vmatpush.bf16.msra.mxu0 %v1009_v56  ;;  %v1124_v20 = vld [vmem:[%s1533_s1 + $0x4] sm:$0xf0]  ;;  %v1048_v21 = vld [vmem:[%s1533_s1 + $0x80] sm:$0xf]  ;;  %s1541_s5 = smov (!%p248_p4, %s944_s5), 15  ;;  %v1061_v22 = vor.u32 %v1141_v14, %v1058_v15 }
  0x20   : > { %597 = vmatpush.bf16.msra.mxu1 %v1073_v57  ;;  %626 = vmatpush.bf16.msra.mxu2 %v1013_v58  ;;  %v1140_v23 = vld [vmem:[%s1533_s1 + $0x84] sm:$0xf0]  ;;  %v1123_v24 = vld [vmem:[%s1533_s1 + $0x4] sm:$0xf]  ;;  %v986_v25 = vld [vmem:[%s1533_s1 + $0x8] sm:$0xf0]  ;;  %v985_v28 = vor.u32 %v1124_v20, %v984_v17 }
  0x21   : > { %655 = vmatpush.bf16.msra.mxu3 %v1077_v62  ;;  %v1139_v26 = vld [vmem:[%s1533_s1 + $0x84] sm:$0xf]  ;;  %v1050_v27 = vld [vmem:[%s1533_s1 + $0x88] sm:$0xf0]  ;;  %s1113_s29 = sshll.u32 %s1541_s5, 3  ;;  %v1049_v29 = vor.u32 %v1140_v23, %v1048_v21  ;;  %v989_v30 = vor.u32 %v1123_v24, %v986_v25 }
  0x22   : > { %s1444_s6 = scalar_lea.vmem %s1532_s0, %s1113_s29  ;;  %v1053_v34 = vor.u32 %v1139_v26, %v1050_v27  ;;  %v731_v56 = vld [vmem:[%s1534_s2] ss:$2 sm:$0x3]  ;;  %v1110_v61 = vld [vmem:[%s1534_s2 + $0x1] ss:$2 sm:$0x3]  ;;  %s1486_s16 = scalar_lea.vmem %s1535_s3, %s1113_s29 }
  0x23   : > { %569 = vmatpush.bf16.msra.mxu0 %v1001_v4  ;;  %v952_v31 = vld [vmem:[%s1444_s6] sm:$0xf]  ;;  %v1116_v32 = vld [vmem:[%s1444_s6 + $0x4] sm:$0xf0]  ;;  %v1115_v33 = vld [vmem:[%s1444_s6 + $0x4] sm:$0xf] }
  0x24   : > { %598 = vmatpush.bf16.msra.mxu1 %v1065_v6  ;;  %627 = vmatpush.bf16.msra.mxu2 %v1005_v7  ;;  %v954_v35 = vld [vmem:[%s1444_s6 + $0x8] sm:$0xf0]  ;;  %v953_v36 = vor.u32 %v1116_v32, %v952_v31  ;;  %v960_v38 = vld [vmem:[%s1444_s6 + $0x10] sm:$0xf]  ;;  %v1118_v39 = vld [vmem:[%s1444_s6 + $0x14] sm:$0xf0] }
  0x25   : > { %656 = vmatpush.bf16.msra.mxu3 %v1069_v11  ;;  %v957_v37 = vor.u32 %v1115_v33, %v954_v35  ;;  %v1117_v40 = vld [vmem:[%s1444_s6 + $0x14] sm:$0xf]  ;;  %v962_v41 = vld [vmem:[%s1444_s6 + $0x18] sm:$0xf0]  ;;  %v961_v42 = vor.u32 %v1118_v39, %v960_v38  ;;  %v968_v44 = vld [vmem:[%s1444_s6 + $0x20] sm:$0xf] }
  0x26   : > { %v965_v43 = vor.u32 %v1117_v40, %v962_v41  ;;  %v1120_v45 = vld [vmem:[%s1444_s6 + $0x24] sm:$0xf0]  ;;  %v1119_v46 = vld [vmem:[%s1444_s6 + $0x24] sm:$0xf]  ;;  %v970_v47 = vld [vmem:[%s1444_s6 + $0x28] sm:$0xf0] }
  0x27   : > { %570 = vmatpush.bf16.msra.mxu0 %v993_v16  ;;  %v969_v48 = vor.u32 %v1120_v45, %v968_v44  ;;  %v973_v49 = vor.u32 %v1119_v46, %v970_v47  ;;  %v976_v50 = vld [vmem:[%s1444_s6 + $0x30] sm:$0xf]  ;;  %v1122_v51 = vld [vmem:[%s1444_s6 + $0x34] sm:$0xf0]  ;;  %v1121_v52 = vld [vmem:[%s1444_s6 + $0x34] sm:$0xf] }
  0x28   : > { %599 = vmatpush.bf16.msra.mxu1 %v1057_v18  ;;  %628 = vmatpush.bf16.msra.mxu2 %v997_v19  ;;  %v978_v53 = vld [vmem:[%s1444_s6 + $0x38] sm:$0xf0]  ;;  %v977_v54 = vor.u32 %v1122_v51, %v976_v50  ;;  %v1465_v59 = vperm.slane %v731_v56, 0  ;;  %v1471_v63 = vperm.slane %v1110_v61, 0  ;;  %v1473_v1 = vperm.slane %v731_v56, 1 }
  0x29   : > { %657 = vmatpush.bf16.msra.mxu3 %v1061_v22  ;;  %v981_v55 = vor.u32 %v1121_v52, %v978_v53  ;;  %v1476_v6 = vperm.slane %v1110_v61, 1 }
  0x2b   : > { %571 = vmatpush.bf16.msra.mxu0 %v985_v28 }
  0x2c   : > { %600 = vmatpush.bf16.msra.mxu1 %v1049_v29  ;;  %629 = vmatpush.bf16.msra.mxu2 %v989_v30 }
  0x2d   : > { %658 = vmatpush.bf16.msra.mxu3 %v1053_v34 }
  0x2e   : > { %572 = vmatmul.bf16.vlgmr.msra.gmra.mxu0 %v953_v36 }
  0x2f   : > { %601 = vmatmul.bf16.vlgmr.msra.gmra.mxu1 %v957_v37  ;;  %630 = vmatmul.bf16.vlgmr.msra.gmra.mxu2 %v953_v36 }
  0x30   : > { %659 = vmatmul.bf16.vlgmr.msra.gmra.mxu3 %v957_v37 }
  0x3e   : > { %577 = vmatmul.bf16.gmra.mxu0 %v961_v42 }
  0x3f   : > { %606 = vmatmul.bf16.gmra.mxu1 %v965_v43  ;;  %635 = vmatmul.bf16.gmra.mxu2 %v961_v42 }
  0x40   : > { %664 = vmatmul.bf16.gmra.mxu3 %v965_v43 }
  0x4e   : > { %582 = vmatmul.bf16.gmra.mxu0 %v969_v48 }
  0x4f   : > { %611 = vmatmul.bf16.gmra.mxu1 %v973_v49  ;;  %640 = vmatmul.bf16.gmra.mxu2 %v969_v48 }
  0x50   : > { %669 = vmatmul.bf16.gmra.mxu3 %v973_v49 }
  0x5e   : > { %587 = vmatmul.bf16.gmra.mxu0 %v977_v54 }
  0x5f   : > { %616 = vmatmul.bf16.gmra.mxu1 %v981_v55  ;;  %645 = vmatmul.bf16.gmra.mxu2 %v977_v54 }
  0x60   : > { %674 = vmatmul.bf16.gmra.mxu3 %v981_v55 }
  0xab   : > { %v573_v57 = vpop.f32.mrf.mxu0 }
  0xac   : > { %v602_v58 = vpop.f32.mrf.mxu1 }
  0xad   : > { %v603_v60 = vadd.f32 %v602_v58, %v573_v57 }
  0xaf   : > { %v737_v62 = vmul.f32 %v1465_v59, %v603_v60 }
  0xb1   : > { %v760_v4 = vadd.f32 %v1471_v63, %v737_v62 }
  0xb2   : > { %v631_v0 = vpop.f32.mrf.mxu2 }
  0xb3   : > { %v660_v2 = vpop.f32.mrf.mxu3  ;;  %v575_v3 = vpop.f32.mrf.mxu0  ;;  %v776_v10 = vmax.f32 %v760_v4, 0.0 }
  0xb4   : > { %v661_v5 = vadd.f32 %v660_v2, %v631_v0  ;;  %v604_v7 = vpop.f32.mrf.mxu1 }
  0xb5   : > { %v605_v9 = vadd.f32 %v604_v7, %v575_v3 }
  0xb6   : > { %v738_v8 = vmul.f32 %v1473_v1, %v661_v5 }
  0xb7   : > { %v739_v13 = vmul.f32 %v1465_v59, %v605_v9 }
  0xb8   : > { %v761_v11 = vadd.f32 %v1476_v6, %v738_v8 }
  0xb9   : > { %v762_v21 = vadd.f32 %v1471_v63, %v739_v13 }
  0xba   : > { %v777_v12 = vmax.f32 %v761_v11, 0.0  ;;  %v633_v14 = vpop.f32.mrf.mxu2 }
  0xbb   : > { %v662_v15 = vpop.f32.mrf.mxu3  ;;  %v578_v16 = vpop.f32.mrf.mxu0  ;;  %v778_v25 = vmax.f32 %v762_v21, 0.0 }
  0xbc   : > { %v792_v17 = vpack.c.bf16 %v777_v12, %v776_v10  ;;  %v663_v18 = vadd.f32 %v662_v15, %v633_v14  ;;  %v607_v19 = vpop.f32.mrf.mxu1 }
  0xbd   : > { %v608_v20 = vadd.f32 %v607_v19, %v578_v16 }
  0xbe   : > { %800 = vst [vmem:[%s1486_s16] sm:$0xff] %v792_v17  ;;  %v740_v22 = vmul.f32 %v1473_v1, %v663_v18 }
  0xbf   : > { %v741_v24 = vmul.f32 %v1465_v59, %v608_v20 }
  0xc0   : > { %v763_v23 = vadd.f32 %v1476_v6, %v740_v22 }
  0xc1   : > { %v764_v31 = vadd.f32 %v1471_v63, %v741_v24 }
  0xc2   : > { %v779_v26 = vmax.f32 %v763_v23, 0.0  ;;  %v636_v27 = vpop.f32.mrf.mxu2 }
  0xc3   : > { %v665_v28 = vpop.f32.mrf.mxu3  ;;  %v580_v29 = vpop.f32.mrf.mxu0  ;;  %v780_v36 = vmax.f32 %v764_v31, 0.0 }
  0xc4   : > { %v793_v30 = vpack.c.bf16 %v779_v26, %v778_v25  ;;  %v666_v32 = vadd.f32 %v665_v28, %v636_v27  ;;  %v609_v33 = vpop.f32.mrf.mxu1 }
  0xc5   : > { %v610_v35 = vadd.f32 %v609_v33, %v580_v29 }
  0xc6   : > { %801 = vst [vmem:[%s1486_s16 + $0x8] sm:$0xff] %v793_v30  ;;  %v742_v34 = vmul.f32 %v1473_v1, %v666_v32 }
  0xc7   : > { %v743_v39 = vmul.f32 %v1465_v59, %v610_v35 }
  0xc8   : > { %v765_v37 = vadd.f32 %v1476_v6, %v742_v34 }
  0xc9   : > { %v766_v47 = vadd.f32 %v1471_v63, %v743_v39 }
  0xca   : > { %v781_v38 = vmax.f32 %v765_v37, 0.0  ;;  %v638_v40 = vpop.f32.mrf.mxu2 }
  0xcb   : > { %v667_v41 = vpop.f32.mrf.mxu3  ;;  %v583_v42 = vpop.f32.mrf.mxu0  ;;  %v782_v51 = vmax.f32 %v766_v47, 0.0 }
  0xcc   : > { %v794_v43 = vpack.c.bf16 %v781_v38, %v780_v36  ;;  %v668_v44 = vadd.f32 %v667_v41, %v638_v40  ;;  %v612_v45 = vpop.f32.mrf.mxu1 }
  0xcd   : > { %v613_v46 = vadd.f32 %v612_v45, %v583_v42 }
  0xce   : > { %802 = vst [vmem:[%s1486_s16 + $0x10] sm:$0xff] %v794_v43  ;;  %v744_v48 = vmul.f32 %v1473_v1, %v668_v44 }
  0xcf   : > { %v745_v50 = vmul.f32 %v1465_v59, %v613_v46 }
  0xd0   : > { %v767_v49 = vadd.f32 %v1476_v6, %v744_v48 }
  0xd1   : > { %v768_v57 = vadd.f32 %v1471_v63, %v745_v50 }
  0xd2   : > { %v783_v52 = vmax.f32 %v767_v49, 0.0  ;;  %v641_v53 = vpop.f32.mrf.mxu2 }
  0xd3   : > { %v670_v54 = vpop.f32.mrf.mxu3  ;;  %v585_v55 = vpop.f32.mrf.mxu0  ;;  %v784_v0 = vmax.f32 %v768_v57, 0.0 }
  0xd4   : > { %v795_v56 = vpack.c.bf16 %v783_v52, %v782_v51  ;;  %v671_v58 = vadd.f32 %v670_v54, %v641_v53  ;;  %v614_v60 = vpop.f32.mrf.mxu1 }
  0xd5   : > { %v615_v62 = vadd.f32 %v614_v60, %v585_v55 }
  0xd6   : > { %803 = vst [vmem:[%s1486_s16 + $0x18] sm:$0xff] %v795_v56  ;;  %v746_v61 = vmul.f32 %v1473_v1, %v671_v58 }
  0xd7   : > { %v747_v4 = vmul.f32 %v1465_v59, %v615_v62 }
  0xd8   : > { %v769_v2 = vadd.f32 %v1476_v6, %v746_v61 }
  0xd9   : > { %v770_v13 = vadd.f32 %v1471_v63, %v747_v4 }
  0xda   : > { %v785_v3 = vmax.f32 %v769_v2, 0.0  ;;  %v643_v5 = vpop.f32.mrf.mxu2 }
  0xdb   : > { %v672_v7 = vpop.f32.mrf.mxu3  ;;  %v588_v8 = vpop.f32.mrf.mxu0  ;;  %v786_v17 = vmax.f32 %v770_v13, 0.0 }
  0xdc   : > { %v796_v9 = vpack.c.bf16 %v785_v3, %v784_v0  ;;  %v673_v10 = vadd.f32 %v672_v7, %v643_v5  ;;  %v617_v11 = vpop.f32.mrf.mxu1 }
  0xdd   : > { %v618_v12 = vadd.f32 %v617_v11, %v588_v8 }
  0xde   : > { %804 = vst [vmem:[%s1486_s16 + $0x20] sm:$0xff] %v796_v9  ;;  %v748_v14 = vmul.f32 %v1473_v1, %v673_v10 }
  0xdf   : > { %v749_v16 = vmul.f32 %v1465_v59, %v618_v12 }
  0xe0   : > { %v771_v15 = vadd.f32 %v1476_v6, %v748_v14 }
  0xe1   : > { %v772_v23 = vadd.f32 %v1471_v63, %v749_v16 }
  0xe2   : > { %v787_v18 = vmax.f32 %v771_v15, 0.0  ;;  %v646_v19 = vpop.f32.mrf.mxu2 }
  0xe3   : > { %v675_v20 = vpop.f32.mrf.mxu3  ;;  %v590_v21 = vpop.f32.mrf.mxu0  ;;  %v788_v28 = vmax.f32 %v772_v23, 0.0 }
  0xe4   : > { %v797_v22 = vpack.c.bf16 %v787_v18, %v786_v17  ;;  %v676_v24 = vadd.f32 %v675_v20, %v646_v19  ;;  %v619_v25 = vpop.f32.mrf.mxu1 }
  0xe5   : > { %v620_v27 = vadd.f32 %v619_v25, %v590_v21 }
  0xe6   : > { %805 = vst [vmem:[%s1486_s16 + $0x28] sm:$0xff] %v797_v22  ;;  %v750_v26 = vmul.f32 %v1473_v1, %v676_v24 }
  0xe7   : > { %v751_v31 = vmul.f32 %v1465_v59, %v620_v27 }
  0xe8   : > { %v773_v29 = vadd.f32 %v1476_v6, %v750_v26 }
  0xe9   : > { %v774_v36 = vadd.f32 %v1471_v63, %v751_v31 }
  0xea   : > { %v789_v30 = vmax.f32 %v773_v29, 0.0  ;;  %v648_v32 = vpop.f32.mrf.mxu2 }
  0xeb   : > { %v677_v33 = vpop.f32.mrf.mxu3  ;;  %v790_v39 = vmax.f32 %v774_v36, 0.0 }
  0xec   : > { %v798_v34 = vpack.c.bf16 %v789_v30, %v788_v28  ;;  %v678_v35 = vadd.f32 %v677_v33, %v648_v32 }
  0xee   : > { %806 = vst [vmem:[%s1486_s16 + $0x30] sm:$0xff] %v798_v34  ;;  %v752_v37 = vmul.f32 %v1473_v1, %v678_v35 }
  0xf0   : > { %v775_v38 = vadd.f32 %v1476_v6, %v752_v37 }
  0xf2   : > { %v791_v40 = vmax.f32 %v775_v38, 0.0 }
  0xf4   : > { %v799_v41 = vpack.c.bf16 %v791_v40, %v790_v39 }
  0xf6   : > { %807 = vst [vmem:[%s1486_s16 + $0x38] sm:$0xff] %v799_v41 }
  0xf7 PF: > { %s13_s14 = sadd.s32 1, %s1201_s14   ;;  %s1536_s12 = smov %s1197_s13 }
  0xf8   : > { %p10_p5 = scmp.ge.s32.totalorder %s13_s14, 4   ;;  %s1537_s13 = smov %s1539_s15 }
  0xfa   :  { %12 = sbr.rel (!%p10_p5) target bundleno = 2 (0x2), region = 77 }

// kernel: _lambda_.24
= control target key start
LH: loop header
LB: loop body
LE: loop exit
PB: predicated region body
PF: predicated region fallthrough
CT: control target
= control target key end

     0   :  { %s884_s12 = smov 0   ;;  %s886_s13 = smov 0   ;;  %s1027_s0 = inlined_call_operand.vmem [shape: bf16[32,1408], index: 0, kind: input, shape index: {}]   ;;  %s1028_s1 = inlined_call_operand.vmem [shape: bf16[1408,256], index: 1, kind: input, shape index: {}]   ;;  %s1029_s2 = inlined_call_operand.vmem [shape: f32[2,256], index: 2, kind: input, shape index: {}]   ;;  %s1030_s3 = inlined_call_operand.vmem [shape: bf16[32,256], index: 3, kind: output, shape index: {}]  }
   0x1   :  { %s888_s14 = smov 0   ;;  %s890_s15 = smov 0  }
   0x2   :  { %s892_s16 = smov 0   ;;  %s894_s17 = smov 0  }
   0x3   :  { %s896_s18 = smov 0  }
   0x4 LB: > { %s25_s19 = sadd.s32 1, %s853_s16  ;;  %s32_s20 = sadd.s32 1, %s857_s17  ;;  %s861_s18 = sphi %s896_s18, %s13_s18   ;;  %s857_s17 = sphi %s894_s17, %s1036_s17   ;;  %s853_s16 = sphi %s892_s16, %s1035_s16   ;;  %s849_s15 = sphi %s890_s15, %s1034_s15   ;;  %s845_s14 = sphi %s888_s14, %s1033_s14   ;;  %s841_s13 = sphi %s886_s13, %s1032_s13   ;;  %s837_s12 = sphi %s884_s12, %s1031_s12  }
   0x5   : > { %p26_p0 = scmp.ge.s32.totalorder %s25_s19, 11  ;;  %p48_p1 = scmp.ne.s32.totalorder %s841_s13, %s837_s12 }
   0x6   : > { %p49_p2 = scmp.eq.s32.totalorder %s861_s18, 0  ;;  %s41_s24 = sadd.s32 1, %s841_s13 }
   0x7   : > { %s1038_s19 = smov (%p26_p0, %s25_s19), 0  ;;  %s1040_s20 = smov (!%p26_p0, %s32_s20), %s857_s17 }
   0x8   : > { %p50_p3 = por %p49_p2, %p48_p1  ;;  %p34_p4 = scmp.ge.s32.totalorder %s1040_s20, 2 }
   0x9   : > { %s37_s21 = ssub.s32 %s853_s16, %s1038_s19  ;;  %p644_p6 = scmp.ge.s32.totalorder %s861_s18, 22 }
   0xa   : > { %s1042_s20 = smov (%p34_p4, %s1040_s20), 0 }
   0xb   : > { %s36_s22 = ssub.s32 %s857_s17, %s1042_s20  ;;  %165 = sbr.rel (%p644_p6) target bundleno = 25 (0x19), region = 20 }
   0xc   : > { %s38_s23 = sor.u32 %s37_s21, %s36_s22 }
   0xd   : > { %p39_p5 = scmp.eq.s32.totalorder %s38_s23, 0 }
   0xf   : > { %s935_s25 = scalar_select %p39_p5, %s841_s13, %s41_s24  }
  0x10   : > { %168 = sbr.rel (!%p50_p3) target bundleno = 25 (0x19), region = 24  ;;  %s170_s26 = sand.u32 (%p50_p3), 1, %s841_s13  }
  0x11   : > { %s749_s27 = smul.u32 (%p50_p3), 22, %s857_s17  ;;  %s645_s28 = sshll.u32 (%p50_p3), %s170_s26, 3 }
  0x12   : > { %s172_s7 = scalar_lea.vmem (%p50_p3), [#allocation3], %s645_s28 }
  0x13   : > { %s175_s29 = sadd.s32 (%p50_p3), %s853_s16, %s749_s27 }
  0x14   : > { %s648_s30 = sshll.u32 (%p50_p3), %s175_s29, 2 }
  0x15   : > { %s177_s6 = scalar_lea.vmem %s1027_s0, %s648_s30 }
  0x16   : > { %v194_v0 = vld [vmem:[%s177_s6] sm:$0xf]  ;;  %v196_v1 = vld [vmem:[%s177_s6 + $0x2c] sm:$0xf] }
  0x17   : > { %195 = vst [vmem:[%s172_s7] sm:$0xf] %v194_v0 }
  0x18   : > { %197 = vst [vmem:[%s172_s7 + $0x4] sm:$0xf] %v196_v1 }
  0x19 PF: > { %p649_p7 = scmp.ge.s32.totalorder %s861_s18, 1  ;;  %p239_p8 = scmp.lt.s32.totalorder %s861_s18, 23 }
  0x1b   : > { %p240_p9 = pnand %p649_p7, %p239_p8 }
  0x1c   : > { %s246_s8 = sand.u32 (!%p240_p9), 1, %s837_s12   ;;  %s651_s9 = sshll.u32 (!%p240_p9), %s845_s14, 4 }
  0x1d   : > { %243 = sbr.rel (%p240_p9) target bundleno = 235 (0xeb), region = 69  ;;  %s948_s10 = sshll.u32 (!%p240_p9), %s246_s8, 3 }
  0x1e   : > { %p292_p10 = scmp.lt.s32.totalorder (!%p240_p9), %s651_s9, 175  ;;  %s654_s11 = sshll.u32 (!%p240_p9), %s849_s15, 1 }
  0x1f   : > { %p310_p11 = scmp.lt.s32.totalorder (!%p240_p9), %s654_s11, 3  ;;  %s248_s29 = scalar_lea.vmem (!%p240_p9), [#allocation3], %s948_s10 }
  0x20   : > { %p657_p12 = scmp.ne.s32.totalorder (!%p240_p9), %s845_s14, 0 }
  0x22   : > { %s1044_s9 = smov (!%p292_p10, %s651_s9), 175  ;;  %s1046_s11 = smov (!%p310_p11, %s654_s11), 3 }
  0x23   : > { %s730_s21 = sshll.u32 %s1044_s9, 3  ;;  %s731_s26 = sshll.u32 %s1046_s11, 3 }
  0x24   : > { %s954_s24 = scalar_lea.vmem %s1028_s1, %s730_s21  ;;  %s959_s12 = scalar_lea.vmem %s1030_s3, %s731_s26 }
  0x25   : > { %323 = sbr.rel (%p657_p12) target bundleno = 47 (0x2f), region = 77 }
  0x2a   : > { %v863_v2 = vmov 0.0  }
  0x2b   : > { %324 = vst [vmem:[#allocation2 + $0x10] sm:$0xff] %v863_v2 }
  0x2c   : > { %325 = vst [vmem:[#allocation2] sm:$0xff] %v863_v2 }
  0x2d   : > { %326 = vst [vmem:[#allocation2 + $0x18] sm:$0xff] %v863_v2 }
  0x2e   : > { %327 = vst [vmem:[#allocation2 + $0x8] sm:$0xff] %v863_v2 }
  0x2f PF: > { %v720_v3 = vld [vmem:[%s954_s24 + $0x70] sm:$0xf]  ;;  %v748_v4 = vld [vmem:[%s954_s24 + $0x74] sm:$0xf0]  ;;  %v747_v5 = vld [vmem:[%s954_s24 + $0x74] sm:$0xf] }
  0x30   : > { %v721_v6 = vor.u32 %v748_v4, %v720_v3  ;;  %v722_v7 = vld [vmem:[%s954_s24 + $0x78] sm:$0xf0]  ;;  %v712_v8 = vld [vmem:[%s954_s24 + $0x60] sm:$0xf]  ;;  %v746_v9 = vld [vmem:[%s954_s24 + $0x64] sm:$0xf0] }
  0x31   : > { %v725_v10 = vor.u32 %v747_v5, %v722_v7  ;;  %v745_v11 = vld [vmem:[%s954_s24 + $0x64] sm:$0xf]  ;;  %v714_v12 = vld [vmem:[%s954_s24 + $0x68] sm:$0xf0]  ;;  %v713_v13 = vor.u32 %v746_v9, %v712_v8  ;;  %v704_v15 = vld [vmem:[%s954_s24 + $0x50] sm:$0xf] }
  0x32   : > { %436 = vmatpush.bf16.msra.mxu0 %v721_v6  ;;  %v717_v14 = vor.u32 %v745_v11, %v714_v12  ;;  %v744_v16 = vld [vmem:[%s954_s24 + $0x54] sm:$0xf0]  ;;  %v743_v17 = vld [vmem:[%s954_s24 + $0x54] sm:$0xf]  ;;  %v706_v18 = vld [vmem:[%s954_s24 + $0x58] sm:$0xf0] }
  0x33   : > { %450 = vmatpush.bf16.msra.mxu1 %v725_v10  ;;  %v705_v19 = vor.u32 %v744_v16, %v704_v15  ;;  %v709_v20 = vor.u32 %v743_v17, %v706_v18  ;;  %v696_v21 = vld [vmem:[%s954_s24 + $0x40] sm:$0xf]  ;;  %v742_v22 = vld [vmem:[%s954_s24 + $0x44] sm:$0xf0]  ;;  %v741_v23 = vld [vmem:[%s954_s24 + $0x44] sm:$0xf] }
  0x34   : > { %v698_v24 = vld [vmem:[%s954_s24 + $0x48] sm:$0xf0]  ;;  %v697_v25 = vor.u32 %v742_v22, %v696_v21  ;;  %v688_v27 = vld [vmem:[%s954_s24 + $0x30] sm:$0xf]  ;;  %v740_v28 = vld [vmem:[%s954_s24 + $0x34] sm:$0xf0] }
  0x35   : > { %v701_v26 = vor.u32 %v741_v23, %v698_v24  ;;  %v739_v29 = vld [vmem:[%s954_s24 + $0x34] sm:$0xf]  ;;  %v690_v30 = vld [vmem:[%s954_s24 + $0x38] sm:$0xf0]  ;;  %v689_v31 = vor.u32 %v740_v28, %v688_v27  ;;  %v680_v33 = vld [vmem:[%s954_s24 + $0x20] sm:$0xf] }
  0x36   : > { %437 = vmatpush.bf16.msra.mxu0 %v713_v13  ;;  %v693_v32 = vor.u32 %v739_v29, %v690_v30  ;;  %v738_v34 = vld [vmem:[%s954_s24 + $0x24] sm:$0xf0]  ;;  %v737_v35 = vld [vmem:[%s954_s24 + $0x24] sm:$0xf]  ;;  %v682_v36 = vld [vmem:[%s954_s24 + $0x28] sm:$0xf0] }
  0x37   : > { %451 = vmatpush.bf16.msra.mxu1 %v717_v14  ;;  %v681_v37 = vor.u32 %v738_v34, %v680_v33  ;;  %v685_v38 = vor.u32 %v737_v35, %v682_v36  ;;  %v672_v39 = vld [vmem:[%s954_s24 + $0x10] sm:$0xf]  ;;  %v736_v40 = vld [vmem:[%s954_s24 + $0x14] sm:$0xf0]  ;;  %v735_v41 = vld [vmem:[%s954_s24 + $0x14] sm:$0xf] }
  0x38   : > { %v674_v42 = vld [vmem:[%s954_s24 + $0x18] sm:$0xf0]  ;;  %v673_v43 = vor.u32 %v736_v40, %v672_v39  ;;  %v664_v45 = vld [vmem:[%s954_s24] sm:$0xf]  ;;  %v734_v46 = vld [vmem:[%s954_s24 + $0x4] sm:$0xf0] }
  0x39   : > { %v677_v44 = vor.u32 %v735_v41, %v674_v42  ;;  %v733_v47 = vld [vmem:[%s954_s24 + $0x4] sm:$0xf]  ;;  %v666_v48 = vld [vmem:[%s954_s24 + $0x8] sm:$0xf0]  ;;  %v665_v49 = vor.u32 %v734_v46, %v664_v45  ;;  %v328_v52 = vld [vmem:[#allocation2 + $0x10] sm:$0xff]  ;;  %p726_p13 = scmp.ne.s32.totalorder %s845_s14, 10 }
  0x3a   : > { %438 = vmatpush.bf16.msra.mxu0 %v705_v19  ;;  %v669_v50 = vor.u32 %v733_v47, %v666_v48  ;;  %v732_v51 = vld [vmem:[%s248_s29] sm:$0xff]  ;;  %v330_v58 = vld [vmem:[#allocation2 + $0x18] sm:$0xff] }
  0x3b   : > { %452 = vmatpush.bf16.msra.mxu1 %v709_v20  ;;  %v329_v53 = vld [vmem:[#allocation2] sm:$0xff]  ;;  %v331_v59 = vld [vmem:[#allocation2 + $0x8] sm:$0xff] }
  0x3e   : > { %439 = vmatpush.bf16.msra.mxu0 %v697_v25 }
  0x3f   : > { %453 = vmatpush.bf16.msra.mxu1 %v701_v26 }
  0x42   : > { %440 = vmatpush.bf16.msra.mxu0 %v689_v31 }
  0x43   : > { %454 = vmatpush.bf16.msra.mxu1 %v693_v32 }
  0x46   : > { %441 = vmatpush.bf16.msra.mxu0 %v681_v37 }
  0x47   : > { %455 = vmatpush.bf16.msra.mxu1 %v685_v38 }
  0x4a   : > { %442 = vmatpush.bf16.msra.mxu0 %v673_v43 }
  0x4b   : > { %456 = vmatpush.bf16.msra.mxu1 %v677_v44 }
  0x4e   : > { %443 = vmatpush.bf16.msra.mxu0 %v665_v49 }
  0x4f   : > { %457 = vmatpush.bf16.msra.mxu1 %v669_v50 }
  0x51   : > { %444 = vmatmul.bf16.vlgmr.msra.gmra.mxu0 %v732_v51 }
  0x52   : > { %458 = vmatmul.bf16.vlgmr.msra.gmra.mxu1 %v732_v51 }
  0xce   : > { %v445_v54 = vpop.f32.mrf.mxu0 }
  0xcf   : > { %v464_v55 = vadd.f32 %v445_v54, %v328_v52  ;;  %v459_v56 = vpop.f32.mrf.mxu1 }
  0xd0   : > { %v465_v57 = vadd.f32 %v459_v56, %v329_v53 }
  0xd1   : > { %468 = vst [vmem:[#allocation2 + $0x10] sm:$0xff] %v464_v55 }
  0xd2   : > { %469 = vst [vmem:[#allocation2] sm:$0xff] %v465_v57 }
  0xd6   : > { %v447_v60 = vpop.f32.mrf.mxu0  ;;  %475 = sbr.rel (%p726_p13) target bundleno = 235 (0xeb), region = 81 }
  0xd7   : > { %v466_v61 = vadd.f32 %v447_v60, %v330_v58  ;;  %v461_v62 = vpop.f32.mrf.mxu1 }
  0xd8   : > { %v467_v63 = vadd.f32 %v461_v62, %v331_v59 }
  0xd9   : > { %470 = vst [vmem:[#allocation2 + $0x18] sm:$0xff] %v466_v61 }
  0xda   : > { %471 = vst [vmem:[#allocation2 + $0x8] sm:$0xff] %v467_v63 }
  0xdb   : > { %v476_v0 = vld [vmem:[#allocation2 + $0x10] sm:$0xff]  ;;  %v477_v1 = vld [vmem:[#allocation2] sm:$0xff] }
  0xdc   : > { %v480_v2 = vld [vmem:[%s1029_s2] ss:$2 sm:$0x3]  ;;  %v727_v5 = vld [vmem:[%s1029_s2 + $0x1] ss:$2 sm:$0x3] }
  0xdd   : > { %v482_v3 = vperm.slane %v480_v2, 0  ;;  %v483_v4 = vperm.slane %v480_v2, 1  ;;  %v493_v7 = vperm.slane %v727_v5, 0  ;;  %v494_v8 = vperm.slane %v727_v5, 1 }
  0xdf   : > { %v486_v10 = vmul.f32 %v482_v3, %v476_v0  ;;  %v487_v11 = vmul.f32 %v483_v4, %v477_v1 }
  0xe0   : > { %v478_v6 = vld [vmem:[#allocation2 + $0x18] sm:$0xff] }
  0xe1   : > { %v479_v9 = vld [vmem:[#allocation2 + $0x8] sm:$0xff]  ;;  %v488_v12 = vmul.f32 %v482_v3, %v478_v6  ;;  %v497_v14 = vadd.f32 %v493_v7, %v486_v10  ;;  %v498_v15 = vadd.f32 %v494_v8, %v487_v11 }
  0xe2   : > { %v489_v13 = vmul.f32 %v483_v4, %v479_v9 }
  0xe3   : > { %v499_v16 = vadd.f32 %v493_v7, %v488_v12  ;;  %v501_v18 = vmax.f32 %v497_v14, 0.0  ;;  %v502_v19 = vmax.f32 %v498_v15, 0.0 }
  0xe4   : > { %v500_v17 = vadd.f32 %v494_v8, %v489_v13 }
  0xe5   : > { %v503_v20 = vmax.f32 %v499_v16, 0.0  ;;  %v505_v22 = vpack.c.bf16 %v502_v19, %v501_v18 }
  0xe6   : > { %v504_v21 = vmax.f32 %v500_v17, 0.0 }
  0xe7   : > { %507 = vst [vmem:[%s959_s12] sm:$0xff] %v505_v22 }
  0xe8   : > { %v506_v23 = vpack.c.bf16 %v504_v21, %v503_v20 }
  0xea   : > { %508 = vst [vmem:[%s959_s12 + $0x8] sm:$0xff] %v506_v23 }
  0xeb PF: > { %s13_s18 = sadd.s32 1, %s861_s18   ;;  %s1031_s12 = smov %s841_s13 }
  0xec   : > { %p10_p0 = scmp.ge.s32.totalorder %s13_s18, 24   ;;  %s1032_s13 = smov %s935_s25 }
  0xed   : > { %s1033_s14 = smov %s853_s16  ;;  %s1034_s15 = smov %s857_s17 }
  0xee   : > { %s1035_s16 = smov %s1038_s19  ;;  %s1036_s17 = smov %s1042_s20 }
  0xef   :  { %12 = sbr.rel (!%p10_p0) target bundleno = 4 (0x4), region = 123 }

// kernel: _lambda_.25
= control target key start
LH: loop header
LB: loop body
LE: loop exit
PB: predicated region body
PF: predicated region fallthrough
CT: control target
= control target key end

     0   :  { %s1260_s12 = smov 0   ;;  %s1262_s13 = smov 0   ;;  %s1508_s0 = inlined_call_operand.vmem [shape: bf16[32,256], index: 0, kind: input, shape index: {}]   ;;  %s1509_s1 = inlined_call_operand.vmem [shape: bf16[256,512], index: 1, kind: input, shape index: {}]   ;;  %s1510_s2 = inlined_call_operand.vmem [shape: f32[2,512], index: 2, kind: input, shape index: {}]   ;;  %s1511_s3 = inlined_call_operand.vmem [shape: bf16[32,512], index: 3, kind: output, shape index: {}]  }
   0x1   :  { %s1264_s14 = smov 0   ;;  %s1266_s15 = smov 0  }
   0x2   :  { %s1268_s16 = smov 0  }
   0x3 LB: > { %s28_s17 = sadd.s32 1, %s1234_s15  ;;  %s959_s18 = sadd.s32 4294967295, %s1238_s16   ;;  %s1238_s16 = sphi %s1268_s16, %s13_s16   ;;  %s1234_s15 = sphi %s1266_s15, %s1516_s15   ;;  %s1230_s14 = sphi %s1264_s14, %s1515_s14   ;;  %s1226_s13 = sphi %s1262_s13, %s1514_s13   ;;  %s1222_s12 = sphi %s1260_s12, %s1513_s12  }
   0x4   : > { %p30_p0 = scmp.ge.s32.totalorder %s28_s17, 2  ;;  %p76_p1 = scmp.ne.s32.totalorder %s1226_s13, %s1222_s12 }
   0x5   : > { %p77_p2 = scmp.eq.s32.totalorder %s1238_s16, 0  ;;  %p134_p4 = scmp.eq.s32.totalorder %s959_s18, 1 }
   0x6   : > { %s1518_s17 = smov (%p30_p0, %s28_s17), 0  ;;  %s69_s20 = sadd.s32 1, %s1226_s13 }
   0x7   : > { %p78_p3 = por %p77_p2, %p76_p1  ;;  %s65_s19 = ssub.s32 %s1234_s15, %s1518_s17 }
   0x8   : > { %p67_p5 = scmp.eq.s32.totalorder %s65_s19, 0  ;;  %p1295_p6 = por %p134_p4, %p76_p1 }
   0x9   : > { %p963_p7 = scmp.ge.s32.totalorder %s1238_s16, 2 }
   0xa   : > { %s1300_s22 = scalar_select %p67_p5, %s1226_s13, %s69_s20  }
   0xb   : > { %171 = sbr.rel (%p963_p7) target bundleno = 52 (0x34), region = 20 }
  0x10   : > { %174 = sbr.rel (!%p78_p3) target bundleno = 52 (0x34), region = 24  ;;  %s176_s23 = sand.u32 (%p78_p3), 1, %s1226_s13  }
  0x11   : > { %s1122_s24 = sshll.u32 (%p78_p3), %s1234_s15, 3  ;;  %s964_s25 = sshll.u32 (%p78_p3), %s176_s23, 8 }
  0x12   : > { %s1308_s28 = scalar_lea.vmem (%p78_p3), %s1509_s1, %s1122_s24  ;;  %s1313_s29 = scalar_lea.vmem (%p78_p3), [#allocation3], %s964_s25 }
  0x13   : > { %v275_v0 = vld [vmem:[%s1308_s28] sm:$0xff] (%p78_p3)  ;;  %v277_v1 = vld [vmem:[%s1308_s28 + $0x10] sm:$0xff] (%p78_p3) }
  0x14   : > { %v279_v2 = vld [vmem:[%s1308_s28 + $0x20] sm:$0xff] (%p78_p3)  ;;  %276 = vst [vmem:[%s1313_s29] sm:$0xff] (%p78_p3), %v275_v0  ;;  %v281_v3 = vld [vmem:[%s1308_s28 + $0x30] sm:$0xff] (%p78_p3) }
  0x15   : > { %278 = vst [vmem:[%s1313_s29 + $0x8] sm:$0xff] %v277_v1  ;;  %v283_v4 = vld [vmem:[%s1308_s28 + $0x40] sm:$0xff]  ;;  %v285_v5 = vld [vmem:[%s1308_s28 + $0x50] sm:$0xff] }
  0x16   : > { %280 = vst [vmem:[%s1313_s29 + $0x10] sm:$0xff] %v279_v2  ;;  %v287_v6 = vld [vmem:[%s1308_s28 + $0x60] sm:$0xff]  ;;  %v289_v7 = vld [vmem:[%s1308_s28 + $0x70] sm:$0xff] }
  0x17   : > { %282 = vst [vmem:[%s1313_s29 + $0x18] sm:$0xff] %v281_v3  ;;  %v291_v8 = vld [vmem:[%s1308_s28 + $0x80] sm:$0xff]  ;;  %v293_v9 = vld [vmem:[%s1308_s28 + $0x90] sm:$0xff] }
  0x18   : > { %284 = vst [vmem:[%s1313_s29 + $0x20] sm:$0xff] %v283_v4  ;;  %v295_v10 = vld [vmem:[%s1308_s28 + $0xa0] sm:$0xff]  ;;  %v297_v11 = vld [vmem:[%s1308_s28 + $0xb0] sm:$0xff] }
  0x19   : > { %286 = vst [vmem:[%s1313_s29 + $0x28] sm:$0xff] %v285_v5  ;;  %v299_v12 = vld [vmem:[%s1308_s28 + $0xc0] sm:$0xff]  ;;  %v301_v13 = vld [vmem:[%s1308_s28 + $0xd0] sm:$0xff] }
  0x1a   : > { %288 = vst [vmem:[%s1313_s29 + $0x30] sm:$0xff] %v287_v6  ;;  %v303_v14 = vld [vmem:[%s1308_s28 + $0xe0] sm:$0xff]  ;;  %v305_v15 = vld [vmem:[%s1308_s28 + $0xf0] sm:$0xff] }
  0x1b   : > { %290 = vst [vmem:[%s1313_s29 + $0x38] sm:$0xff] %v289_v7  ;;  %v307_v16 = vld [vmem:[%s1308_s28 + $0x100] sm:$0xff]  ;;  %v309_v17 = vld [vmem:[%s1308_s28 + $0x110] sm:$0xff] }
  0x1c   : > { %292 = vst [vmem:[%s1313_s29 + $0x40] sm:$0xff] %v291_v8  ;;  %v311_v18 = vld [vmem:[%s1308_s28 + $0x120] sm:$0xff]  ;;  %v313_v19 = vld [vmem:[%s1308_s28 + $0x130] sm:$0xff] }
  0x1d   : > { %294 = vst [vmem:[%s1313_s29 + $0x48] sm:$0xff] %v293_v9  ;;  %v315_v20 = vld [vmem:[%s1308_s28 + $0x140] sm:$0xff]  ;;  %v317_v21 = vld [vmem:[%s1308_s28 + $0x150] sm:$0xff] }
  0x1e   : > { %296 = vst [vmem:[%s1313_s29 + $0x50] sm:$0xff] %v295_v10  ;;  %v319_v22 = vld [vmem:[%s1308_s28 + $0x160] sm:$0xff]  ;;  %v321_v23 = vld [vmem:[%s1308_s28 + $0x170] sm:$0xff] }
  0x1f   : > { %298 = vst [vmem:[%s1313_s29 + $0x58] sm:$0xff] %v297_v11  ;;  %v323_v24 = vld [vmem:[%s1308_s28 + $0x180] sm:$0xff]  ;;  %v325_v25 = vld [vmem:[%s1308_s28 + $0x190] sm:$0xff] }
  0x20   : > { %300 = vst [vmem:[%s1313_s29 + $0x60] sm:$0xff] %v299_v12  ;;  %v327_v26 = vld [vmem:[%s1308_s28 + $0x1a0] sm:$0xff]  ;;  %v329_v27 = vld [vmem:[%s1308_s28 + $0x1b0] sm:$0xff] }
  0x21   : > { %302 = vst [vmem:[%s1313_s29 + $0x68] sm:$0xff] %v301_v13  ;;  %v331_v28 = vld [vmem:[%s1308_s28 + $0x1c0] sm:$0xff]  ;;  %v333_v29 = vld [vmem:[%s1308_s28 + $0x1d0] sm:$0xff] }
  0x22   : > { %304 = vst [vmem:[%s1313_s29 + $0x70] sm:$0xff] %v303_v14  ;;  %v335_v30 = vld [vmem:[%s1308_s28 + $0x1e0] sm:$0xff]  ;;  %v337_v31 = vld [vmem:[%s1308_s28 + $0x1f0] sm:$0xff] }
  0x23   : > { %306 = vst [vmem:[%s1313_s29 + $0x78] sm:$0xff] %v305_v15 }
  0x24   : > { %308 = vst [vmem:[%s1313_s29 + $0x80] sm:$0xff] %v307_v16 }
  0x25   : > { %310 = vst [vmem:[%s1313_s29 + $0x88] sm:$0xff] %v309_v17 }
  0x26   : > { %312 = vst [vmem:[%s1313_s29 + $0x90] sm:$0xff] %v311_v18 }
  0x27   : > { %314 = vst [vmem:[%s1313_s29 + $0x98] sm:$0xff] %v313_v19 }
  0x28   : > { %316 = vst [vmem:[%s1313_s29 + $0xa0] sm:$0xff] %v315_v20 }
  0x29   : > { %318 = vst [vmem:[%s1313_s29 + $0xa8] sm:$0xff] %v317_v21 }
  0x2a   : > { %320 = vst [vmem:[%s1313_s29 + $0xb0] sm:$0xff] %v319_v22 }
  0x2b   : > { %322 = vst [vmem:[%s1313_s29 + $0xb8] sm:$0xff] %v321_v23 }
  0x2c   : > { %324 = vst [vmem:[%s1313_s29 + $0xc0] sm:$0xff] %v323_v24 }
  0x2d   : > { %326 = vst [vmem:[%s1313_s29 + $0xc8] sm:$0xff] %v325_v25 }
  0x2e   : > { %328 = vst [vmem:[%s1313_s29 + $0xd0] sm:$0xff] %v327_v26 }
  0x2f   : > { %330 = vst [vmem:[%s1313_s29 + $0xd8] sm:$0xff] %v329_v27 }
  0x30   : > { %332 = vst [vmem:[%s1313_s29 + $0xe0] sm:$0xff] %v331_v28 }
  0x31   : > { %334 = vst [vmem:[%s1313_s29 + $0xe8] sm:$0xff] %v333_v29 }
  0x32   : > { %336 = vst [vmem:[%s1313_s29 + $0xf0] sm:$0xff] %v335_v30 }
  0x33   : > { %338 = vst [vmem:[%s1313_s29 + $0xf8] sm:$0xff] %v337_v31 }
  0x34 PF: > { %p967_p8 = scmp.ge.s32.totalorder %s1238_s16, 1  ;;  %p352_p9 = scmp.lt.s32.totalorder %s1238_s16, 3 }
  0x36   : > { %p353_p10 = pnand %p967_p8, %p352_p9 }
  0x37   : > { %s359_s30 = sand.u32 (!%p353_p10), 1, %s1222_s12  }
  0x38   : > { %356 = sbr.rel (%p353_p10) target bundleno = 270 (0x10e), region = 66  ;;  %s968_s4 = sshll.u32 (!%p353_p10), %s359_s30, 8 }
  0x39   : > { %s1381_s5 = scalar_lea.vmem (!%p353_p10), [#allocation3], %s968_s4  ;;  %s970_s4 = sshll.u32 (!%p353_p10), %s1230_s14, 1 }
  0x3a   : > { %p411_p11 = scmp.lt.s32.totalorder (!%p353_p10), %s970_s4, 3  ;;  %s969_s9 = sshll.u32 (!%p353_p10), %s359_s30, 5 }
  0x3b   : > { %s1477_s10 = scalar_lea.vmem (!%p353_p10), [#allocation4], %s969_s9 }
  0x3d   : > { %v1046_v32 = vld [vmem:[%s1381_s5 + $0x70] sm:$0xf]  ;;  %v1142_v33 = vld [vmem:[%s1381_s5 + $0x74] sm:$0xf0]  ;;  %v1141_v37 = vld [vmem:[%s1381_s5 + $0x74] sm:$0xf] }
  0x3e   : > { %v1110_v34 = vld [vmem:[%s1381_s5 + $0xf0] sm:$0xf]  ;;  %v1047_v35 = vor.u32 %v1142_v33, %v1046_v32  ;;  %v1158_v36 = vld [vmem:[%s1381_s5 + $0xf4] sm:$0xf0]  ;;  %v1048_v38 = vld [vmem:[%s1381_s5 + $0x78] sm:$0xf0] }
  0x3f   : > { %v1111_v39 = vor.u32 %v1158_v36, %v1110_v34  ;;  %v1051_v40 = vor.u32 %v1141_v37, %v1048_v38  ;;  %v1157_v41 = vld [vmem:[%s1381_s5 + $0xf4] sm:$0xf]  ;;  %v1112_v42 = vld [vmem:[%s1381_s5 + $0xf8] sm:$0xf0]  ;;  %v1038_v43 = vld [vmem:[%s1381_s5 + $0x60] sm:$0xf] }
  0x40   : > { %654 = vmatpush.bf16.msra.mxu0 %v1047_v35  ;;  %v1115_v44 = vor.u32 %v1157_v41, %v1112_v42  ;;  %v1140_v45 = vld [vmem:[%s1381_s5 + $0x64] sm:$0xf0]  ;;  %v1102_v46 = vld [vmem:[%s1381_s5 + $0xe0] sm:$0xf]  ;;  %v1139_v50 = vld [vmem:[%s1381_s5 + $0x64] sm:$0xf] }
  0x41   : > { %v1156_v47 = vld [vmem:[%s1381_s5 + $0xe4] sm:$0xf0]  ;;  %673 = vmatpush.bf16.msra.mxu1 %v1111_v39  ;;  %692 = vmatpush.bf16.msra.mxu2 %v1051_v40  ;;  %v1039_v48 = vor.u32 %v1140_v45, %v1038_v43  ;;  %v1040_v51 = vld [vmem:[%s1381_s5 + $0x68] sm:$0xf0]  ;;  %v1155_v52 = vld [vmem:[%s1381_s5 + $0xe4] sm:$0xf] }
  0x42   : > { %v1103_v49 = vor.u32 %v1156_v47, %v1102_v46  ;;  %711 = vmatpush.bf16.msra.mxu3 %v1115_v44  ;;  %v1043_v53 = vor.u32 %v1139_v50, %v1040_v51  ;;  %v1104_v54 = vld [vmem:[%s1381_s5 + $0xe8] sm:$0xf0]  ;;  %v1030_v55 = vld [vmem:[%s1381_s5 + $0x50] sm:$0xf]  ;;  %v1138_v56 = vld [vmem:[%s1381_s5 + $0x54] sm:$0xf0] }
  0x43   : > { %v1107_v57 = vor.u32 %v1155_v52, %v1104_v54  ;;  %v1094_v58 = vld [vmem:[%s1381_s5 + $0xd0] sm:$0xf]  ;;  %v1154_v59 = vld [vmem:[%s1381_s5 + $0xd4] sm:$0xf0]  ;;  %v1137_v60 = vld [vmem:[%s1381_s5 + $0x54] sm:$0xf]  ;;  %v1031_v61 = vor.u32 %v1138_v56, %v1030_v55 }
  0x44   : > { %655 = vmatpush.bf16.msra.mxu0 %v1039_v48  ;;  %v1032_v62 = vld [vmem:[%s1381_s5 + $0x58] sm:$0xf0]  ;;  %v1153_v63 = vld [vmem:[%s1381_s5 + $0xd4] sm:$0xf]  ;;  %v1095_v1 = vor.u32 %v1154_v59, %v1094_v58  ;;  %v1022_v3 = vld [vmem:[%s1381_s5 + $0x40] sm:$0xf] }
  0x45   : > { %v1096_v0 = vld [vmem:[%s1381_s5 + $0xd8] sm:$0xf0]  ;;  %674 = vmatpush.bf16.msra.mxu1 %v1103_v49  ;;  %693 = vmatpush.bf16.msra.mxu2 %v1043_v53  ;;  %v1035_v2 = vor.u32 %v1137_v60, %v1032_v62  ;;  %v1136_v4 = vld [vmem:[%s1381_s5 + $0x44] sm:$0xf0]  ;;  %v1086_v5 = vld [vmem:[%s1381_s5 + $0xc0] sm:$0xf] }
  0x46   : > { %712 = vmatpush.bf16.msra.mxu3 %v1107_v57  ;;  %v1099_v6 = vor.u32 %v1153_v63, %v1096_v0  ;;  %v1152_v7 = vld [vmem:[%s1381_s5 + $0xc4] sm:$0xf0]  ;;  %v1135_v8 = vld [vmem:[%s1381_s5 + $0x44] sm:$0xf]  ;;  %v1024_v9 = vld [vmem:[%s1381_s5 + $0x48] sm:$0xf0]  ;;  %v1023_v12 = vor.u32 %v1136_v4, %v1022_v3 }
  0x47   : > { %v1151_v10 = vld [vmem:[%s1381_s5 + $0xc4] sm:$0xf]  ;;  %v1088_v11 = vld [vmem:[%s1381_s5 + $0xc8] sm:$0xf0]  ;;  %v1087_v13 = vor.u32 %v1152_v7, %v1086_v5  ;;  %v1027_v14 = vor.u32 %v1135_v8, %v1024_v9  ;;  %v1014_v15 = vld [vmem:[%s1381_s5 + $0x30] sm:$0xf] }
  0x48   : > { %656 = vmatpush.bf16.msra.mxu0 %v1031_v61  ;;  %v1134_v16 = vld [vmem:[%s1381_s5 + $0x34] sm:$0xf0]  ;;  %v1078_v17 = vld [vmem:[%s1381_s5 + $0xb0] sm:$0xf]  ;;  %v1091_v18 = vor.u32 %v1151_v10, %v1088_v11  ;;  %v1133_v20 = vld [vmem:[%s1381_s5 + $0x34] sm:$0xf] }
  0x49   : > { %675 = vmatpush.bf16.msra.mxu1 %v1095_v1  ;;  %694 = vmatpush.bf16.msra.mxu2 %v1035_v2  ;;  %v1150_v19 = vld [vmem:[%s1381_s5 + $0xb4] sm:$0xf0]  ;;  %v1016_v21 = vld [vmem:[%s1381_s5 + $0x38] sm:$0xf0]  ;;  %v1149_v22 = vld [vmem:[%s1381_s5 + $0xb4] sm:$0xf]  ;;  %v1015_v24 = vor.u32 %v1134_v16, %v1014_v15 }
  0x4a   : > { %713 = vmatpush.bf16.msra.mxu3 %v1099_v6  ;;  %v1080_v23 = vld [vmem:[%s1381_s5 + $0xb8] sm:$0xf0]  ;;  %v1079_v25 = vor.u32 %v1150_v19, %v1078_v17  ;;  %v1019_v26 = vor.u32 %v1133_v20, %v1016_v21  ;;  %v1006_v27 = vld [vmem:[%s1381_s5 + $0x20] sm:$0xf]  ;;  %v1132_v28 = vld [vmem:[%s1381_s5 + $0x24] sm:$0xf0] }
  0x4b   : > { %v1070_v29 = vld [vmem:[%s1381_s5 + $0xa0] sm:$0xf]  ;;  %v1083_v30 = vor.u32 %v1149_v22, %v1080_v23  ;;  %v1148_v31 = vld [vmem:[%s1381_s5 + $0xa4] sm:$0xf0]  ;;  %v1131_v32 = vld [vmem:[%s1381_s5 + $0x24] sm:$0xf]  ;;  %v1007_v36 = vor.u32 %v1132_v28, %v1006_v27 }
  0x4c   : > { %657 = vmatpush.bf16.msra.mxu0 %v1023_v12  ;;  %v1008_v33 = vld [vmem:[%s1381_s5 + $0x28] sm:$0xf0]  ;;  %v1147_v34 = vld [vmem:[%s1381_s5 + $0xa4] sm:$0xf]  ;;  %v1071_v37 = vor.u32 %v1148_v31, %v1070_v29  ;;  %v998_v39 = vld [vmem:[%s1381_s5 + $0x10] sm:$0xf] }
  0x4d   : > { %676 = vmatpush.bf16.msra.mxu1 %v1087_v13  ;;  %695 = vmatpush.bf16.msra.mxu2 %v1027_v14  ;;  %v1072_v35 = vld [vmem:[%s1381_s5 + $0xa8] sm:$0xf0]  ;;  %v1011_v38 = vor.u32 %v1131_v32, %v1008_v33  ;;  %v1130_v40 = vld [vmem:[%s1381_s5 + $0x14] sm:$0xf0]  ;;  %v1062_v41 = vld [vmem:[%s1381_s5 + $0x90] sm:$0xf] }
  0x4e   : > { %714 = vmatpush.bf16.msra.mxu3 %v1091_v18  ;;  %v1075_v42 = vor.u32 %v1147_v34, %v1072_v35  ;;  %v1146_v43 = vld [vmem:[%s1381_s5 + $0x94] sm:$0xf0]  ;;  %v1129_v44 = vld [vmem:[%s1381_s5 + $0x14] sm:$0xf]  ;;  %v1000_v45 = vld [vmem:[%s1381_s5 + $0x18] sm:$0xf0]  ;;  %v999_v48 = vor.u32 %v1130_v40, %v998_v39 }
  0x4f   : > { %v1145_v46 = vld [vmem:[%s1381_s5 + $0x94] sm:$0xf]  ;;  %v1064_v47 = vld [vmem:[%s1381_s5 + $0x98] sm:$0xf0]  ;;  %v1063_v49 = vor.u32 %v1146_v43, %v1062_v41  ;;  %v1003_v50 = vor.u32 %v1129_v44, %v1000_v45  ;;  %v990_v51 = vld [vmem:[%s1381_s5] sm:$0xf] }
  0x50   : > { %658 = vmatpush.bf16.msra.mxu0 %v1015_v24  ;;  %v1128_v52 = vld [vmem:[%s1381_s5 + $0x4] sm:$0xf0]  ;;  %v1054_v53 = vld [vmem:[%s1381_s5 + $0x80] sm:$0xf]  ;;  %v1067_v54 = vor.u32 %v1145_v46, %v1064_v47  ;;  %v1127_v56 = vld [vmem:[%s1381_s5 + $0x4] sm:$0xf] }
  0x51   : > { %677 = vmatpush.bf16.msra.mxu1 %v1079_v25  ;;  %696 = vmatpush.bf16.msra.mxu2 %v1019_v26  ;;  %v1144_v55 = vld [vmem:[%s1381_s5 + $0x84] sm:$0xf0]  ;;  %v992_v57 = vld [vmem:[%s1381_s5 + $0x8] sm:$0xf0]  ;;  %v1143_v58 = vld [vmem:[%s1381_s5 + $0x84] sm:$0xf]  ;;  %v991_v60 = vor.u32 %v1128_v52, %v990_v51 }
  0x52   : > { %715 = vmatpush.bf16.msra.mxu3 %v1083_v30  ;;  %v1056_v59 = vld [vmem:[%s1381_s5 + $0x88] sm:$0xf0]  ;;  %v974_v61 = vld [vmem:[%s1508_s0] sm:$0xf]  ;;  %v1124_v62 = vld [vmem:[%s1508_s0 + $0x4] sm:$0xf0]  ;;  %v1055_v63 = vor.u32 %v1144_v55, %v1054_v53  ;;  %v995_v0 = vor.u32 %v1127_v56, %v992_v57 }
  0x53   : > { %v1123_v1 = vld [vmem:[%s1508_s0 + $0x4] sm:$0xf]  ;;  %v976_v2 = vld [vmem:[%s1508_s0 + $0x8] sm:$0xf0]  ;;  %v1059_v3 = vor.u32 %v1143_v58, %v1056_v59  ;;  %v975_v4 = vor.u32 %v1124_v62, %v974_v61  ;;  %v982_v6 = vld [vmem:[%s1508_s0 + $0x10] sm:$0xf] }
  0x54   : > { %659 = vmatpush.bf16.msra.mxu0 %v1007_v36  ;;  %v979_v5 = vor.u32 %v1123_v1, %v976_v2  ;;  %v1126_v7 = vld [vmem:[%s1508_s0 + $0x14] sm:$0xf0]  ;;  %v1125_v8 = vld [vmem:[%s1508_s0 + $0x14] sm:$0xf]  ;;  %v984_v9 = vld [vmem:[%s1508_s0 + $0x18] sm:$0xf0] }
  0x55   : > { %678 = vmatpush.bf16.msra.mxu1 %v1071_v37  ;;  %697 = vmatpush.bf16.msra.mxu2 %v1011_v38  ;;  %v983_v10 = vor.u32 %v1126_v7, %v982_v6  ;;  %v987_v11 = vor.u32 %v1125_v8, %v984_v9  ;;  %s1520_s4 = smov (!%p411_p11, %s970_s4), 3  ;;  %s1159_s12 = sshll.u32 (%p1295_p6), %s1230_s14, 3 }
  0x56   : > { %716 = vmatpush.bf16.msra.mxu3 %v1075_v42  ;;  %s971_s5 = sshll.u32 %s1520_s4, 1  ;;  %s806_s18 = scalar_lea.vmem (%p1295_p6), %s1511_s3, %s1159_s12 }
  0x57   : > { %s414_s8 = scalar_lea.vmem %s1510_s2, %s971_s5 }
  0x58   : > { %660 = vmatpush.bf16.msra.mxu0 %v999_v48  ;;  %v757_v13 = vld [vmem:[%s414_s8] ss:$2 sm:$0x3]  ;;  %v1116_v17 = vld [vmem:[%s414_s8 + $0x1] ss:$2 sm:$0x3] }
  0x59   : > { %679 = vmatpush.bf16.msra.mxu1 %v1063_v49  ;;  %698 = vmatpush.bf16.msra.mxu2 %v1003_v50  ;;  %v759_v16 = vperm.slane %v757_v13, 0  ;;  %v774_v19 = vperm.slane %v1116_v17, 0  ;;  %v760_v21 = vperm.slane %v757_v13, 1  ;;  %v775_v25 = vperm.slane %v1116_v17, 1 }
  0x5a   : > { %717 = vmatpush.bf16.msra.mxu3 %v1067_v54 }
  0x5c   : > { %661 = vmatpush.bf16.msra.mxu0 %v991_v60 }
  0x5d   : > { %680 = vmatpush.bf16.msra.mxu1 %v1055_v63  ;;  %699 = vmatpush.bf16.msra.mxu2 %v995_v0 }
  0x5e   : > { %718 = vmatpush.bf16.msra.mxu3 %v1059_v3 }
  0x5f   : > { %662 = vmatmul.bf16.vlgmr.msra.gmra.mxu0 %v975_v4 }
  0x60   : > { %681 = vmatmul.bf16.vlgmr.msra.gmra.mxu1 %v979_v5  ;;  %700 = vmatmul.bf16.vlgmr.msra.gmra.mxu2 %v975_v4 }
  0x61   : > { %719 = vmatmul.bf16.vlgmr.msra.gmra.mxu3 %v979_v5 }
  0x6f   : > { %667 = vmatmul.bf16.gmra.mxu0 %v983_v10 }
  0x70   : > { %686 = vmatmul.bf16.gmra.mxu1 %v987_v11  ;;  %705 = vmatmul.bf16.gmra.mxu2 %v983_v10 }
  0x71   : > { %724 = vmatmul.bf16.gmra.mxu3 %v987_v11 }
  0xdc   : > { %v663_v12 = vpop.f32.mrf.mxu0 }
  0xdd   : > { %v682_v14 = vpop.f32.mrf.mxu1 }
  0xde   : > { %v683_v15 = vadd.f32 %v682_v14, %v663_v12 }
  0xe0   : > { %v763_v18 = vmul.f32 %v759_v16, %v683_v15 }
  0xe2   : > { %v778_v27 = vadd.f32 %v774_v19, %v763_v18 }
  0xe3   : > { %v701_v20 = vpop.f32.mrf.mxu2 }
  0xe4   : > { %v720_v22 = vpop.f32.mrf.mxu3  ;;  %v665_v23 = vpop.f32.mrf.mxu0 }
  0xe5   : > { %v721_v24 = vadd.f32 %v720_v22, %v701_v20  ;;  %v684_v26 = vpop.f32.mrf.mxu1 }
  0xe6   : > { %v685_v30 = vadd.f32 %v684_v26, %v665_v23 }
  0xe7   : > { %v764_v28 = vmul.f32 %v760_v21, %v721_v24 }
  0xe8   : > { %v765_v35 = vmul.f32 %v759_v16, %v685_v30 }
  0xe9   : > { %v779_v29 = vadd.f32 %v775_v25, %v764_v28 }
  0xea   : > { %v780_v40 = vadd.f32 %v774_v19, %v765_v35 }
  0xeb   : > { %v786_v31 = vpack.c.bf16 %v779_v29, %v778_v27  ;;  %v703_v32 = vpop.f32.mrf.mxu2 }
  0xec   : > { %v722_v33 = vpop.f32.mrf.mxu3  ;;  %v668_v34 = vpop.f32.mrf.mxu0 }
  0xed   : > { %790 = vst [vmem:[%s1477_s10] sm:$0xff] %v786_v31  ;;  %v723_v36 = vadd.f32 %v722_v33, %v703_v32  ;;  %v687_v37 = vpop.f32.mrf.mxu1 }
  0xee   : > { %v688_v39 = vadd.f32 %v687_v37, %v668_v34 }
  0xef   : > { %v766_v38 = vmul.f32 %v760_v21, %v723_v36 }
  0xf0   : > { %v767_v43 = vmul.f32 %v759_v16, %v688_v39 }
  0xf1   : > { %v781_v41 = vadd.f32 %v775_v25, %v766_v38 }
  0xf2   : > { %v782_v49 = vadd.f32 %v774_v19, %v767_v43 }
  0xf3   : > { %v787_v42 = vpack.c.bf16 %v781_v41, %v780_v40  ;;  %v706_v44 = vpop.f32.mrf.mxu2 }
  0xf4   : > { %v725_v45 = vpop.f32.mrf.mxu3  ;;  %v670_v47 = vpop.f32.mrf.mxu0  ;;  %v841_v62 = vld [vmem:[%s1477_s10] sm:$0xff] (%p1295_p6) }
  0xf5   : > { %791 = vst [vmem:[%s1477_s10 + $0x8] sm:$0xff] %v787_v42  ;;  %v726_v46 = vadd.f32 %v725_v45, %v706_v44  ;;  %v689_v48 = vpop.f32.mrf.mxu1 }
  0xf6   : > { %v690_v52 = vadd.f32 %v689_v48, %v670_v47  ;;  %842 = vst [vmem:[%s806_s18] sm:$0xff] (%p1295_p6), %v841_v62 }
  0xf7   : > { %v768_v50 = vmul.f32 %v760_v21, %v726_v46 }
  0xf8   : > { %v769_v56 = vmul.f32 %v759_v16, %v690_v52 }
  0xf9   : > { %v783_v51 = vadd.f32 %v775_v25, %v768_v50 }
  0xfa   : > { %v784_v59 = vadd.f32 %v774_v19, %v769_v56 }
  0xfb   : > { %v788_v53 = vpack.c.bf16 %v783_v51, %v782_v49  ;;  %v708_v54 = vpop.f32.mrf.mxu2 }
  0xfc   : > { %v727_v55 = vpop.f32.mrf.mxu3  ;;  %v843_v63 = vld [vmem:[%s1477_s10 + $0x8] sm:$0xff] (%p1295_p6) }
  0xfd   : > { %792 = vst [vmem:[%s1477_s10 + $0x10] sm:$0xff] %v788_v53  ;;  %v728_v57 = vadd.f32 %v727_v55, %v708_v54 }
  0xfe   : > { %844 = vst [vmem:[%s806_s18 + $0x10] sm:$0xff] (%p1295_p6), %v843_v63 }
  0xff   : > { %v770_v58 = vmul.f32 %v760_v21, %v728_v57 }
 0x101   : > { %v785_v60 = vadd.f32 %v775_v25, %v770_v58  ;;  %800 = sbr.rel (!%p1295_p6) target bundleno = 270 (0x10e), region = 82 }
 0x103   : > { %v789_v61 = vpack.c.bf16 %v785_v60, %v784_v59 }
 0x104   : > { %v845_v0 = vld [vmem:[%s1477_s10 + $0x10] sm:$0xff] (%p1295_p6) }
 0x105   : > { %793 = vst [vmem:[%s1477_s10 + $0x18] sm:$0xff] %v789_v61 }
 0x106   : > { %846 = vst [vmem:[%s806_s18 + $0x20] sm:$0xff] %v845_v0 }
 0x10c   : > { %v847_v1 = vld [vmem:[%s1477_s10 + $0x18] sm:$0xff] }
 0x10d   : > { %848 = vst [vmem:[%s806_s18 + $0x30] sm:$0xff] %v847_v1 }
 0x10e PF: > { %s13_s16 = sadd.s32 1, %s1238_s16   ;;  %s1513_s12 = smov %s1226_s13 }
 0x10f   : > { %p10_p12 = scmp.ge.s32.totalorder %s13_s16, 4   ;;  %s1514_s13 = smov %s1300_s22 }
 0x110   : > { %s1515_s14 = smov %s1234_s15  ;;  %s1516_s15 = smov %s1518_s17 }
 0x111   :  { %12 = sbr.rel (!%p10_p12) target bundleno = 3 (0x3), region = 158 }

// kernel: _lambda_.26
= control target key start
LH: loop header
LB: loop body
LE: loop exit
PB: predicated region body
PF: predicated region fallthrough
CT: control target
= control target key end

     0   :  { %s1421_s15 = smov 0   ;;  %s1423_s16 = smov 0   ;;  %s1698_s0 = inlined_call_operand.vmem [shape: bf16[32,256], index: 0, kind: input, shape index: {}]   ;;  %s1699_s1 = inlined_call_operand.vmem [shape: bf16[256,512], index: 1, kind: input, shape index: {}]   ;;  %s1700_s2 = inlined_call_operand.vmem [shape: f32[2,512], index: 2, kind: input, shape index: {}]   ;;  %s1701_s3 = inlined_call_operand.vmem [shape: bf16[32,512], index: 3, kind: input, shape index: {}]   ;;  %s1702_s4 = inlined_call_operand.vmem [shape: bf16[32,512], index: 4, kind: output, shape index: {}]  }
   0x1   :  { %s1425_s17 = smov 0   ;;  %s1427_s18 = smov 0  }
   0x2   :  { %s1429_s19 = smov 0  }
   0x3 LB: > { %s29_s20 = sadd.s32 1, %s1390_s18  ;;  %s1110_s21 = sadd.s32 4294967295, %s1394_s19   ;;  %s1394_s19 = sphi %s1429_s19, %s14_s19   ;;  %s1390_s18 = sphi %s1427_s18, %s1708_s18   ;;  %s1386_s17 = sphi %s1425_s17, %s1707_s17   ;;  %s1382_s16 = sphi %s1423_s16, %s1706_s16   ;;  %s1378_s15 = sphi %s1421_s15, %s1705_s15  }
   0x4   : > { %p31_p0 = scmp.ge.s32.totalorder %s29_s20, 2  ;;  %p77_p1 = scmp.ne.s32.totalorder %s1382_s16, %s1378_s15 }
   0x5   : > { %p78_p2 = scmp.eq.s32.totalorder %s1394_s19, 0  ;;  %p163_p4 = scmp.eq.s32.totalorder %s1110_s21, 1 }
   0x6   : > { %s1710_s20 = smov (%p31_p0, %s29_s20), 0  ;;  %s70_s24 = sadd.s32 1, %s1382_s16 }
   0x7   : > { %p1453_p3 = por %p78_p2, %p77_p1  ;;  %s66_s23 = ssub.s32 %s1390_s18, %s1710_s20 }
   0x8   : > { %p68_p5 = scmp.eq.s32.totalorder %s66_s23, 0  ;;  %p1460_p6 = por %p163_p4, %p77_p1 }
   0x9   : > { %p1114_p7 = scmp.ge.s32.totalorder %s1394_s19, 2 }
   0xa   : > { %s1465_s26 = scalar_select %p68_p5, %s1382_s16, %s70_s24  }
   0xb   : > { %200 = sbr.rel (%p1114_p7) target bundleno = 60 (0x3c), region = 20 }
  0x10   : > { %203 = sbr.rel (!%p1453_p3) target bundleno = 52 (0x34), region = 24  ;;  %s205_s27 = sand.u32 (%p1453_p3), 1, %s1382_s16  }
  0x11   : > { %s1277_s28 = sshll.u32 (%p1453_p3), %s1390_s18, 3  ;;  %s1115_s29 = sshll.u32 (%p1453_p3), %s205_s27, 8 }
  0x12   : > { %s1475_s6 = scalar_lea.vmem (%p1453_p3), %s1699_s1, %s1277_s28  ;;  %s1480_s7 = scalar_lea.vmem (%p1453_p3), [#allocation3], %s1115_s29 }
  0x13   : > { %v304_v0 = vld [vmem:[%s1475_s6] sm:$0xff] (%p1453_p3)  ;;  %v306_v1 = vld [vmem:[%s1475_s6 + $0x10] sm:$0xff] (%p1453_p3) }
  0x14   : > { %v308_v2 = vld [vmem:[%s1475_s6 + $0x20] sm:$0xff] (%p1453_p3)  ;;  %305 = vst [vmem:[%s1480_s7] sm:$0xff] (%p1453_p3), %v304_v0  ;;  %v310_v3 = vld [vmem:[%s1475_s6 + $0x30] sm:$0xff] (%p1453_p3) }
  0x15   : > { %307 = vst [vmem:[%s1480_s7 + $0x8] sm:$0xff] %v306_v1  ;;  %v312_v4 = vld [vmem:[%s1475_s6 + $0x40] sm:$0xff]  ;;  %v314_v5 = vld [vmem:[%s1475_s6 + $0x50] sm:$0xff] }
  0x16   : > { %309 = vst [vmem:[%s1480_s7 + $0x10] sm:$0xff] %v308_v2  ;;  %v316_v6 = vld [vmem:[%s1475_s6 + $0x60] sm:$0xff]  ;;  %v318_v7 = vld [vmem:[%s1475_s6 + $0x70] sm:$0xff] }
  0x17   : > { %311 = vst [vmem:[%s1480_s7 + $0x18] sm:$0xff] %v310_v3  ;;  %v320_v8 = vld [vmem:[%s1475_s6 + $0x80] sm:$0xff]  ;;  %v322_v9 = vld [vmem:[%s1475_s6 + $0x90] sm:$0xff] }
  0x18   : > { %313 = vst [vmem:[%s1480_s7 + $0x20] sm:$0xff] %v312_v4  ;;  %v324_v10 = vld [vmem:[%s1475_s6 + $0xa0] sm:$0xff]  ;;  %v326_v11 = vld [vmem:[%s1475_s6 + $0xb0] sm:$0xff] }
  0x19   : > { %315 = vst [vmem:[%s1480_s7 + $0x28] sm:$0xff] %v314_v5  ;;  %v328_v12 = vld [vmem:[%s1475_s6 + $0xc0] sm:$0xff]  ;;  %v330_v13 = vld [vmem:[%s1475_s6 + $0xd0] sm:$0xff] }
  0x1a   : > { %317 = vst [vmem:[%s1480_s7 + $0x30] sm:$0xff] %v316_v6  ;;  %v332_v14 = vld [vmem:[%s1475_s6 + $0xe0] sm:$0xff]  ;;  %v334_v15 = vld [vmem:[%s1475_s6 + $0xf0] sm:$0xff] }
  0x1b   : > { %319 = vst [vmem:[%s1480_s7 + $0x38] sm:$0xff] %v318_v7  ;;  %v336_v16 = vld [vmem:[%s1475_s6 + $0x100] sm:$0xff]  ;;  %v338_v17 = vld [vmem:[%s1475_s6 + $0x110] sm:$0xff] }
  0x1c   : > { %321 = vst [vmem:[%s1480_s7 + $0x40] sm:$0xff] %v320_v8  ;;  %v340_v18 = vld [vmem:[%s1475_s6 + $0x120] sm:$0xff]  ;;  %v342_v19 = vld [vmem:[%s1475_s6 + $0x130] sm:$0xff] }
  0x1d   : > { %323 = vst [vmem:[%s1480_s7 + $0x48] sm:$0xff] %v322_v9  ;;  %v344_v20 = vld [vmem:[%s1475_s6 + $0x140] sm:$0xff]  ;;  %v346_v21 = vld [vmem:[%s1475_s6 + $0x150] sm:$0xff] }
  0x1e   : > { %325 = vst [vmem:[%s1480_s7 + $0x50] sm:$0xff] %v324_v10  ;;  %v348_v22 = vld [vmem:[%s1475_s6 + $0x160] sm:$0xff]  ;;  %v350_v23 = vld [vmem:[%s1475_s6 + $0x170] sm:$0xff] }
  0x1f   : > { %327 = vst [vmem:[%s1480_s7 + $0x58] sm:$0xff] %v326_v11  ;;  %v352_v24 = vld [vmem:[%s1475_s6 + $0x180] sm:$0xff]  ;;  %v354_v25 = vld [vmem:[%s1475_s6 + $0x190] sm:$0xff] }
  0x20   : > { %329 = vst [vmem:[%s1480_s7 + $0x60] sm:$0xff] %v328_v12  ;;  %v356_v26 = vld [vmem:[%s1475_s6 + $0x1a0] sm:$0xff]  ;;  %v358_v27 = vld [vmem:[%s1475_s6 + $0x1b0] sm:$0xff] }
  0x21   : > { %331 = vst [vmem:[%s1480_s7 + $0x68] sm:$0xff] %v330_v13  ;;  %v360_v28 = vld [vmem:[%s1475_s6 + $0x1c0] sm:$0xff]  ;;  %v362_v29 = vld [vmem:[%s1475_s6 + $0x1d0] sm:$0xff] }
  0x22   : > { %333 = vst [vmem:[%s1480_s7 + $0x70] sm:$0xff] %v332_v14  ;;  %v364_v30 = vld [vmem:[%s1475_s6 + $0x1e0] sm:$0xff]  ;;  %v366_v31 = vld [vmem:[%s1475_s6 + $0x1f0] sm:$0xff] }
  0x23   : > { %335 = vst [vmem:[%s1480_s7 + $0x78] sm:$0xff] %v334_v15 }
  0x24   : > { %337 = vst [vmem:[%s1480_s7 + $0x80] sm:$0xff] %v336_v16 }
  0x25   : > { %339 = vst [vmem:[%s1480_s7 + $0x88] sm:$0xff] %v338_v17 }
  0x26   : > { %341 = vst [vmem:[%s1480_s7 + $0x90] sm:$0xff] %v340_v18 }
  0x27   : > { %343 = vst [vmem:[%s1480_s7 + $0x98] sm:$0xff] %v342_v19 }
  0x28   : > { %345 = vst [vmem:[%s1480_s7 + $0xa0] sm:$0xff] %v344_v20 }
  0x29   : > { %347 = vst [vmem:[%s1480_s7 + $0xa8] sm:$0xff] %v346_v21 }
  0x2a   : > { %349 = vst [vmem:[%s1480_s7 + $0xb0] sm:$0xff] %v348_v22 }
  0x2b   : > { %351 = vst [vmem:[%s1480_s7 + $0xb8] sm:$0xff] %v350_v23 }
  0x2c   : > { %353 = vst [vmem:[%s1480_s7 + $0xc0] sm:$0xff] %v352_v24 }
  0x2d   : > { %355 = vst [vmem:[%s1480_s7 + $0xc8] sm:$0xff] %v354_v25 }
  0x2e   : > { %357 = vst [vmem:[%s1480_s7 + $0xd0] sm:$0xff] %v356_v26 }
  0x2f   : > { %359 = vst [vmem:[%s1480_s7 + $0xd8] sm:$0xff] %v358_v27 }
  0x30   : > { %361 = vst [vmem:[%s1480_s7 + $0xe0] sm:$0xff] %v360_v28 }
  0x31   : > { %363 = vst [vmem:[%s1480_s7 + $0xe8] sm:$0xff] %v362_v29 }
  0x32   : > { %365 = vst [vmem:[%s1480_s7 + $0xf0] sm:$0xff] %v364_v30 }
  0x33   : > { %367 = vst [vmem:[%s1480_s7 + $0xf8] sm:$0xff] %v366_v31 }
  0x34 PF: > { %382 = sbr.rel (!%p1453_p3) target bundleno = 60 (0x3c), region = 66  ;;  %s384_s8 = sand.u32 (%p1453_p3), 1, %s1382_s16  }
  0x35   : > { %s1278_s9 = sshll.u32 (%p1453_p3), %s1390_s18, 3  ;;  %s1118_s10 = sshll.u32 (%p1453_p3), %s384_s8, 5 }
  0x36   : > { %s392_s13 = scalar_lea.vmem (%p1453_p3), %s1701_s3, %s1278_s9  ;;  %s386_s14 = scalar_lea.vmem (%p1453_p3), [#allocation4], %s1118_s10 }
  0x37   : > { %v427_v32 = vld [vmem:[%s392_s13] sm:$0xff] (%p1453_p3)  ;;  %v429_v33 = vld [vmem:[%s392_s13 + $0x10] sm:$0xff] (%p1453_p3) }
  0x38   : > { %v431_v34 = vld [vmem:[%s392_s13 + $0x20] sm:$0xff] (%p1453_p3)  ;;  %428 = vst [vmem:[%s386_s14] sm:$0xff] (%p1453_p3), %v427_v32  ;;  %v433_v35 = vld [vmem:[%s392_s13 + $0x30] sm:$0xff] (%p1453_p3) }
  0x39   : > { %430 = vst [vmem:[%s386_s14 + $0x8] sm:$0xff] %v429_v33 }
  0x3a   : > { %432 = vst [vmem:[%s386_s14 + $0x10] sm:$0xff] %v431_v34 }
  0x3b   : > { %434 = vst [vmem:[%s386_s14 + $0x18] sm:$0xff] %v433_v35 }
  0x3c PF: > { %p1121_p8 = scmp.ge.s32.totalorder %s1394_s19, 1  ;;  %p439_p9 = scmp.lt.s32.totalorder %s1394_s19, 3 }
  0x3e   : > { %p440_p10 = pnand %p1121_p8, %p439_p9 }
  0x3f   : > { %s446_s21 = sand.u32 (!%p440_p10), 1, %s1378_s15  }
  0x40   : > { %443 = sbr.rel (%p440_p10) target bundleno = 282 (0x11a), region = 104  ;;  %s1122_s22 = sshll.u32 (!%p440_p10), %s446_s21, 8 }
  0x41   : > { %s1555_s23 = scalar_lea.vmem (!%p440_p10), [#allocation3], %s1122_s22  ;;  %s1651_s30 = sshll.u32 (!%p440_p10), %s446_s21, 5 }
  0x42   : > { %s1656_s5 = scalar_lea.vmem (!%p440_p10), [#allocation4], %s1651_s30  ;;  %s1664_s15 = scalar_lea.vmem (!%p440_p10), [#allocation5], %s1651_s30 }
  0x45   : > { %v1201_v36 = vld [vmem:[%s1555_s23 + $0x70] sm:$0xf]  ;;  %v1298_v37 = vld [vmem:[%s1555_s23 + $0x74] sm:$0xf0]  ;;  %v1297_v41 = vld [vmem:[%s1555_s23 + $0x74] sm:$0xf] }
  0x46   : > { %v1265_v38 = vld [vmem:[%s1555_s23 + $0xf0] sm:$0xf]  ;;  %v1202_v39 = vor.u32 %v1298_v37, %v1201_v36  ;;  %v1314_v40 = vld [vmem:[%s1555_s23 + $0xf4] sm:$0xf0]  ;;  %v1203_v42 = vld [vmem:[%s1555_s23 + $0x78] sm:$0xf0] }
  0x47   : > { %v1266_v43 = vor.u32 %v1314_v40, %v1265_v38  ;;  %v1206_v44 = vor.u32 %v1297_v41, %v1203_v42  ;;  %v1313_v45 = vld [vmem:[%s1555_s23 + $0xf4] sm:$0xf]  ;;  %v1267_v46 = vld [vmem:[%s1555_s23 + $0xf8] sm:$0xf0]  ;;  %v1193_v47 = vld [vmem:[%s1555_s23 + $0x60] sm:$0xf] }
  0x48   : > { %756 = vmatpush.bf16.msra.mxu0 %v1202_v39  ;;  %v1270_v48 = vor.u32 %v1313_v45, %v1267_v46  ;;  %v1296_v49 = vld [vmem:[%s1555_s23 + $0x64] sm:$0xf0]  ;;  %v1257_v50 = vld [vmem:[%s1555_s23 + $0xe0] sm:$0xf]  ;;  %v1295_v54 = vld [vmem:[%s1555_s23 + $0x64] sm:$0xf] }
  0x49   : > { %v1312_v51 = vld [vmem:[%s1555_s23 + $0xe4] sm:$0xf0]  ;;  %775 = vmatpush.bf16.msra.mxu1 %v1266_v43  ;;  %794 = vmatpush.bf16.msra.mxu2 %v1206_v44  ;;  %v1194_v52 = vor.u32 %v1296_v49, %v1193_v47  ;;  %v1195_v55 = vld [vmem:[%s1555_s23 + $0x68] sm:$0xf0]  ;;  %v1311_v56 = vld [vmem:[%s1555_s23 + $0xe4] sm:$0xf] }
  0x4a   : > { %v1258_v53 = vor.u32 %v1312_v51, %v1257_v50  ;;  %813 = vmatpush.bf16.msra.mxu3 %v1270_v48  ;;  %v1198_v57 = vor.u32 %v1295_v54, %v1195_v55  ;;  %v1259_v58 = vld [vmem:[%s1555_s23 + $0xe8] sm:$0xf0]  ;;  %v1185_v59 = vld [vmem:[%s1555_s23 + $0x50] sm:$0xf]  ;;  %v1294_v60 = vld [vmem:[%s1555_s23 + $0x54] sm:$0xf0] }
  0x4b   : > { %v1262_v61 = vor.u32 %v1311_v56, %v1259_v58  ;;  %v1249_v62 = vld [vmem:[%s1555_s23 + $0xd0] sm:$0xf]  ;;  %v1310_v63 = vld [vmem:[%s1555_s23 + $0xd4] sm:$0xf0]  ;;  %v1293_v0 = vld [vmem:[%s1555_s23 + $0x54] sm:$0xf]  ;;  %v1186_v1 = vor.u32 %v1294_v60, %v1185_v59 }
  0x4c   : > { %757 = vmatpush.bf16.msra.mxu0 %v1194_v52  ;;  %v1187_v2 = vld [vmem:[%s1555_s23 + $0x58] sm:$0xf0]  ;;  %v1309_v3 = vld [vmem:[%s1555_s23 + $0xd4] sm:$0xf]  ;;  %v1250_v5 = vor.u32 %v1310_v63, %v1249_v62  ;;  %v1177_v7 = vld [vmem:[%s1555_s23 + $0x40] sm:$0xf] }
  0x4d   : > { %v1251_v4 = vld [vmem:[%s1555_s23 + $0xd8] sm:$0xf0]  ;;  %776 = vmatpush.bf16.msra.mxu1 %v1258_v53  ;;  %795 = vmatpush.bf16.msra.mxu2 %v1198_v57  ;;  %v1190_v6 = vor.u32 %v1293_v0, %v1187_v2  ;;  %v1292_v8 = vld [vmem:[%s1555_s23 + $0x44] sm:$0xf0]  ;;  %v1241_v9 = vld [vmem:[%s1555_s23 + $0xc0] sm:$0xf] }
  0x4e   : > { %814 = vmatpush.bf16.msra.mxu3 %v1262_v61  ;;  %v1254_v10 = vor.u32 %v1309_v3, %v1251_v4  ;;  %v1308_v11 = vld [vmem:[%s1555_s23 + $0xc4] sm:$0xf0]  ;;  %v1291_v12 = vld [vmem:[%s1555_s23 + $0x44] sm:$0xf]  ;;  %v1179_v13 = vld [vmem:[%s1555_s23 + $0x48] sm:$0xf0]  ;;  %v1178_v16 = vor.u32 %v1292_v8, %v1177_v7 }
  0x4f   : > { %v1307_v14 = vld [vmem:[%s1555_s23 + $0xc4] sm:$0xf]  ;;  %v1243_v15 = vld [vmem:[%s1555_s23 + $0xc8] sm:$0xf0]  ;;  %v1242_v17 = vor.u32 %v1308_v11, %v1241_v9  ;;  %v1182_v18 = vor.u32 %v1291_v12, %v1179_v13  ;;  %v1169_v19 = vld [vmem:[%s1555_s23 + $0x30] sm:$0xf] }
  0x50   : > { %758 = vmatpush.bf16.msra.mxu0 %v1186_v1  ;;  %v1290_v20 = vld [vmem:[%s1555_s23 + $0x34] sm:$0xf0]  ;;  %v1233_v21 = vld [vmem:[%s1555_s23 + $0xb0] sm:$0xf]  ;;  %v1246_v22 = vor.u32 %v1307_v14, %v1243_v15  ;;  %v1289_v24 = vld [vmem:[%s1555_s23 + $0x34] sm:$0xf] }
  0x51   : > { %777 = vmatpush.bf16.msra.mxu1 %v1250_v5  ;;  %796 = vmatpush.bf16.msra.mxu2 %v1190_v6  ;;  %v1306_v23 = vld [vmem:[%s1555_s23 + $0xb4] sm:$0xf0]  ;;  %v1171_v25 = vld [vmem:[%s1555_s23 + $0x38] sm:$0xf0]  ;;  %v1305_v26 = vld [vmem:[%s1555_s23 + $0xb4] sm:$0xf]  ;;  %v1170_v28 = vor.u32 %v1290_v20, %v1169_v19 }
  0x52   : > { %815 = vmatpush.bf16.msra.mxu3 %v1254_v10  ;;  %v1235_v27 = vld [vmem:[%s1555_s23 + $0xb8] sm:$0xf0]  ;;  %v1234_v29 = vor.u32 %v1306_v23, %v1233_v21  ;;  %v1174_v30 = vor.u32 %v1289_v24, %v1171_v25  ;;  %v1161_v31 = vld [vmem:[%s1555_s23 + $0x20] sm:$0xf]  ;;  %v1288_v32 = vld [vmem:[%s1555_s23 + $0x24] sm:$0xf0] }
  0x53   : > { %v1225_v33 = vld [vmem:[%s1555_s23 + $0xa0] sm:$0xf]  ;;  %v1238_v34 = vor.u32 %v1305_v26, %v1235_v27  ;;  %v1304_v35 = vld [vmem:[%s1555_s23 + $0xa4] sm:$0xf0]  ;;  %v1287_v36 = vld [vmem:[%s1555_s23 + $0x24] sm:$0xf]  ;;  %v1162_v40 = vor.u32 %v1288_v32, %v1161_v31 }
  0x54   : > { %759 = vmatpush.bf16.msra.mxu0 %v1178_v16  ;;  %v1163_v37 = vld [vmem:[%s1555_s23 + $0x28] sm:$0xf0]  ;;  %v1303_v38 = vld [vmem:[%s1555_s23 + $0xa4] sm:$0xf]  ;;  %v1226_v41 = vor.u32 %v1304_v35, %v1225_v33  ;;  %v1153_v43 = vld [vmem:[%s1555_s23 + $0x10] sm:$0xf] }
  0x55   : > { %778 = vmatpush.bf16.msra.mxu1 %v1242_v17  ;;  %797 = vmatpush.bf16.msra.mxu2 %v1182_v18  ;;  %v1227_v39 = vld [vmem:[%s1555_s23 + $0xa8] sm:$0xf0]  ;;  %v1166_v42 = vor.u32 %v1287_v36, %v1163_v37  ;;  %v1286_v44 = vld [vmem:[%s1555_s23 + $0x14] sm:$0xf0]  ;;  %v1217_v45 = vld [vmem:[%s1555_s23 + $0x90] sm:$0xf] }
  0x56   : > { %816 = vmatpush.bf16.msra.mxu3 %v1246_v22  ;;  %v1230_v46 = vor.u32 %v1303_v38, %v1227_v39  ;;  %v1302_v47 = vld [vmem:[%s1555_s23 + $0x94] sm:$0xf0]  ;;  %v1285_v48 = vld [vmem:[%s1555_s23 + $0x14] sm:$0xf]  ;;  %v1155_v49 = vld [vmem:[%s1555_s23 + $0x18] sm:$0xf0]  ;;  %v1154_v52 = vor.u32 %v1286_v44, %v1153_v43 }
  0x57   : > { %v1301_v50 = vld [vmem:[%s1555_s23 + $0x94] sm:$0xf]  ;;  %v1219_v51 = vld [vmem:[%s1555_s23 + $0x98] sm:$0xf0]  ;;  %v1218_v53 = vor.u32 %v1302_v47, %v1217_v45  ;;  %v1158_v54 = vor.u32 %v1285_v48, %v1155_v49  ;;  %v1145_v55 = vld [vmem:[%s1555_s23] sm:$0xf] }
  0x58   : > { %760 = vmatpush.bf16.msra.mxu0 %v1170_v28  ;;  %v1284_v56 = vld [vmem:[%s1555_s23 + $0x4] sm:$0xf0]  ;;  %v1209_v57 = vld [vmem:[%s1555_s23 + $0x80] sm:$0xf]  ;;  %v1222_v58 = vor.u32 %v1301_v50, %v1219_v51  ;;  %v1283_v60 = vld [vmem:[%s1555_s23 + $0x4] sm:$0xf] }
  0x59   : > { %779 = vmatpush.bf16.msra.mxu1 %v1234_v29  ;;  %798 = vmatpush.bf16.msra.mxu2 %v1174_v30  ;;  %v1300_v59 = vld [vmem:[%s1555_s23 + $0x84] sm:$0xf0]  ;;  %v1147_v61 = vld [vmem:[%s1555_s23 + $0x8] sm:$0xf0]  ;;  %v1299_v62 = vld [vmem:[%s1555_s23 + $0x84] sm:$0xf]  ;;  %v1146_v0 = vor.u32 %v1284_v56, %v1145_v55 }
  0x5a   : > { %817 = vmatpush.bf16.msra.mxu3 %v1238_v34  ;;  %v1211_v63 = vld [vmem:[%s1555_s23 + $0x88] sm:$0xf0]  ;;  %v1129_v1 = vld [vmem:[%s1698_s0] sm:$0xf]  ;;  %v1280_v2 = vld [vmem:[%s1698_s0 + $0x4] sm:$0xf0]  ;;  %v1210_v3 = vor.u32 %v1300_v59, %v1209_v57  ;;  %v1150_v4 = vor.u32 %v1283_v60, %v1147_v61 }
  0x5b   : > { %v1279_v5 = vld [vmem:[%s1698_s0 + $0x4] sm:$0xf]  ;;  %v1131_v6 = vld [vmem:[%s1698_s0 + $0x8] sm:$0xf0]  ;;  %v1214_v7 = vor.u32 %v1299_v62, %v1211_v63  ;;  %v1130_v8 = vor.u32 %v1280_v2, %v1129_v1  ;;  %v1137_v10 = vld [vmem:[%s1698_s0 + $0x10] sm:$0xf] }
  0x5c   : > { %761 = vmatpush.bf16.msra.mxu0 %v1162_v40  ;;  %v1134_v9 = vor.u32 %v1279_v5, %v1131_v6  ;;  %v1282_v11 = vld [vmem:[%s1698_s0 + $0x14] sm:$0xf0]  ;;  %v1281_v12 = vld [vmem:[%s1698_s0 + $0x14] sm:$0xf]  ;;  %v1139_v13 = vld [vmem:[%s1698_s0 + $0x18] sm:$0xf0] }
  0x5d   : > { %780 = vmatpush.bf16.msra.mxu1 %v1226_v41  ;;  %799 = vmatpush.bf16.msra.mxu2 %v1166_v42  ;;  %v1138_v14 = vor.u32 %v1282_v11, %v1137_v10  ;;  %v1142_v15 = vor.u32 %v1281_v12, %v1139_v13  ;;  %s1125_s23 = sshll.u32 %s1386_s17, 1  ;;  %v888_v24 = vld [vmem:[%s1656_s5] sm:$0xff]  ;;  %v889_v40 = vld [vmem:[%s1656_s5 + $0x8] sm:$0xff]  ;;  %v890_v56 = vld [vmem:[%s1656_s5 + $0x10] sm:$0xff]  ;;  %s1315_s21 = sshll.u32 (%p1460_p6), %s1386_s17, 3 }
  0x5e   : > { %818 = vmatpush.bf16.msra.mxu3 %v1230_v46  ;;  %p511_p11 = scmp.lt.s32.totalorder %s1125_s23, 3  ;;  %v892_v26 = vunpack.c.l.bf16 %v888_v24  ;;  %v893_v37 = vunpack.c.h.bf16 %v888_v24  ;;  %v894_v48 = vunpack.c.l.bf16 %v889_v40  ;;  %v896_v61 = vunpack.c.l.bf16 %v890_v56  ;;  %v891_v12 = vld [vmem:[%s1656_s5 + $0x18] sm:$0xff]  ;;  %s936_s8 = scalar_lea.vmem (%p1460_p6), %s1702_s4, %s1315_s21 }
  0x60   : > { %762 = vmatpush.bf16.msra.mxu0 %v1154_v52  ;;  %s1712_s23 = smov (!%p511_p11, %s1125_s23), 3 }
  0x61   : > { %781 = vmatpush.bf16.msra.mxu1 %v1218_v53  ;;  %800 = vmatpush.bf16.msra.mxu2 %v1158_v54  ;;  %s1126_s24 = sshll.u32 %s1712_s23, 1  ;;  %v895_v54 = vunpack.c.h.bf16 %v889_v40 }
  0x62   : > { %819 = vmatpush.bf16.msra.mxu3 %v1222_v58  ;;  %s514_s29 = scalar_lea.vmem %s1700_s2, %s1126_s24 }
  0x63   : > { %v859_v16 = vld [vmem:[%s514_s29] ss:$2 sm:$0x3]  ;;  %v1271_v19 = vld [vmem:[%s514_s29 + $0x1] ss:$2 sm:$0x3] }
  0x64   : > { %763 = vmatpush.bf16.msra.mxu0 %v1146_v0  ;;  %v861_v18 = vperm.slane %v859_v16, 0  ;;  %v1653_v22 = vperm.slane %v1271_v19, 0  ;;  %v862_v28 = vperm.slane %v859_v16, 1  ;;  %v877_v32 = vperm.slane %v1271_v19, 1 }
  0x65   : > { %782 = vmatpush.bf16.msra.mxu1 %v1210_v3  ;;  %801 = vmatpush.bf16.msra.mxu2 %v1150_v4 }
  0x66   : > { %820 = vmatpush.bf16.msra.mxu3 %v1214_v7 }
  0x67   : > { %764 = vmatmul.bf16.vlgmr.msra.gmra.mxu0 %v1130_v8 }
  0x68   : > { %783 = vmatmul.bf16.vlgmr.msra.gmra.mxu1 %v1134_v9  ;;  %802 = vmatmul.bf16.vlgmr.msra.gmra.mxu2 %v1130_v8 }
  0x69   : > { %821 = vmatmul.bf16.vlgmr.msra.gmra.mxu3 %v1134_v9  ;;  %v897_v9 = vunpack.c.h.bf16 %v890_v56 }
  0x77   : > { %769 = vmatmul.bf16.gmra.mxu0 %v1138_v14 }
  0x78   : > { %788 = vmatmul.bf16.gmra.mxu1 %v1142_v15  ;;  %807 = vmatmul.bf16.gmra.mxu2 %v1138_v14 }
  0x79   : > { %826 = vmatmul.bf16.gmra.mxu3 %v1142_v15 }
  0xe4   : > { %v765_v17 = vpop.f32.mrf.mxu0 }
  0xe5   : > { %v784_v20 = vpop.f32.mrf.mxu1 }
  0xe6   : > { %v785_v21 = vadd.f32 %v784_v20, %v765_v17  ;;  %v898_v20 = vunpack.c.l.bf16 %v891_v12 }
  0xe8   : > { %v865_v23 = vmul.f32 %v861_v18, %v785_v21 }
  0xea   : > { %v880_v25 = vadd.f32 %v1653_v22, %v865_v23 }
  0xeb   : > { %v803_v27 = vpop.f32.mrf.mxu2 }
  0xec   : > { %v822_v29 = vpop.f32.mrf.mxu3  ;;  %v767_v30 = vpop.f32.mrf.mxu0  ;;  %v900_v35 = vadd.f32 %v892_v26, %v880_v25  ;;  %v899_v25 = vunpack.c.h.bf16 %v891_v12 }
  0xed   : > { %v823_v31 = vadd.f32 %v822_v29, %v803_v27  ;;  %v786_v33 = vpop.f32.mrf.mxu1 }
  0xee   : > { %v787_v34 = vadd.f32 %v786_v33, %v767_v30  ;;  %v908_v41 = vmax.f32 %v900_v35, 0.0 }
  0xef   : > { %v866_v36 = vmul.f32 %v862_v28, %v823_v31 }
  0xf0   : > { %v867_v39 = vmul.f32 %v861_v18, %v787_v34 }
  0xf1   : > { %v881_v38 = vadd.f32 %v877_v32, %v866_v36 }
  0xf2   : > { %v882_v47 = vadd.f32 %v1653_v22, %v867_v39 }
  0xf3   : > { %v901_v42 = vadd.f32 %v893_v37, %v881_v38  ;;  %v805_v43 = vpop.f32.mrf.mxu2 }
  0xf4   : > { %v824_v44 = vpop.f32.mrf.mxu3  ;;  %v770_v45 = vpop.f32.mrf.mxu0  ;;  %v902_v57 = vadd.f32 %v894_v48, %v882_v47 }
  0xf5   : > { %v909_v46 = vmax.f32 %v901_v42, 0.0  ;;  %v825_v49 = vadd.f32 %v824_v44, %v805_v43  ;;  %v789_v50 = vpop.f32.mrf.mxu1 }
  0xf6   : > { %v790_v51 = vadd.f32 %v789_v50, %v770_v45  ;;  %v910_v1 = vmax.f32 %v902_v57, 0.0 }
  0xf7   : > { %v916_v52 = vpack.c.bf16 %v909_v46, %v908_v41  ;;  %v868_v53 = vmul.f32 %v862_v28, %v825_v49 }
  0xf8   : > { %v869_v55 = vmul.f32 %v861_v18, %v790_v51 }
  0xf9   : > { %920 = vst [vmem:[%s1664_s15] sm:$0xff] %v916_v52  ;;  %v883_v58 = vadd.f32 %v877_v32, %v868_v53 }
  0xfa   : > { %v884_v60 = vadd.f32 %v1653_v22, %v869_v55 }
  0xfb   : > { %v903_v59 = vadd.f32 %v895_v54, %v883_v58  ;;  %v808_v62 = vpop.f32.mrf.mxu2 }
  0xfc   : > { %v827_v63 = vpop.f32.mrf.mxu3  ;;  %v772_v0 = vpop.f32.mrf.mxu0  ;;  %v904_v7 = vadd.f32 %v896_v61, %v884_v60 }
  0xfd   : > { %v911_v2 = vmax.f32 %v903_v59, 0.0  ;;  %v828_v3 = vadd.f32 %v827_v63, %v808_v62  ;;  %v791_v4 = vpop.f32.mrf.mxu1 }
  0xfe   : > { %v792_v5 = vadd.f32 %v791_v4, %v772_v0  ;;  %v912_v13 = vmax.f32 %v904_v7, 0.0 }
  0xff   : > { %v917_v6 = vpack.c.bf16 %v911_v2, %v910_v1  ;;  %v870_v8 = vmul.f32 %v862_v28, %v828_v3 }
 0x100   : > { %v871_v11 = vmul.f32 %v861_v18, %v792_v5 }
 0x101   : > { %921 = vst [vmem:[%s1664_s15 + $0x8] sm:$0xff] %v917_v6  ;;  %v885_v10 = vadd.f32 %v877_v32, %v870_v8 }
 0x102   : > { %v886_v19 = vadd.f32 %v1653_v22, %v871_v11  ;;  %v971_v22 = vld [vmem:[%s1664_s15] sm:$0xff] (%p1460_p6) }
 0x103   : > { %v905_v14 = vadd.f32 %v897_v9, %v885_v10  ;;  %v810_v15 = vpop.f32.mrf.mxu2  ;;  %972 = vst [vmem:[%s936_s8] sm:$0xff] (%p1460_p6), %v971_v22 }
 0x104   : > { %v829_v16 = vpop.f32.mrf.mxu3  ;;  %v906_v26 = vadd.f32 %v898_v20, %v886_v19 }
 0x105   : > { %v913_v17 = vmax.f32 %v905_v14, 0.0  ;;  %v830_v21 = vadd.f32 %v829_v16, %v810_v15 }
 0x106   : > { %v914_v30 = vmax.f32 %v906_v26, 0.0 }
 0x107   : > { %v918_v23 = vpack.c.bf16 %v913_v17, %v912_v13  ;;  %v872_v24 = vmul.f32 %v862_v28, %v830_v21 }
 0x108   : > { %v973_v28 = vld [vmem:[%s1664_s15 + $0x8] sm:$0xff] (%p1460_p6) }
 0x109   : > { %922 = vst [vmem:[%s1664_s15 + $0x10] sm:$0xff] %v918_v23  ;;  %v887_v27 = vadd.f32 %v877_v32, %v872_v24 }
 0x10a   : > { %974 = vst [vmem:[%s936_s8 + $0x10] sm:$0xff] (%p1460_p6), %v973_v28 }
 0x10b   : > { %v907_v29 = vadd.f32 %v899_v25, %v887_v27 }
 0x10d   : > { %v915_v18 = vmax.f32 %v907_v29, 0.0  ;;  %930 = sbr.rel (!%p1460_p6) target bundleno = 282 (0x11a), region = 124 }
 0x10f   : > { %v919_v31 = vpack.c.bf16 %v915_v18, %v914_v30 }
 0x110   : > { %v975_v32 = vld [vmem:[%s1664_s15 + $0x10] sm:$0xff] (%p1460_p6) }
 0x111   : > { %923 = vst [vmem:[%s1664_s15 + $0x18] sm:$0xff] %v919_v31 }
 0x112   : > { %976 = vst [vmem:[%s936_s8 + $0x20] sm:$0xff] %v975_v32 }
 0x118   : > { %v977_v33 = vld [vmem:[%s1664_s15 + $0x18] sm:$0xff] }
 0x119   : > { %978 = vst [vmem:[%s936_s8 + $0x30] sm:$0xff] %v977_v33 }
 0x11a PF: > { %s14_s19 = sadd.s32 1, %s1394_s19   ;;  %s1705_s15 = smov %s1382_s16 }
 0x11b   : > { %p11_p12 = scmp.ge.s32.totalorder %s14_s19, 4   ;;  %s1706_s16 = smov %s1465_s26 }
 0x11c   : > { %s1707_s17 = smov %s1390_s18  ;;  %s1708_s18 = smov %s1710_s20 }
 0x11d   :  { %13 = sbr.rel (!%p11_p12) target bundleno = 3 (0x3), region = 208 }

// kernel: _lambda_.27
= control target key start
LH: loop header
LB: loop body
LE: loop exit
PB: predicated region body
PF: predicated region fallthrough
CT: control target
= control target key end

     0   :  { %s1734_s0 = inlined_call_operand.vmem [shape: bf16[32,512], index: 0, kind: input, shape index: {}]   ;;  %s1735_s1 = inlined_call_operand.vmem [shape: bf16[512,512], index: 1, kind: input, shape index: {}]   ;;  %s1736_s2 = inlined_call_operand.vmem [shape: f32[2,512], index: 2, kind: input, shape index: {}]   ;;  %s1737_s3 = inlined_call_operand.vmem [shape: bf16[32,512], index: 3, kind: output, shape index: {}]  }
   0x1   :  { %1740 = sst [smem:[#allocation8_spill]] %s1734_s0 }
   0x2   :  { %1741 = sst [smem:[#allocation9_spill]] %s1735_s1 }
   0x3   :  { %s1412_s12 = smov 0   ;;  %s1414_s13 = smov 0  }
   0x4   :  { %s1416_s14 = smov 0   ;;  %s1418_s15 = smov 0  }
   0x5   :  { %s1420_s16 = smov 0   ;;  %s1422_s17 = smov 0  }
   0x6   :  { %s1424_s18 = smov 0   ;;  %s1426_s19 = smov 0  }
   0x7   :  { %s1428_s20 = smov 0   ;;  %s1430_s21 = smov 0  }
   0x8   :  { %s1432_s22 = smov 0  }
   0x9 LB: > { %s1005_s23 = sadd.s32 4294967295, %s1389_s22   ;;  %s25_s24 = sadd.s32 1, %s1381_s20  ;;  %s1389_s22 = sphi %s1432_s22, %s13_s22   ;;  %s1385_s21 = sphi %s1430_s21, %s1760_s21   ;;  %s1381_s20 = sphi %s1428_s20, %s1759_s20   ;;  %s1377_s19 = sphi %s1426_s19, %s1758_s19   ;;  %s1373_s18 = sphi %s1424_s18, %s1757_s18   ;;  %s1369_s17 = sphi %s1422_s17, %s1756_s17   ;;  %s1365_s16 = sphi %s1420_s16, %s1755_s16   ;;  %s1361_s15 = sphi %s1418_s15, %s1754_s15   ;;  %s1357_s14 = sphi %s1416_s14, %s1753_s14   ;;  %s1353_s13 = sphi %s1414_s13, %s1752_s13   ;;  %s1349_s12 = sphi %s1412_s12, %s1751_s12  }
   0xa   : > { %p26_p0 = scmp.ge.s32.totalorder %s25_s24, 2  ;;  %s28_s25 = sadd.s32 1, %s1385_s21 }
   0xb   : > { %s41_s26 = sadd.s32 1, %s1369_s17  ;;  %p48_p1 = scmp.ne.s32.totalorder %s1369_s17, %s1365_s16 }
   0xc   : > { %s1762_s24 = smov (%p26_p0, %s25_s24), 0  ;;  %s1764_s25 = smov (!%p26_p0, %s28_s25), %s1385_s21 }
   0xd   : > { %1742 = sst [smem:[#allocation6_spill]] %s1762_s24  ;;  %s37_s27 = ssub.s32 %s1381_s20, %s1762_s24 }
   0xe   : > { %p49_p2 = scmp.eq.s32.totalorder %s1389_s22, 0  ;;  %p30_p3 = scmp.ge.s32.totalorder %s1764_s25, 2 }
   0xf   : > { %p39_p4 = scmp.eq.s32.totalorder %s37_s27, 0  ;;  %s69_s29 = sadd.s32 1, %s1361_s15 }
  0x10   : > { %p1479_p5 = por %p49_p2, %p48_p1  ;;  %s1766_s25 = smov (%p30_p3, %s1764_s25), 0 }
  0x11   : > { %1744 = sst [smem:[#allocation7_spill]] %s1766_s25  ;;  %s65_s4 = ssub.s32 %s1385_s21, %s1766_s25 }
  0x12   : > { %s1487_s30 = scalar_select %p39_p4, %s1369_s17, %s41_s26  }
  0x13   : > { %p76_p6 = scmp.ne.s32.totalorder %s1361_s15, %s1357_s14  ;;  %s66_s5 = sor.u32 %s65_s4, %s37_s27 }
  0x14   : > { %p121_p7 = scmp.eq.s32.totalorder %s65_s4, 0  ;;  %p67_p8 = scmp.eq.s32.totalorder %s66_s5, 0 }
  0x15   : > { %p1493_p9 = por %p76_p6, %p49_p2  ;;  %s123_s7 = sadd.s32 1, %s1353_s13 }
  0x16   : > { %p133_p10 = scmp.ne.s32.totalorder %s1353_s13, %s1349_s12  ;;  %p134_p11 = scmp.eq.s32.totalorder %s1005_s23, 3 }
  0x17   : > { %s1501_s8 = scalar_select %p67_p8, %s1361_s15, %s69_s29  }
  0x18   : > { %s1504_s9 = scalar_select %p121_p7, %s1353_s13, %s123_s7  }
  0x19   : > { %p1506_p12 = por %p134_p11, %p133_p10  ;;  %p1008_p13 = scmp.ge.s32.totalorder %s1389_s22, 4 }
  0x1b   : > { %156 = sbr.rel (%p1008_p13) target bundleno = 88 (0x58), region = 16 }
  0x20   : > { %159 = sbr.rel (!%p1479_p5) target bundleno = 46 (0x2e), region = 20  ;;  %s161_s11 = sand.u32 (%p1479_p5), 1, %s1369_s17  }
  0x21   : > { %s1175_s26 = sshll.u32 (%p1479_p5), %s1381_s20, 3  ;;  %s1009_s27 = sshll.u32 (%p1479_p5), %s161_s11, 5 }
  0x22   : > { %s1747_s0 = sld [smem:[#allocation8_spill]] (%p1479_p5)  ;;  %s163_s23 = scalar_lea.vmem (%p1479_p5), [#allocation3], %s1009_s27 }
  0x28   : > { %s169_s5 = scalar_lea.vmem %s1747_s0, %s1175_s26 }
  0x29   : > { %v204_v0 = vld [vmem:[%s169_s5] sm:$0xff]  ;;  %v206_v1 = vld [vmem:[%s169_s5 + $0x10] sm:$0xff] }
  0x2a   : > { %v208_v2 = vld [vmem:[%s169_s5 + $0x20] sm:$0xff]  ;;  %205 = vst [vmem:[%s163_s23] sm:$0xff] %v204_v0  ;;  %v210_v3 = vld [vmem:[%s169_s5 + $0x30] sm:$0xff] }
  0x2b   : > { %207 = vst [vmem:[%s163_s23 + $0x8] sm:$0xff] %v206_v1 }
  0x2c   : > { %209 = vst [vmem:[%s163_s23 + $0x10] sm:$0xff] %v208_v2 }
  0x2d   : > { %211 = vst [vmem:[%s163_s23 + $0x18] sm:$0xff] %v210_v3 }
  0x2e PF: > { %217 = sbr.rel (!%p1493_p9) target bundleno = 88 (0x58), region = 58  ;;  %s219_s28 = sand.u32 (%p1493_p9), 1, %s1361_s15  }
  0x2f   : > { %s1014_s7 = sshll.u32 (%p1493_p9), %s1385_s21, 1  ;;  %s1012_s11 = sshll.u32 (%p1493_p9), %s219_s28, 8 }
  0x30   : > { %s1176_s26 = sshll.u32 (%p1493_p9), %s1381_s20, 7  ;;  %s1748_s1 = sld [smem:[#allocation9_spill]] (%p1493_p9) }
  0x31   : > { %s225_s29 = sadd.s32 (%p1493_p9), %s1176_s26, %s1014_s7  ;;  %s1531_s6 = scalar_lea.vmem (%p1493_p9), [#allocation4], %s1012_s11 }
  0x32   : > { %s1016_s4 = sshll.u32 (%p1493_p9), %s225_s29, 2 }
  0x36   : > { %s1526_s5 = scalar_lea.vmem %s1748_s1, %s1016_s4 }
  0x37   : > { %v318_v4 = vld [vmem:[%s1526_s5] sm:$0xff]  ;;  %v320_v5 = vld [vmem:[%s1526_s5 + $0x10] sm:$0xff] }
  0x38   : > { %v322_v6 = vld [vmem:[%s1526_s5 + $0x20] sm:$0xff]  ;;  %319 = vst [vmem:[%s1531_s6] sm:$0xff] %v318_v4  ;;  %v324_v7 = vld [vmem:[%s1526_s5 + $0x30] sm:$0xff] }
  0x39   : > { %321 = vst [vmem:[%s1531_s6 + $0x8] sm:$0xff] %v320_v5  ;;  %v326_v8 = vld [vmem:[%s1526_s5 + $0x40] sm:$0xff]  ;;  %v328_v9 = vld [vmem:[%s1526_s5 + $0x50] sm:$0xff] }
  0x3a   : > { %323 = vst [vmem:[%s1531_s6 + $0x10] sm:$0xff] %v322_v6  ;;  %v330_v10 = vld [vmem:[%s1526_s5 + $0x60] sm:$0xff]  ;;  %v332_v11 = vld [vmem:[%s1526_s5 + $0x70] sm:$0xff] }
  0x3b   : > { %325 = vst [vmem:[%s1531_s6 + $0x18] sm:$0xff] %v324_v7  ;;  %v334_v12 = vld [vmem:[%s1526_s5 + $0x80] sm:$0xff]  ;;  %v336_v13 = vld [vmem:[%s1526_s5 + $0x90] sm:$0xff] }
  0x3c   : > { %327 = vst [vmem:[%s1531_s6 + $0x20] sm:$0xff] %v326_v8  ;;  %v338_v14 = vld [vmem:[%s1526_s5 + $0xa0] sm:$0xff]  ;;  %v340_v15 = vld [vmem:[%s1526_s5 + $0xb0] sm:$0xff] }
  0x3d   : > { %329 = vst [vmem:[%s1531_s6 + $0x28] sm:$0xff] %v328_v9  ;;  %v342_v16 = vld [vmem:[%s1526_s5 + $0xc0] sm:$0xff]  ;;  %v344_v17 = vld [vmem:[%s1526_s5 + $0xd0] sm:$0xff] }
  0x3e   : > { %331 = vst [vmem:[%s1531_s6 + $0x30] sm:$0xff] %v330_v10  ;;  %v346_v18 = vld [vmem:[%s1526_s5 + $0xe0] sm:$0xff]  ;;  %v348_v19 = vld [vmem:[%s1526_s5 + $0xf0] sm:$0xff] }
  0x3f   : > { %333 = vst [vmem:[%s1531_s6 + $0x38] sm:$0xff] %v332_v11  ;;  %v350_v20 = vld [vmem:[%s1526_s5 + $0x100] sm:$0xff]  ;;  %v352_v21 = vld [vmem:[%s1526_s5 + $0x110] sm:$0xff] }
  0x40   : > { %335 = vst [vmem:[%s1531_s6 + $0x40] sm:$0xff] %v334_v12  ;;  %v354_v22 = vld [vmem:[%s1526_s5 + $0x120] sm:$0xff]  ;;  %v356_v23 = vld [vmem:[%s1526_s5 + $0x130] sm:$0xff] }
  0x41   : > { %337 = vst [vmem:[%s1531_s6 + $0x48] sm:$0xff] %v336_v13  ;;  %v358_v24 = vld [vmem:[%s1526_s5 + $0x140] sm:$0xff]  ;;  %v360_v25 = vld [vmem:[%s1526_s5 + $0x150] sm:$0xff] }
  0x42   : > { %339 = vst [vmem:[%s1531_s6 + $0x50] sm:$0xff] %v338_v14  ;;  %v362_v26 = vld [vmem:[%s1526_s5 + $0x160] sm:$0xff]  ;;  %v364_v27 = vld [vmem:[%s1526_s5 + $0x170] sm:$0xff] }
  0x43   : > { %341 = vst [vmem:[%s1531_s6 + $0x58] sm:$0xff] %v340_v15  ;;  %v366_v28 = vld [vmem:[%s1526_s5 + $0x180] sm:$0xff]  ;;  %v368_v29 = vld [vmem:[%s1526_s5 + $0x190] sm:$0xff] }
  0x44   : > { %343 = vst [vmem:[%s1531_s6 + $0x60] sm:$0xff] %v342_v16  ;;  %v370_v30 = vld [vmem:[%s1526_s5 + $0x1a0] sm:$0xff]  ;;  %v372_v31 = vld [vmem:[%s1526_s5 + $0x1b0] sm:$0xff] }
  0x45   : > { %345 = vst [vmem:[%s1531_s6 + $0x68] sm:$0xff] %v344_v17  ;;  %v374_v32 = vld [vmem:[%s1526_s5 + $0x1c0] sm:$0xff]  ;;  %v376_v33 = vld [vmem:[%s1526_s5 + $0x1d0] sm:$0xff] }
  0x46   : > { %347 = vst [vmem:[%s1531_s6 + $0x70] sm:$0xff] %v346_v18  ;;  %v378_v34 = vld [vmem:[%s1526_s5 + $0x1e0] sm:$0xff]  ;;  %v380_v35 = vld [vmem:[%s1526_s5 + $0x1f0] sm:$0xff] }
  0x47   : > { %349 = vst [vmem:[%s1531_s6 + $0x78] sm:$0xff] %v348_v19 }
  0x48   : > { %351 = vst [vmem:[%s1531_s6 + $0x80] sm:$0xff] %v350_v20 }
  0x49   : > { %353 = vst [vmem:[%s1531_s6 + $0x88] sm:$0xff] %v352_v21 }
  0x4a   : > { %355 = vst [vmem:[%s1531_s6 + $0x90] sm:$0xff] %v354_v22 }
  0x4b   : > { %357 = vst [vmem:[%s1531_s6 + $0x98] sm:$0xff] %v356_v23 }
  0x4c   : > { %359 = vst [vmem:[%s1531_s6 + $0xa0] sm:$0xff] %v358_v24 }
  0x4d   : > { %361 = vst [vmem:[%s1531_s6 + $0xa8] sm:$0xff] %v360_v25 }
  0x4e   : > { %363 = vst [vmem:[%s1531_s6 + $0xb0] sm:$0xff] %v362_v26 }
  0x4f   : > { %365 = vst [vmem:[%s1531_s6 + $0xb8] sm:$0xff] %v364_v27 }
  0x50   : > { %367 = vst [vmem:[%s1531_s6 + $0xc0] sm:$0xff] %v366_v28 }
  0x51   : > { %369 = vst [vmem:[%s1531_s6 + $0xc8] sm:$0xff] %v368_v29 }
  0x52   : > { %371 = vst [vmem:[%s1531_s6 + $0xd0] sm:$0xff] %v370_v30 }
  0x53   : > { %373 = vst [vmem:[%s1531_s6 + $0xd8] sm:$0xff] %v372_v31 }
  0x54   : > { %375 = vst [vmem:[%s1531_s6 + $0xe0] sm:$0xff] %v374_v32 }
  0x55   : > { %377 = vst [vmem:[%s1531_s6 + $0xe8] sm:$0xff] %v376_v33 }
  0x56   : > { %379 = vst [vmem:[%s1531_s6 + $0xf0] sm:$0xff] %v378_v34 }
  0x57   : > { %381 = vst [vmem:[%s1531_s6 + $0xf8] sm:$0xff] %v380_v35 }
  0x58 PF: > { %p1017_p0 = scmp.ge.s32.totalorder %s1389_s22, 1  ;;  %p395_p1 = scmp.lt.s32.totalorder %s1389_s22, 5 }
  0x5a   : > { %p396_p2 = pnand %p1017_p0, %p395_p1 }
  0x5b   : > { %s402_s0 = sand.u32 (!%p396_p2), 1, %s1365_s16   ;;  %s409_s23 = sand.u32 (!%p396_p2), 1, %s1357_s14  }
  0x5c   : > { %399 = sbr.rel (%p396_p2) target bundleno = 334 (0x14e), region = 100  ;;  %s1018_s28 = sshll.u32 (!%p396_p2), %s402_s0, 5 }
  0x5d   : > { %s1019_s7 = sshll.u32 (!%p396_p2), %s409_s23, 8  ;;  %s437_s11 = sand.u32 (!%p396_p2), 1, %s1349_s12  }
  0x5e   : > { %s1021_s26 = sshll.u32 (!%p396_p2), %s1377_s19, 1  ;;  %s1020_s29 = sshll.u32 (!%p396_p2), %s437_s11, 5 }
  0x5f   : > { %p445_p3 = scmp.lt.s32.totalorder (!%p396_p2), %s1021_s26, 3  ;;  %s1605_s1 = scalar_lea.vmem (!%p396_p2), [#allocation3], %s1018_s28 }
  0x60   : > { %s1607_s25 = scalar_lea.vmem (!%p396_p2), [#allocation4], %s1019_s7  ;;  %s1609_s24 = scalar_lea.vmem (!%p396_p2), [#allocation5], %s1020_s29 }
  0x61   : > { %s1768_s26 = smov (!%p445_p3, %s1021_s26), 3  ;;  %p1023_p4 = scmp.ne.s32.totalorder %s1373_s18, 0 }
  0x62   : > { %s1022_s4 = sshll.u32 %s1768_s26, 1 }
  0x63   : > { %s1603_s6 = scalar_lea.vmem %s1736_s2, %s1022_s4  ;;  %455 = sbr.rel (%p1023_p4) target bundleno = 113 (0x71), region = 112 }
  0x68   : > { %v1391_v36 = vmov 0.0  }
  0x69   : > { %456 = vst [vmem:[#allocation2 + $0x30] sm:$0xff] %v1391_v36 }
  0x6a   : > { %457 = vst [vmem:[#allocation2] sm:$0xff] %v1391_v36 }
  0x6b   : > { %458 = vst [vmem:[#allocation2 + $0x18] sm:$0xff] %v1391_v36 }
  0x6c   : > { %459 = vst [vmem:[#allocation2 + $0x10] sm:$0xff] %v1391_v36 }
  0x6d   : > { %460 = vst [vmem:[#allocation2 + $0x8] sm:$0xff] %v1391_v36 }
  0x6e   : > { %461 = vst [vmem:[#allocation2 + $0x20] sm:$0xff] %v1391_v36 }
  0x6f   : > { %462 = vst [vmem:[#allocation2 + $0x28] sm:$0xff] %v1391_v36 }
  0x70   : > { %463 = vst [vmem:[#allocation2 + $0x38] sm:$0xff] %v1391_v36 }
  0x71 PF: > { %v1098_v37 = vld [vmem:[%s1607_s25 + $0x70] sm:$0xf]  ;;  %v1196_v38 = vld [vmem:[%s1607_s25 + $0x74] sm:$0xf0]  ;;  %v1195_v42 = vld [vmem:[%s1607_s25 + $0x74] sm:$0xf] }
  0x72   : > { %v1162_v39 = vld [vmem:[%s1607_s25 + $0xf0] sm:$0xf]  ;;  %v1099_v40 = vor.u32 %v1196_v38, %v1098_v37  ;;  %v1212_v41 = vld [vmem:[%s1607_s25 + $0xf4] sm:$0xf0]  ;;  %v1100_v43 = vld [vmem:[%s1607_s25 + $0x78] sm:$0xf0] }
  0x73   : > { %v1163_v44 = vor.u32 %v1212_v41, %v1162_v39  ;;  %v1103_v45 = vor.u32 %v1195_v42, %v1100_v43  ;;  %v1211_v46 = vld [vmem:[%s1607_s25 + $0xf4] sm:$0xf]  ;;  %v1164_v47 = vld [vmem:[%s1607_s25 + $0xf8] sm:$0xf0]  ;;  %v1090_v48 = vld [vmem:[%s1607_s25 + $0x60] sm:$0xf] }
  0x74   : > { %688 = vmatpush.bf16.msra.mxu0 %v1099_v40  ;;  %v1167_v49 = vor.u32 %v1211_v46, %v1164_v47  ;;  %v1194_v50 = vld [vmem:[%s1607_s25 + $0x64] sm:$0xf0]  ;;  %v1154_v51 = vld [vmem:[%s1607_s25 + $0xe0] sm:$0xf]  ;;  %v1193_v55 = vld [vmem:[%s1607_s25 + $0x64] sm:$0xf] }
  0x75   : > { %v1210_v52 = vld [vmem:[%s1607_s25 + $0xe4] sm:$0xf0]  ;;  %707 = vmatpush.bf16.msra.mxu1 %v1163_v44  ;;  %726 = vmatpush.bf16.msra.mxu2 %v1103_v45  ;;  %v1091_v53 = vor.u32 %v1194_v50, %v1090_v48  ;;  %v1092_v56 = vld [vmem:[%s1607_s25 + $0x68] sm:$0xf0]  ;;  %v1209_v57 = vld [vmem:[%s1607_s25 + $0xe4] sm:$0xf] }
  0x76   : > { %v1155_v54 = vor.u32 %v1210_v52, %v1154_v51  ;;  %745 = vmatpush.bf16.msra.mxu3 %v1167_v49  ;;  %v1095_v58 = vor.u32 %v1193_v55, %v1092_v56  ;;  %v1156_v59 = vld [vmem:[%s1607_s25 + $0xe8] sm:$0xf0]  ;;  %v1082_v60 = vld [vmem:[%s1607_s25 + $0x50] sm:$0xf]  ;;  %v1192_v61 = vld [vmem:[%s1607_s25 + $0x54] sm:$0xf0] }
  0x77   : > { %v1159_v62 = vor.u32 %v1209_v57, %v1156_v59  ;;  %v1146_v63 = vld [vmem:[%s1607_s25 + $0xd0] sm:$0xf]  ;;  %v1208_v0 = vld [vmem:[%s1607_s25 + $0xd4] sm:$0xf0]  ;;  %v1191_v1 = vld [vmem:[%s1607_s25 + $0x54] sm:$0xf]  ;;  %v1083_v2 = vor.u32 %v1192_v61, %v1082_v60 }
  0x78   : > { %689 = vmatpush.bf16.msra.mxu0 %v1091_v53  ;;  %v1084_v3 = vld [vmem:[%s1607_s25 + $0x58] sm:$0xf0]  ;;  %v1207_v4 = vld [vmem:[%s1607_s25 + $0xd4] sm:$0xf]  ;;  %v1147_v6 = vor.u32 %v1208_v0, %v1146_v63  ;;  %v1074_v8 = vld [vmem:[%s1607_s25 + $0x40] sm:$0xf] }
  0x79   : > { %v1148_v5 = vld [vmem:[%s1607_s25 + $0xd8] sm:$0xf0]  ;;  %708 = vmatpush.bf16.msra.mxu1 %v1155_v54  ;;  %727 = vmatpush.bf16.msra.mxu2 %v1095_v58  ;;  %v1087_v7 = vor.u32 %v1191_v1, %v1084_v3  ;;  %v1190_v9 = vld [vmem:[%s1607_s25 + $0x44] sm:$0xf0]  ;;  %v1138_v10 = vld [vmem:[%s1607_s25 + $0xc0] sm:$0xf] }
  0x7a   : > { %746 = vmatpush.bf16.msra.mxu3 %v1159_v62  ;;  %v1151_v11 = vor.u32 %v1207_v4, %v1148_v5  ;;  %v1206_v12 = vld [vmem:[%s1607_s25 + $0xc4] sm:$0xf0]  ;;  %v1189_v13 = vld [vmem:[%s1607_s25 + $0x44] sm:$0xf]  ;;  %v1076_v14 = vld [vmem:[%s1607_s25 + $0x48] sm:$0xf0]  ;;  %v1075_v17 = vor.u32 %v1190_v9, %v1074_v8 }
  0x7b   : > { %v1205_v15 = vld [vmem:[%s1607_s25 + $0xc4] sm:$0xf]  ;;  %v1140_v16 = vld [vmem:[%s1607_s25 + $0xc8] sm:$0xf0]  ;;  %v1139_v18 = vor.u32 %v1206_v12, %v1138_v10  ;;  %v1079_v19 = vor.u32 %v1189_v13, %v1076_v14  ;;  %v1066_v20 = vld [vmem:[%s1607_s25 + $0x30] sm:$0xf] }
  0x7c   : > { %690 = vmatpush.bf16.msra.mxu0 %v1083_v2  ;;  %v1188_v21 = vld [vmem:[%s1607_s25 + $0x34] sm:$0xf0]  ;;  %v1130_v22 = vld [vmem:[%s1607_s25 + $0xb0] sm:$0xf]  ;;  %v1143_v23 = vor.u32 %v1205_v15, %v1140_v16  ;;  %v1187_v25 = vld [vmem:[%s1607_s25 + $0x34] sm:$0xf] }
  0x7d   : > { %709 = vmatpush.bf16.msra.mxu1 %v1147_v6  ;;  %728 = vmatpush.bf16.msra.mxu2 %v1087_v7  ;;  %v1204_v24 = vld [vmem:[%s1607_s25 + $0xb4] sm:$0xf0]  ;;  %v1068_v26 = vld [vmem:[%s1607_s25 + $0x38] sm:$0xf0]  ;;  %v1203_v27 = vld [vmem:[%s1607_s25 + $0xb4] sm:$0xf]  ;;  %v1067_v29 = vor.u32 %v1188_v21, %v1066_v20 }
  0x7e   : > { %747 = vmatpush.bf16.msra.mxu3 %v1151_v11  ;;  %v1132_v28 = vld [vmem:[%s1607_s25 + $0xb8] sm:$0xf0]  ;;  %v1131_v30 = vor.u32 %v1204_v24, %v1130_v22  ;;  %v1071_v31 = vor.u32 %v1187_v25, %v1068_v26  ;;  %v1058_v32 = vld [vmem:[%s1607_s25 + $0x20] sm:$0xf]  ;;  %v1186_v33 = vld [vmem:[%s1607_s25 + $0x24] sm:$0xf0] }
  0x7f   : > { %v1122_v34 = vld [vmem:[%s1607_s25 + $0xa0] sm:$0xf]  ;;  %v1135_v35 = vor.u32 %v1203_v27, %v1132_v28  ;;  %v1202_v36 = vld [vmem:[%s1607_s25 + $0xa4] sm:$0xf0]  ;;  %v1185_v37 = vld [vmem:[%s1607_s25 + $0x24] sm:$0xf]  ;;  %v1059_v41 = vor.u32 %v1186_v33, %v1058_v32 }
  0x80   : > { %691 = vmatpush.bf16.msra.mxu0 %v1075_v17  ;;  %v1060_v38 = vld [vmem:[%s1607_s25 + $0x28] sm:$0xf0]  ;;  %v1201_v39 = vld [vmem:[%s1607_s25 + $0xa4] sm:$0xf]  ;;  %v1123_v42 = vor.u32 %v1202_v36, %v1122_v34  ;;  %v1050_v44 = vld [vmem:[%s1607_s25 + $0x10] sm:$0xf] }
  0x81   : > { %710 = vmatpush.bf16.msra.mxu1 %v1139_v18  ;;  %729 = vmatpush.bf16.msra.mxu2 %v1079_v19  ;;  %v1124_v40 = vld [vmem:[%s1607_s25 + $0xa8] sm:$0xf0]  ;;  %v1063_v43 = vor.u32 %v1185_v37, %v1060_v38  ;;  %v1184_v45 = vld [vmem:[%s1607_s25 + $0x14] sm:$0xf0]  ;;  %v1114_v46 = vld [vmem:[%s1607_s25 + $0x90] sm:$0xf] }
  0x82   : > { %748 = vmatpush.bf16.msra.mxu3 %v1143_v23  ;;  %v1127_v47 = vor.u32 %v1201_v39, %v1124_v40  ;;  %v1200_v48 = vld [vmem:[%s1607_s25 + $0x94] sm:$0xf0]  ;;  %v1183_v49 = vld [vmem:[%s1607_s25 + $0x14] sm:$0xf]  ;;  %v1052_v50 = vld [vmem:[%s1607_s25 + $0x18] sm:$0xf0]  ;;  %v1051_v53 = vor.u32 %v1184_v45, %v1050_v44 }
  0x83   : > { %v1199_v51 = vld [vmem:[%s1607_s25 + $0x94] sm:$0xf]  ;;  %v1116_v52 = vld [vmem:[%s1607_s25 + $0x98] sm:$0xf0]  ;;  %v1115_v54 = vor.u32 %v1200_v48, %v1114_v46  ;;  %v1055_v55 = vor.u32 %v1183_v49, %v1052_v50  ;;  %v1042_v56 = vld [vmem:[%s1607_s25] sm:$0xf] }
  0x84   : > { %692 = vmatpush.bf16.msra.mxu0 %v1067_v29  ;;  %v1182_v57 = vld [vmem:[%s1607_s25 + $0x4] sm:$0xf0]  ;;  %v1106_v58 = vld [vmem:[%s1607_s25 + $0x80] sm:$0xf]  ;;  %v1119_v59 = vor.u32 %v1199_v51, %v1116_v52  ;;  %v1181_v61 = vld [vmem:[%s1607_s25 + $0x4] sm:$0xf] }
  0x85   : > { %711 = vmatpush.bf16.msra.mxu1 %v1131_v30  ;;  %730 = vmatpush.bf16.msra.mxu2 %v1071_v31  ;;  %v1198_v60 = vld [vmem:[%s1607_s25 + $0x84] sm:$0xf0]  ;;  %v1044_v62 = vld [vmem:[%s1607_s25 + $0x8] sm:$0xf0]  ;;  %v1197_v63 = vld [vmem:[%s1607_s25 + $0x84] sm:$0xf]  ;;  %v1043_v1 = vor.u32 %v1182_v57, %v1042_v56 }
  0x86   : > { %749 = vmatpush.bf16.msra.mxu3 %v1135_v35  ;;  %v1108_v0 = vld [vmem:[%s1607_s25 + $0x88] sm:$0xf0]  ;;  %v1026_v2 = vld [vmem:[%s1605_s1] sm:$0xf]  ;;  %v1178_v3 = vld [vmem:[%s1605_s1 + $0x4] sm:$0xf0]  ;;  %v1107_v4 = vor.u32 %v1198_v60, %v1106_v58  ;;  %v1047_v5 = vor.u32 %v1181_v61, %v1044_v62 }
  0x87   : > { %v1177_v6 = vld [vmem:[%s1605_s1 + $0x4] sm:$0xf]  ;;  %v1028_v7 = vld [vmem:[%s1605_s1 + $0x8] sm:$0xf0]  ;;  %v1111_v8 = vor.u32 %v1197_v63, %v1108_v0  ;;  %v1027_v9 = vor.u32 %v1178_v3, %v1026_v2  ;;  %v1034_v11 = vld [vmem:[%s1605_s1 + $0x10] sm:$0xf] }
  0x88   : > { %693 = vmatpush.bf16.msra.mxu0 %v1059_v41  ;;  %v1031_v10 = vor.u32 %v1177_v6, %v1028_v7  ;;  %v1180_v12 = vld [vmem:[%s1605_s1 + $0x14] sm:$0xf0]  ;;  %v1179_v13 = vld [vmem:[%s1605_s1 + $0x14] sm:$0xf]  ;;  %v1036_v14 = vld [vmem:[%s1605_s1 + $0x18] sm:$0xf0] }
  0x89   : > { %712 = vmatpush.bf16.msra.mxu1 %v1123_v42  ;;  %731 = vmatpush.bf16.msra.mxu2 %v1063_v43  ;;  %v1035_v15 = vor.u32 %v1180_v12, %v1034_v11  ;;  %v1039_v16 = vor.u32 %v1179_v13, %v1036_v14  ;;  %v464_v18 = vld [vmem:[#allocation2 + $0x30] sm:$0xff]  ;;  %v465_v23 = vld [vmem:[#allocation2] sm:$0xff]  ;;  %v466_v27 = vld [vmem:[#allocation2 + $0x18] sm:$0xff]  ;;  %p1168_p5 = scmp.ne.s32.totalorder %s1373_s18, 1 }
  0x8a   : > { %750 = vmatpush.bf16.msra.mxu3 %v1127_v47  ;;  %v467_v33 = vld [vmem:[#allocation2 + $0x10] sm:$0xff]  ;;  %v468_v37 = vld [vmem:[#allocation2 + $0x8] sm:$0xff]  ;;  %v469_v43 = vld [vmem:[#allocation2 + $0x20] sm:$0xff] }
  0x8b   : > { %v470_v47 = vld [vmem:[#allocation2 + $0x28] sm:$0xff] }
  0x8c   : > { %694 = vmatpush.bf16.msra.mxu0 %v1051_v53  ;;  %v471_v53 = vld [vmem:[#allocation2 + $0x38] sm:$0xff] }
  0x8d   : > { %713 = vmatpush.bf16.msra.mxu1 %v1115_v54  ;;  %732 = vmatpush.bf16.msra.mxu2 %v1055_v55 }
  0x8e   : > { %751 = vmatpush.bf16.msra.mxu3 %v1119_v59 }
  0x90   : > { %695 = vmatpush.bf16.msra.mxu0 %v1043_v1 }
  0x91   : > { %714 = vmatpush.bf16.msra.mxu1 %v1107_v4  ;;  %733 = vmatpush.bf16.msra.mxu2 %v1047_v5 }
  0x92   : > { %752 = vmatpush.bf16.msra.mxu3 %v1111_v8 }
  0x93   : > { %696 = vmatmul.bf16.vlgmr.msra.gmra.mxu0 %v1027_v9 }
  0x94   : > { %715 = vmatmul.bf16.vlgmr.msra.gmra.mxu1 %v1031_v10  ;;  %734 = vmatmul.bf16.vlgmr.msra.gmra.mxu2 %v1027_v9 }
  0x95   : > { %753 = vmatmul.bf16.vlgmr.msra.gmra.mxu3 %v1031_v10 }
  0xa3   : > { %701 = vmatmul.bf16.gmra.mxu0 %v1035_v15 }
  0xa4   : > { %720 = vmatmul.bf16.gmra.mxu1 %v1039_v16  ;;  %739 = vmatmul.bf16.gmra.mxu2 %v1035_v15 }
  0xa5   : > { %758 = vmatmul.bf16.gmra.mxu3 %v1039_v16 }
 0x110   : > { %v697_v17 = vpop.f32.mrf.mxu0 }
 0x111   : > { %v716_v19 = vpop.f32.mrf.mxu1 }
 0x112   : > { %v717_v20 = vadd.f32 %v716_v19, %v697_v17 }
 0x114   : > { %v764_v21 = vadd.f32 %v717_v20, %v464_v18 }
 0x116   : > { %772 = vst [vmem:[#allocation2 + $0x30] sm:$0xff] %v764_v21 }
 0x117   : > { %v735_v22 = vpop.f32.mrf.mxu2 }
 0x118   : > { %v754_v24 = vpop.f32.mrf.mxu3  ;;  %v699_v25 = vpop.f32.mrf.mxu0 }
 0x119   : > { %v755_v26 = vadd.f32 %v754_v24, %v735_v22  ;;  %v718_v28 = vpop.f32.mrf.mxu1 }
 0x11a   : > { %v719_v29 = vadd.f32 %v718_v28, %v699_v25 }
 0x11b   : > { %v765_v30 = vadd.f32 %v755_v26, %v465_v23 }
 0x11c   : > { %v766_v31 = vadd.f32 %v719_v29, %v466_v27 }
 0x11d   : > { %773 = vst [vmem:[#allocation2] sm:$0xff] %v765_v30 }
 0x11e   : > { %774 = vst [vmem:[#allocation2 + $0x18] sm:$0xff] %v766_v31 }
 0x11f   : > { %v737_v32 = vpop.f32.mrf.mxu2 }
 0x120   : > { %v756_v34 = vpop.f32.mrf.mxu3  ;;  %v702_v35 = vpop.f32.mrf.mxu0 }
 0x121   : > { %v757_v36 = vadd.f32 %v756_v34, %v737_v32  ;;  %v721_v38 = vpop.f32.mrf.mxu1 }
 0x122   : > { %v722_v39 = vadd.f32 %v721_v38, %v702_v35 }
 0x123   : > { %v767_v40 = vadd.f32 %v757_v36, %v467_v33 }
 0x124   : > { %v768_v41 = vadd.f32 %v722_v39, %v468_v37 }
 0x125   : > { %775 = vst [vmem:[#allocation2 + $0x10] sm:$0xff] %v767_v40 }
 0x126   : > { %776 = vst [vmem:[#allocation2 + $0x8] sm:$0xff] %v768_v41 }
 0x127   : > { %v740_v42 = vpop.f32.mrf.mxu2 }
 0x128   : > { %v759_v44 = vpop.f32.mrf.mxu3  ;;  %v704_v45 = vpop.f32.mrf.mxu0 }
 0x129   : > { %v760_v46 = vadd.f32 %v759_v44, %v740_v42  ;;  %v723_v48 = vpop.f32.mrf.mxu1 }
 0x12a   : > { %v724_v49 = vadd.f32 %v723_v48, %v704_v45 }
 0x12b   : > { %v769_v50 = vadd.f32 %v760_v46, %v469_v43 }
 0x12c   : > { %v770_v51 = vadd.f32 %v724_v49, %v470_v47 }
 0x12d   : > { %777 = vst [vmem:[#allocation2 + $0x20] sm:$0xff] %v769_v50 }
 0x12e   : > { %778 = vst [vmem:[#allocation2 + $0x28] sm:$0xff] %v770_v51 }
 0x12f   : > { %v742_v52 = vpop.f32.mrf.mxu2 }
 0x130   : > { %v761_v54 = vpop.f32.mrf.mxu3 }
 0x131   : > { %v762_v55 = vadd.f32 %v761_v54, %v742_v52  ;;  %783 = sbr.rel (%p1168_p5) target bundleno = 326 (0x146), region = 116 }
 0x133   : > { %v771_v56 = vadd.f32 %v762_v55, %v471_v53 }
 0x135   : > { %779 = vst [vmem:[#allocation2 + $0x38] sm:$0xff] %v771_v56 }
 0x136   : > { %v784_v57 = vld [vmem:[#allocation2 + $0x30] sm:$0xff]  ;;  %v785_v58 = vld [vmem:[#allocation2] sm:$0xff]  ;;  %v786_v63 = vld [vmem:[#allocation2 + $0x18] sm:$0xff] }
 0x137   : > { %v792_v59 = vld [vmem:[%s1603_s6] ss:$2 sm:$0x3]  ;;  %v1169_v62 = vld [vmem:[%s1603_s6 + $0x1] ss:$2 sm:$0x3] }
 0x138   : > { %v794_v60 = vperm.slane %v792_v59, 0  ;;  %v795_v61 = vperm.slane %v792_v59, 1  ;;  %v809_v0 = vperm.slane %v1169_v62, 0  ;;  %v810_v1 = vperm.slane %v1169_v62, 1  ;;  %v787_v2 = vld [vmem:[#allocation2 + $0x10] sm:$0xff]  ;;  %v788_v3 = vld [vmem:[#allocation2 + $0x8] sm:$0xff] }
 0x139   : > { %v789_v4 = vld [vmem:[#allocation2 + $0x20] sm:$0xff]  ;;  %v790_v9 = vld [vmem:[#allocation2 + $0x28] sm:$0xff] }
 0x13a   : > { %v798_v5 = vmul.f32 %v794_v60, %v784_v57  ;;  %v799_v6 = vmul.f32 %v795_v61, %v785_v58  ;;  %v800_v7 = vmul.f32 %v794_v60, %v786_v63  ;;  %v801_v8 = vmul.f32 %v795_v61, %v787_v2 }
 0x13b   : > { %v802_v11 = vmul.f32 %v794_v60, %v788_v3  ;;  %v803_v12 = vmul.f32 %v795_v61, %v789_v4  ;;  %v804_v13 = vmul.f32 %v794_v60, %v790_v9 }
 0x13c   : > { %v791_v10 = vld [vmem:[#allocation2 + $0x38] sm:$0xff]  ;;  %v813_v15 = vadd.f32 %v809_v0, %v798_v5  ;;  %v814_v16 = vadd.f32 %v810_v1, %v799_v6  ;;  %v815_v17 = vadd.f32 %v809_v0, %v800_v7  ;;  %v816_v18 = vadd.f32 %v810_v1, %v801_v8 }
 0x13d   : > { %v805_v14 = vmul.f32 %v795_v61, %v791_v10  ;;  %v817_v19 = vadd.f32 %v809_v0, %v802_v11  ;;  %v818_v20 = vadd.f32 %v810_v1, %v803_v12  ;;  %v819_v21 = vadd.f32 %v809_v0, %v804_v13 }
 0x13e   : > { %v821_v23 = vmax.f32 %v813_v15, 0.0  ;;  %v822_v24 = vmax.f32 %v814_v16, 0.0  ;;  %v823_v25 = vmax.f32 %v815_v17, 0.0  ;;  %v824_v26 = vmax.f32 %v816_v18, 0.0 }
 0x13f   : > { %v820_v22 = vadd.f32 %v810_v1, %v805_v14  ;;  %v825_v27 = vmax.f32 %v817_v19, 0.0  ;;  %v826_v28 = vmax.f32 %v818_v20, 0.0  ;;  %v827_v29 = vmax.f32 %v819_v21, 0.0 }
 0x140   : > { %v829_v31 = vpack.c.bf16 %v822_v24, %v821_v23  ;;  %v830_v32 = vpack.c.bf16 %v824_v26, %v823_v25 }
 0x141   : > { %v828_v30 = vmax.f32 %v820_v22, 0.0  ;;  %v831_v33 = vpack.c.bf16 %v826_v28, %v825_v27 }
 0x142   : > { %833 = vst [vmem:[%s1609_s24] sm:$0xff] %v829_v31 }
 0x143   : > { %v832_v34 = vpack.c.bf16 %v828_v30, %v827_v29  ;;  %834 = vst [vmem:[%s1609_s24 + $0x8] sm:$0xff] %v830_v32 }
 0x144   : > { %835 = vst [vmem:[%s1609_s24 + $0x10] sm:$0xff] %v831_v33 }
 0x145   : > { %836 = vst [vmem:[%s1609_s24 + $0x18] sm:$0xff] %v832_v34 }
 0x146 PF: > { %843 = sbr.rel (!%p1506_p12) target bundleno = 334 (0x14e), region = 120  ;;  %s1213_s1 = sshll.u32 (%p1506_p12), %s1377_s19, 3 }
 0x147   : > { %s849_s16 = scalar_lea.vmem (%p1506_p12), %s1737_s3, %s1213_s1 }
 0x149   : > { %v884_v35 = vld [vmem:[%s1609_s24] sm:$0xff] (%p1506_p12) }
 0x14a   : > { %v886_v36 = vld [vmem:[%s1609_s24 + $0x8] sm:$0xff] (%p1506_p12)  ;;  %885 = vst [vmem:[%s849_s16] sm:$0xff] (%p1506_p12), %v884_v35 }
 0x14b   : > { %v888_v37 = vld [vmem:[%s1609_s24 + $0x10] sm:$0xff]  ;;  %887 = vst [vmem:[%s849_s16 + $0x10] sm:$0xff] %v886_v36 }
 0x14c   : > { %v890_v38 = vld [vmem:[%s1609_s24 + $0x18] sm:$0xff]  ;;  %889 = vst [vmem:[%s849_s16 + $0x20] sm:$0xff] %v888_v37 }
 0x14d   : > { %891 = vst [vmem:[%s849_s16 + $0x30] sm:$0xff] %v890_v38 }
 0x14e PF: > { %s13_s22 = sadd.s32 1, %s1389_s22   ;;  %s1749_s25 = sld [smem:[#allocation6_spill]] }
 0x14f   : > { %p10_p6 = scmp.ge.s32.totalorder %s13_s22, 6   ;;  %s1750_s10 = sld [smem:[#allocation7_spill]] }
 0x150   : > { %s1751_s12 = smov %s1353_s13  ;;  %s1752_s13 = smov %s1504_s9 }
 0x151   : > { %s1753_s14 = smov %s1361_s15  ;;  %s1754_s15 = smov %s1501_s8 }
 0x152   : > { %s1755_s16 = smov %s1369_s17  ;;  %s1756_s17 = smov %s1487_s30 }
 0x153   : > { %s1757_s18 = smov %s1381_s20  ;;  %s1758_s19 = smov %s1385_s21 }
 0x154   : > { %s1759_s20 = smov %s1749_s25  ;;  %12 = sbr.rel (!%p10_p6) target bundleno = 9 (0x9), region = 201 }
 0x155   : > { %s1760_s21 = smov %s1750_s10 }

// kernel: _lambda_.28
= control target key start
LH: loop header
LB: loop body
LE: loop exit
PB: predicated region body
PF: predicated region fallthrough
CT: control target
= control target key end

     0   :  { %s964_s12 = smov 0   ;;  %s966_s13 = smov 0   ;;  %s1158_s0 = inlined_call_operand.vmem [shape: bf16[8,2816], index: 0, kind: input, shape index: {}]   ;;  %s1159_s1 = inlined_call_operand.vmem [shape: bf16[2816,384], index: 1, kind: input, shape index: {}]   ;;  %s1160_s2 = inlined_call_operand.vmem [shape: f32[2,384], index: 2, kind: input, shape index: {}]   ;;  %s1161_s3 = inlined_call_operand.vmem [shape: bf16[8,384], index: 3, kind: output, shape index: {}]  }
   0x1   :  { %s968_s14 = smov 0   ;;  %s970_s15 = smov 0  }
   0x2   :  { %s972_s16 = smov 0   ;;  %s974_s17 = smov 0  }
   0x3   :  { %s976_s18 = smov 0  }
   0x4 LB: > { %s25_s19 = sadd.s32 1, %s933_s16  ;;  %s28_s20 = sadd.s32 1, %s937_s17  ;;  %s941_s18 = sphi %s976_s18, %s13_s18   ;;  %s937_s17 = sphi %s974_s17, %s1167_s17   ;;  %s933_s16 = sphi %s972_s16, %s1166_s16   ;;  %s929_s15 = sphi %s970_s15, %s1165_s15   ;;  %s925_s14 = sphi %s968_s14, %s1164_s14   ;;  %s921_s13 = sphi %s966_s13, %s1163_s13   ;;  %s917_s12 = sphi %s964_s12, %s1162_s12  }
   0x5   : > { %p26_p0 = scmp.ge.s32.totalorder %s25_s19, 11  ;;  %p76_p1 = scmp.ne.s32.totalorder %s921_s13, %s917_s12 }
   0x6   : > { %p77_p2 = scmp.eq.s32.totalorder %s941_s18, 0  ;;  %s69_s24 = sadd.s32 1, %s921_s13 }
   0x7   : > { %s1169_s19 = smov (%p26_p0, %s25_s19), 0  ;;  %s1171_s20 = smov (!%p26_p0, %s28_s20), %s937_s17 }
   0x8   : > { %p78_p3 = por %p77_p2, %p76_p1  ;;  %p30_p4 = scmp.ge.s32.totalorder %s1171_s20, 3 }
   0x9   : > { %s64_s21 = ssub.s32 %s933_s16, %s1169_s19  ;;  %p732_p6 = scmp.ge.s32.totalorder %s941_s18, 33 }
   0xa   : > { %s1173_s20 = smov (%p30_p4, %s1171_s20), 0 }
   0xb   : > { %s65_s22 = ssub.s32 %s937_s17, %s1173_s20  ;;  %156 = sbr.rel (%p732_p6) target bundleno = 55 (0x37), region = 16 }
   0xc   : > { %s66_s23 = sor.u32 %s65_s22, %s64_s21 }
   0xd   : > { %p67_p5 = scmp.eq.s32.totalorder %s66_s23, 0 }
   0xf   : > { %s1015_s25 = scalar_select %p67_p5, %s921_s13, %s69_s24  }
  0x10   : > { %172 = sbr.rel (!%p78_p3) target bundleno = 55 (0x37), region = 24  ;;  %s174_s26 = sand.u32 (%p78_p3), 1, %s921_s13  }
  0x11   : > { %s827_s27 = smul.u32 (%p78_p3), 96, %s933_s16  ;;  %s733_s28 = sshll.u32 (%p78_p3), %s174_s26, 7 }
  0x12   : > { %s1029_s7 = scalar_lea.vmem (%p78_p3), [#allocation3], %s733_s28 }
  0x13   : > { %s179_s29 = sadd.s32 (%p78_p3), %s937_s17, %s827_s27 }
  0x14   : > { %s736_s30 = sshll.u32 (%p78_p3), %s179_s29, 2 }
  0x15   : > { %s1024_s6 = scalar_lea.vmem %s1159_s1, %s736_s30 }
  0x16   : > { %v198_v0 = vld [vmem:[%s1024_s6] sm:$0xf]  ;;  %v200_v1 = vld [vmem:[%s1024_s6 + $0xc] sm:$0xf]  ;;  %v202_v2 = vld [vmem:[%s1024_s6 + $0x18] sm:$0xf] }
  0x17   : > { %199 = vst [vmem:[%s1029_s7] sm:$0xf] %v198_v0  ;;  %v204_v3 = vld [vmem:[%s1024_s6 + $0x24] sm:$0xf]  ;;  %v206_v4 = vld [vmem:[%s1024_s6 + $0x30] sm:$0xf] }
  0x18   : > { %201 = vst [vmem:[%s1029_s7 + $0x4] sm:$0xf] %v200_v1  ;;  %v208_v5 = vld [vmem:[%s1024_s6 + $0x3c] sm:$0xf]  ;;  %v210_v6 = vld [vmem:[%s1024_s6 + $0x48] sm:$0xf] }
  0x19   : > { %203 = vst [vmem:[%s1029_s7 + $0x8] sm:$0xf] %v202_v2  ;;  %v212_v7 = vld [vmem:[%s1024_s6 + $0x54] sm:$0xf]  ;;  %v214_v8 = vld [vmem:[%s1024_s6 + $0x60] sm:$0xf] }
  0x1a   : > { %205 = vst [vmem:[%s1029_s7 + $0xc] sm:$0xf] %v204_v3  ;;  %v216_v9 = vld [vmem:[%s1024_s6 + $0x6c] sm:$0xf]  ;;  %v218_v10 = vld [vmem:[%s1024_s6 + $0x78] sm:$0xf] }
  0x1b   : > { %207 = vst [vmem:[%s1029_s7 + $0x10] sm:$0xf] %v206_v4  ;;  %v220_v11 = vld [vmem:[%s1024_s6 + $0x84] sm:$0xf]  ;;  %v222_v12 = vld [vmem:[%s1024_s6 + $0x90] sm:$0xf] }
  0x1c   : > { %209 = vst [vmem:[%s1029_s7 + $0x14] sm:$0xf] %v208_v5  ;;  %v224_v13 = vld [vmem:[%s1024_s6 + $0x9c] sm:$0xf]  ;;  %v226_v14 = vld [vmem:[%s1024_s6 + $0xa8] sm:$0xf] }
  0x1d   : > { %211 = vst [vmem:[%s1029_s7 + $0x18] sm:$0xf] %v210_v6  ;;  %v228_v15 = vld [vmem:[%s1024_s6 + $0xb4] sm:$0xf]  ;;  %v230_v16 = vld [vmem:[%s1024_s6 + $0xc0] sm:$0xf] }
  0x1e   : > { %213 = vst [vmem:[%s1029_s7 + $0x1c] sm:$0xf] %v212_v7  ;;  %v232_v17 = vld [vmem:[%s1024_s6 + $0xcc] sm:$0xf]  ;;  %v234_v18 = vld [vmem:[%s1024_s6 + $0xd8] sm:$0xf] }
  0x1f   : > { %215 = vst [vmem:[%s1029_s7 + $0x20] sm:$0xf] %v214_v8  ;;  %v236_v19 = vld [vmem:[%s1024_s6 + $0xe4] sm:$0xf]  ;;  %v238_v20 = vld [vmem:[%s1024_s6 + $0xf0] sm:$0xf] }
  0x20   : > { %217 = vst [vmem:[%s1029_s7 + $0x24] sm:$0xf] %v216_v9  ;;  %v240_v21 = vld [vmem:[%s1024_s6 + $0xfc] sm:$0xf]  ;;  %v242_v22 = vld [vmem:[%s1024_s6 + $0x108] sm:$0xf] }
  0x21   : > { %219 = vst [vmem:[%s1029_s7 + $0x28] sm:$0xf] %v218_v10  ;;  %v244_v23 = vld [vmem:[%s1024_s6 + $0x114] sm:$0xf]  ;;  %v246_v24 = vld [vmem:[%s1024_s6 + $0x120] sm:$0xf] }
  0x22   : > { %221 = vst [vmem:[%s1029_s7 + $0x2c] sm:$0xf] %v220_v11  ;;  %v248_v25 = vld [vmem:[%s1024_s6 + $0x12c] sm:$0xf]  ;;  %v250_v26 = vld [vmem:[%s1024_s6 + $0x138] sm:$0xf] }
  0x23   : > { %223 = vst [vmem:[%s1029_s7 + $0x30] sm:$0xf] %v222_v12  ;;  %v252_v27 = vld [vmem:[%s1024_s6 + $0x144] sm:$0xf]  ;;  %v254_v28 = vld [vmem:[%s1024_s6 + $0x150] sm:$0xf] }
  0x24   : > { %225 = vst [vmem:[%s1029_s7 + $0x34] sm:$0xf] %v224_v13  ;;  %v256_v29 = vld [vmem:[%s1024_s6 + $0x15c] sm:$0xf]  ;;  %v258_v30 = vld [vmem:[%s1024_s6 + $0x168] sm:$0xf] }
  0x25   : > { %227 = vst [vmem:[%s1029_s7 + $0x38] sm:$0xf] %v226_v14  ;;  %v260_v31 = vld [vmem:[%s1024_s6 + $0x174] sm:$0xf] }
  0x26   : > { %229 = vst [vmem:[%s1029_s7 + $0x3c] sm:$0xf] %v228_v15 }
  0x27   : > { %231 = vst [vmem:[%s1029_s7 + $0x40] sm:$0xf] %v230_v16 }
  0x28   : > { %233 = vst [vmem:[%s1029_s7 + $0x44] sm:$0xf] %v232_v17 }
  0x29   : > { %235 = vst [vmem:[%s1029_s7 + $0x48] sm:$0xf] %v234_v18 }
  0x2a   : > { %237 = vst [vmem:[%s1029_s7 + $0x4c] sm:$0xf] %v236_v19 }
  0x2b   : > { %239 = vst [vmem:[%s1029_s7 + $0x50] sm:$0xf] %v238_v20 }
  0x2c   : > { %241 = vst [vmem:[%s1029_s7 + $0x54] sm:$0xf] %v240_v21 }
  0x2d   : > { %243 = vst [vmem:[%s1029_s7 + $0x58] sm:$0xf] %v242_v22 }
  0x2e   : > { %245 = vst [vmem:[%s1029_s7 + $0x5c] sm:$0xf] %v244_v23 }
  0x2f   : > { %247 = vst [vmem:[%s1029_s7 + $0x60] sm:$0xf] %v246_v24 }
  0x30   : > { %249 = vst [vmem:[%s1029_s7 + $0x64] sm:$0xf] %v248_v25 }
  0x31   : > { %251 = vst [vmem:[%s1029_s7 + $0x68] sm:$0xf] %v250_v26 }
  0x32   : > { %253 = vst [vmem:[%s1029_s7 + $0x6c] sm:$0xf] %v252_v27 }
  0x33   : > { %255 = vst [vmem:[%s1029_s7 + $0x70] sm:$0xf] %v254_v28 }
  0x34   : > { %257 = vst [vmem:[%s1029_s7 + $0x74] sm:$0xf] %v256_v29 }
  0x35   : > { %259 = vst [vmem:[%s1029_s7 + $0x78] sm:$0xf] %v258_v30 }
  0x36   : > { %261 = vst [vmem:[%s1029_s7 + $0x7c] sm:$0xf] %v260_v31 }
  0x37 PF: > { %p737_p7 = scmp.ge.s32.totalorder %s941_s18, 1  ;;  %p355_p8 = scmp.lt.s32.totalorder %s941_s18, 34 }
  0x39   : > { %p356_p9 = pnand %p737_p7, %p355_p8 }
  0x3a   : > { %s362_s8 = sand.u32 (!%p356_p9), 1, %s917_s12   ;;  %s739_s9 = sshll.u32 (!%p356_p9), %s925_s14, 1 }
  0x3b   : > { %359 = sbr.rel (%p356_p9) target bundleno = 254 (0xfe), region = 69  ;;  %s738_s10 = sshll.u32 (!%p356_p9), %s362_s8, 7 }
  0x3c   : > { %p404_p10 = scmp.lt.s32.totalorder (!%p356_p9), %s739_s9, 21  ;;  %p412_p11 = scmp.lt.s32.totalorder (!%p356_p9), %s929_s15, 2 }
  0x3d   : > { %s1113_s5 = scalar_lea.vmem (!%p356_p9), [#allocation3], %s738_s10  ;;  %p743_p12 = scmp.ne.s32.totalorder (!%p356_p9), %s925_s14, 0 }
  0x40   : > { %s1175_s9 = smov (!%p404_p10, %s739_s9), 21  ;;  %s1177_s15 = smov (!%p412_p11, %s929_s15), 2 }
  0x41   : > { %s740_s11 = sshll.u32 %s1175_s9, 2  ;;  %s741_s24 = sshll.u32 %s1177_s15, 1 }
  0x42   : > { %s1101_s23 = scalar_lea.vmem %s1158_s0, %s740_s11  ;;  %s1106_s28 = scalar_lea.vmem %s1160_s2, %s741_s24 }
  0x43   : > { %s742_s29 = sshll.u32 %s1177_s15, 2  ;;  %427 = sbr.rel (%p743_p12) target bundleno = 74 (0x4a), region = 77 }
  0x44   : > { %s1111_s4 = scalar_lea.vmem %s1161_s3, %s742_s29 }
  0x48   : > { %v943_v32 = vmov 0.0  }
  0x49   : > { %428 = vst [vmem:[#allocation2] sm:$0xff] %v943_v32 }
  0x4a PF: > { %v818_v33 = vld [vmem:[%s1113_s5 + $0x38] sm:$0xff]  ;;  %v817_v35 = vld [vmem:[%s1113_s5 + $0x30] sm:$0xff]  ;;  %v816_v37 = vld [vmem:[%s1113_s5 + $0x28] sm:$0xff]  ;;  %p808_p13 = scmp.ne.s32.totalorder %s925_s14, 10 }
  0x4b   : > { %v826_v34 = vld [vmem:[%s1113_s5 + $0x78] sm:$0xff]  ;;  %566 = vmatpush.bf16.msra.mxu0 %v818_v33  ;;  %v825_v36 = vld [vmem:[%s1113_s5 + $0x70] sm:$0xff]  ;;  %v824_v38 = vld [vmem:[%s1113_s5 + $0x68] sm:$0xff] }
  0x4c   : > { %579 = vmatpush.bf16.msra.mxu1 %v826_v34  ;;  %v815_v39 = vld [vmem:[%s1113_s5 + $0x20] sm:$0xff]  ;;  %v814_v41 = vld [vmem:[%s1113_s5 + $0x18] sm:$0xff]  ;;  %v813_v43 = vld [vmem:[%s1113_s5 + $0x10] sm:$0xff] }
  0x4d   : > { %v823_v40 = vld [vmem:[%s1113_s5 + $0x60] sm:$0xff]  ;;  %v822_v42 = vld [vmem:[%s1113_s5 + $0x58] sm:$0xff]  ;;  %v821_v44 = vld [vmem:[%s1113_s5 + $0x50] sm:$0xff] }
  0x4e   : > { %v812_v45 = vld [vmem:[%s1113_s5 + $0x8] sm:$0xff]  ;;  %v430_v47 = vld [vmem:[%s1101_s23] sm:$0xff]  ;;  %v811_v50 = vld [vmem:[%s1113_s5] sm:$0xff] }
  0x4f   : > { %567 = vmatpush.bf16.msra.mxu0 %v817_v35  ;;  %v820_v46 = vld [vmem:[%s1113_s5 + $0x48] sm:$0xff]  ;;  %v464_v48 = vunpack.c.l.b16 %v430_v47  ;;  %v465_v49 = vunpack.c.h.b16 %v430_v47  ;;  %v819_v51 = vld [vmem:[%s1113_s5 + $0x40] sm:$0xff] }
  0x50   : > { %580 = vmatpush.bf16.msra.mxu1 %v825_v36  ;;  %v429_v55 = vld [vmem:[#allocation2] sm:$0xff] }
  0x51   : > { %v466_v52 = vpack.c.b16 %v464_v48, %v464_v48  ;;  %v467_v53 = vpack.c.b16 %v465_v49, %v465_v49 }
  0x53   : > { %568 = vmatpush.bf16.msra.mxu0 %v816_v37 }
  0x54   : > { %581 = vmatpush.bf16.msra.mxu1 %v824_v38 }
  0x57   : > { %569 = vmatpush.bf16.msra.mxu0 %v815_v39 }
  0x58   : > { %582 = vmatpush.bf16.msra.mxu1 %v823_v40 }
  0x5b   : > { %570 = vmatpush.bf16.msra.mxu0 %v814_v41 }
  0x5c   : > { %583 = vmatpush.bf16.msra.mxu1 %v822_v42 }
  0x5f   : > { %571 = vmatpush.bf16.msra.mxu0 %v813_v43 }
  0x60   : > { %584 = vmatpush.bf16.msra.mxu1 %v821_v44 }
  0x63   : > { %572 = vmatpush.bf16.msra.mxu0 %v812_v45 }
  0x64   : > { %585 = vmatpush.bf16.msra.mxu1 %v820_v46 }
  0x67   : > { %573 = vmatpush.bf16.msra.mxu0 %v811_v50 }
  0x68   : > { %586 = vmatpush.bf16.msra.mxu1 %v819_v51 }
  0x6a   : > { %574 = vmatmul.bf16.vlgmr.msra.gmra.mxu0 %v466_v52 }
  0x6b   : > { %587 = vmatmul.bf16.vlgmr.msra.gmra.mxu1 %v467_v53 }
  0xe7   : > { %v575_v54 = vpop.f32.mrf.mxu0 }
  0xe8   : > { %v588_v56 = vpop.f32.mrf.mxu1 }
  0xe9   : > { %v589_v57 = vadd.f32 %v588_v56, %v575_v54 }
  0xeb   : > { %v592_v58 = vadd.f32 %v589_v57, %v429_v55 }
  0xec   : > { %597 = sbr.rel (%p808_p13) target bundleno = 254 (0xfe), region = 81 }
  0xed   : > { %593 = vst [vmem:[#allocation2] sm:$0xff] %v592_v58 }
  0xef   : > { %v577_v59 = vpop.f32.mrf.mxu0 }
  0xf0   : > { %v590_v60 = vpop.f32.mrf.mxu1 }
  0xf1   : > { %v885_v62 = vld [vmem:[%s1106_s28] ss:$0 sm:$0xff]  ;;  %v886_v63 = vld [vmem:[%s1106_s28 + $0x1] ss:$0 sm:$0xff] }
  0xf4   : > { %v598_v61 = vld [vmem:[#allocation2] sm:$0xff] }
  0xf5   : > { %v601_v0 = vmul.f32 %v885_v62, %v598_v61 }
  0xf7   : > { %v604_v1 = vadd.f32 %v886_v63, %v601_v0 }
  0xf9   : > { %v605_v2 = vmax.f32 %v604_v1, 0.0 }
  0xfb   : > { %v606_v3 = vpack.c.bf16 %v605_v2, %v605_v2 }
  0xfd   : > { %607 = vst [vmem:[%s1111_s4] sm:$0xf] %v606_v3 }
  0xfe PF: > { %s13_s18 = sadd.s32 1, %s941_s18   ;;  %s1162_s12 = smov %s921_s13 }
  0xff   : > { %p10_p0 = scmp.ge.s32.totalorder %s13_s18, 35   ;;  %s1163_s13 = smov %s1015_s25 }
 0x100   : > { %s1164_s14 = smov %s933_s16  ;;  %s1165_s15 = smov %s937_s17 }
 0x101   : > { %s1166_s16 = smov %s1169_s19  ;;  %s1167_s17 = smov %s1173_s20 }
 0x102   :  { %12 = sbr.rel (!%p10_p0) target bundleno = 4 (0x4), region = 122 }

// kernel: _lambda_.29
= control target key start
LH: loop header
LB: loop body
LE: loop exit
PB: predicated region body
PF: predicated region fallthrough
CT: control target
= control target key end

     0   :  { %s1158_s12 = smov 0   ;;  %s1160_s13 = smov 0   ;;  %s1399_s0 = inlined_call_operand.vmem [shape: bf16[8,512], index: 0, kind: input, shape index: {}]   ;;  %s1400_s1 = inlined_call_operand.vmem [shape: bf16[512,1024], index: 1, kind: input, shape index: {}]   ;;  %s1401_s2 = inlined_call_operand.vmem [shape: f32[2,1024], index: 2, kind: input, shape index: {}]   ;;  %s1402_s3 = inlined_call_operand.vmem [shape: bf16[8,1024], index: 3, kind: output, shape index: {}]  }
   0x1   :  { %s1162_s14 = smov 0   ;;  %s1164_s15 = smov 0  }
   0x2   :  { %s1166_s16 = smov 0   ;;  %s1168_s17 = smov 0  }
   0x3   :  { %s1170_s18 = smov 0  }
   0x4 LB: > { %s25_s19 = sadd.s32 1, %s1127_s16  ;;  %s28_s20 = sadd.s32 1, %s1131_s17  ;;  %s1135_s18 = sphi %s1170_s18, %s13_s18   ;;  %s1131_s17 = sphi %s1168_s17, %s1408_s17   ;;  %s1127_s16 = sphi %s1166_s16, %s1407_s16   ;;  %s1123_s15 = sphi %s1164_s15, %s1406_s15   ;;  %s1119_s14 = sphi %s1162_s14, %s1405_s14   ;;  %s1115_s13 = sphi %s1160_s13, %s1404_s13   ;;  %s1111_s12 = sphi %s1158_s12, %s1403_s12  }
   0x5   : > { %p26_p0 = scmp.ge.s32.totalorder %s25_s19, 2  ;;  %p76_p1 = scmp.ne.s32.totalorder %s1115_s13, %s1111_s12 }
   0x6   : > { %p77_p2 = scmp.eq.s32.totalorder %s1135_s18, 0  ;;  %s69_s24 = sadd.s32 1, %s1115_s13 }
   0x7   : > { %s1410_s19 = smov (%p26_p0, %s25_s19), 0  ;;  %s1412_s20 = smov (!%p26_p0, %s28_s20), %s1131_s17 }
   0x8   : > { %p78_p3 = por %p77_p2, %p76_p1  ;;  %p30_p4 = scmp.ge.s32.totalorder %s1412_s20, 4 }
   0x9   : > { %s64_s21 = ssub.s32 %s1127_s16, %s1410_s19  ;;  %p844_p6 = scmp.ge.s32.totalorder %s1135_s18, 8 }
   0xa   : > { %s1414_s20 = smov (%p30_p4, %s1412_s20), 0 }
   0xb   : > { %s65_s22 = ssub.s32 %s1131_s17, %s1414_s20  ;;  %156 = sbr.rel (%p844_p6) target bundleno = 55 (0x37), region = 16 }
   0xc   : > { %s66_s23 = sor.u32 %s65_s22, %s64_s21 }
   0xd   : > { %p67_p5 = scmp.eq.s32.totalorder %s66_s23, 0 }
   0xf   : > { %s1209_s25 = scalar_select %p67_p5, %s1115_s13, %s69_s24  }
  0x10   : > { %172 = sbr.rel (!%p78_p3) target bundleno = 55 (0x37), region = 24  ;;  %s174_s26 = sand.u32 (%p78_p3), 1, %s1115_s13  }
  0x11   : > { %s847_s27 = sshll.u32 (%p78_p3), %s1131_s17, 1  ;;  %s845_s28 = sshll.u32 (%p78_p3), %s174_s26, 8 }
  0x12   : > { %s991_s29 = sshll.u32 (%p78_p3), %s1127_s16, 8  ;;  %s1223_s8 = scalar_lea.vmem (%p78_p3), [#allocation3], %s845_s28 }
  0x13   : > { %s180_s30 = sadd.s32 (%p78_p3), %s991_s29, %s847_s27 }
  0x14   : > { %s849_s4 = sshll.u32 (%p78_p3), %s180_s30, 2 }
  0x15   : > { %s1218_s7 = scalar_lea.vmem %s1400_s1, %s849_s4 }
  0x16   : > { %v273_v0 = vld [vmem:[%s1218_s7] sm:$0xff] }
  0x17   : > { %v275_v1 = vld [vmem:[%s1218_s7 + $0x20] sm:$0xff]  ;;  %274 = vst [vmem:[%s1223_s8] sm:$0xff] %v273_v0 }
  0x18   : > { %v277_v2 = vld [vmem:[%s1218_s7 + $0x40] sm:$0xff]  ;;  %276 = vst [vmem:[%s1223_s8 + $0x8] sm:$0xff] %v275_v1 }
  0x19   : > { %v279_v3 = vld [vmem:[%s1218_s7 + $0x60] sm:$0xff]  ;;  %278 = vst [vmem:[%s1223_s8 + $0x10] sm:$0xff] %v277_v2 }
  0x1a   : > { %v281_v4 = vld [vmem:[%s1218_s7 + $0x80] sm:$0xff]  ;;  %280 = vst [vmem:[%s1223_s8 + $0x18] sm:$0xff] %v279_v3 }
  0x1b   : > { %v283_v5 = vld [vmem:[%s1218_s7 + $0xa0] sm:$0xff]  ;;  %282 = vst [vmem:[%s1223_s8 + $0x20] sm:$0xff] %v281_v4 }
  0x1c   : > { %v285_v6 = vld [vmem:[%s1218_s7 + $0xc0] sm:$0xff]  ;;  %284 = vst [vmem:[%s1223_s8 + $0x28] sm:$0xff] %v283_v5 }
  0x1d   : > { %v287_v7 = vld [vmem:[%s1218_s7 + $0xe0] sm:$0xff]  ;;  %286 = vst [vmem:[%s1223_s8 + $0x30] sm:$0xff] %v285_v6 }
  0x1e   : > { %v289_v8 = vld [vmem:[%s1218_s7 + $0x100] sm:$0xff]  ;;  %288 = vst [vmem:[%s1223_s8 + $0x38] sm:$0xff] %v287_v7 }
  0x1f   : > { %v291_v9 = vld [vmem:[%s1218_s7 + $0x120] sm:$0xff]  ;;  %290 = vst [vmem:[%s1223_s8 + $0x40] sm:$0xff] %v289_v8 }
  0x20   : > { %v293_v10 = vld [vmem:[%s1218_s7 + $0x140] sm:$0xff]  ;;  %292 = vst [vmem:[%s1223_s8 + $0x48] sm:$0xff] %v291_v9 }
  0x21   : > { %v295_v11 = vld [vmem:[%s1218_s7 + $0x160] sm:$0xff]  ;;  %294 = vst [vmem:[%s1223_s8 + $0x50] sm:$0xff] %v293_v10 }
  0x22   : > { %v297_v12 = vld [vmem:[%s1218_s7 + $0x180] sm:$0xff]  ;;  %296 = vst [vmem:[%s1223_s8 + $0x58] sm:$0xff] %v295_v11 }
  0x23   : > { %v299_v13 = vld [vmem:[%s1218_s7 + $0x1a0] sm:$0xff]  ;;  %298 = vst [vmem:[%s1223_s8 + $0x60] sm:$0xff] %v297_v12 }
  0x24   : > { %v301_v14 = vld [vmem:[%s1218_s7 + $0x1c0] sm:$0xff]  ;;  %300 = vst [vmem:[%s1223_s8 + $0x68] sm:$0xff] %v299_v13 }
  0x25   : > { %v303_v15 = vld [vmem:[%s1218_s7 + $0x1e0] sm:$0xff]  ;;  %302 = vst [vmem:[%s1223_s8 + $0x70] sm:$0xff] %v301_v14 }
  0x26   : > { %v305_v16 = vld [vmem:[%s1218_s7 + $0x200] sm:$0xff]  ;;  %304 = vst [vmem:[%s1223_s8 + $0x78] sm:$0xff] %v303_v15 }
  0x27   : > { %v307_v17 = vld [vmem:[%s1218_s7 + $0x220] sm:$0xff]  ;;  %306 = vst [vmem:[%s1223_s8 + $0x80] sm:$0xff] %v305_v16 }
  0x28   : > { %v309_v18 = vld [vmem:[%s1218_s7 + $0x240] sm:$0xff]  ;;  %308 = vst [vmem:[%s1223_s8 + $0x88] sm:$0xff] %v307_v17 }
  0x29   : > { %v311_v19 = vld [vmem:[%s1218_s7 + $0x260] sm:$0xff]  ;;  %310 = vst [vmem:[%s1223_s8 + $0x90] sm:$0xff] %v309_v18 }
  0x2a   : > { %v313_v20 = vld [vmem:[%s1218_s7 + $0x280] sm:$0xff]  ;;  %312 = vst [vmem:[%s1223_s8 + $0x98] sm:$0xff] %v311_v19 }
  0x2b   : > { %v315_v21 = vld [vmem:[%s1218_s7 + $0x2a0] sm:$0xff]  ;;  %314 = vst [vmem:[%s1223_s8 + $0xa0] sm:$0xff] %v313_v20 }
  0x2c   : > { %v317_v22 = vld [vmem:[%s1218_s7 + $0x2c0] sm:$0xff]  ;;  %316 = vst [vmem:[%s1223_s8 + $0xa8] sm:$0xff] %v315_v21 }
  0x2d   : > { %v319_v23 = vld [vmem:[%s1218_s7 + $0x2e0] sm:$0xff]  ;;  %318 = vst [vmem:[%s1223_s8 + $0xb0] sm:$0xff] %v317_v22 }
  0x2e   : > { %v321_v24 = vld [vmem:[%s1218_s7 + $0x300] sm:$0xff]  ;;  %320 = vst [vmem:[%s1223_s8 + $0xb8] sm:$0xff] %v319_v23 }
  0x2f   : > { %v323_v25 = vld [vmem:[%s1218_s7 + $0x320] sm:$0xff]  ;;  %322 = vst [vmem:[%s1223_s8 + $0xc0] sm:$0xff] %v321_v24 }
  0x30   : > { %v325_v26 = vld [vmem:[%s1218_s7 + $0x340] sm:$0xff]  ;;  %324 = vst [vmem:[%s1223_s8 + $0xc8] sm:$0xff] %v323_v25 }
  0x31   : > { %v327_v27 = vld [vmem:[%s1218_s7 + $0x360] sm:$0xff]  ;;  %326 = vst [vmem:[%s1223_s8 + $0xd0] sm:$0xff] %v325_v26 }
  0x32   : > { %v329_v28 = vld [vmem:[%s1218_s7 + $0x380] sm:$0xff]  ;;  %328 = vst [vmem:[%s1223_s8 + $0xd8] sm:$0xff] %v327_v27 }
  0x33   : > { %v331_v29 = vld [vmem:[%s1218_s7 + $0x3a0] sm:$0xff]  ;;  %330 = vst [vmem:[%s1223_s8 + $0xe0] sm:$0xff] %v329_v28 }
  0x34   : > { %v333_v30 = vld [vmem:[%s1218_s7 + $0x3c0] sm:$0xff]  ;;  %332 = vst [vmem:[%s1223_s8 + $0xe8] sm:$0xff] %v331_v29 }
  0x35   : > { %v335_v31 = vld [vmem:[%s1218_s7 + $0x3e0] sm:$0xff]  ;;  %334 = vst [vmem:[%s1223_s8 + $0xf0] sm:$0xff] %v333_v30 }
  0x36   : > { %336 = vst [vmem:[%s1223_s8 + $0xf8] sm:$0xff] %v335_v31 }
  0x37 PF: > { %p850_p7 = scmp.ge.s32.totalorder %s1135_s18, 1  ;;  %p350_p8 = scmp.lt.s32.totalorder %s1135_s18, 9 }
  0x39   : > { %p351_p9 = pnand %p850_p7, %p350_p8 }
  0x3a   : > { %s357_s9 = sand.u32 (!%p351_p9), 1, %s1111_s12   ;;  %s852_s10 = sshll.u32 (!%p351_p9), %s1119_s14, 1 }
  0x3b   : > { %354 = sbr.rel (%p351_p9) target bundleno = 263 (0x107), region = 66  ;;  %s851_s11 = sshll.u32 (!%p351_p9), %s357_s9, 8 }
  0x3c   : > { %p401_p10 = scmp.lt.s32.totalorder (!%p351_p9), %s852_s10, 3  ;;  %s854_s21 = sshll.u32 (!%p351_p9), %s1123_s15, 1 }
  0x3d   : > { %p411_p11 = scmp.lt.s32.totalorder (!%p351_p9), %s854_s21, 7  ;;  %s1306_s6 = scalar_lea.vmem (!%p351_p9), [#allocation3], %s851_s11 }
  0x3e   : > { %p858_p12 = scmp.ne.s32.totalorder (!%p351_p9), %s1119_s14, 0 }
  0x40   : > { %s1416_s10 = smov (!%p401_p10, %s852_s10), 3  ;;  %s1418_s21 = smov (!%p411_p11, %s854_s21), 7 }
  0x41   : > { %s853_s22 = sshll.u32 %s1416_s10, 2  ;;  %s855_s27 = sshll.u32 %s1418_s21, 1 }
  0x42   : > { %s1294_s26 = scalar_lea.vmem %s1399_s0, %s853_s22  ;;  %s857_s28 = sshll.u32 %s1418_s21, 2 }
  0x43   : > { %s1299_s4 = scalar_lea.vmem %s1401_s2, %s855_s27  ;;  %s1304_s15 = scalar_lea.vmem %s1402_s3, %s857_s28 }
  0x44   : > { %429 = sbr.rel (%p858_p12) target bundleno = 76 (0x4c), region = 74 }
  0x49   : > { %v1137_v32 = vmov 0.0  }
  0x4a   : > { %430 = vst [vmem:[#allocation2] sm:$0xff] %v1137_v32 }
  0x4b   : > { %431 = vst [vmem:[#allocation2 + $0x8] sm:$0xff] %v1137_v32 }
  0x4c PF: > { %v917_v33 = vld [vmem:[%s1306_s6 + $0x70] sm:$0xf]  ;;  %v1007_v34 = vld [vmem:[%s1306_s6 + $0x74] sm:$0xf0]  ;;  %v1006_v38 = vld [vmem:[%s1306_s6 + $0x74] sm:$0xf] }
  0x4d   : > { %v981_v35 = vld [vmem:[%s1306_s6 + $0xf0] sm:$0xf]  ;;  %v918_v36 = vor.u32 %v1007_v34, %v917_v33  ;;  %v1023_v37 = vld [vmem:[%s1306_s6 + $0xf4] sm:$0xf0]  ;;  %v919_v39 = vld [vmem:[%s1306_s6 + $0x78] sm:$0xf0] }
  0x4e   : > { %v982_v40 = vor.u32 %v1023_v37, %v981_v35  ;;  %v922_v41 = vor.u32 %v1006_v38, %v919_v39  ;;  %v1022_v42 = vld [vmem:[%s1306_s6 + $0xf4] sm:$0xf]  ;;  %v983_v43 = vld [vmem:[%s1306_s6 + $0xf8] sm:$0xf0]  ;;  %v909_v44 = vld [vmem:[%s1306_s6 + $0x60] sm:$0xf] }
  0x4f   : > { %634 = vmatpush.bf16.msra.mxu0 %v918_v36  ;;  %v986_v45 = vor.u32 %v1022_v42, %v983_v43  ;;  %v1005_v46 = vld [vmem:[%s1306_s6 + $0x64] sm:$0xf0]  ;;  %v973_v47 = vld [vmem:[%s1306_s6 + $0xe0] sm:$0xf]  ;;  %v1004_v51 = vld [vmem:[%s1306_s6 + $0x64] sm:$0xf] }
  0x50   : > { %v1021_v48 = vld [vmem:[%s1306_s6 + $0xe4] sm:$0xf0]  ;;  %647 = vmatpush.bf16.msra.mxu1 %v982_v40  ;;  %660 = vmatpush.bf16.msra.mxu2 %v922_v41  ;;  %v910_v49 = vor.u32 %v1005_v46, %v909_v44  ;;  %v911_v52 = vld [vmem:[%s1306_s6 + $0x68] sm:$0xf0]  ;;  %v1020_v53 = vld [vmem:[%s1306_s6 + $0xe4] sm:$0xf] }
  0x51   : > { %v974_v50 = vor.u32 %v1021_v48, %v973_v47  ;;  %673 = vmatpush.bf16.msra.mxu3 %v986_v45  ;;  %v914_v54 = vor.u32 %v1004_v51, %v911_v52  ;;  %v975_v55 = vld [vmem:[%s1306_s6 + $0xe8] sm:$0xf0]  ;;  %v901_v56 = vld [vmem:[%s1306_s6 + $0x50] sm:$0xf]  ;;  %v1003_v57 = vld [vmem:[%s1306_s6 + $0x54] sm:$0xf0] }
  0x52   : > { %v978_v58 = vor.u32 %v1020_v53, %v975_v55  ;;  %v965_v59 = vld [vmem:[%s1306_s6 + $0xd0] sm:$0xf]  ;;  %v1019_v60 = vld [vmem:[%s1306_s6 + $0xd4] sm:$0xf0]  ;;  %v1002_v61 = vld [vmem:[%s1306_s6 + $0x54] sm:$0xf]  ;;  %v902_v62 = vor.u32 %v1003_v57, %v901_v56 }
  0x53   : > { %635 = vmatpush.bf16.msra.mxu0 %v910_v49  ;;  %v903_v63 = vld [vmem:[%s1306_s6 + $0x58] sm:$0xf0]  ;;  %v1018_v0 = vld [vmem:[%s1306_s6 + $0xd4] sm:$0xf]  ;;  %v966_v2 = vor.u32 %v1019_v60, %v965_v59  ;;  %v893_v4 = vld [vmem:[%s1306_s6 + $0x40] sm:$0xf] }
  0x54   : > { %v967_v1 = vld [vmem:[%s1306_s6 + $0xd8] sm:$0xf0]  ;;  %648 = vmatpush.bf16.msra.mxu1 %v974_v50  ;;  %661 = vmatpush.bf16.msra.mxu2 %v914_v54  ;;  %v906_v3 = vor.u32 %v1002_v61, %v903_v63  ;;  %v1001_v5 = vld [vmem:[%s1306_s6 + $0x44] sm:$0xf0]  ;;  %v957_v6 = vld [vmem:[%s1306_s6 + $0xc0] sm:$0xf] }
  0x55   : > { %674 = vmatpush.bf16.msra.mxu3 %v978_v58  ;;  %v970_v7 = vor.u32 %v1018_v0, %v967_v1  ;;  %v1017_v8 = vld [vmem:[%s1306_s6 + $0xc4] sm:$0xf0]  ;;  %v1000_v9 = vld [vmem:[%s1306_s6 + $0x44] sm:$0xf]  ;;  %v895_v10 = vld [vmem:[%s1306_s6 + $0x48] sm:$0xf0]  ;;  %v894_v13 = vor.u32 %v1001_v5, %v893_v4 }
  0x56   : > { %v1016_v11 = vld [vmem:[%s1306_s6 + $0xc4] sm:$0xf]  ;;  %v959_v12 = vld [vmem:[%s1306_s6 + $0xc8] sm:$0xf0]  ;;  %v958_v14 = vor.u32 %v1017_v8, %v957_v6  ;;  %v898_v15 = vor.u32 %v1000_v9, %v895_v10  ;;  %v885_v16 = vld [vmem:[%s1306_s6 + $0x30] sm:$0xf] }
  0x57   : > { %636 = vmatpush.bf16.msra.mxu0 %v902_v62  ;;  %v999_v17 = vld [vmem:[%s1306_s6 + $0x34] sm:$0xf0]  ;;  %v949_v18 = vld [vmem:[%s1306_s6 + $0xb0] sm:$0xf]  ;;  %v962_v19 = vor.u32 %v1016_v11, %v959_v12  ;;  %v998_v21 = vld [vmem:[%s1306_s6 + $0x34] sm:$0xf] }
  0x58   : > { %649 = vmatpush.bf16.msra.mxu1 %v966_v2  ;;  %662 = vmatpush.bf16.msra.mxu2 %v906_v3  ;;  %v1015_v20 = vld [vmem:[%s1306_s6 + $0xb4] sm:$0xf0]  ;;  %v887_v22 = vld [vmem:[%s1306_s6 + $0x38] sm:$0xf0]  ;;  %v1014_v23 = vld [vmem:[%s1306_s6 + $0xb4] sm:$0xf]  ;;  %v886_v25 = vor.u32 %v999_v17, %v885_v16 }
  0x59   : > { %675 = vmatpush.bf16.msra.mxu3 %v970_v7  ;;  %v951_v24 = vld [vmem:[%s1306_s6 + $0xb8] sm:$0xf0]  ;;  %v950_v26 = vor.u32 %v1015_v20, %v949_v18  ;;  %v890_v27 = vor.u32 %v998_v21, %v887_v22  ;;  %v877_v28 = vld [vmem:[%s1306_s6 + $0x20] sm:$0xf]  ;;  %v997_v29 = vld [vmem:[%s1306_s6 + $0x24] sm:$0xf0] }
  0x5a   : > { %v941_v30 = vld [vmem:[%s1306_s6 + $0xa0] sm:$0xf]  ;;  %v954_v31 = vor.u32 %v1014_v23, %v951_v24  ;;  %v1013_v32 = vld [vmem:[%s1306_s6 + $0xa4] sm:$0xf0]  ;;  %v996_v33 = vld [vmem:[%s1306_s6 + $0x24] sm:$0xf]  ;;  %v878_v37 = vor.u32 %v997_v29, %v877_v28 }
  0x5b   : > { %637 = vmatpush.bf16.msra.mxu0 %v894_v13  ;;  %v879_v34 = vld [vmem:[%s1306_s6 + $0x28] sm:$0xf0]  ;;  %v1012_v35 = vld [vmem:[%s1306_s6 + $0xa4] sm:$0xf]  ;;  %v942_v38 = vor.u32 %v1013_v32, %v941_v30  ;;  %v869_v40 = vld [vmem:[%s1306_s6 + $0x10] sm:$0xf] }
  0x5c   : > { %650 = vmatpush.bf16.msra.mxu1 %v958_v14  ;;  %663 = vmatpush.bf16.msra.mxu2 %v898_v15  ;;  %v943_v36 = vld [vmem:[%s1306_s6 + $0xa8] sm:$0xf0]  ;;  %v882_v39 = vor.u32 %v996_v33, %v879_v34  ;;  %v995_v41 = vld [vmem:[%s1306_s6 + $0x14] sm:$0xf0]  ;;  %v933_v42 = vld [vmem:[%s1306_s6 + $0x90] sm:$0xf] }
  0x5d   : > { %676 = vmatpush.bf16.msra.mxu3 %v962_v19  ;;  %v946_v43 = vor.u32 %v1012_v35, %v943_v36  ;;  %v1011_v44 = vld [vmem:[%s1306_s6 + $0x94] sm:$0xf0]  ;;  %v994_v45 = vld [vmem:[%s1306_s6 + $0x14] sm:$0xf]  ;;  %v871_v46 = vld [vmem:[%s1306_s6 + $0x18] sm:$0xf0]  ;;  %v870_v49 = vor.u32 %v995_v41, %v869_v40 }
  0x5e   : > { %v1010_v47 = vld [vmem:[%s1306_s6 + $0x94] sm:$0xf]  ;;  %v935_v48 = vld [vmem:[%s1306_s6 + $0x98] sm:$0xf0]  ;;  %v934_v51 = vor.u32 %v1011_v44, %v933_v42  ;;  %v874_v52 = vor.u32 %v994_v45, %v871_v46  ;;  %v861_v53 = vld [vmem:[%s1306_s6] sm:$0xf] }
  0x5f   : > { %638 = vmatpush.bf16.msra.mxu0 %v886_v25  ;;  %v434_v50 = vld [vmem:[%s1294_s26] sm:$0xff]  ;;  %v993_v54 = vld [vmem:[%s1306_s6 + $0x4] sm:$0xf0]  ;;  %v925_v55 = vld [vmem:[%s1306_s6 + $0x80] sm:$0xf]  ;;  %v938_v56 = vor.u32 %v1010_v47, %v935_v48  ;;  %p987_p13 = scmp.ne.s32.totalorder %s1119_s14, 1 }
  0x60   : > { %651 = vmatpush.bf16.msra.mxu1 %v950_v26  ;;  %664 = vmatpush.bf16.msra.mxu2 %v890_v27  ;;  %v1009_v57 = vld [vmem:[%s1306_s6 + $0x84] sm:$0xf0]  ;;  %v992_v58 = vld [vmem:[%s1306_s6 + $0x4] sm:$0xf]  ;;  %v863_v59 = vld [vmem:[%s1306_s6 + $0x8] sm:$0xf0]  ;;  %v468_v62 = vunpack.c.l.b16 %v434_v50  ;;  %v862_v63 = vor.u32 %v993_v54, %v861_v53  ;;  %v469_v0 = vunpack.c.h.b16 %v434_v50 }
  0x61   : > { %677 = vmatpush.bf16.msra.mxu3 %v954_v31  ;;  %v1008_v60 = vld [vmem:[%s1306_s6 + $0x84] sm:$0xf]  ;;  %v927_v61 = vld [vmem:[%s1306_s6 + $0x88] sm:$0xf0]  ;;  %v926_v1 = vor.u32 %v1009_v57, %v925_v55  ;;  %v866_v2 = vor.u32 %v992_v58, %v863_v59  ;;  %v432_v7 = vld [vmem:[#allocation2] sm:$0xff] }
  0x62   : > { %v930_v3 = vor.u32 %v1008_v60, %v927_v61  ;;  %v470_v4 = vpack.c.b16 %v468_v62, %v468_v62  ;;  %v471_v5 = vpack.c.b16 %v469_v0, %v469_v0  ;;  %v433_v12 = vld [vmem:[#allocation2 + $0x8] sm:$0xff] }
  0x63   : > { %639 = vmatpush.bf16.msra.mxu0 %v878_v37 }
  0x64   : > { %652 = vmatpush.bf16.msra.mxu1 %v942_v38  ;;  %665 = vmatpush.bf16.msra.mxu2 %v882_v39 }
  0x65   : > { %678 = vmatpush.bf16.msra.mxu3 %v946_v43 }
  0x67   : > { %640 = vmatpush.bf16.msra.mxu0 %v870_v49 }
  0x68   : > { %653 = vmatpush.bf16.msra.mxu1 %v934_v51  ;;  %666 = vmatpush.bf16.msra.mxu2 %v874_v52 }
  0x69   : > { %679 = vmatpush.bf16.msra.mxu3 %v938_v56 }
  0x6b   : > { %641 = vmatpush.bf16.msra.mxu0 %v862_v63 }
  0x6c   : > { %654 = vmatpush.bf16.msra.mxu1 %v926_v1  ;;  %667 = vmatpush.bf16.msra.mxu2 %v866_v2 }
  0x6d   : > { %680 = vmatpush.bf16.msra.mxu3 %v930_v3 }
  0x6e   : > { %642 = vmatmul.bf16.vlgmr.msra.gmra.mxu0 %v470_v4 }
  0x6f   : > { %655 = vmatmul.bf16.vlgmr.msra.gmra.mxu1 %v471_v5  ;;  %668 = vmatmul.bf16.vlgmr.msra.gmra.mxu2 %v470_v4 }
  0x70   : > { %681 = vmatmul.bf16.vlgmr.msra.gmra.mxu3 %v471_v5 }
  0xeb   : > { %v643_v6 = vpop.f32.mrf.mxu0 }
  0xec   : > { %v656_v8 = vpop.f32.mrf.mxu1 }
  0xed   : > { %v657_v9 = vadd.f32 %v656_v8, %v643_v6 }
  0xef   : > { %v686_v10 = vadd.f32 %v657_v9, %v432_v7 }
  0xf1   : > { %688 = vst [vmem:[#allocation2] sm:$0xff] %v686_v10 }
  0xf2   : > { %v669_v11 = vpop.f32.mrf.mxu2 }
  0xf3   : > { %v682_v13 = vpop.f32.mrf.mxu3  ;;  %v645_v14 = vpop.f32.mrf.mxu0 }
  0xf4   : > { %v683_v15 = vadd.f32 %v682_v13, %v669_v11  ;;  %v658_v16 = vpop.f32.mrf.mxu1 }
  0xf6   : > { %v687_v17 = vadd.f32 %v683_v15, %v433_v12 }
  0xf7   : > { %693 = sbr.rel (%p987_p13) target bundleno = 263 (0x107), region = 78 }
  0xf8   : > { %689 = vst [vmem:[#allocation2 + $0x8] sm:$0xff] %v687_v17 }
  0xfa   : > { %v671_v18 = vpop.f32.mrf.mxu2 }
  0xfb   : > { %v684_v19 = vpop.f32.mrf.mxu3 }
  0xfc   : > { %v694_v20 = vld [vmem:[#allocation2] sm:$0xff] }
  0xfd   : > { %v696_v22 = vld [vmem:[%s1299_s4] ss:$2 sm:$0x3]  ;;  %v988_v25 = vld [vmem:[%s1299_s4 + $0x1] ss:$2 sm:$0x3] }
  0xfe   : > { %v698_v23 = vperm.slane %v696_v22, 0  ;;  %v699_v24 = vperm.slane %v696_v22, 1  ;;  %v707_v26 = vperm.slane %v988_v25, 0  ;;  %v708_v27 = vperm.slane %v988_v25, 1 }
  0xff   : > { %v695_v21 = vld [vmem:[#allocation2 + $0x8] sm:$0xff] }
 0x100   : > { %v702_v28 = vmul.f32 %v698_v23, %v694_v20  ;;  %v703_v29 = vmul.f32 %v699_v24, %v695_v21 }
 0x102   : > { %v711_v30 = vadd.f32 %v707_v26, %v702_v28  ;;  %v712_v31 = vadd.f32 %v708_v27, %v703_v29 }
 0x104   : > { %v713_v32 = vpack.c.bf16 %v712_v31, %v711_v30 }
 0x106   : > { %714 = vst [vmem:[%s1304_s15] sm:$0xff] %v713_v32 }
 0x107 PF: > { %s13_s18 = sadd.s32 1, %s1135_s18   ;;  %s1403_s12 = smov %s1115_s13 }
 0x108   : > { %p10_p0 = scmp.ge.s32.totalorder %s13_s18, 10   ;;  %s1404_s13 = smov %s1209_s25 }
 0x109   : > { %s1405_s14 = smov %s1127_s16  ;;  %s1406_s15 = smov %s1131_s17 }
 0x10a   : > { %s1407_s16 = smov %s1410_s19  ;;  %s1408_s17 = smov %s1414_s20 }
 0x10b   :  { %12 = sbr.rel (!%p10_p0) target bundleno = 4 (0x4), region = 120 }

// kernel: _lambda_.30
= control target key start
LH: loop header
LB: loop body
LE: loop exit
PB: predicated region body
PF: predicated region fallthrough
CT: control target
= control target key end

     0   :  { %s1253_s15 = smov 0   ;;  %s1255_s16 = smov 0   ;;  %s1500_s0 = inlined_call_operand.vmem [shape: bf16[8,512], index: 0, kind: input, shape index: {}]   ;;  %s1501_s1 = inlined_call_operand.vmem [shape: bf16[512,1024], index: 1, kind: input, shape index: {}]   ;;  %s1502_s2 = inlined_call_operand.vmem [shape: f32[2,1024], index: 2, kind: input, shape index: {}]   ;;  %s1503_s3 = inlined_call_operand.vmem [shape: bf16[8,1024], index: 3, kind: input, shape index: {}]   ;;  %s1504_s4 = inlined_call_operand.vmem [shape: bf16[8,1024], index: 4, kind: output, shape index: {}]  }
   0x1   :  { %s1257_s17 = smov 0   ;;  %s1259_s18 = smov 0  }
   0x2   :  { %s1261_s19 = smov 0   ;;  %s1263_s20 = smov 0  }
   0x3   :  { %s1265_s21 = smov 0  }
   0x4 LB: > { %s26_s22 = sadd.s32 1, %s1217_s19  ;;  %s29_s23 = sadd.s32 1, %s1221_s20  ;;  %s1225_s21 = sphi %s1265_s21, %s14_s21   ;;  %s1221_s20 = sphi %s1263_s20, %s1510_s20   ;;  %s1217_s19 = sphi %s1261_s19, %s1509_s19   ;;  %s1213_s18 = sphi %s1259_s18, %s1508_s18   ;;  %s1209_s17 = sphi %s1257_s17, %s1507_s17   ;;  %s1205_s16 = sphi %s1255_s16, %s1506_s16   ;;  %s1201_s15 = sphi %s1253_s15, %s1505_s15  }
   0x5   : > { %p27_p0 = scmp.ge.s32.totalorder %s26_s22, 2  ;;  %p77_p1 = scmp.ne.s32.totalorder %s1205_s16, %s1201_s15 }
   0x6   : > { %p78_p2 = scmp.eq.s32.totalorder %s1225_s21, 0  ;;  %s70_s27 = sadd.s32 1, %s1205_s16 }
   0x7   : > { %s1512_s22 = smov (%p27_p0, %s26_s22), 0  ;;  %s1514_s23 = smov (!%p27_p0, %s29_s23), %s1221_s20 }
   0x8   : > { %p79_p3 = por %p78_p2, %p77_p1  ;;  %p31_p4 = scmp.ge.s32.totalorder %s1514_s23, 4 }
   0x9   : > { %s65_s24 = ssub.s32 %s1217_s19, %s1512_s22  ;;  %p932_p6 = scmp.ge.s32.totalorder %s1225_s21, 8 }
   0xa   : > { %s1516_s23 = smov (%p31_p4, %s1514_s23), 0 }
   0xb   : > { %s66_s25 = ssub.s32 %s1221_s20, %s1516_s23  ;;  %185 = sbr.rel (%p932_p6) target bundleno = 55 (0x37), region = 16 }
   0xc   : > { %s67_s26 = sor.u32 %s66_s25, %s65_s24 }
   0xd   : > { %p68_p5 = scmp.eq.s32.totalorder %s67_s26, 0 }
   0xf   : > { %s1304_s28 = scalar_select %p68_p5, %s1205_s16, %s70_s27  }
  0x10   : > { %201 = sbr.rel (!%p79_p3) target bundleno = 55 (0x37), region = 24  ;;  %s203_s29 = sand.u32 (%p79_p3), 1, %s1205_s16  }
  0x11   : > { %s935_s30 = sshll.u32 (%p79_p3), %s1221_s20, 1  ;;  %s933_s5 = sshll.u32 (%p79_p3), %s203_s29, 8 }
  0x12   : > { %s1081_s6 = sshll.u32 (%p79_p3), %s1217_s19, 8  ;;  %s1318_s12 = scalar_lea.vmem (%p79_p3), [#allocation3], %s933_s5 }
  0x13   : > { %s209_s7 = sadd.s32 (%p79_p3), %s1081_s6, %s935_s30 }
  0x14   : > { %s937_s8 = sshll.u32 (%p79_p3), %s209_s7, 2 }
  0x15   : > { %s1313_s11 = scalar_lea.vmem %s1501_s1, %s937_s8 }
  0x16   : > { %v302_v0 = vld [vmem:[%s1313_s11] sm:$0xff] }
  0x17   : > { %v304_v1 = vld [vmem:[%s1313_s11 + $0x20] sm:$0xff]  ;;  %303 = vst [vmem:[%s1318_s12] sm:$0xff] %v302_v0 }
  0x18   : > { %v306_v2 = vld [vmem:[%s1313_s11 + $0x40] sm:$0xff]  ;;  %305 = vst [vmem:[%s1318_s12 + $0x8] sm:$0xff] %v304_v1 }
  0x19   : > { %v308_v3 = vld [vmem:[%s1313_s11 + $0x60] sm:$0xff]  ;;  %307 = vst [vmem:[%s1318_s12 + $0x10] sm:$0xff] %v306_v2 }
  0x1a   : > { %v310_v4 = vld [vmem:[%s1313_s11 + $0x80] sm:$0xff]  ;;  %309 = vst [vmem:[%s1318_s12 + $0x18] sm:$0xff] %v308_v3 }
  0x1b   : > { %v312_v5 = vld [vmem:[%s1313_s11 + $0xa0] sm:$0xff]  ;;  %311 = vst [vmem:[%s1318_s12 + $0x20] sm:$0xff] %v310_v4 }
  0x1c   : > { %v314_v6 = vld [vmem:[%s1313_s11 + $0xc0] sm:$0xff]  ;;  %313 = vst [vmem:[%s1318_s12 + $0x28] sm:$0xff] %v312_v5 }
  0x1d   : > { %v316_v7 = vld [vmem:[%s1313_s11 + $0xe0] sm:$0xff]  ;;  %315 = vst [vmem:[%s1318_s12 + $0x30] sm:$0xff] %v314_v6 }
  0x1e   : > { %v318_v8 = vld [vmem:[%s1313_s11 + $0x100] sm:$0xff]  ;;  %317 = vst [vmem:[%s1318_s12 + $0x38] sm:$0xff] %v316_v7 }
  0x1f   : > { %v320_v9 = vld [vmem:[%s1313_s11 + $0x120] sm:$0xff]  ;;  %319 = vst [vmem:[%s1318_s12 + $0x40] sm:$0xff] %v318_v8 }
  0x20   : > { %v322_v10 = vld [vmem:[%s1313_s11 + $0x140] sm:$0xff]  ;;  %321 = vst [vmem:[%s1318_s12 + $0x48] sm:$0xff] %v320_v9 }
  0x21   : > { %v324_v11 = vld [vmem:[%s1313_s11 + $0x160] sm:$0xff]  ;;  %323 = vst [vmem:[%s1318_s12 + $0x50] sm:$0xff] %v322_v10 }
  0x22   : > { %v326_v12 = vld [vmem:[%s1313_s11 + $0x180] sm:$0xff]  ;;  %325 = vst [vmem:[%s1318_s12 + $0x58] sm:$0xff] %v324_v11 }
  0x23   : > { %v328_v13 = vld [vmem:[%s1313_s11 + $0x1a0] sm:$0xff]  ;;  %327 = vst [vmem:[%s1318_s12 + $0x60] sm:$0xff] %v326_v12 }
  0x24   : > { %v330_v14 = vld [vmem:[%s1313_s11 + $0x1c0] sm:$0xff]  ;;  %329 = vst [vmem:[%s1318_s12 + $0x68] sm:$0xff] %v328_v13 }
  0x25   : > { %v332_v15 = vld [vmem:[%s1313_s11 + $0x1e0] sm:$0xff]  ;;  %331 = vst [vmem:[%s1318_s12 + $0x70] sm:$0xff] %v330_v14 }
  0x26   : > { %v334_v16 = vld [vmem:[%s1313_s11 + $0x200] sm:$0xff]  ;;  %333 = vst [vmem:[%s1318_s12 + $0x78] sm:$0xff] %v332_v15 }
  0x27   : > { %v336_v17 = vld [vmem:[%s1313_s11 + $0x220] sm:$0xff]  ;;  %335 = vst [vmem:[%s1318_s12 + $0x80] sm:$0xff] %v334_v16 }
  0x28   : > { %v338_v18 = vld [vmem:[%s1313_s11 + $0x240] sm:$0xff]  ;;  %337 = vst [vmem:[%s1318_s12 + $0x88] sm:$0xff] %v336_v17 }
  0x29   : > { %v340_v19 = vld [vmem:[%s1313_s11 + $0x260] sm:$0xff]  ;;  %339 = vst [vmem:[%s1318_s12 + $0x90] sm:$0xff] %v338_v18 }
  0x2a   : > { %v342_v20 = vld [vmem:[%s1313_s11 + $0x280] sm:$0xff]  ;;  %341 = vst [vmem:[%s1318_s12 + $0x98] sm:$0xff] %v340_v19 }
  0x2b   : > { %v344_v21 = vld [vmem:[%s1313_s11 + $0x2a0] sm:$0xff]  ;;  %343 = vst [vmem:[%s1318_s12 + $0xa0] sm:$0xff] %v342_v20 }
  0x2c   : > { %v346_v22 = vld [vmem:[%s1313_s11 + $0x2c0] sm:$0xff]  ;;  %345 = vst [vmem:[%s1318_s12 + $0xa8] sm:$0xff] %v344_v21 }
  0x2d   : > { %v348_v23 = vld [vmem:[%s1313_s11 + $0x2e0] sm:$0xff]  ;;  %347 = vst [vmem:[%s1318_s12 + $0xb0] sm:$0xff] %v346_v22 }
  0x2e   : > { %v350_v24 = vld [vmem:[%s1313_s11 + $0x300] sm:$0xff]  ;;  %349 = vst [vmem:[%s1318_s12 + $0xb8] sm:$0xff] %v348_v23 }
  0x2f   : > { %v352_v25 = vld [vmem:[%s1313_s11 + $0x320] sm:$0xff]  ;;  %351 = vst [vmem:[%s1318_s12 + $0xc0] sm:$0xff] %v350_v24 }
  0x30   : > { %v354_v26 = vld [vmem:[%s1313_s11 + $0x340] sm:$0xff]  ;;  %353 = vst [vmem:[%s1318_s12 + $0xc8] sm:$0xff] %v352_v25 }
  0x31   : > { %v356_v27 = vld [vmem:[%s1313_s11 + $0x360] sm:$0xff]  ;;  %355 = vst [vmem:[%s1318_s12 + $0xd0] sm:$0xff] %v354_v26 }
  0x32   : > { %v358_v28 = vld [vmem:[%s1313_s11 + $0x380] sm:$0xff]  ;;  %357 = vst [vmem:[%s1318_s12 + $0xd8] sm:$0xff] %v356_v27 }
  0x33   : > { %v360_v29 = vld [vmem:[%s1313_s11 + $0x3a0] sm:$0xff]  ;;  %359 = vst [vmem:[%s1318_s12 + $0xe0] sm:$0xff] %v358_v28 }
  0x34   : > { %v362_v30 = vld [vmem:[%s1313_s11 + $0x3c0] sm:$0xff]  ;;  %361 = vst [vmem:[%s1318_s12 + $0xe8] sm:$0xff] %v360_v29 }
  0x35   : > { %v364_v31 = vld [vmem:[%s1313_s11 + $0x3e0] sm:$0xff]  ;;  %363 = vst [vmem:[%s1318_s12 + $0xf0] sm:$0xff] %v362_v30 }
  0x36   : > { %365 = vst [vmem:[%s1318_s12 + $0xf8] sm:$0xff] %v364_v31 }
  0x37 PF: > { %p938_p7 = scmp.ge.s32.totalorder %s1225_s21, 1  ;;  %p392_p8 = scmp.lt.s32.totalorder %s1225_s21, 9 }
  0x39   : > { %p393_p9 = pnand %p938_p7, %p392_p8 }
  0x3a   : > { %s399_s13 = sand.u32 (!%p393_p9), 1, %s1201_s15   ;;  %s940_s14 = sshll.u32 (!%p393_p9), %s1209_s17, 1 }
  0x3b   : > { %396 = sbr.rel (%p393_p9) target bundleno = 268 (0x10c), region = 70  ;;  %s939_s24 = sshll.u32 (!%p393_p9), %s399_s13, 8 }
  0x3c   : > { %p454_p10 = scmp.lt.s32.totalorder (!%p393_p9), %s940_s14, 3  ;;  %s942_s25 = sshll.u32 (!%p393_p9), %s1213_s18, 1 }
  0x3d   : > { %p464_p11 = scmp.lt.s32.totalorder (!%p393_p9), %s942_s25, 7  ;;  %p948_p12 = scmp.ne.s32.totalorder (!%p393_p9), %s1209_s17, 0 }
  0x40   : > { %s1518_s14 = smov (!%p454_p10, %s940_s14), 3  ;;  %s1520_s25 = smov (!%p464_p11, %s942_s25), 7 }
  0x41   : > { %s941_s26 = sshll.u32 %s1518_s14, 2  ;;  %s943_s5 = sshll.u32 %s1520_s25, 1 }
  0x42   : > { %s1389_s30 = scalar_lea.vmem %s1500_s0, %s941_s26  ;;  %s945_s6 = sshll.u32 %s1520_s25, 2 }
  0x43   : > { %s1394_s9 = scalar_lea.vmem %s1502_s2, %s943_s5  ;;  %s1399_s18 = scalar_lea.vmem %s1503_s3, %s945_s6 }
  0x44   : > { %s1404_s13 = scalar_lea.vmem %s1504_s4, %s945_s6  ;;  %s1406_s14 = scalar_lea.vmem [#allocation3], %s939_s24 }
  0x45   : > { %492 = sbr.rel (%p948_p12) target bundleno = 77 (0x4d), region = 78 }
  0x4a   : > { %v1227_v32 = vmov 0.0  }
  0x4b   : > { %493 = vst [vmem:[#allocation2] sm:$0xff] %v1227_v32 }
  0x4c   : > { %494 = vst [vmem:[#allocation2 + $0x8] sm:$0xff] %v1227_v32 }
  0x4d PF: > { %v1007_v33 = vld [vmem:[%s1406_s14 + $0x70] sm:$0xf]  ;;  %v1097_v34 = vld [vmem:[%s1406_s14 + $0x74] sm:$0xf0]  ;;  %v1096_v38 = vld [vmem:[%s1406_s14 + $0x74] sm:$0xf] }
  0x4e   : > { %v1071_v35 = vld [vmem:[%s1406_s14 + $0xf0] sm:$0xf]  ;;  %v1008_v36 = vor.u32 %v1097_v34, %v1007_v33  ;;  %v1113_v37 = vld [vmem:[%s1406_s14 + $0xf4] sm:$0xf0]  ;;  %v1009_v39 = vld [vmem:[%s1406_s14 + $0x78] sm:$0xf0] }
  0x4f   : > { %v1072_v40 = vor.u32 %v1113_v37, %v1071_v35  ;;  %v1012_v41 = vor.u32 %v1096_v38, %v1009_v39  ;;  %v1112_v42 = vld [vmem:[%s1406_s14 + $0xf4] sm:$0xf]  ;;  %v1073_v43 = vld [vmem:[%s1406_s14 + $0xf8] sm:$0xf0]  ;;  %v999_v44 = vld [vmem:[%s1406_s14 + $0x60] sm:$0xf] }
  0x50   : > { %697 = vmatpush.bf16.msra.mxu0 %v1008_v36  ;;  %v1076_v45 = vor.u32 %v1112_v42, %v1073_v43  ;;  %v1095_v46 = vld [vmem:[%s1406_s14 + $0x64] sm:$0xf0]  ;;  %v1063_v47 = vld [vmem:[%s1406_s14 + $0xe0] sm:$0xf]  ;;  %v1094_v51 = vld [vmem:[%s1406_s14 + $0x64] sm:$0xf] }
  0x51   : > { %v1111_v48 = vld [vmem:[%s1406_s14 + $0xe4] sm:$0xf0]  ;;  %710 = vmatpush.bf16.msra.mxu1 %v1072_v40  ;;  %723 = vmatpush.bf16.msra.mxu2 %v1012_v41  ;;  %v1000_v49 = vor.u32 %v1095_v46, %v999_v44  ;;  %v1001_v52 = vld [vmem:[%s1406_s14 + $0x68] sm:$0xf0]  ;;  %v1110_v53 = vld [vmem:[%s1406_s14 + $0xe4] sm:$0xf] }
  0x52   : > { %v1064_v50 = vor.u32 %v1111_v48, %v1063_v47  ;;  %736 = vmatpush.bf16.msra.mxu3 %v1076_v45  ;;  %v1004_v54 = vor.u32 %v1094_v51, %v1001_v52  ;;  %v1065_v55 = vld [vmem:[%s1406_s14 + $0xe8] sm:$0xf0]  ;;  %v991_v56 = vld [vmem:[%s1406_s14 + $0x50] sm:$0xf]  ;;  %v1093_v57 = vld [vmem:[%s1406_s14 + $0x54] sm:$0xf0] }
  0x53   : > { %v1068_v58 = vor.u32 %v1110_v53, %v1065_v55  ;;  %v1055_v59 = vld [vmem:[%s1406_s14 + $0xd0] sm:$0xf]  ;;  %v1109_v60 = vld [vmem:[%s1406_s14 + $0xd4] sm:$0xf0]  ;;  %v1092_v61 = vld [vmem:[%s1406_s14 + $0x54] sm:$0xf]  ;;  %v992_v62 = vor.u32 %v1093_v57, %v991_v56 }
  0x54   : > { %698 = vmatpush.bf16.msra.mxu0 %v1000_v49  ;;  %v993_v63 = vld [vmem:[%s1406_s14 + $0x58] sm:$0xf0]  ;;  %v1108_v0 = vld [vmem:[%s1406_s14 + $0xd4] sm:$0xf]  ;;  %v1056_v2 = vor.u32 %v1109_v60, %v1055_v59  ;;  %v983_v4 = vld [vmem:[%s1406_s14 + $0x40] sm:$0xf] }
  0x55   : > { %v1057_v1 = vld [vmem:[%s1406_s14 + $0xd8] sm:$0xf0]  ;;  %711 = vmatpush.bf16.msra.mxu1 %v1064_v50  ;;  %724 = vmatpush.bf16.msra.mxu2 %v1004_v54  ;;  %v996_v3 = vor.u32 %v1092_v61, %v993_v63  ;;  %v1091_v5 = vld [vmem:[%s1406_s14 + $0x44] sm:$0xf0]  ;;  %v1047_v6 = vld [vmem:[%s1406_s14 + $0xc0] sm:$0xf] }
  0x56   : > { %737 = vmatpush.bf16.msra.mxu3 %v1068_v58  ;;  %v1060_v7 = vor.u32 %v1108_v0, %v1057_v1  ;;  %v1107_v8 = vld [vmem:[%s1406_s14 + $0xc4] sm:$0xf0]  ;;  %v1090_v9 = vld [vmem:[%s1406_s14 + $0x44] sm:$0xf]  ;;  %v985_v10 = vld [vmem:[%s1406_s14 + $0x48] sm:$0xf0]  ;;  %v984_v13 = vor.u32 %v1091_v5, %v983_v4 }
  0x57   : > { %v1106_v11 = vld [vmem:[%s1406_s14 + $0xc4] sm:$0xf]  ;;  %v1049_v12 = vld [vmem:[%s1406_s14 + $0xc8] sm:$0xf0]  ;;  %v1048_v14 = vor.u32 %v1107_v8, %v1047_v6  ;;  %v988_v15 = vor.u32 %v1090_v9, %v985_v10  ;;  %v975_v16 = vld [vmem:[%s1406_s14 + $0x30] sm:$0xf] }
  0x58   : > { %699 = vmatpush.bf16.msra.mxu0 %v992_v62  ;;  %v1089_v17 = vld [vmem:[%s1406_s14 + $0x34] sm:$0xf0]  ;;  %v1039_v18 = vld [vmem:[%s1406_s14 + $0xb0] sm:$0xf]  ;;  %v1052_v19 = vor.u32 %v1106_v11, %v1049_v12  ;;  %v1088_v21 = vld [vmem:[%s1406_s14 + $0x34] sm:$0xf] }
  0x59   : > { %712 = vmatpush.bf16.msra.mxu1 %v1056_v2  ;;  %725 = vmatpush.bf16.msra.mxu2 %v996_v3  ;;  %v1105_v20 = vld [vmem:[%s1406_s14 + $0xb4] sm:$0xf0]  ;;  %v977_v22 = vld [vmem:[%s1406_s14 + $0x38] sm:$0xf0]  ;;  %v1104_v23 = vld [vmem:[%s1406_s14 + $0xb4] sm:$0xf]  ;;  %v976_v25 = vor.u32 %v1089_v17, %v975_v16 }
  0x5a   : > { %738 = vmatpush.bf16.msra.mxu3 %v1060_v7  ;;  %v1041_v24 = vld [vmem:[%s1406_s14 + $0xb8] sm:$0xf0]  ;;  %v1040_v26 = vor.u32 %v1105_v20, %v1039_v18  ;;  %v980_v27 = vor.u32 %v1088_v21, %v977_v22  ;;  %v967_v28 = vld [vmem:[%s1406_s14 + $0x20] sm:$0xf]  ;;  %v1087_v29 = vld [vmem:[%s1406_s14 + $0x24] sm:$0xf0] }
  0x5b   : > { %v1031_v30 = vld [vmem:[%s1406_s14 + $0xa0] sm:$0xf]  ;;  %v1044_v31 = vor.u32 %v1104_v23, %v1041_v24  ;;  %v1103_v32 = vld [vmem:[%s1406_s14 + $0xa4] sm:$0xf0]  ;;  %v1086_v33 = vld [vmem:[%s1406_s14 + $0x24] sm:$0xf]  ;;  %v968_v37 = vor.u32 %v1087_v29, %v967_v28 }
  0x5c   : > { %700 = vmatpush.bf16.msra.mxu0 %v984_v13  ;;  %v969_v34 = vld [vmem:[%s1406_s14 + $0x28] sm:$0xf0]  ;;  %v1102_v35 = vld [vmem:[%s1406_s14 + $0xa4] sm:$0xf]  ;;  %v1032_v38 = vor.u32 %v1103_v32, %v1031_v30  ;;  %v959_v40 = vld [vmem:[%s1406_s14 + $0x10] sm:$0xf] }
  0x5d   : > { %713 = vmatpush.bf16.msra.mxu1 %v1048_v14  ;;  %726 = vmatpush.bf16.msra.mxu2 %v988_v15  ;;  %v1033_v36 = vld [vmem:[%s1406_s14 + $0xa8] sm:$0xf0]  ;;  %v972_v39 = vor.u32 %v1086_v33, %v969_v34  ;;  %v1085_v41 = vld [vmem:[%s1406_s14 + $0x14] sm:$0xf0]  ;;  %v1023_v42 = vld [vmem:[%s1406_s14 + $0x90] sm:$0xf] }
  0x5e   : > { %739 = vmatpush.bf16.msra.mxu3 %v1052_v19  ;;  %v1036_v43 = vor.u32 %v1102_v35, %v1033_v36  ;;  %v1101_v44 = vld [vmem:[%s1406_s14 + $0x94] sm:$0xf0]  ;;  %v1084_v45 = vld [vmem:[%s1406_s14 + $0x14] sm:$0xf]  ;;  %v961_v46 = vld [vmem:[%s1406_s14 + $0x18] sm:$0xf0]  ;;  %v960_v49 = vor.u32 %v1085_v41, %v959_v40 }
  0x5f   : > { %v1100_v47 = vld [vmem:[%s1406_s14 + $0x94] sm:$0xf]  ;;  %v1025_v48 = vld [vmem:[%s1406_s14 + $0x98] sm:$0xf0]  ;;  %v1024_v51 = vor.u32 %v1101_v44, %v1023_v42  ;;  %v964_v52 = vor.u32 %v1084_v45, %v961_v46  ;;  %v951_v53 = vld [vmem:[%s1406_s14] sm:$0xf] }
  0x60   : > { %701 = vmatpush.bf16.msra.mxu0 %v976_v25  ;;  %v497_v50 = vld [vmem:[%s1389_s30] sm:$0xff]  ;;  %v1083_v54 = vld [vmem:[%s1406_s14 + $0x4] sm:$0xf0]  ;;  %v1015_v55 = vld [vmem:[%s1406_s14 + $0x80] sm:$0xf]  ;;  %v1028_v56 = vor.u32 %v1100_v47, %v1025_v48  ;;  %p1077_p13 = scmp.ne.s32.totalorder %s1209_s17, 1 }
  0x61   : > { %714 = vmatpush.bf16.msra.mxu1 %v1040_v26  ;;  %727 = vmatpush.bf16.msra.mxu2 %v980_v27  ;;  %v1099_v57 = vld [vmem:[%s1406_s14 + $0x84] sm:$0xf0]  ;;  %v1082_v58 = vld [vmem:[%s1406_s14 + $0x4] sm:$0xf]  ;;  %v953_v59 = vld [vmem:[%s1406_s14 + $0x8] sm:$0xf0]  ;;  %v531_v62 = vunpack.c.l.b16 %v497_v50  ;;  %v952_v63 = vor.u32 %v1083_v54, %v951_v53  ;;  %v532_v0 = vunpack.c.h.b16 %v497_v50 }
  0x62   : > { %740 = vmatpush.bf16.msra.mxu3 %v1044_v31  ;;  %v1098_v60 = vld [vmem:[%s1406_s14 + $0x84] sm:$0xf]  ;;  %v1017_v61 = vld [vmem:[%s1406_s14 + $0x88] sm:$0xf0]  ;;  %v1016_v1 = vor.u32 %v1099_v57, %v1015_v55  ;;  %v956_v2 = vor.u32 %v1082_v58, %v953_v59  ;;  %v495_v7 = vld [vmem:[#allocation2] sm:$0xff] }
  0x63   : > { %v1020_v3 = vor.u32 %v1098_v60, %v1017_v61  ;;  %v533_v4 = vpack.c.b16 %v531_v62, %v531_v62  ;;  %v534_v5 = vpack.c.b16 %v532_v0, %v532_v0  ;;  %v496_v12 = vld [vmem:[#allocation2 + $0x8] sm:$0xff] }
  0x64   : > { %702 = vmatpush.bf16.msra.mxu0 %v968_v37 }
  0x65   : > { %715 = vmatpush.bf16.msra.mxu1 %v1032_v38  ;;  %728 = vmatpush.bf16.msra.mxu2 %v972_v39 }
  0x66   : > { %741 = vmatpush.bf16.msra.mxu3 %v1036_v43 }
  0x68   : > { %703 = vmatpush.bf16.msra.mxu0 %v960_v49 }
  0x69   : > { %716 = vmatpush.bf16.msra.mxu1 %v1024_v51  ;;  %729 = vmatpush.bf16.msra.mxu2 %v964_v52 }
  0x6a   : > { %742 = vmatpush.bf16.msra.mxu3 %v1028_v56 }
  0x6c   : > { %704 = vmatpush.bf16.msra.mxu0 %v952_v63 }
  0x6d   : > { %717 = vmatpush.bf16.msra.mxu1 %v1016_v1  ;;  %730 = vmatpush.bf16.msra.mxu2 %v956_v2 }
  0x6e   : > { %743 = vmatpush.bf16.msra.mxu3 %v1020_v3 }
  0x6f   : > { %705 = vmatmul.bf16.vlgmr.msra.gmra.mxu0 %v533_v4 }
  0x70   : > { %718 = vmatmul.bf16.vlgmr.msra.gmra.mxu1 %v534_v5  ;;  %731 = vmatmul.bf16.vlgmr.msra.gmra.mxu2 %v533_v4 }
  0x71   : > { %744 = vmatmul.bf16.vlgmr.msra.gmra.mxu3 %v534_v5 }
  0xec   : > { %v706_v6 = vpop.f32.mrf.mxu0 }
  0xed   : > { %v719_v8 = vpop.f32.mrf.mxu1 }
  0xee   : > { %v720_v9 = vadd.f32 %v719_v8, %v706_v6 }
  0xf0   : > { %v749_v10 = vadd.f32 %v720_v9, %v495_v7 }
  0xf2   : > { %751 = vst [vmem:[#allocation2] sm:$0xff] %v749_v10 }
  0xf3   : > { %v732_v11 = vpop.f32.mrf.mxu2 }
  0xf4   : > { %v745_v13 = vpop.f32.mrf.mxu3  ;;  %v708_v14 = vpop.f32.mrf.mxu0 }
  0xf5   : > { %v746_v15 = vadd.f32 %v745_v13, %v732_v11  ;;  %v721_v16 = vpop.f32.mrf.mxu1 }
  0xf7   : > { %v750_v17 = vadd.f32 %v746_v15, %v496_v12 }
  0xf8   : > { %756 = sbr.rel (%p1077_p13) target bundleno = 268 (0x10c), region = 82 }
  0xf9   : > { %752 = vst [vmem:[#allocation2 + $0x8] sm:$0xff] %v750_v17 }
  0xfb   : > { %v734_v18 = vpop.f32.mrf.mxu2 }
  0xfc   : > { %v747_v19 = vpop.f32.mrf.mxu3 }
  0xfd   : > { %v757_v20 = vld [vmem:[#allocation2] sm:$0xff] }
  0xfe   : > { %v759_v22 = vld [vmem:[%s1394_s9] ss:$2 sm:$0x3]  ;;  %v1078_v25 = vld [vmem:[%s1394_s9 + $0x1] ss:$2 sm:$0x3] }
  0xff   : > { %v761_v23 = vperm.slane %v759_v22, 0  ;;  %v762_v24 = vperm.slane %v759_v22, 1  ;;  %v776_v26 = vld [vmem:[%s1399_s18] sm:$0xff]  ;;  %v770_v27 = vperm.slane %v1078_v25, 0  ;;  %v771_v28 = vperm.slane %v1078_v25, 1 }
 0x100   : > { %v758_v21 = vld [vmem:[#allocation2 + $0x8] sm:$0xff]  ;;  %v777_v31 = vunpack.c.l.bf16 %v776_v26  ;;  %v778_v32 = vunpack.c.h.bf16 %v776_v26 }
 0x101   : > { %v765_v29 = vmul.f32 %v761_v23, %v757_v20  ;;  %v766_v30 = vmul.f32 %v762_v24, %v758_v21 }
 0x103   : > { %v774_v33 = vadd.f32 %v770_v27, %v765_v29  ;;  %v775_v34 = vadd.f32 %v771_v28, %v766_v30 }
 0x105   : > { %v779_v35 = vadd.f32 %v777_v31, %v774_v33  ;;  %v780_v36 = vadd.f32 %v778_v32, %v775_v34 }
 0x107   : > { %v781_v37 = vmax.f32 %v779_v35, 0.0  ;;  %v782_v38 = vmax.f32 %v780_v36, 0.0 }
 0x109   : > { %v783_v39 = vpack.c.bf16 %v782_v38, %v781_v37 }
 0x10b   : > { %784 = vst [vmem:[%s1404_s13] sm:$0xff] %v783_v39 }
 0x10c PF: > { %s14_s21 = sadd.s32 1, %s1225_s21   ;;  %s1505_s15 = smov %s1205_s16 }
 0x10d   : > { %p11_p0 = scmp.ge.s32.totalorder %s14_s21, 10   ;;  %s1506_s16 = smov %s1304_s28 }
 0x10e   : > { %s1507_s17 = smov %s1217_s19  ;;  %s1508_s18 = smov %s1221_s20 }
 0x10f   : > { %s1509_s19 = smov %s1512_s22  ;;  %s1510_s20 = smov %s1516_s23 }
 0x110   :  { %13 = sbr.rel (!%p11_p0) target bundleno = 4 (0x4), region = 127 }

// kernel: _lambda_.31
= control target key start
LH: loop header
LB: loop body
LE: loop exit
PB: predicated region body
PF: predicated region fallthrough
CT: control target
= control target key end

     0   :  { %s964_s12 = smov 0   ;;  %s966_s13 = smov 0   ;;  %s1158_s0 = inlined_call_operand.vmem [shape: bf16[8,1024], index: 0, kind: input, shape index: {}]   ;;  %s1159_s1 = inlined_call_operand.vmem [shape: bf16[1024,896], index: 1, kind: input, shape index: {}]   ;;  %s1160_s2 = inlined_call_operand.vmem [shape: f32[2,896], index: 2, kind: input, shape index: {}]   ;;  %s1161_s3 = inlined_call_operand.vmem [shape: bf16[8,896], index: 3, kind: output, shape index: {}]  }
   0x1   :  { %s968_s14 = smov 0   ;;  %s970_s15 = smov 0  }
   0x2   :  { %s972_s16 = smov 0   ;;  %s974_s17 = smov 0  }
   0x3   :  { %s976_s18 = smov 0  }
   0x4 LB: > { %s25_s19 = sadd.s32 1, %s933_s16  ;;  %s28_s20 = sadd.s32 1, %s937_s17  ;;  %s941_s18 = sphi %s976_s18, %s13_s18   ;;  %s937_s17 = sphi %s974_s17, %s1167_s17   ;;  %s933_s16 = sphi %s972_s16, %s1166_s16   ;;  %s929_s15 = sphi %s970_s15, %s1165_s15   ;;  %s925_s14 = sphi %s968_s14, %s1164_s14   ;;  %s921_s13 = sphi %s966_s13, %s1163_s13   ;;  %s917_s12 = sphi %s964_s12, %s1162_s12  }
   0x5   : > { %p26_p0 = scmp.ge.s32.totalorder %s25_s19, 4  ;;  %p76_p1 = scmp.ne.s32.totalorder %s921_s13, %s917_s12 }
   0x6   : > { %p77_p2 = scmp.eq.s32.totalorder %s941_s18, 0  ;;  %s69_s24 = sadd.s32 1, %s921_s13 }
   0x7   : > { %s1169_s19 = smov (%p26_p0, %s25_s19), 0  ;;  %s1171_s20 = smov (!%p26_p0, %s28_s20), %s937_s17 }
   0x8   : > { %p78_p3 = por %p77_p2, %p76_p1  ;;  %p30_p4 = scmp.ge.s32.totalorder %s1171_s20, 7 }
   0x9   : > { %s64_s21 = ssub.s32 %s933_s16, %s1169_s19  ;;  %p732_p6 = scmp.ge.s32.totalorder %s941_s18, 28 }
   0xa   : > { %s1173_s20 = smov (%p30_p4, %s1171_s20), 0 }
   0xb   : > { %s65_s22 = ssub.s32 %s937_s17, %s1173_s20  ;;  %156 = sbr.rel (%p732_p6) target bundleno = 55 (0x37), region = 16 }
   0xc   : > { %s66_s23 = sor.u32 %s65_s22, %s64_s21 }
   0xd   : > { %p67_p5 = scmp.eq.s32.totalorder %s66_s23, 0 }
   0xf   : > { %s1015_s25 = scalar_select %p67_p5, %s921_s13, %s69_s24  }
  0x10   : > { %172 = sbr.rel (!%p78_p3) target bundleno = 55 (0x37), region = 24  ;;  %s174_s26 = sand.u32 (%p78_p3), 1, %s921_s13  }
  0x11   : > { %s827_s27 = smul.u32 (%p78_p3), 224, %s933_s16  ;;  %s733_s28 = sshll.u32 (%p78_p3), %s174_s26, 7 }
  0x12   : > { %s1029_s7 = scalar_lea.vmem (%p78_p3), [#allocation3], %s733_s28 }
  0x13   : > { %s179_s29 = sadd.s32 (%p78_p3), %s937_s17, %s827_s27 }
  0x14   : > { %s736_s30 = sshll.u32 (%p78_p3), %s179_s29, 2 }
  0x15   : > { %s1024_s6 = scalar_lea.vmem %s1159_s1, %s736_s30 }
  0x16   : > { %v198_v0 = vld [vmem:[%s1024_s6] sm:$0xf]  ;;  %v200_v1 = vld [vmem:[%s1024_s6 + $0x1c] sm:$0xf]  ;;  %v202_v2 = vld [vmem:[%s1024_s6 + $0x38] sm:$0xf] }
  0x17   : > { %199 = vst [vmem:[%s1029_s7] sm:$0xf] %v198_v0  ;;  %v204_v3 = vld [vmem:[%s1024_s6 + $0x54] sm:$0xf]  ;;  %v206_v4 = vld [vmem:[%s1024_s6 + $0x70] sm:$0xf] }
  0x18   : > { %201 = vst [vmem:[%s1029_s7 + $0x4] sm:$0xf] %v200_v1  ;;  %v208_v5 = vld [vmem:[%s1024_s6 + $0x8c] sm:$0xf]  ;;  %v210_v6 = vld [vmem:[%s1024_s6 + $0xa8] sm:$0xf] }
  0x19   : > { %203 = vst [vmem:[%s1029_s7 + $0x8] sm:$0xf] %v202_v2  ;;  %v212_v7 = vld [vmem:[%s1024_s6 + $0xc4] sm:$0xf]  ;;  %v214_v8 = vld [vmem:[%s1024_s6 + $0xe0] sm:$0xf] }
  0x1a   : > { %205 = vst [vmem:[%s1029_s7 + $0xc] sm:$0xf] %v204_v3  ;;  %v216_v9 = vld [vmem:[%s1024_s6 + $0xfc] sm:$0xf]  ;;  %v218_v10 = vld [vmem:[%s1024_s6 + $0x118] sm:$0xf] }
  0x1b   : > { %207 = vst [vmem:[%s1029_s7 + $0x10] sm:$0xf] %v206_v4  ;;  %v220_v11 = vld [vmem:[%s1024_s6 + $0x134] sm:$0xf]  ;;  %v222_v12 = vld [vmem:[%s1024_s6 + $0x150] sm:$0xf] }
  0x1c   : > { %209 = vst [vmem:[%s1029_s7 + $0x14] sm:$0xf] %v208_v5  ;;  %v224_v13 = vld [vmem:[%s1024_s6 + $0x16c] sm:$0xf]  ;;  %v226_v14 = vld [vmem:[%s1024_s6 + $0x188] sm:$0xf] }
  0x1d   : > { %211 = vst [vmem:[%s1029_s7 + $0x18] sm:$0xf] %v210_v6  ;;  %v228_v15 = vld [vmem:[%s1024_s6 + $0x1a4] sm:$0xf]  ;;  %v230_v16 = vld [vmem:[%s1024_s6 + $0x1c0] sm:$0xf] }
  0x1e   : > { %213 = vst [vmem:[%s1029_s7 + $0x1c] sm:$0xf] %v212_v7  ;;  %v232_v17 = vld [vmem:[%s1024_s6 + $0x1dc] sm:$0xf]  ;;  %v234_v18 = vld [vmem:[%s1024_s6 + $0x1f8] sm:$0xf] }
  0x1f   : > { %215 = vst [vmem:[%s1029_s7 + $0x20] sm:$0xf] %v214_v8  ;;  %v236_v19 = vld [vmem:[%s1024_s6 + $0x214] sm:$0xf]  ;;  %v238_v20 = vld [vmem:[%s1024_s6 + $0x230] sm:$0xf] }
  0x20   : > { %217 = vst [vmem:[%s1029_s7 + $0x24] sm:$0xf] %v216_v9  ;;  %v240_v21 = vld [vmem:[%s1024_s6 + $0x24c] sm:$0xf]  ;;  %v242_v22 = vld [vmem:[%s1024_s6 + $0x268] sm:$0xf] }
  0x21   : > { %219 = vst [vmem:[%s1029_s7 + $0x28] sm:$0xf] %v218_v10  ;;  %v244_v23 = vld [vmem:[%s1024_s6 + $0x284] sm:$0xf]  ;;  %v246_v24 = vld [vmem:[%s1024_s6 + $0x2a0] sm:$0xf] }
  0x22   : > { %221 = vst [vmem:[%s1029_s7 + $0x2c] sm:$0xf] %v220_v11  ;;  %v248_v25 = vld [vmem:[%s1024_s6 + $0x2bc] sm:$0xf]  ;;  %v250_v26 = vld [vmem:[%s1024_s6 + $0x2d8] sm:$0xf] }
  0x23   : > { %223 = vst [vmem:[%s1029_s7 + $0x30] sm:$0xf] %v222_v12  ;;  %v252_v27 = vld [vmem:[%s1024_s6 + $0x2f4] sm:$0xf]  ;;  %v254_v28 = vld [vmem:[%s1024_s6 + $0x310] sm:$0xf] }
  0x24   : > { %225 = vst [vmem:[%s1029_s7 + $0x34] sm:$0xf] %v224_v13  ;;  %v256_v29 = vld [vmem:[%s1024_s6 + $0x32c] sm:$0xf]  ;;  %v258_v30 = vld [vmem:[%s1024_s6 + $0x348] sm:$0xf] }
  0x25   : > { %227 = vst [vmem:[%s1029_s7 + $0x38] sm:$0xf] %v226_v14  ;;  %v260_v31 = vld [vmem:[%s1024_s6 + $0x364] sm:$0xf] }
  0x26   : > { %229 = vst [vmem:[%s1029_s7 + $0x3c] sm:$0xf] %v228_v15 }
  0x27   : > { %231 = vst [vmem:[%s1029_s7 + $0x40] sm:$0xf] %v230_v16 }
  0x28   : > { %233 = vst [vmem:[%s1029_s7 + $0x44] sm:$0xf] %v232_v17 }
  0x29   : > { %235 = vst [vmem:[%s1029_s7 + $0x48] sm:$0xf] %v234_v18 }
  0x2a   : > { %237 = vst [vmem:[%s1029_s7 + $0x4c] sm:$0xf] %v236_v19 }
  0x2b   : > { %239 = vst [vmem:[%s1029_s7 + $0x50] sm:$0xf] %v238_v20 }
  0x2c   : > { %241 = vst [vmem:[%s1029_s7 + $0x54] sm:$0xf] %v240_v21 }
  0x2d   : > { %243 = vst [vmem:[%s1029_s7 + $0x58] sm:$0xf] %v242_v22 }
  0x2e   : > { %245 = vst [vmem:[%s1029_s7 + $0x5c] sm:$0xf] %v244_v23 }
  0x2f   : > { %247 = vst [vmem:[%s1029_s7 + $0x60] sm:$0xf] %v246_v24 }
  0x30   : > { %249 = vst [vmem:[%s1029_s7 + $0x64] sm:$0xf] %v248_v25 }
  0x31   : > { %251 = vst [vmem:[%s1029_s7 + $0x68] sm:$0xf] %v250_v26 }
  0x32   : > { %253 = vst [vmem:[%s1029_s7 + $0x6c] sm:$0xf] %v252_v27 }
  0x33   : > { %255 = vst [vmem:[%s1029_s7 + $0x70] sm:$0xf] %v254_v28 }
  0x34   : > { %257 = vst [vmem:[%s1029_s7 + $0x74] sm:$0xf] %v256_v29 }
  0x35   : > { %259 = vst [vmem:[%s1029_s7 + $0x78] sm:$0xf] %v258_v30 }
  0x36   : > { %261 = vst [vmem:[%s1029_s7 + $0x7c] sm:$0xf] %v260_v31 }
  0x37 PF: > { %p737_p7 = scmp.ge.s32.totalorder %s941_s18, 1  ;;  %p355_p8 = scmp.lt.s32.totalorder %s941_s18, 29 }
  0x39   : > { %p356_p9 = pnand %p737_p7, %p355_p8 }
  0x3a   : > { %s362_s8 = sand.u32 (!%p356_p9), 1, %s917_s12   ;;  %s739_s9 = sshll.u32 (!%p356_p9), %s925_s14, 1 }
  0x3b   : > { %359 = sbr.rel (%p356_p9) target bundleno = 254 (0xfe), region = 69  ;;  %s738_s10 = sshll.u32 (!%p356_p9), %s362_s8, 7 }
  0x3c   : > { %p404_p10 = scmp.lt.s32.totalorder (!%p356_p9), %s739_s9, 7  ;;  %p412_p11 = scmp.lt.s32.totalorder (!%p356_p9), %s929_s15, 6 }
  0x3d   : > { %s1113_s5 = scalar_lea.vmem (!%p356_p9), [#allocation3], %s738_s10  ;;  %p743_p12 = scmp.ne.s32.totalorder (!%p356_p9), %s925_s14, 0 }
  0x40   : > { %s1175_s9 = smov (!%p404_p10, %s739_s9), 7  ;;  %s1177_s15 = smov (!%p412_p11, %s929_s15), 6 }
  0x41   : > { %s740_s11 = sshll.u32 %s1175_s9, 2  ;;  %s741_s24 = sshll.u32 %s1177_s15, 1 }
  0x42   : > { %s1101_s23 = scalar_lea.vmem %s1158_s0, %s740_s11  ;;  %s1106_s28 = scalar_lea.vmem %s1160_s2, %s741_s24 }
  0x43   : > { %s742_s29 = sshll.u32 %s1177_s15, 2  ;;  %427 = sbr.rel (%p743_p12) target bundleno = 74 (0x4a), region = 77 }
  0x44   : > { %s1111_s4 = scalar_lea.vmem %s1161_s3, %s742_s29 }
  0x48   : > { %v943_v32 = vmov 0.0  }
  0x49   : > { %428 = vst [vmem:[#allocation2] sm:$0xff] %v943_v32 }
  0x4a PF: > { %v818_v33 = vld [vmem:[%s1113_s5 + $0x38] sm:$0xff]  ;;  %v817_v35 = vld [vmem:[%s1113_s5 + $0x30] sm:$0xff]  ;;  %v816_v37 = vld [vmem:[%s1113_s5 + $0x28] sm:$0xff]  ;;  %p808_p13 = scmp.ne.s32.totalorder %s925_s14, 3 }
  0x4b   : > { %v826_v34 = vld [vmem:[%s1113_s5 + $0x78] sm:$0xff]  ;;  %566 = vmatpush.bf16.msra.mxu0 %v818_v33  ;;  %v825_v36 = vld [vmem:[%s1113_s5 + $0x70] sm:$0xff]  ;;  %v824_v38 = vld [vmem:[%s1113_s5 + $0x68] sm:$0xff] }
  0x4c   : > { %579 = vmatpush.bf16.msra.mxu1 %v826_v34  ;;  %v815_v39 = vld [vmem:[%s1113_s5 + $0x20] sm:$0xff]  ;;  %v814_v41 = vld [vmem:[%s1113_s5 + $0x18] sm:$0xff]  ;;  %v813_v43 = vld [vmem:[%s1113_s5 + $0x10] sm:$0xff] }
  0x4d   : > { %v823_v40 = vld [vmem:[%s1113_s5 + $0x60] sm:$0xff]  ;;  %v822_v42 = vld [vmem:[%s1113_s5 + $0x58] sm:$0xff]  ;;  %v821_v44 = vld [vmem:[%s1113_s5 + $0x50] sm:$0xff] }
  0x4e   : > { %v812_v45 = vld [vmem:[%s1113_s5 + $0x8] sm:$0xff]  ;;  %v430_v47 = vld [vmem:[%s1101_s23] sm:$0xff]  ;;  %v811_v50 = vld [vmem:[%s1113_s5] sm:$0xff] }
  0x4f   : > { %567 = vmatpush.bf16.msra.mxu0 %v817_v35  ;;  %v820_v46 = vld [vmem:[%s1113_s5 + $0x48] sm:$0xff]  ;;  %v464_v48 = vunpack.c.l.b16 %v430_v47  ;;  %v465_v49 = vunpack.c.h.b16 %v430_v47  ;;  %v819_v51 = vld [vmem:[%s1113_s5 + $0x40] sm:$0xff] }
  0x50   : > { %580 = vmatpush.bf16.msra.mxu1 %v825_v36  ;;  %v429_v55 = vld [vmem:[#allocation2] sm:$0xff] }
  0x51   : > { %v466_v52 = vpack.c.b16 %v464_v48, %v464_v48  ;;  %v467_v53 = vpack.c.b16 %v465_v49, %v465_v49 }
  0x53   : > { %568 = vmatpush.bf16.msra.mxu0 %v816_v37 }
  0x54   : > { %581 = vmatpush.bf16.msra.mxu1 %v824_v38 }
  0x57   : > { %569 = vmatpush.bf16.msra.mxu0 %v815_v39 }
  0x58   : > { %582 = vmatpush.bf16.msra.mxu1 %v823_v40 }
  0x5b   : > { %570 = vmatpush.bf16.msra.mxu0 %v814_v41 }
  0x5c   : > { %583 = vmatpush.bf16.msra.mxu1 %v822_v42 }
  0x5f   : > { %571 = vmatpush.bf16.msra.mxu0 %v813_v43 }
  0x60   : > { %584 = vmatpush.bf16.msra.mxu1 %v821_v44 }
  0x63   : > { %572 = vmatpush.bf16.msra.mxu0 %v812_v45 }
  0x64   : > { %585 = vmatpush.bf16.msra.mxu1 %v820_v46 }
  0x67   : > { %573 = vmatpush.bf16.msra.mxu0 %v811_v50 }
  0x68   : > { %586 = vmatpush.bf16.msra.mxu1 %v819_v51 }
  0x6a   : > { %574 = vmatmul.bf16.vlgmr.msra.gmra.mxu0 %v466_v52 }
  0x6b   : > { %587 = vmatmul.bf16.vlgmr.msra.gmra.mxu1 %v467_v53 }
  0xe7   : > { %v575_v54 = vpop.f32.mrf.mxu0 }
  0xe8   : > { %v588_v56 = vpop.f32.mrf.mxu1 }
  0xe9   : > { %v589_v57 = vadd.f32 %v588_v56, %v575_v54 }
  0xeb   : > { %v592_v58 = vadd.f32 %v589_v57, %v429_v55 }
  0xec   : > { %597 = sbr.rel (%p808_p13) target bundleno = 254 (0xfe), region = 81 }
  0xed   : > { %593 = vst [vmem:[#allocation2] sm:$0xff] %v592_v58 }
  0xef   : > { %v577_v59 = vpop.f32.mrf.mxu0 }
  0xf0   : > { %v590_v60 = vpop.f32.mrf.mxu1 }
  0xf1   : > { %v885_v62 = vld [vmem:[%s1106_s28] ss:$0 sm:$0xff]  ;;  %v886_v63 = vld [vmem:[%s1106_s28 + $0x1] ss:$0 sm:$0xff] }
  0xf4   : > { %v598_v61 = vld [vmem:[#allocation2] sm:$0xff] }
  0xf5   : > { %v601_v0 = vmul.f32 %v885_v62, %v598_v61 }
  0xf7   : > { %v604_v1 = vadd.f32 %v886_v63, %v601_v0 }
  0xf9   : > { %v605_v2 = vmax.f32 %v604_v1, 0.0 }
  0xfb   : > { %v606_v3 = vpack.c.bf16 %v605_v2, %v605_v2 }
  0xfd   : > { %607 = vst [vmem:[%s1111_s4] sm:$0xf] %v606_v3 }
  0xfe PF: > { %s13_s18 = sadd.s32 1, %s941_s18   ;;  %s1162_s12 = smov %s921_s13 }
  0xff   : > { %p10_p0 = scmp.ge.s32.totalorder %s13_s18, 30   ;;  %s1163_s13 = smov %s1015_s25 }
 0x100   : > { %s1164_s14 = smov %s933_s16  ;;  %s1165_s15 = smov %s937_s17 }
 0x101   : > { %s1166_s16 = smov %s1169_s19  ;;  %s1167_s17 = smov %s1173_s20 }
 0x102   :  { %12 = sbr.rel (!%p10_p0) target bundleno = 4 (0x4), region = 122 }

// kernel: _lambda_.32
= control target key start
LH: loop header
LB: loop body
LE: loop exit
PB: predicated region body
PF: predicated region fallthrough
CT: control target
= control target key end

     0   :  { %s964_s12 = smov 0   ;;  %s966_s13 = smov 0   ;;  %s1158_s0 = inlined_call_operand.vmem [shape: bf16[8,5632], index: 0, kind: input, shape index: {}]   ;;  %s1159_s1 = inlined_call_operand.vmem [shape: bf16[5632,640], index: 1, kind: input, shape index: {}]   ;;  %s1160_s2 = inlined_call_operand.vmem [shape: f32[2,640], index: 2, kind: input, shape index: {}]   ;;  %s1161_s3 = inlined_call_operand.vmem [shape: bf16[8,640], index: 3, kind: output, shape index: {}]  }
   0x1   :  { %s968_s14 = smov 0   ;;  %s970_s15 = smov 0  }
   0x2   :  { %s972_s16 = smov 0   ;;  %s974_s17 = smov 0  }
   0x3   :  { %s976_s18 = smov 0  }
   0x4 LB: > { %s25_s19 = sadd.s32 1, %s933_s16  ;;  %s28_s20 = sadd.s32 1, %s937_s17  ;;  %s941_s18 = sphi %s976_s18, %s13_s18   ;;  %s937_s17 = sphi %s974_s17, %s1167_s17   ;;  %s933_s16 = sphi %s972_s16, %s1166_s16   ;;  %s929_s15 = sphi %s970_s15, %s1165_s15   ;;  %s925_s14 = sphi %s968_s14, %s1164_s14   ;;  %s921_s13 = sphi %s966_s13, %s1163_s13   ;;  %s917_s12 = sphi %s964_s12, %s1162_s12  }
   0x5   : > { %p26_p0 = scmp.ge.s32.totalorder %s25_s19, 22  ;;  %p76_p1 = scmp.ne.s32.totalorder %s921_s13, %s917_s12 }
   0x6   : > { %p77_p2 = scmp.eq.s32.totalorder %s941_s18, 0  ;;  %s69_s24 = sadd.s32 1, %s921_s13 }
   0x7   : > { %s1169_s19 = smov (%p26_p0, %s25_s19), 0  ;;  %s1171_s20 = smov (!%p26_p0, %s28_s20), %s937_s17 }
   0x8   : > { %p78_p3 = por %p77_p2, %p76_p1  ;;  %p30_p4 = scmp.ge.s32.totalorder %s1171_s20, 5 }
   0x9   : > { %s64_s21 = ssub.s32 %s933_s16, %s1169_s19  ;;  %p732_p6 = scmp.ge.s32.totalorder %s941_s18, 110 }
   0xa   : > { %s1173_s20 = smov (%p30_p4, %s1171_s20), 0 }
   0xb   : > { %s65_s22 = ssub.s32 %s937_s17, %s1173_s20  ;;  %156 = sbr.rel (%p732_p6) target bundleno = 55 (0x37), region = 16 }
   0xc   : > { %s66_s23 = sor.u32 %s65_s22, %s64_s21 }
   0xd   : > { %p67_p5 = scmp.eq.s32.totalorder %s66_s23, 0 }
   0xf   : > { %s1015_s25 = scalar_select %p67_p5, %s921_s13, %s69_s24  }
  0x10   : > { %172 = sbr.rel (!%p78_p3) target bundleno = 55 (0x37), region = 24  ;;  %s174_s26 = sand.u32 (%p78_p3), 1, %s921_s13  }
  0x11   : > { %s827_s27 = smul.u32 (%p78_p3), 160, %s933_s16  ;;  %s733_s28 = sshll.u32 (%p78_p3), %s174_s26, 7 }
  0x12   : > { %s1029_s7 = scalar_lea.vmem (%p78_p3), [#allocation3], %s733_s28 }
  0x13   : > { %s179_s29 = sadd.s32 (%p78_p3), %s937_s17, %s827_s27 }
  0x14   : > { %s736_s30 = sshll.u32 (%p78_p3), %s179_s29, 2 }
  0x15   : > { %s1024_s6 = scalar_lea.vmem %s1159_s1, %s736_s30 }
  0x16   : > { %v198_v0 = vld [vmem:[%s1024_s6] sm:$0xf]  ;;  %v200_v1 = vld [vmem:[%s1024_s6 + $0x14] sm:$0xf]  ;;  %v202_v2 = vld [vmem:[%s1024_s6 + $0x28] sm:$0xf] }
  0x17   : > { %199 = vst [vmem:[%s1029_s7] sm:$0xf] %v198_v0  ;;  %v204_v3 = vld [vmem:[%s1024_s6 + $0x3c] sm:$0xf]  ;;  %v206_v4 = vld [vmem:[%s1024_s6 + $0x50] sm:$0xf] }
  0x18   : > { %201 = vst [vmem:[%s1029_s7 + $0x4] sm:$0xf] %v200_v1  ;;  %v208_v5 = vld [vmem:[%s1024_s6 + $0x64] sm:$0xf]  ;;  %v210_v6 = vld [vmem:[%s1024_s6 + $0x78] sm:$0xf] }
  0x19   : > { %203 = vst [vmem:[%s1029_s7 + $0x8] sm:$0xf] %v202_v2  ;;  %v212_v7 = vld [vmem:[%s1024_s6 + $0x8c] sm:$0xf]  ;;  %v214_v8 = vld [vmem:[%s1024_s6 + $0xa0] sm:$0xf] }
  0x1a   : > { %205 = vst [vmem:[%s1029_s7 + $0xc] sm:$0xf] %v204_v3  ;;  %v216_v9 = vld [vmem:[%s1024_s6 + $0xb4] sm:$0xf]  ;;  %v218_v10 = vld [vmem:[%s1024_s6 + $0xc8] sm:$0xf] }
  0x1b   : > { %207 = vst [vmem:[%s1029_s7 + $0x10] sm:$0xf] %v206_v4  ;;  %v220_v11 = vld [vmem:[%s1024_s6 + $0xdc] sm:$0xf]  ;;  %v222_v12 = vld [vmem:[%s1024_s6 + $0xf0] sm:$0xf] }
  0x1c   : > { %209 = vst [vmem:[%s1029_s7 + $0x14] sm:$0xf] %v208_v5  ;;  %v224_v13 = vld [vmem:[%s1024_s6 + $0x104] sm:$0xf]  ;;  %v226_v14 = vld [vmem:[%s1024_s6 + $0x118] sm:$0xf] }
  0x1d   : > { %211 = vst [vmem:[%s1029_s7 + $0x18] sm:$0xf] %v210_v6  ;;  %v228_v15 = vld [vmem:[%s1024_s6 + $0x12c] sm:$0xf]  ;;  %v230_v16 = vld [vmem:[%s1024_s6 + $0x140] sm:$0xf] }
  0x1e   : > { %213 = vst [vmem:[%s1029_s7 + $0x1c] sm:$0xf] %v212_v7  ;;  %v232_v17 = vld [vmem:[%s1024_s6 + $0x154] sm:$0xf]  ;;  %v234_v18 = vld [vmem:[%s1024_s6 + $0x168] sm:$0xf] }
  0x1f   : > { %215 = vst [vmem:[%s1029_s7 + $0x20] sm:$0xf] %v214_v8  ;;  %v236_v19 = vld [vmem:[%s1024_s6 + $0x17c] sm:$0xf]  ;;  %v238_v20 = vld [vmem:[%s1024_s6 + $0x190] sm:$0xf] }
  0x20   : > { %217 = vst [vmem:[%s1029_s7 + $0x24] sm:$0xf] %v216_v9  ;;  %v240_v21 = vld [vmem:[%s1024_s6 + $0x1a4] sm:$0xf]  ;;  %v242_v22 = vld [vmem:[%s1024_s6 + $0x1b8] sm:$0xf] }
  0x21   : > { %219 = vst [vmem:[%s1029_s7 + $0x28] sm:$0xf] %v218_v10  ;;  %v244_v23 = vld [vmem:[%s1024_s6 + $0x1cc] sm:$0xf]  ;;  %v246_v24 = vld [vmem:[%s1024_s6 + $0x1e0] sm:$0xf] }
  0x22   : > { %221 = vst [vmem:[%s1029_s7 + $0x2c] sm:$0xf] %v220_v11  ;;  %v248_v25 = vld [vmem:[%s1024_s6 + $0x1f4] sm:$0xf]  ;;  %v250_v26 = vld [vmem:[%s1024_s6 + $0x208] sm:$0xf] }
  0x23   : > { %223 = vst [vmem:[%s1029_s7 + $0x30] sm:$0xf] %v222_v12  ;;  %v252_v27 = vld [vmem:[%s1024_s6 + $0x21c] sm:$0xf]  ;;  %v254_v28 = vld [vmem:[%s1024_s6 + $0x230] sm:$0xf] }
  0x24   : > { %225 = vst [vmem:[%s1029_s7 + $0x34] sm:$0xf] %v224_v13  ;;  %v256_v29 = vld [vmem:[%s1024_s6 + $0x244] sm:$0xf]  ;;  %v258_v30 = vld [vmem:[%s1024_s6 + $0x258] sm:$0xf] }
  0x25   : > { %227 = vst [vmem:[%s1029_s7 + $0x38] sm:$0xf] %v226_v14  ;;  %v260_v31 = vld [vmem:[%s1024_s6 + $0x26c] sm:$0xf] }
  0x26   : > { %229 = vst [vmem:[%s1029_s7 + $0x3c] sm:$0xf] %v228_v15 }
  0x27   : > { %231 = vst [vmem:[%s1029_s7 + $0x40] sm:$0xf] %v230_v16 }
  0x28   : > { %233 = vst [vmem:[%s1029_s7 + $0x44] sm:$0xf] %v232_v17 }
  0x29   : > { %235 = vst [vmem:[%s1029_s7 + $0x48] sm:$0xf] %v234_v18 }
  0x2a   : > { %237 = vst [vmem:[%s1029_s7 + $0x4c] sm:$0xf] %v236_v19 }
  0x2b   : > { %239 = vst [vmem:[%s1029_s7 + $0x50] sm:$0xf] %v238_v20 }
  0x2c   : > { %241 = vst [vmem:[%s1029_s7 + $0x54] sm:$0xf] %v240_v21 }
  0x2d   : > { %243 = vst [vmem:[%s1029_s7 + $0x58] sm:$0xf] %v242_v22 }
  0x2e   : > { %245 = vst [vmem:[%s1029_s7 + $0x5c] sm:$0xf] %v244_v23 }
  0x2f   : > { %247 = vst [vmem:[%s1029_s7 + $0x60] sm:$0xf] %v246_v24 }
  0x30   : > { %249 = vst [vmem:[%s1029_s7 + $0x64] sm:$0xf] %v248_v25 }
  0x31   : > { %251 = vst [vmem:[%s1029_s7 + $0x68] sm:$0xf] %v250_v26 }
  0x32   : > { %253 = vst [vmem:[%s1029_s7 + $0x6c] sm:$0xf] %v252_v27 }
  0x33   : > { %255 = vst [vmem:[%s1029_s7 + $0x70] sm:$0xf] %v254_v28 }
  0x34   : > { %257 = vst [vmem:[%s1029_s7 + $0x74] sm:$0xf] %v256_v29 }
  0x35   : > { %259 = vst [vmem:[%s1029_s7 + $0x78] sm:$0xf] %v258_v30 }
  0x36   : > { %261 = vst [vmem:[%s1029_s7 + $0x7c] sm:$0xf] %v260_v31 }
  0x37 PF: > { %p737_p7 = scmp.ge.s32.totalorder %s941_s18, 1  ;;  %p355_p8 = scmp.lt.s32.totalorder %s941_s18, 111 }
  0x39   : > { %p356_p9 = pnand %p737_p7, %p355_p8 }
  0x3a   : > { %s362_s8 = sand.u32 (!%p356_p9), 1, %s917_s12   ;;  %s739_s9 = sshll.u32 (!%p356_p9), %s925_s14, 1 }
  0x3b   : > { %359 = sbr.rel (%p356_p9) target bundleno = 254 (0xfe), region = 69  ;;  %s738_s10 = sshll.u32 (!%p356_p9), %s362_s8, 7 }
  0x3c   : > { %p404_p10 = scmp.lt.s32.totalorder (!%p356_p9), %s739_s9, 43  ;;  %p412_p11 = scmp.lt.s32.totalorder (!%p356_p9), %s929_s15, 4 }
  0x3d   : > { %s1113_s5 = scalar_lea.vmem (!%p356_p9), [#allocation3], %s738_s10  ;;  %p743_p12 = scmp.ne.s32.totalorder (!%p356_p9), %s925_s14, 0 }
  0x40   : > { %s1175_s9 = smov (!%p404_p10, %s739_s9), 43  ;;  %s1177_s15 = smov (!%p412_p11, %s929_s15), 4 }
  0x41   : > { %s740_s11 = sshll.u32 %s1175_s9, 2  ;;  %s741_s24 = sshll.u32 %s1177_s15, 1 }
  0x42   : > { %s1101_s23 = scalar_lea.vmem %s1158_s0, %s740_s11  ;;  %s1106_s28 = scalar_lea.vmem %s1160_s2, %s741_s24 }
  0x43   : > { %s742_s29 = sshll.u32 %s1177_s15, 2  ;;  %427 = sbr.rel (%p743_p12) target bundleno = 74 (0x4a), region = 77 }
  0x44   : > { %s1111_s4 = scalar_lea.vmem %s1161_s3, %s742_s29 }
  0x48   : > { %v943_v32 = vmov 0.0  }
  0x49   : > { %428 = vst [vmem:[#allocation2] sm:$0xff] %v943_v32 }
  0x4a PF: > { %v818_v33 = vld [vmem:[%s1113_s5 + $0x38] sm:$0xff]  ;;  %v817_v35 = vld [vmem:[%s1113_s5 + $0x30] sm:$0xff]  ;;  %v816_v37 = vld [vmem:[%s1113_s5 + $0x28] sm:$0xff]  ;;  %p808_p13 = scmp.ne.s32.totalorder %s925_s14, 21 }
  0x4b   : > { %v826_v34 = vld [vmem:[%s1113_s5 + $0x78] sm:$0xff]  ;;  %566 = vmatpush.bf16.msra.mxu0 %v818_v33  ;;  %v825_v36 = vld [vmem:[%s1113_s5 + $0x70] sm:$0xff]  ;;  %v824_v38 = vld [vmem:[%s1113_s5 + $0x68] sm:$0xff] }
  0x4c   : > { %579 = vmatpush.bf16.msra.mxu1 %v826_v34  ;;  %v815_v39 = vld [vmem:[%s1113_s5 + $0x20] sm:$0xff]  ;;  %v814_v41 = vld [vmem:[%s1113_s5 + $0x18] sm:$0xff]  ;;  %v813_v43 = vld [vmem:[%s1113_s5 + $0x10] sm:$0xff] }
  0x4d   : > { %v823_v40 = vld [vmem:[%s1113_s5 + $0x60] sm:$0xff]  ;;  %v822_v42 = vld [vmem:[%s1113_s5 + $0x58] sm:$0xff]  ;;  %v821_v44 = vld [vmem:[%s1113_s5 + $0x50] sm:$0xff] }
  0x4e   : > { %v812_v45 = vld [vmem:[%s1113_s5 + $0x8] sm:$0xff]  ;;  %v430_v47 = vld [vmem:[%s1101_s23] sm:$0xff]  ;;  %v811_v50 = vld [vmem:[%s1113_s5] sm:$0xff] }
  0x4f   : > { %567 = vmatpush.bf16.msra.mxu0 %v817_v35  ;;  %v820_v46 = vld [vmem:[%s1113_s5 + $0x48] sm:$0xff]  ;;  %v464_v48 = vunpack.c.l.b16 %v430_v47  ;;  %v465_v49 = vunpack.c.h.b16 %v430_v47  ;;  %v819_v51 = vld [vmem:[%s1113_s5 + $0x40] sm:$0xff] }
  0x50   : > { %580 = vmatpush.bf16.msra.mxu1 %v825_v36  ;;  %v429_v55 = vld [vmem:[#allocation2] sm:$0xff] }
  0x51   : > { %v466_v52 = vpack.c.b16 %v464_v48, %v464_v48  ;;  %v467_v53 = vpack.c.b16 %v465_v49, %v465_v49 }
  0x53   : > { %568 = vmatpush.bf16.msra.mxu0 %v816_v37 }
  0x54   : > { %581 = vmatpush.bf16.msra.mxu1 %v824_v38 }
  0x57   : > { %569 = vmatpush.bf16.msra.mxu0 %v815_v39 }
  0x58   : > { %582 = vmatpush.bf16.msra.mxu1 %v823_v40 }
  0x5b   : > { %570 = vmatpush.bf16.msra.mxu0 %v814_v41 }
  0x5c   : > { %583 = vmatpush.bf16.msra.mxu1 %v822_v42 }
  0x5f   : > { %571 = vmatpush.bf16.msra.mxu0 %v813_v43 }
  0x60   : > { %584 = vmatpush.bf16.msra.mxu1 %v821_v44 }
  0x63   : > { %572 = vmatpush.bf16.msra.mxu0 %v812_v45 }
  0x64   : > { %585 = vmatpush.bf16.msra.mxu1 %v820_v46 }
  0x67   : > { %573 = vmatpush.bf16.msra.mxu0 %v811_v50 }
  0x68   : > { %586 = vmatpush.bf16.msra.mxu1 %v819_v51 }
  0x6a   : > { %574 = vmatmul.bf16.vlgmr.msra.gmra.mxu0 %v466_v52 }
  0x6b   : > { %587 = vmatmul.bf16.vlgmr.msra.gmra.mxu1 %v467_v53 }
  0xe7   : > { %v575_v54 = vpop.f32.mrf.mxu0 }
  0xe8   : > { %v588_v56 = vpop.f32.mrf.mxu1 }
  0xe9   : > { %v589_v57 = vadd.f32 %v588_v56, %v575_v54 }
  0xeb   : > { %v592_v58 = vadd.f32 %v589_v57, %v429_v55 }
  0xec   : > { %597 = sbr.rel (%p808_p13) target bundleno = 254 (0xfe), region = 81 }
  0xed   : > { %593 = vst [vmem:[#allocation2] sm:$0xff] %v592_v58 }
  0xef   : > { %v577_v59 = vpop.f32.mrf.mxu0 }
  0xf0   : > { %v590_v60 = vpop.f32.mrf.mxu1 }
  0xf1   : > { %v885_v62 = vld [vmem:[%s1106_s28] ss:$0 sm:$0xff]  ;;  %v886_v63 = vld [vmem:[%s1106_s28 + $0x1] ss:$0 sm:$0xff] }
  0xf4   : > { %v598_v61 = vld [vmem:[#allocation2] sm:$0xff] }
  0xf5   : > { %v601_v0 = vmul.f32 %v885_v62, %v598_v61 }
  0xf7   : > { %v604_v1 = vadd.f32 %v886_v63, %v601_v0 }
  0xf9   : > { %v605_v2 = vmax.f32 %v604_v1, 0.0 }
  0xfb   : > { %v606_v3 = vpack.c.bf16 %v605_v2, %v605_v2 }
  0xfd   : > { %607 = vst [vmem:[%s1111_s4] sm:$0xf] %v606_v3 }
  0xfe PF: > { %s13_s18 = sadd.s32 1, %s941_s18   ;;  %s1162_s12 = smov %s921_s13 }
  0xff   : > { %p10_p0 = scmp.ge.s32.totalorder %s13_s18, 112   ;;  %s1163_s13 = smov %s1015_s25 }
 0x100   : > { %s1164_s14 = smov %s933_s16  ;;  %s1165_s15 = smov %s937_s17 }
 0x101   : > { %s1166_s16 = smov %s1169_s19  ;;  %s1167_s17 = smov %s1173_s20 }
 0x102   :  { %12 = sbr.rel (!%p10_p0) target bundleno = 4 (0x4), region = 122 }

// kernel: _lambda_.34
= control target key start
LH: loop header
LB: loop body
LE: loop exit
PB: predicated region body
PF: predicated region fallthrough
CT: control target
= control target key end

     0   :  { %s974_s15 = smov 0   ;;  %s976_s16 = smov 0   ;;  %s1140_s0 = inlined_call_operand.vmem [shape: bf16[8,896], index: 0, kind: input, shape index: {}]   ;;  %s1141_s1 = inlined_call_operand.vmem [shape: bf16[896,2048], index: 1, kind: input, shape index: {}]   ;;  %s1142_s2 = inlined_call_operand.vmem [shape: f32[2,2048], index: 2, kind: input, shape index: {}]   ;;  %s1143_s3 = inlined_call_operand.vmem [shape: bf16[8,2048], index: 3, kind: input, shape index: {}]   ;;  %s1144_s4 = inlined_call_operand.vmem [shape: bf16[8,2048], index: 4, kind: output, shape index: {}]  }
   0x1   :  { %s978_s17 = smov 0   ;;  %s980_s18 = smov 0  }
   0x2   :  { %s982_s19 = smov 0   ;;  %s984_s20 = smov 0  }
   0x3   :  { %s986_s21 = smov 0  }
   0x4 LB: > { %s26_s22 = sadd.s32 1, %s938_s19  ;;  %s29_s23 = sadd.s32 1, %s942_s20  ;;  %s946_s21 = sphi %s986_s21, %s14_s21   ;;  %s942_s20 = sphi %s984_s20, %s1150_s20   ;;  %s938_s19 = sphi %s982_s19, %s1149_s19   ;;  %s934_s18 = sphi %s980_s18, %s1148_s18   ;;  %s930_s17 = sphi %s978_s17, %s1147_s17   ;;  %s926_s16 = sphi %s976_s16, %s1146_s16   ;;  %s922_s15 = sphi %s974_s15, %s1145_s15  }
   0x5   : > { %p27_p0 = scmp.ge.s32.totalorder %s26_s22, 7  ;;  %p77_p1 = scmp.ne.s32.totalorder %s926_s16, %s922_s15 }
   0x6   : > { %p78_p2 = scmp.eq.s32.totalorder %s946_s21, 0  ;;  %s70_s27 = sadd.s32 1, %s926_s16 }
   0x7   : > { %s1152_s22 = smov (%p27_p0, %s26_s22), 0  ;;  %s1154_s23 = smov (!%p27_p0, %s29_s23), %s942_s20 }
   0x8   : > { %p79_p3 = por %p78_p2, %p77_p1  ;;  %p31_p4 = scmp.ge.s32.totalorder %s1154_s23, 8 }
   0x9   : > { %s65_s24 = ssub.s32 %s938_s19, %s1152_s22  ;;  %p734_p6 = scmp.ge.s32.totalorder %s946_s21, 56 }
   0xa   : > { %s1156_s23 = smov (%p31_p4, %s1154_s23), 0 }
   0xb   : > { %s66_s25 = ssub.s32 %s942_s20, %s1156_s23  ;;  %185 = sbr.rel (%p734_p6) target bundleno = 39 (0x27), region = 16 }
   0xc   : > { %s67_s26 = sor.u32 %s66_s25, %s65_s24 }
   0xd   : > { %p68_p5 = scmp.eq.s32.totalorder %s67_s26, 0 }
   0xf   : > { %s1025_s28 = scalar_select %p68_p5, %s926_s16, %s70_s27  }
  0x10   : > { %199 = sbr.rel (!%p79_p3) target bundleno = 39 (0x27), region = 24  ;;  %s201_s29 = sand.u32 (%p79_p3), 1, %s926_s16  }
  0x11   : > { %s737_s30 = sshll.u32 (%p79_p3), %s942_s20, 1  ;;  %s735_s5 = sshll.u32 (%p79_p3), %s201_s29, 7 }
  0x12   : > { %s818_s6 = sshll.u32 (%p79_p3), %s938_s19, 8  ;;  %s203_s12 = scalar_lea.vmem (%p79_p3), [#allocation3], %s735_s5 }
  0x13   : > { %s207_s7 = sadd.s32 (%p79_p3), %s818_s6, %s737_s30 }
  0x14   : > { %s739_s8 = sshll.u32 (%p79_p3), %s207_s7, 2 }
  0x15   : > { %s1034_s11 = scalar_lea.vmem %s1141_s1, %s739_s8 }
  0x16   : > { %v268_v0 = vld [vmem:[%s1034_s11] sm:$0xff] }
  0x17   : > { %v270_v1 = vld [vmem:[%s1034_s11 + $0x40] sm:$0xff]  ;;  %269 = vst [vmem:[%s203_s12] sm:$0xff] %v268_v0 }
  0x18   : > { %v272_v2 = vld [vmem:[%s1034_s11 + $0x80] sm:$0xff]  ;;  %271 = vst [vmem:[%s203_s12 + $0x8] sm:$0xff] %v270_v1 }
  0x19   : > { %v274_v3 = vld [vmem:[%s1034_s11 + $0xc0] sm:$0xff]  ;;  %273 = vst [vmem:[%s203_s12 + $0x10] sm:$0xff] %v272_v2 }
  0x1a   : > { %v276_v4 = vld [vmem:[%s1034_s11 + $0x100] sm:$0xff]  ;;  %275 = vst [vmem:[%s203_s12 + $0x18] sm:$0xff] %v274_v3 }
  0x1b   : > { %v278_v5 = vld [vmem:[%s1034_s11 + $0x140] sm:$0xff]  ;;  %277 = vst [vmem:[%s203_s12 + $0x20] sm:$0xff] %v276_v4 }
  0x1c   : > { %v280_v6 = vld [vmem:[%s1034_s11 + $0x180] sm:$0xff]  ;;  %279 = vst [vmem:[%s203_s12 + $0x28] sm:$0xff] %v278_v5 }
  0x1d   : > { %v282_v7 = vld [vmem:[%s1034_s11 + $0x1c0] sm:$0xff]  ;;  %281 = vst [vmem:[%s203_s12 + $0x30] sm:$0xff] %v280_v6 }
  0x1e   : > { %v284_v8 = vld [vmem:[%s1034_s11 + $0x200] sm:$0xff]  ;;  %283 = vst [vmem:[%s203_s12 + $0x38] sm:$0xff] %v282_v7 }
  0x1f   : > { %v286_v9 = vld [vmem:[%s1034_s11 + $0x240] sm:$0xff]  ;;  %285 = vst [vmem:[%s203_s12 + $0x40] sm:$0xff] %v284_v8 }
  0x20   : > { %v288_v10 = vld [vmem:[%s1034_s11 + $0x280] sm:$0xff]  ;;  %287 = vst [vmem:[%s203_s12 + $0x48] sm:$0xff] %v286_v9 }
  0x21   : > { %v290_v11 = vld [vmem:[%s1034_s11 + $0x2c0] sm:$0xff]  ;;  %289 = vst [vmem:[%s203_s12 + $0x50] sm:$0xff] %v288_v10 }
  0x22   : > { %v292_v12 = vld [vmem:[%s1034_s11 + $0x300] sm:$0xff]  ;;  %291 = vst [vmem:[%s203_s12 + $0x58] sm:$0xff] %v290_v11 }
  0x23   : > { %v294_v13 = vld [vmem:[%s1034_s11 + $0x340] sm:$0xff]  ;;  %293 = vst [vmem:[%s203_s12 + $0x60] sm:$0xff] %v292_v12 }
  0x24   : > { %v296_v14 = vld [vmem:[%s1034_s11 + $0x380] sm:$0xff]  ;;  %295 = vst [vmem:[%s203_s12 + $0x68] sm:$0xff] %v294_v13 }
  0x25   : > { %v298_v15 = vld [vmem:[%s1034_s11 + $0x3c0] sm:$0xff]  ;;  %297 = vst [vmem:[%s203_s12 + $0x70] sm:$0xff] %v296_v14 }
  0x26   : > { %299 = vst [vmem:[%s203_s12 + $0x78] sm:$0xff] %v298_v15 }
  0x27 PF: > { %p740_p7 = scmp.ge.s32.totalorder %s946_s21, 1  ;;  %p326_p8 = scmp.lt.s32.totalorder %s946_s21, 57 }
  0x29   : > { %p327_p9 = pnand %p740_p7, %p326_p8 }
  0x2a   : > { %s333_s13 = sand.u32 (!%p327_p9), 1, %s922_s15   ;;  %p386_p10 = scmp.lt.s32.totalorder (!%p327_p9), %s930_s17, 6 }
  0x2b   : > { %330 = sbr.rel (%p327_p9) target bundleno = 241 (0xf1), region = 70  ;;  %s741_s14 = sshll.u32 (!%p327_p9), %s333_s13, 7 }
  0x2c   : > { %s743_s24 = sshll.u32 (!%p327_p9), %s934_s18, 1  ;;  %p749_p12 = scmp.ne.s32.totalorder (!%p327_p9), %s930_s17, 0 }
  0x2d   : > { %p395_p11 = scmp.lt.s32.totalorder (!%p327_p9), %s743_s24, 15 }
  0x30   : > { %s387_s25 = scalar_select %p386_p10, %s930_s17, 6 }
  0x31   : > { %s1158_s24 = smov (!%p395_p11, %s743_s24), 15  ;;  %423 = sbr.rel (%p749_p12) target bundleno = 57 (0x39), region = 78 }
  0x32   : > { %s742_s26 = sshll.u32 %s387_s25, 2  ;;  %s744_s5 = sshll.u32 %s1158_s24, 1 }
  0x33   : > { %s1061_s30 = scalar_lea.vmem %s1140_s0, %s742_s26  ;;  %s1066_s8 = scalar_lea.vmem %s1142_s2, %s744_s5 }
  0x34   : > { %s746_s9 = sshll.u32 %s1158_s24, 2  ;;  %s1078_s25 = scalar_lea.vmem [#allocation3], %s741_s14 }
  0x35   : > { %s1071_s18 = scalar_lea.vmem %s1143_s3, %s746_s9  ;;  %s1076_s13 = scalar_lea.vmem %s1144_s4, %s746_s9 }
  0x36   : > { %v948_v16 = vmov 0.0  }
  0x37   : > { %424 = vst [vmem:[#allocation2] sm:$0xff] %v948_v16 }
  0x38   : > { %425 = vst [vmem:[#allocation2 + $0x8] sm:$0xff] %v948_v16 }
  0x39 PF: > { %v808_v17 = vld [vmem:[%s1078_s25 + $0x70] sm:$0xf]  ;;  %v834_v18 = vld [vmem:[%s1078_s25 + $0x74] sm:$0xf0]  ;;  %v833_v19 = vld [vmem:[%s1078_s25 + $0x74] sm:$0xf] }
  0x3a   : > { %v809_v20 = vor.u32 %v834_v18, %v808_v17  ;;  %v810_v21 = vld [vmem:[%s1078_s25 + $0x78] sm:$0xf0]  ;;  %v800_v22 = vld [vmem:[%s1078_s25 + $0x60] sm:$0xf]  ;;  %v832_v23 = vld [vmem:[%s1078_s25 + $0x64] sm:$0xf0] }
  0x3b   : > { %v813_v24 = vor.u32 %v833_v19, %v810_v21  ;;  %v831_v25 = vld [vmem:[%s1078_s25 + $0x64] sm:$0xf]  ;;  %v802_v26 = vld [vmem:[%s1078_s25 + $0x68] sm:$0xf0]  ;;  %v801_v27 = vor.u32 %v832_v23, %v800_v22  ;;  %v792_v29 = vld [vmem:[%s1078_s25 + $0x50] sm:$0xf] }
  0x3c   : > { %525 = vmatpush.bf16.msra.mxu0 %v809_v20  ;;  %v805_v28 = vor.u32 %v831_v25, %v802_v26  ;;  %v830_v30 = vld [vmem:[%s1078_s25 + $0x54] sm:$0xf0]  ;;  %v829_v31 = vld [vmem:[%s1078_s25 + $0x54] sm:$0xf]  ;;  %v794_v32 = vld [vmem:[%s1078_s25 + $0x58] sm:$0xf0] }
  0x3d   : > { %538 = vmatpush.bf16.msra.mxu1 %v813_v24  ;;  %v793_v33 = vor.u32 %v830_v30, %v792_v29  ;;  %v797_v34 = vor.u32 %v829_v31, %v794_v32  ;;  %v784_v35 = vld [vmem:[%s1078_s25 + $0x40] sm:$0xf]  ;;  %v828_v36 = vld [vmem:[%s1078_s25 + $0x44] sm:$0xf0]  ;;  %v827_v37 = vld [vmem:[%s1078_s25 + $0x44] sm:$0xf] }
  0x3e   : > { %v786_v38 = vld [vmem:[%s1078_s25 + $0x48] sm:$0xf0]  ;;  %v785_v39 = vor.u32 %v828_v36, %v784_v35  ;;  %v776_v41 = vld [vmem:[%s1078_s25 + $0x30] sm:$0xf]  ;;  %v826_v42 = vld [vmem:[%s1078_s25 + $0x34] sm:$0xf0] }
  0x3f   : > { %v789_v40 = vor.u32 %v827_v37, %v786_v38  ;;  %v825_v43 = vld [vmem:[%s1078_s25 + $0x34] sm:$0xf]  ;;  %v778_v44 = vld [vmem:[%s1078_s25 + $0x38] sm:$0xf0]  ;;  %v777_v45 = vor.u32 %v826_v42, %v776_v41  ;;  %v768_v47 = vld [vmem:[%s1078_s25 + $0x20] sm:$0xf] }
  0x40   : > { %526 = vmatpush.bf16.msra.mxu0 %v801_v27  ;;  %v781_v46 = vor.u32 %v825_v43, %v778_v44  ;;  %v824_v48 = vld [vmem:[%s1078_s25 + $0x24] sm:$0xf0]  ;;  %v823_v49 = vld [vmem:[%s1078_s25 + $0x24] sm:$0xf]  ;;  %v770_v50 = vld [vmem:[%s1078_s25 + $0x28] sm:$0xf0] }
  0x41   : > { %539 = vmatpush.bf16.msra.mxu1 %v805_v28  ;;  %v769_v51 = vor.u32 %v824_v48, %v768_v47  ;;  %v773_v52 = vor.u32 %v823_v49, %v770_v50  ;;  %v760_v53 = vld [vmem:[%s1078_s25 + $0x10] sm:$0xf]  ;;  %v822_v54 = vld [vmem:[%s1078_s25 + $0x14] sm:$0xf0]  ;;  %v821_v55 = vld [vmem:[%s1078_s25 + $0x14] sm:$0xf] }
  0x42   : > { %v762_v56 = vld [vmem:[%s1078_s25 + $0x18] sm:$0xf0]  ;;  %v761_v57 = vor.u32 %v822_v54, %v760_v53  ;;  %v752_v59 = vld [vmem:[%s1078_s25] sm:$0xf]  ;;  %v820_v60 = vld [vmem:[%s1078_s25 + $0x4] sm:$0xf0] }
  0x43   : > { %v765_v58 = vor.u32 %v821_v55, %v762_v56  ;;  %v819_v61 = vld [vmem:[%s1078_s25 + $0x4] sm:$0xf]  ;;  %v754_v62 = vld [vmem:[%s1078_s25 + $0x8] sm:$0xf0]  ;;  %v753_v63 = vor.u32 %v820_v60, %v752_v59  ;;  %v428_v1 = vld [vmem:[%s1061_s30] sm:$0xf] }
  0x44   : > { %527 = vmatpush.bf16.msra.mxu0 %v793_v33  ;;  %v757_v0 = vor.u32 %v819_v61, %v754_v62  ;;  %v426_v2 = vld [vmem:[#allocation2] sm:$0xff]  ;;  %v427_v3 = vld [vmem:[#allocation2 + $0x8] sm:$0xff]  ;;  %p814_p13 = scmp.ne.s32.totalorder %s930_s17, 6 }
  0x45   : > { %540 = vmatpush.bf16.msra.mxu1 %v797_v34 }
  0x48   : > { %528 = vmatpush.bf16.msra.mxu0 %v785_v39 }
  0x49   : > { %541 = vmatpush.bf16.msra.mxu1 %v789_v40 }
  0x4c   : > { %529 = vmatpush.bf16.msra.mxu0 %v777_v45 }
  0x4d   : > { %542 = vmatpush.bf16.msra.mxu1 %v781_v46 }
  0x50   : > { %530 = vmatpush.bf16.msra.mxu0 %v769_v51 }
  0x51   : > { %543 = vmatpush.bf16.msra.mxu1 %v773_v52 }
  0x54   : > { %531 = vmatpush.bf16.msra.mxu0 %v761_v57 }
  0x55   : > { %544 = vmatpush.bf16.msra.mxu1 %v765_v58 }
  0x58   : > { %532 = vmatpush.bf16.msra.mxu0 %v753_v63 }
  0x59   : > { %545 = vmatpush.bf16.msra.mxu1 %v757_v0 }
  0x5b   : > { %533 = vmatmul.bf16.vlgmr.msra.gmra.mxu0 %v428_v1 }
  0x5c   : > { %546 = vmatmul.bf16.vlgmr.msra.gmra.mxu1 %v428_v1 }
  0xd8   : > { %v534_v4 = vpop.f32.mrf.mxu0 }
  0xd9   : > { %v551_v5 = vadd.f32 %v534_v4, %v426_v2  ;;  %v547_v6 = vpop.f32.mrf.mxu1 }
  0xda   : > { %v552_v7 = vadd.f32 %v547_v6, %v427_v3 }
  0xdb   : > { %553 = vst [vmem:[#allocation2] sm:$0xff] %v551_v5 }
  0xdc   : > { %554 = vst [vmem:[#allocation2 + $0x8] sm:$0xff] %v552_v7 }
  0xdd   : > { %558 = sbr.rel (%p814_p13) target bundleno = 241 (0xf1), region = 82 }
  0xe0   : > { %v536_v8 = vpop.f32.mrf.mxu0 }
  0xe1   : > { %v549_v9 = vpop.f32.mrf.mxu1 }
  0xe2   : > { %v559_v10 = vld [vmem:[#allocation2] sm:$0xff] }
  0xe3   : > { %v560_v11 = vld [vmem:[#allocation2 + $0x8] sm:$0xff]  ;;  %v561_v12 = vld [vmem:[%s1066_s8] ss:$2 sm:$0x3] }
  0xe4   : > { %v563_v13 = vperm.slane %v561_v12, 0  ;;  %v564_v14 = vperm.slane %v561_v12, 1  ;;  %v815_v15 = vld [vmem:[%s1066_s8 + $0x1] ss:$2 sm:$0x3] }
  0xe5   : > { %v578_v16 = vld [vmem:[%s1071_s18] sm:$0xff]  ;;  %v572_v17 = vperm.slane %v815_v15, 0  ;;  %v573_v18 = vperm.slane %v815_v15, 1 }
  0xe6   : > { %v567_v19 = vmul.f32 %v563_v13, %v559_v10  ;;  %v568_v20 = vmul.f32 %v564_v14, %v560_v11  ;;  %v579_v21 = vunpack.c.l.bf16 %v578_v16  ;;  %v580_v22 = vunpack.c.h.bf16 %v578_v16 }
  0xe8   : > { %v576_v23 = vadd.f32 %v572_v17, %v567_v19  ;;  %v577_v24 = vadd.f32 %v573_v18, %v568_v20 }
  0xea   : > { %v581_v25 = vadd.f32 %v579_v21, %v576_v23  ;;  %v582_v26 = vadd.f32 %v580_v22, %v577_v24 }
  0xec   : > { %v583_v27 = vmax.f32 %v581_v25, 0.0  ;;  %v584_v28 = vmax.f32 %v582_v26, 0.0 }
  0xee   : > { %v585_v29 = vpack.c.bf16 %v584_v28, %v583_v27 }
  0xf0   : > { %586 = vst [vmem:[%s1076_s13] sm:$0xff] %v585_v29 }
  0xf1 PF: > { %s14_s21 = sadd.s32 1, %s946_s21   ;;  %s1145_s15 = smov %s926_s16 }
  0xf2   : > { %p11_p0 = scmp.ge.s32.totalorder %s14_s21, 58   ;;  %s1146_s16 = smov %s1025_s28 }
  0xf3   : > { %s1147_s17 = smov %s938_s19  ;;  %s1148_s18 = smov %s942_s20 }
  0xf4   : > { %s1149_s19 = smov %s1152_s22  ;;  %s1150_s20 = smov %s1156_s23 }
  0xf5   :  { %13 = sbr.rel (!%p11_p0) target bundleno = 4 (0x4), region = 127 }

// kernel: _lambda_.33
= control target key start
LH: loop header
LB: loop body
LE: loop exit
PB: predicated region body
PF: predicated region fallthrough
CT: control target
= control target key end

     0   :  { %s1158_s12 = smov 0   ;;  %s1160_s13 = smov 0   ;;  %s1399_s0 = inlined_call_operand.vmem [shape: bf16[8,1024], index: 0, kind: input, shape index: {}]   ;;  %s1400_s1 = inlined_call_operand.vmem [shape: bf16[1024,2048], index: 1, kind: input, shape index: {}]   ;;  %s1401_s2 = inlined_call_operand.vmem [shape: f32[2,2048], index: 2, kind: input, shape index: {}]   ;;  %s1402_s3 = inlined_call_operand.vmem [shape: bf16[8,2048], index: 3, kind: output, shape index: {}]  }
   0x1   :  { %s1162_s14 = smov 0   ;;  %s1164_s15 = smov 0  }
   0x2   :  { %s1166_s16 = smov 0   ;;  %s1168_s17 = smov 0  }
   0x3   :  { %s1170_s18 = smov 0  }
   0x4 LB: > { %s25_s19 = sadd.s32 1, %s1127_s16  ;;  %s28_s20 = sadd.s32 1, %s1131_s17  ;;  %s1135_s18 = sphi %s1170_s18, %s13_s18   ;;  %s1131_s17 = sphi %s1168_s17, %s1408_s17   ;;  %s1127_s16 = sphi %s1166_s16, %s1407_s16   ;;  %s1123_s15 = sphi %s1164_s15, %s1406_s15   ;;  %s1119_s14 = sphi %s1162_s14, %s1405_s14   ;;  %s1115_s13 = sphi %s1160_s13, %s1404_s13   ;;  %s1111_s12 = sphi %s1158_s12, %s1403_s12  }
   0x5   : > { %p26_p0 = scmp.ge.s32.totalorder %s25_s19, 4  ;;  %p76_p1 = scmp.ne.s32.totalorder %s1115_s13, %s1111_s12 }
   0x6   : > { %p77_p2 = scmp.eq.s32.totalorder %s1135_s18, 0  ;;  %s69_s24 = sadd.s32 1, %s1115_s13 }
   0x7   : > { %s1410_s19 = smov (%p26_p0, %s25_s19), 0  ;;  %s1412_s20 = smov (!%p26_p0, %s28_s20), %s1131_s17 }
   0x8   : > { %p78_p3 = por %p77_p2, %p76_p1  ;;  %p30_p4 = scmp.ge.s32.totalorder %s1412_s20, 8 }
   0x9   : > { %s64_s21 = ssub.s32 %s1127_s16, %s1410_s19  ;;  %p844_p6 = scmp.ge.s32.totalorder %s1135_s18, 32 }
   0xa   : > { %s1414_s20 = smov (%p30_p4, %s1412_s20), 0 }
   0xb   : > { %s65_s22 = ssub.s32 %s1131_s17, %s1414_s20  ;;  %156 = sbr.rel (%p844_p6) target bundleno = 55 (0x37), region = 16 }
   0xc   : > { %s66_s23 = sor.u32 %s65_s22, %s64_s21 }
   0xd   : > { %p67_p5 = scmp.eq.s32.totalorder %s66_s23, 0 }
   0xf   : > { %s1209_s25 = scalar_select %p67_p5, %s1115_s13, %s69_s24  }
  0x10   : > { %172 = sbr.rel (!%p78_p3) target bundleno = 55 (0x37), region = 24  ;;  %s174_s26 = sand.u32 (%p78_p3), 1, %s1115_s13  }
  0x11   : > { %s847_s27 = sshll.u32 (%p78_p3), %s1131_s17, 1  ;;  %s845_s28 = sshll.u32 (%p78_p3), %s174_s26, 8 }
  0x12   : > { %s991_s29 = sshll.u32 (%p78_p3), %s1127_s16, 9  ;;  %s1223_s8 = scalar_lea.vmem (%p78_p3), [#allocation3], %s845_s28 }
  0x13   : > { %s180_s30 = sadd.s32 (%p78_p3), %s991_s29, %s847_s27 }
  0x14   : > { %s849_s4 = sshll.u32 (%p78_p3), %s180_s30, 2 }
  0x15   : > { %s1218_s7 = scalar_lea.vmem %s1400_s1, %s849_s4 }
  0x16   : > { %v273_v0 = vld [vmem:[%s1218_s7] sm:$0xff] }
  0x17   : > { %v275_v1 = vld [vmem:[%s1218_s7 + $0x40] sm:$0xff]  ;;  %274 = vst [vmem:[%s1223_s8] sm:$0xff] %v273_v0 }
  0x18   : > { %v277_v2 = vld [vmem:[%s1218_s7 + $0x80] sm:$0xff]  ;;  %276 = vst [vmem:[%s1223_s8 + $0x8] sm:$0xff] %v275_v1 }
  0x19   : > { %v279_v3 = vld [vmem:[%s1218_s7 + $0xc0] sm:$0xff]  ;;  %278 = vst [vmem:[%s1223_s8 + $0x10] sm:$0xff] %v277_v2 }
  0x1a   : > { %v281_v4 = vld [vmem:[%s1218_s7 + $0x100] sm:$0xff]  ;;  %280 = vst [vmem:[%s1223_s8 + $0x18] sm:$0xff] %v279_v3 }
  0x1b   : > { %v283_v5 = vld [vmem:[%s1218_s7 + $0x140] sm:$0xff]  ;;  %282 = vst [vmem:[%s1223_s8 + $0x20] sm:$0xff] %v281_v4 }
  0x1c   : > { %v285_v6 = vld [vmem:[%s1218_s7 + $0x180] sm:$0xff]  ;;  %284 = vst [vmem:[%s1223_s8 + $0x28] sm:$0xff] %v283_v5 }
  0x1d   : > { %v287_v7 = vld [vmem:[%s1218_s7 + $0x1c0] sm:$0xff]  ;;  %286 = vst [vmem:[%s1223_s8 + $0x30] sm:$0xff] %v285_v6 }
  0x1e   : > { %v289_v8 = vld [vmem:[%s1218_s7 + $0x200] sm:$0xff]  ;;  %288 = vst [vmem:[%s1223_s8 + $0x38] sm:$0xff] %v287_v7 }
  0x1f   : > { %v291_v9 = vld [vmem:[%s1218_s7 + $0x240] sm:$0xff]  ;;  %290 = vst [vmem:[%s1223_s8 + $0x40] sm:$0xff] %v289_v8 }
  0x20   : > { %v293_v10 = vld [vmem:[%s1218_s7 + $0x280] sm:$0xff]  ;;  %292 = vst [vmem:[%s1223_s8 + $0x48] sm:$0xff] %v291_v9 }
  0x21   : > { %v295_v11 = vld [vmem:[%s1218_s7 + $0x2c0] sm:$0xff]  ;;  %294 = vst [vmem:[%s1223_s8 + $0x50] sm:$0xff] %v293_v10 }
  0x22   : > { %v297_v12 = vld [vmem:[%s1218_s7 + $0x300] sm:$0xff]  ;;  %296 = vst [vmem:[%s1223_s8 + $0x58] sm:$0xff] %v295_v11 }
  0x23   : > { %v299_v13 = vld [vmem:[%s1218_s7 + $0x340] sm:$0xff]  ;;  %298 = vst [vmem:[%s1223_s8 + $0x60] sm:$0xff] %v297_v12 }
  0x24   : > { %v301_v14 = vld [vmem:[%s1218_s7 + $0x380] sm:$0xff]  ;;  %300 = vst [vmem:[%s1223_s8 + $0x68] sm:$0xff] %v299_v13 }
  0x25   : > { %v303_v15 = vld [vmem:[%s1218_s7 + $0x3c0] sm:$0xff]  ;;  %302 = vst [vmem:[%s1223_s8 + $0x70] sm:$0xff] %v301_v14 }
  0x26   : > { %v305_v16 = vld [vmem:[%s1218_s7 + $0x400] sm:$0xff]  ;;  %304 = vst [vmem:[%s1223_s8 + $0x78] sm:$0xff] %v303_v15 }
  0x27   : > { %v307_v17 = vld [vmem:[%s1218_s7 + $0x440] sm:$0xff]  ;;  %306 = vst [vmem:[%s1223_s8 + $0x80] sm:$0xff] %v305_v16 }
  0x28   : > { %v309_v18 = vld [vmem:[%s1218_s7 + $0x480] sm:$0xff]  ;;  %308 = vst [vmem:[%s1223_s8 + $0x88] sm:$0xff] %v307_v17 }
  0x29   : > { %v311_v19 = vld [vmem:[%s1218_s7 + $0x4c0] sm:$0xff]  ;;  %310 = vst [vmem:[%s1223_s8 + $0x90] sm:$0xff] %v309_v18 }
  0x2a   : > { %v313_v20 = vld [vmem:[%s1218_s7 + $0x500] sm:$0xff]  ;;  %312 = vst [vmem:[%s1223_s8 + $0x98] sm:$0xff] %v311_v19 }
  0x2b   : > { %v315_v21 = vld [vmem:[%s1218_s7 + $0x540] sm:$0xff]  ;;  %314 = vst [vmem:[%s1223_s8 + $0xa0] sm:$0xff] %v313_v20 }
  0x2c   : > { %v317_v22 = vld [vmem:[%s1218_s7 + $0x580] sm:$0xff]  ;;  %316 = vst [vmem:[%s1223_s8 + $0xa8] sm:$0xff] %v315_v21 }
  0x2d   : > { %v319_v23 = vld [vmem:[%s1218_s7 + $0x5c0] sm:$0xff]  ;;  %318 = vst [vmem:[%s1223_s8 + $0xb0] sm:$0xff] %v317_v22 }
  0x2e   : > { %v321_v24 = vld [vmem:[%s1218_s7 + $0x600] sm:$0xff]  ;;  %320 = vst [vmem:[%s1223_s8 + $0xb8] sm:$0xff] %v319_v23 }
  0x2f   : > { %v323_v25 = vld [vmem:[%s1218_s7 + $0x640] sm:$0xff]  ;;  %322 = vst [vmem:[%s1223_s8 + $0xc0] sm:$0xff] %v321_v24 }
  0x30   : > { %v325_v26 = vld [vmem:[%s1218_s7 + $0x680] sm:$0xff]  ;;  %324 = vst [vmem:[%s1223_s8 + $0xc8] sm:$0xff] %v323_v25 }
  0x31   : > { %v327_v27 = vld [vmem:[%s1218_s7 + $0x6c0] sm:$0xff]  ;;  %326 = vst [vmem:[%s1223_s8 + $0xd0] sm:$0xff] %v325_v26 }
  0x32   : > { %v329_v28 = vld [vmem:[%s1218_s7 + $0x700] sm:$0xff]  ;;  %328 = vst [vmem:[%s1223_s8 + $0xd8] sm:$0xff] %v327_v27 }
  0x33   : > { %v331_v29 = vld [vmem:[%s1218_s7 + $0x740] sm:$0xff]  ;;  %330 = vst [vmem:[%s1223_s8 + $0xe0] sm:$0xff] %v329_v28 }
  0x34   : > { %v333_v30 = vld [vmem:[%s1218_s7 + $0x780] sm:$0xff]  ;;  %332 = vst [vmem:[%s1223_s8 + $0xe8] sm:$0xff] %v331_v29 }
  0x35   : > { %v335_v31 = vld [vmem:[%s1218_s7 + $0x7c0] sm:$0xff]  ;;  %334 = vst [vmem:[%s1223_s8 + $0xf0] sm:$0xff] %v333_v30 }
  0x36   : > { %336 = vst [vmem:[%s1223_s8 + $0xf8] sm:$0xff] %v335_v31 }
  0x37 PF: > { %p850_p7 = scmp.ge.s32.totalorder %s1135_s18, 1  ;;  %p350_p8 = scmp.lt.s32.totalorder %s1135_s18, 33 }
  0x39   : > { %p351_p9 = pnand %p850_p7, %p350_p8 }
  0x3a   : > { %s357_s9 = sand.u32 (!%p351_p9), 1, %s1111_s12   ;;  %s852_s10 = sshll.u32 (!%p351_p9), %s1119_s14, 1 }
  0x3b   : > { %354 = sbr.rel (%p351_p9) target bundleno = 263 (0x107), region = 66  ;;  %s851_s11 = sshll.u32 (!%p351_p9), %s357_s9, 8 }
  0x3c   : > { %p401_p10 = scmp.lt.s32.totalorder (!%p351_p9), %s852_s10, 7  ;;  %s854_s21 = sshll.u32 (!%p351_p9), %s1123_s15, 1 }
  0x3d   : > { %p411_p11 = scmp.lt.s32.totalorder (!%p351_p9), %s854_s21, 15  ;;  %s1306_s6 = scalar_lea.vmem (!%p351_p9), [#allocation3], %s851_s11 }
  0x3e   : > { %p858_p12 = scmp.ne.s32.totalorder (!%p351_p9), %s1119_s14, 0 }
  0x40   : > { %s1416_s10 = smov (!%p401_p10, %s852_s10), 7  ;;  %s1418_s21 = smov (!%p411_p11, %s854_s21), 15 }
  0x41   : > { %s853_s22 = sshll.u32 %s1416_s10, 2  ;;  %s855_s27 = sshll.u32 %s1418_s21, 1 }
  0x42   : > { %s1294_s26 = scalar_lea.vmem %s1399_s0, %s853_s22  ;;  %s857_s28 = sshll.u32 %s1418_s21, 2 }
  0x43   : > { %s1299_s4 = scalar_lea.vmem %s1401_s2, %s855_s27  ;;  %s1304_s15 = scalar_lea.vmem %s1402_s3, %s857_s28 }
  0x44   : > { %429 = sbr.rel (%p858_p12) target bundleno = 76 (0x4c), region = 74 }
  0x49   : > { %v1137_v32 = vmov 0.0  }
  0x4a   : > { %430 = vst [vmem:[#allocation2] sm:$0xff] %v1137_v32 }
  0x4b   : > { %431 = vst [vmem:[#allocation2 + $0x8] sm:$0xff] %v1137_v32 }
  0x4c PF: > { %v917_v33 = vld [vmem:[%s1306_s6 + $0x70] sm:$0xf]  ;;  %v1007_v34 = vld [vmem:[%s1306_s6 + $0x74] sm:$0xf0]  ;;  %v1006_v38 = vld [vmem:[%s1306_s6 + $0x74] sm:$0xf] }
  0x4d   : > { %v981_v35 = vld [vmem:[%s1306_s6 + $0xf0] sm:$0xf]  ;;  %v918_v36 = vor.u32 %v1007_v34, %v917_v33  ;;  %v1023_v37 = vld [vmem:[%s1306_s6 + $0xf4] sm:$0xf0]  ;;  %v919_v39 = vld [vmem:[%s1306_s6 + $0x78] sm:$0xf0] }
  0x4e   : > { %v982_v40 = vor.u32 %v1023_v37, %v981_v35  ;;  %v922_v41 = vor.u32 %v1006_v38, %v919_v39  ;;  %v1022_v42 = vld [vmem:[%s1306_s6 + $0xf4] sm:$0xf]  ;;  %v983_v43 = vld [vmem:[%s1306_s6 + $0xf8] sm:$0xf0]  ;;  %v909_v44 = vld [vmem:[%s1306_s6 + $0x60] sm:$0xf] }
  0x4f   : > { %634 = vmatpush.bf16.msra.mxu0 %v918_v36  ;;  %v986_v45 = vor.u32 %v1022_v42, %v983_v43  ;;  %v1005_v46 = vld [vmem:[%s1306_s6 + $0x64] sm:$0xf0]  ;;  %v973_v47 = vld [vmem:[%s1306_s6 + $0xe0] sm:$0xf]  ;;  %v1004_v51 = vld [vmem:[%s1306_s6 + $0x64] sm:$0xf] }
  0x50   : > { %v1021_v48 = vld [vmem:[%s1306_s6 + $0xe4] sm:$0xf0]  ;;  %647 = vmatpush.bf16.msra.mxu1 %v982_v40  ;;  %660 = vmatpush.bf16.msra.mxu2 %v922_v41  ;;  %v910_v49 = vor.u32 %v1005_v46, %v909_v44  ;;  %v911_v52 = vld [vmem:[%s1306_s6 + $0x68] sm:$0xf0]  ;;  %v1020_v53 = vld [vmem:[%s1306_s6 + $0xe4] sm:$0xf] }
  0x51   : > { %v974_v50 = vor.u32 %v1021_v48, %v973_v47  ;;  %673 = vmatpush.bf16.msra.mxu3 %v986_v45  ;;  %v914_v54 = vor.u32 %v1004_v51, %v911_v52  ;;  %v975_v55 = vld [vmem:[%s1306_s6 + $0xe8] sm:$0xf0]  ;;  %v901_v56 = vld [vmem:[%s1306_s6 + $0x50] sm:$0xf]  ;;  %v1003_v57 = vld [vmem:[%s1306_s6 + $0x54] sm:$0xf0] }
  0x52   : > { %v978_v58 = vor.u32 %v1020_v53, %v975_v55  ;;  %v965_v59 = vld [vmem:[%s1306_s6 + $0xd0] sm:$0xf]  ;;  %v1019_v60 = vld [vmem:[%s1306_s6 + $0xd4] sm:$0xf0]  ;;  %v1002_v61 = vld [vmem:[%s1306_s6 + $0x54] sm:$0xf]  ;;  %v902_v62 = vor.u32 %v1003_v57, %v901_v56 }
  0x53   : > { %635 = vmatpush.bf16.msra.mxu0 %v910_v49  ;;  %v903_v63 = vld [vmem:[%s1306_s6 + $0x58] sm:$0xf0]  ;;  %v1018_v0 = vld [vmem:[%s1306_s6 + $0xd4] sm:$0xf]  ;;  %v966_v2 = vor.u32 %v1019_v60, %v965_v59  ;;  %v893_v4 = vld [vmem:[%s1306_s6 + $0x40] sm:$0xf] }
  0x54   : > { %v967_v1 = vld [vmem:[%s1306_s6 + $0xd8] sm:$0xf0]  ;;  %648 = vmatpush.bf16.msra.mxu1 %v974_v50  ;;  %661 = vmatpush.bf16.msra.mxu2 %v914_v54  ;;  %v906_v3 = vor.u32 %v1002_v61, %v903_v63  ;;  %v1001_v5 = vld [vmem:[%s1306_s6 + $0x44] sm:$0xf0]  ;;  %v957_v6 = vld [vmem:[%s1306_s6 + $0xc0] sm:$0xf] }
  0x55   : > { %674 = vmatpush.bf16.msra.mxu3 %v978_v58  ;;  %v970_v7 = vor.u32 %v1018_v0, %v967_v1  ;;  %v1017_v8 = vld [vmem:[%s1306_s6 + $0xc4] sm:$0xf0]  ;;  %v1000_v9 = vld [vmem:[%s1306_s6 + $0x44] sm:$0xf]  ;;  %v895_v10 = vld [vmem:[%s1306_s6 + $0x48] sm:$0xf0]  ;;  %v894_v13 = vor.u32 %v1001_v5, %v893_v4 }
  0x56   : > { %v1016_v11 = vld [vmem:[%s1306_s6 + $0xc4] sm:$0xf]  ;;  %v959_v12 = vld [vmem:[%s1306_s6 + $0xc8] sm:$0xf0]  ;;  %v958_v14 = vor.u32 %v1017_v8, %v957_v6  ;;  %v898_v15 = vor.u32 %v1000_v9, %v895_v10  ;;  %v885_v16 = vld [vmem:[%s1306_s6 + $0x30] sm:$0xf] }
  0x57   : > { %636 = vmatpush.bf16.msra.mxu0 %v902_v62  ;;  %v999_v17 = vld [vmem:[%s1306_s6 + $0x34] sm:$0xf0]  ;;  %v949_v18 = vld [vmem:[%s1306_s6 + $0xb0] sm:$0xf]  ;;  %v962_v19 = vor.u32 %v1016_v11, %v959_v12  ;;  %v998_v21 = vld [vmem:[%s1306_s6 + $0x34] sm:$0xf] }
  0x58   : > { %649 = vmatpush.bf16.msra.mxu1 %v966_v2  ;;  %662 = vmatpush.bf16.msra.mxu2 %v906_v3  ;;  %v1015_v20 = vld [vmem:[%s1306_s6 + $0xb4] sm:$0xf0]  ;;  %v887_v22 = vld [vmem:[%s1306_s6 + $0x38] sm:$0xf0]  ;;  %v1014_v23 = vld [vmem:[%s1306_s6 + $0xb4] sm:$0xf]  ;;  %v886_v25 = vor.u32 %v999_v17, %v885_v16 }
  0x59   : > { %675 = vmatpush.bf16.msra.mxu3 %v970_v7  ;;  %v951_v24 = vld [vmem:[%s1306_s6 + $0xb8] sm:$0xf0]  ;;  %v950_v26 = vor.u32 %v1015_v20, %v949_v18  ;;  %v890_v27 = vor.u32 %v998_v21, %v887_v22  ;;  %v877_v28 = vld [vmem:[%s1306_s6 + $0x20] sm:$0xf]  ;;  %v997_v29 = vld [vmem:[%s1306_s6 + $0x24] sm:$0xf0] }
  0x5a   : > { %v941_v30 = vld [vmem:[%s1306_s6 + $0xa0] sm:$0xf]  ;;  %v954_v31 = vor.u32 %v1014_v23, %v951_v24  ;;  %v1013_v32 = vld [vmem:[%s1306_s6 + $0xa4] sm:$0xf0]  ;;  %v996_v33 = vld [vmem:[%s1306_s6 + $0x24] sm:$0xf]  ;;  %v878_v37 = vor.u32 %v997_v29, %v877_v28 }
  0x5b   : > { %637 = vmatpush.bf16.msra.mxu0 %v894_v13  ;;  %v879_v34 = vld [vmem:[%s1306_s6 + $0x28] sm:$0xf0]  ;;  %v1012_v35 = vld [vmem:[%s1306_s6 + $0xa4] sm:$0xf]  ;;  %v942_v38 = vor.u32 %v1013_v32, %v941_v30  ;;  %v869_v40 = vld [vmem:[%s1306_s6 + $0x10] sm:$0xf] }
  0x5c   : > { %650 = vmatpush.bf16.msra.mxu1 %v958_v14  ;;  %663 = vmatpush.bf16.msra.mxu2 %v898_v15  ;;  %v943_v36 = vld [vmem:[%s1306_s6 + $0xa8] sm:$0xf0]  ;;  %v882_v39 = vor.u32 %v996_v33, %v879_v34  ;;  %v995_v41 = vld [vmem:[%s1306_s6 + $0x14] sm:$0xf0]  ;;  %v933_v42 = vld [vmem:[%s1306_s6 + $0x90] sm:$0xf] }
  0x5d   : > { %676 = vmatpush.bf16.msra.mxu3 %v962_v19  ;;  %v946_v43 = vor.u32 %v1012_v35, %v943_v36  ;;  %v1011_v44 = vld [vmem:[%s1306_s6 + $0x94] sm:$0xf0]  ;;  %v994_v45 = vld [vmem:[%s1306_s6 + $0x14] sm:$0xf]  ;;  %v871_v46 = vld [vmem:[%s1306_s6 + $0x18] sm:$0xf0]  ;;  %v870_v49 = vor.u32 %v995_v41, %v869_v40 }
  0x5e   : > { %v1010_v47 = vld [vmem:[%s1306_s6 + $0x94] sm:$0xf]  ;;  %v935_v48 = vld [vmem:[%s1306_s6 + $0x98] sm:$0xf0]  ;;  %v934_v51 = vor.u32 %v1011_v44, %v933_v42  ;;  %v874_v52 = vor.u32 %v994_v45, %v871_v46  ;;  %v861_v53 = vld [vmem:[%s1306_s6] sm:$0xf] }
  0x5f   : > { %638 = vmatpush.bf16.msra.mxu0 %v886_v25  ;;  %v434_v50 = vld [vmem:[%s1294_s26] sm:$0xff]  ;;  %v993_v54 = vld [vmem:[%s1306_s6 + $0x4] sm:$0xf0]  ;;  %v925_v55 = vld [vmem:[%s1306_s6 + $0x80] sm:$0xf]  ;;  %v938_v56 = vor.u32 %v1010_v47, %v935_v48  ;;  %p987_p13 = scmp.ne.s32.totalorder %s1119_s14, 3 }
  0x60   : > { %651 = vmatpush.bf16.msra.mxu1 %v950_v26  ;;  %664 = vmatpush.bf16.msra.mxu2 %v890_v27  ;;  %v1009_v57 = vld [vmem:[%s1306_s6 + $0x84] sm:$0xf0]  ;;  %v992_v58 = vld [vmem:[%s1306_s6 + $0x4] sm:$0xf]  ;;  %v863_v59 = vld [vmem:[%s1306_s6 + $0x8] sm:$0xf0]  ;;  %v468_v62 = vunpack.c.l.b16 %v434_v50  ;;  %v862_v63 = vor.u32 %v993_v54, %v861_v53  ;;  %v469_v0 = vunpack.c.h.b16 %v434_v50 }
  0x61   : > { %677 = vmatpush.bf16.msra.mxu3 %v954_v31  ;;  %v1008_v60 = vld [vmem:[%s1306_s6 + $0x84] sm:$0xf]  ;;  %v927_v61 = vld [vmem:[%s1306_s6 + $0x88] sm:$0xf0]  ;;  %v926_v1 = vor.u32 %v1009_v57, %v925_v55  ;;  %v866_v2 = vor.u32 %v992_v58, %v863_v59  ;;  %v432_v7 = vld [vmem:[#allocation2] sm:$0xff] }
  0x62   : > { %v930_v3 = vor.u32 %v1008_v60, %v927_v61  ;;  %v470_v4 = vpack.c.b16 %v468_v62, %v468_v62  ;;  %v471_v5 = vpack.c.b16 %v469_v0, %v469_v0  ;;  %v433_v12 = vld [vmem:[#allocation2 + $0x8] sm:$0xff] }
  0x63   : > { %639 = vmatpush.bf16.msra.mxu0 %v878_v37 }
  0x64   : > { %652 = vmatpush.bf16.msra.mxu1 %v942_v38  ;;  %665 = vmatpush.bf16.msra.mxu2 %v882_v39 }
  0x65   : > { %678 = vmatpush.bf16.msra.mxu3 %v946_v43 }
  0x67   : > { %640 = vmatpush.bf16.msra.mxu0 %v870_v49 }
  0x68   : > { %653 = vmatpush.bf16.msra.mxu1 %v934_v51  ;;  %666 = vmatpush.bf16.msra.mxu2 %v874_v52 }
  0x69   : > { %679 = vmatpush.bf16.msra.mxu3 %v938_v56 }
  0x6b   : > { %641 = vmatpush.bf16.msra.mxu0 %v862_v63 }
  0x6c   : > { %654 = vmatpush.bf16.msra.mxu1 %v926_v1  ;;  %667 = vmatpush.bf16.msra.mxu2 %v866_v2 }
  0x6d   : > { %680 = vmatpush.bf16.msra.mxu3 %v930_v3 }
  0x6e   : > { %642 = vmatmul.bf16.vlgmr.msra.gmra.mxu0 %v470_v4 }
  0x6f   : > { %655 = vmatmul.bf16.vlgmr.msra.gmra.mxu1 %v471_v5  ;;  %668 = vmatmul.bf16.vlgmr.msra.gmra.mxu2 %v470_v4 }
  0x70   : > { %681 = vmatmul.bf16.vlgmr.msra.gmra.mxu3 %v471_v5 }
  0xeb   : > { %v643_v6 = vpop.f32.mrf.mxu0 }
  0xec   : > { %v656_v8 = vpop.f32.mrf.mxu1 }
  0xed   : > { %v657_v9 = vadd.f32 %v656_v8, %v643_v6 }
  0xef   : > { %v686_v10 = vadd.f32 %v657_v9, %v432_v7 }
  0xf1   : > { %688 = vst [vmem:[#allocation2] sm:$0xff] %v686_v10 }
  0xf2   : > { %v669_v11 = vpop.f32.mrf.mxu2 }
  0xf3   : > { %v682_v13 = vpop.f32.mrf.mxu3  ;;  %v645_v14 = vpop.f32.mrf.mxu0 }
  0xf4   : > { %v683_v15 = vadd.f32 %v682_v13, %v669_v11  ;;  %v658_v16 = vpop.f32.mrf.mxu1 }
  0xf6   : > { %v687_v17 = vadd.f32 %v683_v15, %v433_v12 }
  0xf7   : > { %693 = sbr.rel (%p987_p13) target bundleno = 263 (0x107), region = 78 }
  0xf8   : > { %689 = vst [vmem:[#allocation2 + $0x8] sm:$0xff] %v687_v17 }
  0xfa   : > { %v671_v18 = vpop.f32.mrf.mxu2 }
  0xfb   : > { %v684_v19 = vpop.f32.mrf.mxu3 }
  0xfc   : > { %v694_v20 = vld [vmem:[#allocation2] sm:$0xff] }
  0xfd   : > { %v696_v22 = vld [vmem:[%s1299_s4] ss:$2 sm:$0x3]  ;;  %v988_v25 = vld [vmem:[%s1299_s4 + $0x1] ss:$2 sm:$0x3] }
  0xfe   : > { %v698_v23 = vperm.slane %v696_v22, 0  ;;  %v699_v24 = vperm.slane %v696_v22, 1  ;;  %v707_v26 = vperm.slane %v988_v25, 0  ;;  %v708_v27 = vperm.slane %v988_v25, 1 }
  0xff   : > { %v695_v21 = vld [vmem:[#allocation2 + $0x8] sm:$0xff] }
 0x100   : > { %v702_v28 = vmul.f32 %v698_v23, %v694_v20  ;;  %v703_v29 = vmul.f32 %v699_v24, %v695_v21 }
 0x102   : > { %v711_v30 = vadd.f32 %v707_v26, %v702_v28  ;;  %v712_v31 = vadd.f32 %v708_v27, %v703_v29 }
 0x104   : > { %v713_v32 = vpack.c.bf16 %v712_v31, %v711_v30 }
 0x106   : > { %714 = vst [vmem:[%s1304_s15] sm:$0xff] %v713_v32 }
 0x107 PF: > { %s13_s18 = sadd.s32 1, %s1135_s18   ;;  %s1403_s12 = smov %s1115_s13 }
 0x108   : > { %p10_p0 = scmp.ge.s32.totalorder %s13_s18, 34   ;;  %s1404_s13 = smov %s1209_s25 }
 0x109   : > { %s1405_s14 = smov %s1127_s16  ;;  %s1406_s15 = smov %s1131_s17 }
 0x10a   : > { %s1407_s16 = smov %s1410_s19  ;;  %s1408_s17 = smov %s1414_s20 }
 0x10b   :  { %12 = sbr.rel (!%p10_p0) target bundleno = 4 (0x4), region = 120 }

// kernel: _lambda_.35
= control target key start
LH: loop header
LB: loop body
LE: loop exit
PB: predicated region body
PF: predicated region fallthrough
CT: control target
= control target key end

     0   :  { %s718_s12 = smov 0   ;;  %s720_s13 = smov 0   ;;  %s787_s0 = inlined_call_operand.vmem [shape: bf16[8,2048], index: 0, kind: input, shape index: {}]   ;;  %s788_s1 = inlined_call_operand.vmem [shape: bf16[2048,128], index: 1, kind: input, shape index: {}]   ;;  %s789_s2 = inlined_call_operand.vmem [shape: f32[2,128], index: 2, kind: input, shape index: {}]   ;;  %s790_s3 = inlined_call_operand.vmem [shape: f32[8,128], index: 3, kind: output, shape index: {}]  }
   0x1   :  { %s722_s14 = smov 0  }
   0x2 LB: > { %s25_s15 = sadd.s32 1, %s691_s13  ;;  %p556_p0 = scmp.ge.s32.totalorder %s695_s14, 1  ;;  %s695_s14 = sphi %s722_s14, %s13_s14   ;;  %s691_s13 = sphi %s720_s13, %s792_s13   ;;  %s687_s12 = sphi %s718_s12, %s791_s12  }
   0x3   : > { %p26_p1 = scmp.ge.s32.totalorder %s25_s15, 8  ;;  %p190_p2 = scmp.lt.s32.totalorder %s695_s14, 9 }
   0x5   : > { %s794_s15 = smov (%p26_p1, %s25_s15), 0  ;;  %p191_p3 = pnand %p556_p0, %p190_p2 }
   0x6   : > { %s557_s16 = sshll.u32 (!%p191_p3), %s687_s12, 1  ;;  %s559_s17 = sshll.u32 (!%p191_p3), %s687_s12, 5 }
   0x7   : > { %194 = sbr.rel (%p191_p3) target bundleno = 198 (0xc6), region = 32  ;;  %p235_p4 = scmp.lt.s32.totalorder (!%p191_p3), %s557_s16, 15 }
   0x8   : > { %p243_p5 = scmp.lt.s32.totalorder (!%p191_p3), %s559_s17, 255  ;;  %p561_p6 = scmp.ne.s32.totalorder (!%p191_p3), %s687_s12, 0 }
   0xc   : > { %s796_s16 = smov (!%p235_p4, %s557_s16), 15  ;;  %s798_s17 = smov (!%p243_p5, %s559_s17), 255 }
   0xd   : > { %s558_s18 = sshll.u32 %s796_s16, 2  ;;  %s560_s22 = sshll.u32 %s798_s17, 2 }
   0xe   : > { %s743_s21 = scalar_lea.vmem %s787_s0, %s558_s18  ;;  %s748_s25 = scalar_lea.vmem %s788_s1, %s560_s22 }
   0xf   : > { %265 = sbr.rel (%p561_p6) target bundleno = 22 (0x16), region = 36 }
  0x14   : > { %v697_v0 = vmov 0.0  }
  0x15   : > { %266 = vst [vmem:[#allocation2] sm:$0xff] %v697_v0 }
  0x16 PF: > { %v637_v1 = vld [vmem:[%s748_s25 + $0x38] sm:$0xff]  ;;  %v636_v3 = vld [vmem:[%s748_s25 + $0x30] sm:$0xff]  ;;  %v635_v5 = vld [vmem:[%s748_s25 + $0x28] sm:$0xff]  ;;  %p626_p7 = scmp.ne.s32.totalorder %s687_s12, 7 }
  0x17   : > { %v645_v2 = vld [vmem:[%s748_s25 + $0x78] sm:$0xff]  ;;  %404 = vmatpush.bf16.msra.mxu0 %v637_v1  ;;  %v644_v4 = vld [vmem:[%s748_s25 + $0x70] sm:$0xff]  ;;  %v643_v6 = vld [vmem:[%s748_s25 + $0x68] sm:$0xff] }
  0x18   : > { %417 = vmatpush.bf16.msra.mxu1 %v645_v2  ;;  %v634_v7 = vld [vmem:[%s748_s25 + $0x20] sm:$0xff]  ;;  %v633_v9 = vld [vmem:[%s748_s25 + $0x18] sm:$0xff]  ;;  %v632_v11 = vld [vmem:[%s748_s25 + $0x10] sm:$0xff] }
  0x19   : > { %v642_v8 = vld [vmem:[%s748_s25 + $0x60] sm:$0xff]  ;;  %v641_v10 = vld [vmem:[%s748_s25 + $0x58] sm:$0xff]  ;;  %v640_v12 = vld [vmem:[%s748_s25 + $0x50] sm:$0xff] }
  0x1a   : > { %v631_v13 = vld [vmem:[%s748_s25 + $0x8] sm:$0xff]  ;;  %v268_v15 = vld [vmem:[%s743_s21] sm:$0xff] }
  0x1b   : > { %405 = vmatpush.bf16.msra.mxu0 %v636_v3  ;;  %v639_v14 = vld [vmem:[%s748_s25 + $0x48] sm:$0xff]  ;;  %v302_v16 = vunpack.c.l.b16 %v268_v15  ;;  %v303_v17 = vunpack.c.h.b16 %v268_v15  ;;  %v630_v18 = vld [vmem:[%s748_s25] sm:$0xff] }
  0x1c   : > { %418 = vmatpush.bf16.msra.mxu1 %v644_v4  ;;  %v638_v19 = vld [vmem:[%s748_s25 + $0x40] sm:$0xff] }
  0x1d   : > { %v304_v20 = vpack.c.b16 %v302_v16, %v302_v16  ;;  %v305_v21 = vpack.c.b16 %v303_v17, %v303_v17  ;;  %v267_v23 = vld [vmem:[#allocation2] sm:$0xff] }
  0x1f   : > { %406 = vmatpush.bf16.msra.mxu0 %v635_v5 }
  0x20   : > { %419 = vmatpush.bf16.msra.mxu1 %v643_v6 }
  0x23   : > { %407 = vmatpush.bf16.msra.mxu0 %v634_v7 }
  0x24   : > { %420 = vmatpush.bf16.msra.mxu1 %v642_v8 }
  0x27   : > { %408 = vmatpush.bf16.msra.mxu0 %v633_v9 }
  0x28   : > { %421 = vmatpush.bf16.msra.mxu1 %v641_v10 }
  0x2b   : > { %409 = vmatpush.bf16.msra.mxu0 %v632_v11 }
  0x2c   : > { %422 = vmatpush.bf16.msra.mxu1 %v640_v12 }
  0x2f   : > { %410 = vmatpush.bf16.msra.mxu0 %v631_v13 }
  0x30   : > { %423 = vmatpush.bf16.msra.mxu1 %v639_v14 }
  0x33   : > { %411 = vmatpush.bf16.msra.mxu0 %v630_v18 }
  0x34   : > { %424 = vmatpush.bf16.msra.mxu1 %v638_v19 }
  0x36   : > { %412 = vmatmul.bf16.vlgmr.msra.gmra.mxu0 %v304_v20 }
  0x37   : > { %425 = vmatmul.bf16.vlgmr.msra.gmra.mxu1 %v305_v21 }
  0xb3   : > { %v413_v22 = vpop.f32.mrf.mxu0 }
  0xb4   : > { %v426_v24 = vpop.f32.mrf.mxu1 }
  0xb5   : > { %v427_v25 = vadd.f32 %v426_v24, %v413_v22 }
  0xb7   : > { %v430_v26 = vadd.f32 %v427_v25, %v267_v23 }
  0xb8   : > { %435 = sbr.rel (%p626_p7) target bundleno = 198 (0xc6), region = 40 }
  0xb9   : > { %431 = vst [vmem:[#allocation2] sm:$0xff] %v430_v26 }
  0xbb   : > { %v415_v27 = vpop.f32.mrf.mxu0 }
  0xbc   : > { %v428_v28 = vpop.f32.mrf.mxu1 }
  0xbd   : > { %v671_v30 = vld [vmem:[%s789_s2] ss:$0 sm:$0xff]  ;;  %v672_v31 = vld [vmem:[%s789_s2 + $0x1] ss:$0 sm:$0xff] }
  0xc0   : > { %v436_v29 = vld [vmem:[#allocation2] sm:$0xff] }
  0xc1   : > { %v439_v32 = vmul.f32 %v671_v30, %v436_v29 }
  0xc3   : > { %v442_v33 = vadd.f32 %v672_v31, %v439_v32 }
  0xc5   : > { %443 = vst [vmem:[%s790_s3] sm:$0xff] %v442_v33 }
  0xc6 PF: > { %s13_s14 = sadd.s32 1, %s695_s14   ;;  %s791_s12 = smov %s691_s13 }
  0xc7   : > { %p10_p8 = scmp.ge.s32.totalorder %s13_s14, 10   ;;  %s792_s13 = smov %s794_s15 }
  0xc9   :  { %12 = sbr.rel (!%p10_p8) target bundleno = 2 (0x2), region = 76 }

</bundles_post_ra>
